<compile_context>
chip_gen: v6e
topology: v6e:2x2x1
jax: 0.10.0
libtpu: 0.0.40
codegen_flags: <defaults>
</compile_context>

<pallas_src>
import jax
import jax.numpy as jnp
from jax.experimental import pallas as pl
from jax.experimental.pallas import tpu as pltpu

NEG_SLOPE = 0.01       # F.leaky_relu default
_BLOCKDIAG_MAX = 128   # pack grouped conv block-diagonally if P*cin and P*cout fit one panel


def _leaky_relu(x):
    return jnp.where(x >= 0, x, NEG_SLOPE * x)


def _make_kernel(num_filters, num_parts):
    P = num_parts

    def kernel(*refs):
        # refs: x, wp0,bp0, wp1,bp1, wpo,bpo, (wf_i,bf_i)*num_filters, out_mean, out_parts
        idx = 0
        x_ref = refs[idx]; idx += 1
        wp0, bp0 = refs[idx], refs[idx + 1]; idx += 2
        wp1, bp1 = refs[idx], refs[idx + 1]; idx += 2
        wpo, bpo = refs[idx], refs[idx + 1]; idx += 2
        filt = []
        for _ in range(num_filters):
            filt.append((refs[idx], refs[idx + 1])); idx += 2
        out_mean_ref, out_parts_ref = refs[idx], refs[idx + 1]

        x = x_ref[...].astype(jnp.bfloat16)                 # (C0, tn), points on lanes

        # ---- parts branch: fc_parts_0 -> leaky -> fc_parts_1 -> leaky -> fc_parts_out
        h = jnp.dot(wp0[...], x, preferred_element_type=jnp.float32) + bp0[...]
        h = _leaky_relu(h).astype(jnp.bfloat16)
        h = jnp.dot(wp1[...], h, preferred_element_type=jnp.float32) + bp1[...]
        h = _leaky_relu(h).astype(jnp.bfloat16)
        out_parts = jnp.dot(wpo[...], h, preferred_element_type=jnp.float32) + bpo[...]  # (P, tn)

        # softmax over the part axis (PyTorch dim=1 == sublane axis here)
        m = jnp.max(out_parts, axis=0, keepdims=True)
        e = jnp.exp(out_parts - m)
        denom = jnp.sum(e, axis=0, keepdims=True)
        parts_softmax = e * pl.reciprocal(denom, approx=True)

        # ---- main MLP branch.  Small-P grouped layers arrive pre-packed as block-diagonal
        # 2-D weights, so every layer is a single MXU dot (no reshapes, no batched einsum).
        # 3-D weights only appear in the large-P fallback path.
        y = x
        for i, (w_ref, b_ref) in enumerate(filt):
            w = w_ref[...]
            if w.ndim == 2:
                y = jnp.dot(w, y, preferred_element_type=jnp.float32) + b_ref[...]
            else:
                Pg, cout, cin = w.shape
                pieces = [
                    jnp.dot(w[g], y[g * cin:(g + 1) * cin, :],
                            preferred_element_type=jnp.float32)
                    for g in range(Pg)
                ]
                y = jnp.concatenate(pieces, axis=0) + b_ref[...]
            if i != num_filters - 1:
                y = _leaky_relu(y).astype(jnp.bfloat16)
        # y: (P, tn) f32, because filter_channels[-1] == 1

        y = y * parts_softmax
        out_mean_ref[...] = jnp.sum(y, axis=0, keepdims=True) * (1.0 / P)  # mean over parts
        out_parts_ref[...] = out_parts

    return kernel


def _block_diag(w3):
    """(P, cout, cin) grouped-conv weights -> (P*cout, P*cin) block-diagonal matrix."""
    Pg, cout, cin = w3.shape
    bd = jnp.zeros((Pg * cout, Pg * cin), w3.dtype)
    for g in range(Pg):
        bd = bd.at[g * cout:(g + 1) * cout, g * cin:(g + 1) * cin].set(w3[g])
    return bd


def mlp_ptf_forward(feature, params, *, num_parts, tile_n=1024):
    """feature: [B, C0, N] (PyTorch layout). Returns (y [B,1,N], out_parts [B,P,N])."""
    B, C0, N = feature.shape
    P = num_parts

    # Point-tile selection: as large as fits (MXU weight-push + per-step-overhead
    # amortization; v5e should stay <= 1024, v7x <= ~2048), but keep >= 2 grid steps so the
    # v7x megacore doesn't leave a TensorCore idle.
    tile_n = min(tile_n, N)
    if B == 1 and tile_n == N and N % 256 == 0:
        tile_n = N // 2
    assert N % tile_n == 0 and tile_n % 128 == 0, "N must be a multiple of the point tile"

    # The softmax-weighted mean requires filter_channels[-1] == 1 (final width == num_parts).
    last_w = params["filters"][-1][0]
    final_ch = last_w.shape[0] * last_w.shape[1] if last_w.ndim == 3 else last_w.shape[0]
    assert final_ch == P, "filter_channels[-1] must be 1 so y broadcasts with parts_softmax"

    x = feature.astype(jnp.float32)

    # bf16 matmul weights (halves weight DMA, native MXU rate); biases stay f32.
    wlist = [params["wp0"].astype(jnp.bfloat16), params["bp0"].astype(jnp.float32),
             params["wp1"].astype(jnp.bfloat16), params["bp1"].astype(jnp.float32),
             params["wpo"].astype(jnp.bfloat16), params["bpo"].astype(jnp.float32)]
    for (w, b) in params["filters"]:
        if (w.ndim == 3 and w.shape[0] * w.shape[1] <= _BLOCKDIAG_MAX
                and w.shape[0] * w.shape[2] <= _BLOCKDIAG_MAX):
            # Small-P grouped conv: one block-diagonal MXU panel per layer instead of P tiny
            # padded per-group panels.
            w = _block_diag(w)
        wlist += [w.astype(jnp.bfloat16), b.astype(jnp.float32)]
    num_filters = len(params["filters"])

    def full_spec(arr):
        nd = arr.ndim
        return pl.BlockSpec(arr.shape, lambda b, n, _nd=nd: (0,) * _nd)

    in_specs = [pl.BlockSpec((None, C0, tile_n), lambda b, n: (b, 0, n))]
    in_specs += [full_spec(a) for a in wlist]

    out_specs = (
        pl.BlockSpec((None, 1, tile_n), lambda b, n: (b, 0, n)),   # lane-dense
        pl.BlockSpec((None, P, tile_n), lambda b, n: (b, 0, n)),   # lane-dense
    )
    out_shape = (
        jax.ShapeDtypeStruct((B, 1, N), jnp.float32),
        jax.ShapeDtypeStruct((B, P, N), jnp.float32),
    )

    kernel = _make_kernel(num_filters, P)

    # VMEM budget: the (512 x tile_n) f32+bf16 parts-branch intermediates dominate (~6 B/elem);
    # add headroom for double-buffered I/O tiles + resident weights, never exceed v7x's 64 MiB.
    vmem_limit_bytes = int(min(64 * 1024 * 1024,
                               max(32 * 1024 * 1024,
                                   16 * 1024 * 1024 + 8 * 1024 * tile_n)))

    y_mean, out_parts = pl.pallas_call(
        kernel,
        out_shape=out_shape,
        grid_spec=pltpu.PrefetchScalarGridSpec(
            num_scalar_prefetch=0,
            grid=(B, N // tile_n),
            in_specs=in_specs,
            out_specs=out_specs,
        ),
        compiler_params=pltpu.CompilerParams(
            dimension_semantics=("parallel", "parallel"),
            vmem_limit_bytes=vmem_limit_bytes),
    )(x, *wlist)

    return y_mean, out_parts     # already [B,1,N] / [B,P,N]; no wrapper transposes


def init_params(key, filter_channels, num_parts):
    """Deterministic synthetic parameters, mirroring MLP_PTF.__init__ shapes.

    Weights are stored transposed as (out, in) [dense] or (P, out, in) [grouped, group-major];
    biases as (out, 1) so they broadcast over the lane (point) axis.
    """
    C0 = filter_channels[0]
    keys = iter(jax.random.split(key, 128))

    def dense(k, cout, cin):
        return jax.random.normal(k, (cout, cin), jnp.float32) / jnp.sqrt(cin)

    def bias(k, cout):
        return jax.random.normal(k, (cout, 1), jnp.float32) * 0.01

    params = {
        # fc_parts_0: Conv1d(C0, 512, 1)
        "wp0": dense(next(keys), 512, C0), "bp0": bias(next(keys), 512),
        # fc_parts_1: Conv1d(512, 256, 1)
        "wp1": dense(next(keys), 256, 512), "bp1": bias(next(keys), 256),
        # fc_parts_out: Conv1d(256, num_parts, 1)
        "wpo": dense(next(keys), num_parts, 256), "bpo": bias(next(keys), num_parts),
        "filters": [],
    }

    # TODO(synk): res_layers (grouped conv over cat([y, feature], 1)) not implemented;
    # this build mirrors the default res_layers=[] (and last_op=None; phi is never returned).
    for l in range(len(filter_channels) - 1):
        cin, cout = filter_channels[l], filter_channels[l + 1]
        if l == 0:
            w = dense(next(keys), cout * num_parts, cin)                 # dense Conv1d(C0, C1*P, 1)
        else:
            # grouped Conv1d(cin*P, cout*P, 1, groups=P) -> per-group (P, cout, cin) weights
            w = jnp.stack([dense(next(keys), cout, cin) for _ in range(num_parts)])
        b = bias(next(keys), cout * num_parts)
        params["filters"].append((w, b))
    return params


def mlp_ptf_reference(feature, params, num_parts):
    """Pure-JAX f32 reference (same math as the PyTorch module, no Pallas)."""
    x = feature.astype(jnp.float32)                       # [B, C0, N]

    def conv(w, b, inp):                                  # w (out,in), b (out,1)
        return jnp.einsum('oi,bin->bon', w, inp) + b[None]

    h = _leaky_relu(conv(params["wp0"], params["bp0"], x))
    h = _leaky_relu(conv(params["wp1"], params["bp1"], h))
    out_parts = conv(params["wpo"], params["bpo"], h)     # [B, P, N]
    sm = jax.nn.softmax(out_parts, axis=1)

    y = x
    nf = len(params["filters"])
    for i, (w, b) in enumerate(params["filters"]):
        if w.ndim == 2:
            y = conv(w, b, y)
        else:
            P, cout, cin = w.shape
            Bz, _, Nz = y.shape
            y = jnp.einsum('gok,bgkn->bgon', w, y.reshape(Bz, P, cin, Nz))
            y = y.reshape(Bz, P * cout, Nz) + b[None]
        if i != nf - 1:
            y = _leaky_relu(y)
    y = (y * sm).mean(axis=1, keepdims=True)              # [B, 1, N]
    return y, out_parts


if __name__ == "__main__":
    # filter_channels[-1] must be 1 so y ([B, P, N]) broadcasts with parts_softmax, as in the
    # original module's usage.
    filter_channels = [16, 32, 16, 8, 1]
    num_parts = 2
    B, C0, N = 2, filter_channels[0], 512

    key = jax.random.PRNGKey(0)
    pkey, xkey = jax.random.split(key)
    params = init_params(pkey, filter_channels, num_parts)
    feature = jax.random.normal(xkey, (B, C0, N), jnp.float32)   # [B, C_in, N]

    y, out_parts = mlp_ptf_forward(feature, params, num_parts=num_parts)
    jax.block_until_ready((y, out_parts))

    y_ref, op_ref = mlp_ptf_reference(feature, params, num_parts)
    assert y.shape == (B, 1, N) and out_parts.shape == (B, num_parts, N)
    # bf16 matmul operands (f32 accumulation) -> compare against the f32 reference with
    # correspondingly loosened tolerances.
    assert jnp.allclose(out_parts, op_ref, atol=5e-2, rtol=5e-2), \
        float(jnp.max(jnp.abs(out_parts - op_ref)))
    assert jnp.allclose(y, y_ref, atol=5e-2, rtol=5e-2), \
        float(jnp.max(jnp.abs(y - y_ref)))

    print("KERNEL_OK")
</pallas_src>

<mosaic_0001>
module attributes {stable_mosaic.version = 11 : i64} {
  func.func @kernel(%arg0: i32, %arg1: i32, %arg2: memref<1x16x512xf32, #tpu.memory_space<vmem>>, %arg3: memref<512x16xbf16, #tpu.memory_space<vmem>>, %arg4: memref<512x1xf32, #tpu.memory_space<vmem>>, %arg5: memref<256x512xbf16, #tpu.memory_space<vmem>>, %arg6: memref<256x1xf32, #tpu.memory_space<vmem>>, %arg7: memref<2x256xbf16, #tpu.memory_space<vmem>>, %arg8: memref<2x1xf32, #tpu.memory_space<vmem>>, %arg9: memref<64x16xbf16, #tpu.memory_space<vmem>>, %arg10: memref<64x1xf32, #tpu.memory_space<vmem>>, %arg11: memref<32x64xbf16, #tpu.memory_space<vmem>>, %arg12: memref<32x1xf32, #tpu.memory_space<vmem>>, %arg13: memref<16x32xbf16, #tpu.memory_space<vmem>>, %arg14: memref<16x1xf32, #tpu.memory_space<vmem>>, %arg15: memref<2x16xbf16, #tpu.memory_space<vmem>>, %arg16: memref<2x1xf32, #tpu.memory_space<vmem>>, %arg17: memref<1x1x512xf32, #tpu.memory_space<vmem>>, %arg18: memref<1x2x512xf32, #tpu.memory_space<vmem>>) attributes {dimension_semantics = [#tpu.dimension_semantics<parallel>, #tpu.dimension_semantics<parallel>], iteration_bounds = array<i64: 2, 1>, scalar_prefetch = 0 : i64, scratch_operands = 0 : i64, tpu.core_type = #tpu.core_type<tc>, window_params = [{transform_indices = @transform_0, window_bounds = array<i64: 1, 16, 512>}, {pipeline_mode = #tpu.pipeline_mode<synchronous>, transform_indices = @transform_1, window_bounds = array<i64: 512, 16>}, {pipeline_mode = #tpu.pipeline_mode<synchronous>, transform_indices = @transform_2, window_bounds = array<i64: 512, 1>}, {pipeline_mode = #tpu.pipeline_mode<synchronous>, transform_indices = @transform_3, window_bounds = array<i64: 256, 512>}, {pipeline_mode = #tpu.pipeline_mode<synchronous>, transform_indices = @transform_4, window_bounds = array<i64: 256, 1>}, {pipeline_mode = #tpu.pipeline_mode<synchronous>, transform_indices = @transform_5, window_bounds = array<i64: 2, 256>}, {pipeline_mode = #tpu.pipeline_mode<synchronous>, transform_indices = @transform_6, window_bounds = array<i64: 2, 1>}, {pipeline_mode = #tpu.pipeline_mode<synchronous>, transform_indices = @transform_7, window_bounds = array<i64: 64, 16>}, {pipeline_mode = #tpu.pipeline_mode<synchronous>, transform_indices = @transform_8, window_bounds = array<i64: 64, 1>}, {pipeline_mode = #tpu.pipeline_mode<synchronous>, transform_indices = @transform_9, window_bounds = array<i64: 32, 64>}, {pipeline_mode = #tpu.pipeline_mode<synchronous>, transform_indices = @transform_10, window_bounds = array<i64: 32, 1>}, {pipeline_mode = #tpu.pipeline_mode<synchronous>, transform_indices = @transform_11, window_bounds = array<i64: 16, 32>}, {pipeline_mode = #tpu.pipeline_mode<synchronous>, transform_indices = @transform_12, window_bounds = array<i64: 16, 1>}, {pipeline_mode = #tpu.pipeline_mode<synchronous>, transform_indices = @transform_13, window_bounds = array<i64: 2, 16>}, {pipeline_mode = #tpu.pipeline_mode<synchronous>, transform_indices = @transform_14, window_bounds = array<i64: 2, 1>}, {transform_indices = @transform_15, window_bounds = array<i64: 1, 1, 512>}, {transform_indices = @transform_16, window_bounds = array<i64: 1, 2, 512>}]} {
    %c0 = arith.constant 0 : index
    %c0_0 = arith.constant 0 : index
    %c0_1 = arith.constant 0 : index
    %0 = vector.load %arg2[%c0, %c0_0, %c0_1] : memref<1x16x512xf32, #tpu.memory_space<vmem>>, vector<1x16x512xf32>
    %1 = vector.shape_cast %0 : vector<1x16x512xf32> to vector<16x512xf32>
    %2 = arith.truncf %1 : vector<16x512xf32> to vector<16x512xbf16>
    %c0_2 = arith.constant 0 : index
    %c0_3 = arith.constant 0 : index
    %3 = vector.load %arg3[%c0_2, %c0_3] : memref<512x16xbf16, #tpu.memory_space<vmem>>, vector<512x16xbf16>
    %cst = arith.constant dense<0.000000e+00> : vector<512x512xf32>
    %4 = tpu.matmul %3, %2, %cst {dimension_numbers = #tpu.dot_dimension_numbers<[1], [0], [0], [1], [0, 0, 1, 1], [], []>} : vector<512x16xbf16>, vector<16x512xbf16>, vector<512x512xf32> -> vector<512x512xf32>
    %c0_4 = arith.constant 0 : index
    %c0_5 = arith.constant 0 : index
    %5 = vector.load %arg4[%c0_4, %c0_5] : memref<512x1xf32, #tpu.memory_space<vmem>>, vector<512x1xf32>
    %6 = vector.broadcast %5 : vector<512x1xf32> to vector<512x512xf32>
    %7 = arith.addf %4, %6 : vector<512x512xf32>
    %cst_6 = arith.constant 0.000000e+00 : f32
    %8 = vector.broadcast %cst_6 : f32 to vector<512x512xf32>
    %9 = arith.cmpf oge, %7, %8 : vector<512x512xf32>
    %cst_7 = arith.constant 0.00999999977 : f32
    %10 = vector.broadcast %cst_7 : f32 to vector<512x512xf32>
    %11 = arith.mulf %10, %7 : vector<512x512xf32>
    %12 = arith.select %9, %7, %11 : vector<512x512xi1>, vector<512x512xf32>
    %13 = arith.truncf %12 : vector<512x512xf32> to vector<512x512xbf16>
    %c0_8 = arith.constant 0 : index
    %c0_9 = arith.constant 0 : index
    %14 = vector.load %arg5[%c0_8, %c0_9] : memref<256x512xbf16, #tpu.memory_space<vmem>>, vector<256x512xbf16>
    %cst_10 = arith.constant dense<0.000000e+00> : vector<256x512xf32>
    %15 = tpu.matmul %14, %13, %cst_10 {dimension_numbers = #tpu.dot_dimension_numbers<[1], [0], [0], [1], [0, 0, 1, 1], [], []>} : vector<256x512xbf16>, vector<512x512xbf16>, vector<256x512xf32> -> vector<256x512xf32>
    %c0_11 = arith.constant 0 : index
    %c0_12 = arith.constant 0 : index
    %16 = vector.load %arg6[%c0_11, %c0_12] : memref<256x1xf32, #tpu.memory_space<vmem>>, vector<256x1xf32>
    %17 = vector.broadcast %16 : vector<256x1xf32> to vector<256x512xf32>
    %18 = arith.addf %15, %17 : vector<256x512xf32>
    %cst_13 = arith.constant 0.000000e+00 : f32
    %19 = vector.broadcast %cst_13 : f32 to vector<256x512xf32>
    %20 = arith.cmpf oge, %18, %19 : vector<256x512xf32>
    %cst_14 = arith.constant 0.00999999977 : f32
    %21 = vector.broadcast %cst_14 : f32 to vector<256x512xf32>
    %22 = arith.mulf %21, %18 : vector<256x512xf32>
    %23 = arith.select %20, %18, %22 : vector<256x512xi1>, vector<256x512xf32>
    %24 = arith.truncf %23 : vector<256x512xf32> to vector<256x512xbf16>
    %c0_15 = arith.constant 0 : index
    %c0_16 = arith.constant 0 : index
    %25 = vector.load %arg7[%c0_15, %c0_16] : memref<2x256xbf16, #tpu.memory_space<vmem>>, vector<2x256xbf16>
    %cst_17 = arith.constant dense<0.000000e+00> : vector<2x512xf32>
    %26 = tpu.matmul %25, %24, %cst_17 {dimension_numbers = #tpu.dot_dimension_numbers<[1], [0], [0], [1], [0, 0, 1, 1], [], []>} : vector<2x256xbf16>, vector<256x512xbf16>, vector<2x512xf32> -> vector<2x512xf32>
    %c0_18 = arith.constant 0 : index
    %c0_19 = arith.constant 0 : index
    %27 = vector.load %arg8[%c0_18, %c0_19] : memref<2x1xf32, #tpu.memory_space<vmem>>, vector<2x1xf32>
    %28 = vector.broadcast %27 : vector<2x1xf32> to vector<2x512xf32>
    %29 = arith.addf %26, %28 : vector<2x512xf32>
    %cst_20 = arith.constant dense<0xFF800000> : vector<512xf32>
    %30 = vector.multi_reduction <maximumf>, %29, %cst_20 [0] : vector<2x512xf32> to vector<512xf32>
    %31 = vector.shape_cast %30 : vector<512xf32> to vector<1x512xf32>
    %32 = vector.broadcast %31 : vector<1x512xf32> to vector<2x512xf32>
    %33 = arith.subf %29, %32 : vector<2x512xf32>
    %34 = math.exp %33 : vector<2x512xf32>
    %cst_21 = arith.constant dense<0.000000e+00> : vector<512xf32>
    %35 = vector.multi_reduction <add>, %34, %cst_21 [0] : vector<2x512xf32> to vector<512xf32>
    %36 = vector.shape_cast %35 : vector<512xf32> to vector<1x512xf32>
    %37 = tpu.reciprocal %36 {approx = true} : vector<1x512xf32> -> vector<1x512xf32>
    %38 = vector.broadcast %37 : vector<1x512xf32> to vector<2x512xf32>
    %39 = arith.mulf %34, %38 : vector<2x512xf32>
    %c0_22 = arith.constant 0 : index
    %c0_23 = arith.constant 0 : index
    %40 = vector.load %arg9[%c0_22, %c0_23] : memref<64x16xbf16, #tpu.memory_space<vmem>>, vector<64x16xbf16>
    %cst_24 = arith.constant dense<0.000000e+00> : vector<64x512xf32>
    %41 = tpu.matmul %40, %2, %cst_24 {dimension_numbers = #tpu.dot_dimension_numbers<[1], [0], [0], [1], [0, 0, 1, 1], [], []>} : vector<64x16xbf16>, vector<16x512xbf16>, vector<64x512xf32> -> vector<64x512xf32>
    %c0_25 = arith.constant 0 : index
    %c0_26 = arith.constant 0 : index
    %42 = vector.load %arg10[%c0_25, %c0_26] : memref<64x1xf32, #tpu.memory_space<vmem>>, vector<64x1xf32>
    %43 = vector.broadcast %42 : vector<64x1xf32> to vector<64x512xf32>
    %44 = arith.addf %41, %43 : vector<64x512xf32>
    %cst_27 = arith.constant 0.000000e+00 : f32
    %45 = vector.broadcast %cst_27 : f32 to vector<64x512xf32>
    %46 = arith.cmpf oge, %44, %45 : vector<64x512xf32>
    %cst_28 = arith.constant 0.00999999977 : f32
    %47 = vector.broadcast %cst_28 : f32 to vector<64x512xf32>
    %48 = arith.mulf %47, %44 : vector<64x512xf32>
    %49 = arith.select %46, %44, %48 : vector<64x512xi1>, vector<64x512xf32>
    %50 = arith.truncf %49 : vector<64x512xf32> to vector<64x512xbf16>
    %c0_29 = arith.constant 0 : index
    %c0_30 = arith.constant 0 : index
    %51 = vector.load %arg11[%c0_29, %c0_30] : memref<32x64xbf16, #tpu.memory_space<vmem>>, vector<32x64xbf16>
    %cst_31 = arith.constant dense<0.000000e+00> : vector<32x512xf32>
    %52 = tpu.matmul %51, %50, %cst_31 {dimension_numbers = #tpu.dot_dimension_numbers<[1], [0], [0], [1], [0, 0, 1, 1], [], []>} : vector<32x64xbf16>, vector<64x512xbf16>, vector<32x512xf32> -> vector<32x512xf32>
    %c0_32 = arith.constant 0 : index
    %c0_33 = arith.constant 0 : index
    %53 = vector.load %arg12[%c0_32, %c0_33] : memref<32x1xf32, #tpu.memory_space<vmem>>, vector<32x1xf32>
    %54 = vector.broadcast %53 : vector<32x1xf32> to vector<32x512xf32>
    %55 = arith.addf %52, %54 : vector<32x512xf32>
    %cst_34 = arith.constant 0.000000e+00 : f32
    %56 = vector.broadcast %cst_34 : f32 to vector<32x512xf32>
    %57 = arith.cmpf oge, %55, %56 : vector<32x512xf32>
    %cst_35 = arith.constant 0.00999999977 : f32
    %58 = vector.broadcast %cst_35 : f32 to vector<32x512xf32>
    %59 = arith.mulf %58, %55 : vector<32x512xf32>
    %60 = arith.select %57, %55, %59 : vector<32x512xi1>, vector<32x512xf32>
    %61 = arith.truncf %60 : vector<32x512xf32> to vector<32x512xbf16>
    %c0_36 = arith.constant 0 : index
    %c0_37 = arith.constant 0 : index
    %62 = vector.load %arg13[%c0_36, %c0_37] : memref<16x32xbf16, #tpu.memory_space<vmem>>, vector<16x32xbf16>
    %cst_38 = arith.constant dense<0.000000e+00> : vector<16x512xf32>
    %63 = tpu.matmul %62, %61, %cst_38 {dimension_numbers = #tpu.dot_dimension_numbers<[1], [0], [0], [1], [0, 0, 1, 1], [], []>} : vector<16x32xbf16>, vector<32x512xbf16>, vector<16x512xf32> -> vector<16x512xf32>
    %c0_39 = arith.constant 0 : index
    %c0_40 = arith.constant 0 : index
    %64 = vector.load %arg14[%c0_39, %c0_40] : memref<16x1xf32, #tpu.memory_space<vmem>>, vector<16x1xf32>
    %65 = vector.broadcast %64 : vector<16x1xf32> to vector<16x512xf32>
    %66 = arith.addf %63, %65 : vector<16x512xf32>
    %cst_41 = arith.constant 0.000000e+00 : f32
    %67 = vector.broadcast %cst_41 : f32 to vector<16x512xf32>
    %68 = arith.cmpf oge, %66, %67 : vector<16x512xf32>
    %cst_42 = arith.constant 0.00999999977 : f32
    %69 = vector.broadcast %cst_42 : f32 to vector<16x512xf32>
    %70 = arith.mulf %69, %66 : vector<16x512xf32>
    %71 = arith.select %68, %66, %70 : vector<16x512xi1>, vector<16x512xf32>
    %72 = arith.truncf %71 : vector<16x512xf32> to vector<16x512xbf16>
    %c0_43 = arith.constant 0 : index
    %c0_44 = arith.constant 0 : index
    %73 = vector.load %arg15[%c0_43, %c0_44] : memref<2x16xbf16, #tpu.memory_space<vmem>>, vector<2x16xbf16>
    %cst_45 = arith.constant dense<0.000000e+00> : vector<2x512xf32>
    %74 = tpu.matmul %73, %72, %cst_45 {dimension_numbers = #tpu.dot_dimension_numbers<[1], [0], [0], [1], [0, 0, 1, 1], [], []>} : vector<2x16xbf16>, vector<16x512xbf16>, vector<2x512xf32> -> vector<2x512xf32>
    %c0_46 = arith.constant 0 : index
    %c0_47 = arith.constant 0 : index
    %75 = vector.load %arg16[%c0_46, %c0_47] : memref<2x1xf32, #tpu.memory_space<vmem>>, vector<2x1xf32>
    %76 = vector.broadcast %75 : vector<2x1xf32> to vector<2x512xf32>
    %77 = arith.addf %74, %76 : vector<2x512xf32>
    %78 = arith.mulf %77, %39 : vector<2x512xf32>
    %cst_48 = arith.constant dense<0.000000e+00> : vector<512xf32>
    %79 = vector.multi_reduction <add>, %78, %cst_48 [0] : vector<2x512xf32> to vector<512xf32>
    %80 = vector.shape_cast %79 : vector<512xf32> to vector<1x512xf32>
    %cst_49 = arith.constant 5.000000e-01 : f32
    %81 = vector.broadcast %cst_49 : f32 to vector<1x512xf32>
    %82 = arith.mulf %80, %81 : vector<1x512xf32>
    %c0_50 = arith.constant 0 : index
    %c0_51 = arith.constant 0 : index
    %c0_52 = arith.constant 0 : index
    %83 = vector.load %arg17[%c0_50, %c0_51, %c0_52] : memref<1x1x512xf32, #tpu.memory_space<vmem>>, vector<1x1x512xf32>
    %84 = vector.shape_cast %83 : vector<1x1x512xf32> to vector<1x512xf32>
    %85 = vector.shape_cast %82 : vector<1x512xf32> to vector<1x1x512xf32>
    tpu.vector_store %arg17[%c0_50, %c0_51, %c0_52], %85 {strides = array<i32>} : memref<1x1x512xf32, #tpu.memory_space<vmem>>, vector<1x1x512xf32>,
    %c0_53 = arith.constant 0 : index
    %c0_54 = arith.constant 0 : index
    %c0_55 = arith.constant 0 : index
    %86 = vector.load %arg18[%c0_53, %c0_54, %c0_55] : memref<1x2x512xf32, #tpu.memory_space<vmem>>, vector<1x2x512xf32>
    %87 = vector.shape_cast %86 : vector<1x2x512xf32> to vector<2x512xf32>
    %88 = vector.shape_cast %29 : vector<2x512xf32> to vector<1x2x512xf32>
    tpu.vector_store %arg18[%c0_53, %c0_54, %c0_55], %88 {strides = array<i32>} : memref<1x2x512xf32, #tpu.memory_space<vmem>>, vector<1x2x512xf32>,
    return
  }
  func.func @transform_0(%arg0: i32, %arg1: i32) -> (i32, i32, i32) {
    %c0_i32 = arith.constant 0 : i32
    %c0_i32_0 = arith.constant 0 : i32
    return %arg0, %c0_i32, %arg1 : i32, i32, i32
  }
  func.func @transform_1(%arg0: i32, %arg1: i32) -> (i32, i32) {
    %c0_i32 = arith.constant 0 : i32
    %c0_i32_0 = arith.constant 0 : i32
    %c0_i32_1 = arith.constant 0 : i32
    return %c0_i32, %c0_i32_0 : i32, i32
  }
  func.func @transform_2(%arg0: i32, %arg1: i32) -> (i32, i32) {
    %c0_i32 = arith.constant 0 : i32
    %c0_i32_0 = arith.constant 0 : i32
    %c0_i32_1 = arith.constant 0 : i32
    return %c0_i32, %c0_i32_0 : i32, i32
  }
  func.func @transform_3(%arg0: i32, %arg1: i32) -> (i32, i32) {
    %c0_i32 = arith.constant 0 : i32
    %c0_i32_0 = arith.constant 0 : i32
    %c0_i32_1 = arith.constant 0 : i32
    return %c0_i32, %c0_i32_0 : i32, i32
  }
  func.func @transform_4(%arg0: i32, %arg1: i32) -> (i32, i32) {
    %c0_i32 = arith.constant 0 : i32
    %c0_i32_0 = arith.constant 0 : i32
    %c0_i32_1 = arith.constant 0 : i32
    return %c0_i32, %c0_i32_0 : i32, i32
  }
  func.func @transform_5(%arg0: i32, %arg1: i32) -> (i32, i32) {
    %c0_i32 = arith.constant 0 : i32
    %c0_i32_0 = arith.constant 0 : i32
    %c0_i32_1 = arith.constant 0 : i32
    return %c0_i32, %c0_i32_0 : i32, i32
  }
  func.func @transform_6(%arg0: i32, %arg1: i32) -> (i32, i32) {
    %c0_i32 = arith.constant 0 : i32
    %c0_i32_0 = arith.constant 0 : i32
    %c0_i32_1 = arith.constant 0 : i32
    return %c0_i32, %c0_i32_0 : i32, i32
  }
  func.func @transform_7(%arg0: i32, %arg1: i32) -> (i32, i32) {
    %c0_i32 = arith.constant 0 : i32
    %c0_i32_0 = arith.constant 0 : i32
    %c0_i32_1 = arith.constant 0 : i32
    return %c0_i32, %c0_i32_0 : i32, i32
  }
  func.func @transform_8(%arg0: i32, %arg1: i32) -> (i32, i32) {
    %c0_i32 = arith.constant 0 : i32
    %c0_i32_0 = arith.constant 0 : i32
    %c0_i32_1 = arith.constant 0 : i32
    return %c0_i32, %c0_i32_0 : i32, i32
  }
  func.func @transform_9(%arg0: i32, %arg1: i32) -> (i32, i32) {
    %c0_i32 = arith.constant 0 : i32
    %c0_i32_0 = arith.constant 0 : i32
    %c0_i32_1 = arith.constant 0 : i32
    return %c0_i32, %c0_i32_0 : i32, i32
  }
  func.func @transform_10(%arg0: i32, %arg1: i32) -> (i32, i32) {
    %c0_i32 = arith.constant 0 : i32
    %c0_i32_0 = arith.constant 0 : i32
    %c0_i32_1 = arith.constant 0 : i32
    return %c0_i32, %c0_i32_0 : i32, i32
  }
  func.func @transform_11(%arg0: i32, %arg1: i32) -> (i32, i32) {
    %c0_i32 = arith.constant 0 : i32
    %c0_i32_0 = arith.constant 0 : i32
    %c0_i32_1 = arith.constant 0 : i32
    return %c0_i32, %c0_i32_0 : i32, i32
  }
  func.func @transform_12(%arg0: i32, %arg1: i32) -> (i32, i32) {
    %c0_i32 = arith.constant 0 : i32
    %c0_i32_0 = arith.constant 0 : i32
    %c0_i32_1 = arith.constant 0 : i32
    return %c0_i32, %c0_i32_0 : i32, i32
  }
  func.func @transform_13(%arg0: i32, %arg1: i32) -> (i32, i32) {
    %c0_i32 = arith.constant 0 : i32
    %c0_i32_0 = arith.constant 0 : i32
    %c0_i32_1 = arith.constant 0 : i32
    return %c0_i32, %c0_i32_0 : i32, i32
  }
  func.func @transform_14(%arg0: i32, %arg1: i32) -> (i32, i32) {
    %c0_i32 = arith.constant 0 : i32
    %c0_i32_0 = arith.constant 0 : i32
    %c0_i32_1 = arith.constant 0 : i32
    return %c0_i32, %c0_i32_0 : i32, i32
  }
  func.func @transform_15(%arg0: i32, %arg1: i32) -> (i32, i32, i32) {
    %c0_i32 = arith.constant 0 : i32
    %c0_i32_0 = arith.constant 0 : i32
    return %arg0, %c0_i32, %arg1 : i32, i32, i32
  }
  func.func @transform_16(%arg0: i32, %arg1: i32) -> (i32, i32, i32) {
    %c0_i32 = arith.constant 0 : i32
    %c0_i32_0 = arith.constant 0 : i32
    return %arg0, %c0_i32, %arg1 : i32, i32, i32
  }
}

</mosaic_0001>

<bundles_post_ra>
// kernel: tpu_custom_call.1
= control target key start
LH: loop header
LB: loop body
LE: loop exit
PB: predicated region body
PF: predicated region fallthrough
CT: control target
= control target key end

     0   :  { %s11526_s0 = inlined_call_operand.vmem [shape: f32[2,16,512], index: 0, kind: input, shape index: {}]   ;;  %s11527_s1 = inlined_call_operand.vmem [shape: bf16[512,16], index: 1, kind: input, shape index: {}]   ;;  %s11528_s2 = inlined_call_operand.vmem [shape: f32[512,1], index: 2, kind: input, shape index: {}]   ;;  %s11529_s3 = inlined_call_operand.vmem [shape: bf16[256,512], index: 3, kind: input, shape index: {}]   ;;  %s11530_s4 = inlined_call_operand.vmem [shape: f32[256,1], index: 4, kind: input, shape index: {}]   ;;  %s11531_s5 = inlined_call_operand.vmem [shape: bf16[2,256], index: 5, kind: input, shape index: {}]   ;;  %s11532_s6 = inlined_call_operand.vmem [shape: f32[2,1], index: 6, kind: input, shape index: {}]   ;;  %s11533_s7 = inlined_call_operand.vmem [shape: bf16[64,16], index: 7, kind: input, shape index: {}]   ;;  %s11534_s8 = inlined_call_operand.vmem [shape: f32[64,1], index: 8, kind: input, shape index: {}]   ;;  %s11535_s9 = inlined_call_operand.vmem [shape: bf16[32,64], index: 9, kind: input, shape index: {}]   ;;  %s11536_s10 = inlined_call_operand.vmem [shape: f32[32,1], index: 10, kind: input, shape index: {}]   ;;  %s11537_s11 = inlined_call_operand.vmem [shape: bf16[16,32], index: 11, kind: input, shape index: {}]   ;;  %s11538_s12 = inlined_call_operand.vmem [shape: f32[16,1], index: 12, kind: input, shape index: {}]   ;;  %s11539_s13 = inlined_call_operand.vmem [shape: bf16[2,16], index: 13, kind: input, shape index: {}]   ;;  %s11540_s14 = inlined_call_operand.vmem [shape: f32[2,1], index: 14, kind: input, shape index: {}]   ;;  %s11541_s15 = inlined_call_operand.hbm [shape: f32[2,1,512], index: 15, kind: output, shape index: {0}]   ;;  %s11542_s16 = inlined_call_operand.hbm [shape: f32[2,2,512], index: 16, kind: output, shape index: {1}]  }
   0x1   :  { %11853 = sst [smem:[#allocation169_spill]] %s11526_s0 }
   0x2   :  { %11854 = sst [smem:[#allocation170_spill]] %s11527_s1 }
   0x3   :  { %11855 = sst [smem:[#allocation171_spill]] %s11541_s15 }
   0x4   :  { %22 = vsyncpa [#allocation3], 0 }
   0x5   :  { %24 = vsyncpa [#allocation3 + $0x1], 0 }
   0x6   :  { %25 = vsyncpa [#allocation5], 0 }
   0x7   :  { %27 = vsyncpa [#allocation5 + $0x1], 0  ;;  %s6533_s21 = smov 0   ;;  %s6535_s22 = smov 0  }
   0x8   :  { %s6537_s23 = smov 0   ;;  %s6539_s24 = smov 0  }
   0x9   :  { %s6541_s25 = smov 0   ;;  %s6543_s26 = smov 0  }
   0xa LB: > { %11856 = sst [smem:[#allocation8_spill]] %s6421_s21  ;;  %s5896_s27 = sadd.s32 4294967295, %s6441_s26   ;;  %s6441_s26 = sphi %s6543_s26, %s33_s26   ;;  %s6437_s25 = sphi %s6541_s25, %s12821_s25   ;;  %s6433_s24 = sphi %s6539_s24, %s12820_s24   ;;  %s6429_s23 = sphi %s6537_s23, %s12819_s23   ;;  %s6425_s22 = sphi %s6535_s22, %s12823_s22   ;;  %s6421_s21 = sphi %s6533_s21, %s12822_s21  }
   0xb   : > { %11857 = sst [smem:[#allocation9_spill]] %s6429_s23  ;;  %s5897_s28 = sadd.s32 4294967294, %s6441_s26  }
   0xc   : > { %11858 = sst [smem:[#allocation10_spill]] %s6437_s25  ;;  %s45_s29 = sadd.s32 1, %s6437_s25 }
   0xd   : > { %11859 = sst [smem:[#allocation11_spill]] %s6441_s26  ;;  %s376_s30 = sadd.s32 1, %s6429_s23 }
   0xe   : > { %p47_p0 = scmp.ge.s32.totalorder %s45_s29, 2  ;;  %p386_p1 = scmp.ne.s32.totalorder %s6429_s23, %s6425_s22 }
   0xf   : > { %p387_p2 = scmp.eq.s32.totalorder %s5896_s27, 1  ;;  %p392_p3 = scmp.ne.s32.totalorder %s6425_s22, %s6421_s21 }
  0x10   : > { %s12825_s29 = smov (%p47_p0, %s45_s29), 0  ;;  %p393_p5 = scmp.eq.s32.totalorder %s5897_s28, 1 }
  0x11   : > { %11860 = sst [smem:[#allocation12_spill]] %s12825_s29  ;;  %p6573_p4 = por %p387_p2, %p386_p1 }
  0x12   : > { %s371_s17 = ssub.s32 %s6437_s25, %s12825_s29  ;;  %p5900_p6 = scmp.ge.s32.totalorder %s6441_s26, 1 }
  0x13   : > { %p374_p7 = scmp.eq.s32.totalorder %s371_s17, 0  ;;  %p6580_p8 = por %p393_p5, %p392_p3 }
  0x14   : > { %p494_p9 = scmp.lt.s32.totalorder %s6441_s26, 3 }
  0x15   : > { %s11862_s18 = scalar_select %p6580_p8, 1, 0 }
  0x16   : > { %s6586_s19 = scalar_select %p374_p7, %s6429_s23, %s376_s30  }
  0x17   : > { %11863 = sst [smem:[#allocation13_spill]] %s11862_s18  ;;  %p495_p10 = pnand %p5900_p6, %p494_p9 }
  0x18   : > { %11864 = sst [smem:[#allocation14_spill]] %s6586_s19 }
  0x19   : > { %498 = sbr.rel (%p495_p10) target bundleno = 1955 (0x7a3), region = 80 }
  0x1e   : > { %p554_p11 = scmp.lt.s32.totalorder %s6433_s24, 1  ;;  %v11551_v0 = vmov 0   ;;  %v656_v1 = vld [vmem:[%s11528_s2 + $0x70] sm:$0xff]  ;;  %v657_v3 = vld [vmem:[%s11528_s2 + $0x78] sm:$0xff]  ;;  %s11865_s21 = sld [smem:[#allocation169_spill]]  ;;  %v654_v16 = vld [vmem:[%s11528_s2 + $0x60] sm:$0xff] }
  0x1f   : > { %1315 = vmatprep.mubr.bf16.mxu0 %v11551_v0  ;;  %1668 = vmatprep.mubr.bf16.mxu1 %v11551_v0  ;;  %v688_v2 = vld [vmem:[%s11528_s2 + $0x170] sm:$0xff]  ;;  %v689_v4 = vld [vmem:[%s11528_s2 + $0x178] sm:$0xff]  ;;  %s11870_s1 = sld [smem:[#allocation170_spill]]  ;;  %v655_v19 = vld [vmem:[%s11528_s2 + $0x68] sm:$0xff]  ;;  %vm11637_vm0 = vcmask 130048   ;;  %s11333_s18 = sand.u32 1, %s6425_s22  }
  0x20   : > { %s555_s20 = scalar_select %p554_p11, %s6433_s24, 1  ;;  %6163 = vset.pattern.permute.xlu0 %v11551_v0  ;;  %6164 = vset.pattern.permute.xlu1 %v11551_v0  ;;  %v686_v20 = vld [vmem:[%s11528_s2 + $0x160] sm:$0xff]  ;;  %v687_v21 = vld [vmem:[%s11528_s2 + $0x168] sm:$0xff]  ;;  %v652_v23 = vld [vmem:[%s11528_s2 + $0x50] sm:$0xff] }
  0x21   : > { %778 = vperm.xlu0 %6163, %v656_v1   ;;  %938 = vperm.xlu1 %6164, %v688_v2   ;;  %v653_v24 = vld [vmem:[%s11528_s2 + $0x58] sm:$0xff]  ;;  %v684_v25 = vld [vmem:[%s11528_s2 + $0x150] sm:$0xff]  ;;  %v650_v27 = vld [vmem:[%s11528_s2 + $0x40] sm:$0xff]  ;;  %s6099_s27 = sshll.u32 %s6433_s24, 7 }
  0x22   : > { %s6097_s29 = sshll.u32 %s555_s20, 6  ;;  %v685_v26 = vld [vmem:[%s11528_s2 + $0x158] sm:$0xff]  ;;  %v651_v29 = vld [vmem:[%s11528_s2 + $0x48] sm:$0xff]  ;;  %v682_v30 = vld [vmem:[%s11528_s2 + $0x140] sm:$0xff]  ;;  %s5783_s25 = scalar_lea.hbm %s11542_s16, %s6099_s27 }
  0x23   : > { %v683_v31 = vld [vmem:[%s11528_s2 + $0x148] sm:$0xff]  ;;  %v648_v33 = vld [vmem:[%s11528_s2 + $0x30] sm:$0xff]  ;;  %v649_v34 = vld [vmem:[%s11528_s2 + $0x38] sm:$0xff]  ;;  %s6446_s20 = smov [#allocation4]  }
  0x24   : > { %s561_s26 = scalar_lea.vmem %s11865_s21, %s6097_s29  ;;  %v680_v35 = vld [vmem:[%s11528_s2 + $0x130] sm:$0xff]  ;;  %v681_v36 = vld [vmem:[%s11528_s2 + $0x138] sm:$0xff]  ;;  %v646_v37 = vld [vmem:[%s11528_s2 + $0x20] sm:$0xff]  ;;  %s5753_s29 = scalar_lea.sflag [#allocation5], %s11333_s18 }
  0x25   : > { %v567_v5 = vld [vmem:[%s561_s26 + $0x8] sm:$0xff]  ;;  %v569_v7 = vld [vmem:[%s561_s26 + $0x18] sm:$0xff]  ;;  %v566_v10 = vld [vmem:[%s561_s26] sm:$0xff]  ;;  %783 = vperm.xlu0 %6163, %v657_v3   ;;  %943 = vperm.xlu1 %6164, %v689_v4   ;;  %s6339_s28 = sshll.u32 %s6446_s20, 4  ;;  %s6340_s28 = int_to_ptr.vmem [resolvable:$false] %s6339_s28 }
  0x26   : > { %v571_v6 = vld [vmem:[%s561_s26 + $0x28] sm:$0xff]  ;;  %v573_v9 = vld [vmem:[%s561_s26 + $0x38] sm:$0xff]  ;;  %v570_v11 = vld [vmem:[%s561_s26 + $0x20] sm:$0xff]  ;;  %s6341_s30 = scalar_lea.vmem %s6340_s28, 256 }
  0x27   : > { %v6609_v8 = vpack.c.bf16 %v571_v6, %v567_v5  ;;  %v6611_v12 = vpack.c.bf16 %v573_v9, %v569_v7  ;;  %v6613_v13 = vpack.c.bf16 %v570_v11, %v566_v10  ;;  %v568_v14 = vld [vmem:[%s561_s26 + $0x10] sm:$0xff]  ;;  %v6165_v18 = vld [vmem:[%s11870_s1] sm:$0xff]   ;;  %v6166_v22 = vld [vmem:[%s11870_s1 + $0x8] sm:$0xff]  }
  0x28   : > { %v572_v15 = vld [vmem:[%s561_s26 + $0x30] sm:$0xff]  ;;  %v6168_v32 = vld [vmem:[%s11870_s1 + $0x18] sm:$0xff]   ;;  %v6169_v38 = vld [vmem:[%s11870_s1 + $0x20] sm:$0xff]   ;;  %s5902_s26 = sshll.u32 %s11333_s18, 3 }
  0x29   : > { %11866 = vst [vmem:[#allocation15_spill] sm:$0xff] %v6609_v8  ;;  %11867 = vst [vmem:[#allocation16_spill] sm:$0xff] %v6611_v12  ;;  %1297 = vmatprep.subr.bf16.mxu0 %v6609_v8  ;;  %v6619_v17 = vpack.c.bf16 %v572_v15, %v568_v14  ;;  %1650 = vmatprep.subr.bf16.mxu1 %v6611_v12  ;;  %v6167_v28 = vld [vmem:[%s11870_s1 + $0x10] sm:$0xff]   ;;  %v647_v39 = vld [vmem:[%s11528_s2 + $0x28] sm:$0xff]  ;;  %s11350_s19 = scalar_lea.vmem [#allocation4], %s5902_s26 }
  0x2a   : > { %11868 = vst [vmem:[#allocation17_spill] sm:$0xff] %v6613_v13  ;;  %1298 = vmatpush1.bf16.msra.mxu0 %v6613_v13  ;;  %768 = vperm.xlu0 %6163, %v654_v16   ;;  %v678_v40 = vld [vmem:[%s11528_s2 + $0x120] sm:$0xff]  ;;  %v679_v41 = vld [vmem:[%s11528_s2 + $0x128] sm:$0xff]  ;;  %v644_v43 = vld [vmem:[%s11528_s2 + $0x10] sm:$0xff]  ;;  %s5785_s21 = sshll.u32 %s11350_s19, 4  ;;  %s5786_s21 = int_to_ptr.vmem [resolvable:$true] %s5785_s21 }
  0x2b   : > { %11869 = vst [vmem:[#allocation18_spill] sm:$0xff] %v6619_v17  ;;  %1651 = vmatpush1.bf16.msra.mxu1 %v6619_v17  ;;  %773 = vperm.xlu1 %6164, %v655_v19   ;;  %v6170_v42 = vld [vmem:[%s11870_s1 + $0x28] sm:$0xff]   ;;  %v645_v44 = vld [vmem:[%s11528_s2 + $0x18] sm:$0xff]  ;;  %v676_v45 = vld [vmem:[%s11528_s2 + $0x110] sm:$0xff]  ;;  %s6335_s26 = scalar_lea.vmem %s5786_s21, 128  ;;  %p6342_p1 = scmp.lt.s32.totalorder %s5786_s21, %s6340_s28 }
  0x2c   : > { %v677_v46 = vld [vmem:[%s11528_s2 + $0x118] sm:$0xff]  ;;  %v6171_v47 = vld [vmem:[%s11870_s1 + $0x30] sm:$0xff]   ;;  %v642_v48 = vld [vmem:[%s11528_s2] sm:$0xff]  ;;  %p6336_p12 = scmp.ne.s32.totalorder %s5786_s21, %s6335_s26  ;;  %p6343_p2 = scmp.lt.s32.totalorder %s6341_s30, %s6335_s26 }
  0x2d   : > { %5937 = vmatmul.mubr.msk.bf16.vlgmr.msra.gmra.mxu0 %vm11637_vm0, %v6165_v18  ;;  %v643_v49 = vld [vmem:[%s11528_s2 + $0x8] sm:$0xff]  ;;  %v674_v50 = vld [vmem:[%s11528_s2 + $0x100] sm:$0xff]  ;;  %v6172_v52 = vld [vmem:[%s11870_s1 + $0x38] sm:$0xff]  }
  0x2e   : > { %5969 = vmatmul.mubr.msk.bf16.vlgmr.msra.gmra.mxu1 %vm11637_vm0, %v6165_v18  ;;  %1325 = vmatprep.mubr.bf16.mxu0 %v11551_v0  ;;  %v675_v51 = vld [vmem:[%s11528_s2 + $0x108] sm:$0xff]  ;;  %v672_v53 = vld [vmem:[%s11528_s2 + $0xf0] sm:$0xff]  ;;  %v673_v54 = vld [vmem:[%s11528_s2 + $0xf8] sm:$0xff]  ;;  %p6337_p13 = pnand %p6336_p12, %p6573_p4  ;;  %p6344_p3 = por %p6343_p2, %p6342_p1 }
  0x2f   : > { %1678 = vmatprep.mubr.bf16.mxu1 %v11551_v0  ;;  %928 = vperm.xlu0 %6163, %v686_v20   ;;  %v704_v55 = vld [vmem:[%s11528_s2 + $0x1f0] sm:$0xff]  ;;  %v705_v56 = vld [vmem:[%s11528_s2 + $0x1f8] sm:$0xff]  ;;  %v6173_v57 = vld [vmem:[%s11870_s1 + $0x40] sm:$0xff]  }
  0x30   : > { %933 = vperm.xlu1 %6164, %v687_v21   ;;  %v670_v58 = vld [vmem:[%s11528_s2 + $0xe0] sm:$0xff]  ;;  %v671_v59 = vld [vmem:[%s11528_s2 + $0xe8] sm:$0xff]  ;;  %v668_v62 = vld [vmem:[%s11528_s2 + $0xd0] sm:$0xff]  ;;  %p6338_p0 = pneg %p6337_p13 }
  0x31   : > { %v702_v60 = vld [vmem:[%s11528_s2 + $0x1e0] sm:$0xff]  ;;  %v703_v61 = vld [vmem:[%s11528_s2 + $0x1e8] sm:$0xff]  ;;  %v669_v1 = vld [vmem:[%s11528_s2 + $0xd8] sm:$0xff] }
  0x32   : > { %v6174_v63 = vld [vmem:[%s11870_s1 + $0x48] sm:$0xff]   ;;  %v700_v2 = vld [vmem:[%s11528_s2 + $0x1d0] sm:$0xff]  ;;  %v701_v3 = vld [vmem:[%s11528_s2 + $0x1d8] sm:$0xff]  ;;  %p6345_p5 = pnand %p6344_p3, %p6338_p0 }
  0x33   : > { %758 = vperm.xlu0 %6163, %v652_v23   ;;  %v666_v4 = vld [vmem:[%s11528_s2 + $0xc0] sm:$0xff]  ;;  %v6175_v5 = vld [vmem:[%s11870_s1 + $0x50] sm:$0xff]   ;;  %v667_v6 = vld [vmem:[%s11528_s2 + $0xc8] sm:$0xff] }
  0x34   : > { %763 = vperm.xlu1 %6164, %v653_v24   ;;  %v698_v7 = vld [vmem:[%s11528_s2 + $0x1c0] sm:$0xff]  ;;  %v699_v9 = vld [vmem:[%s11528_s2 + $0x1c8] sm:$0xff]  ;;  %v664_v10 = vld [vmem:[%s11528_s2 + $0xb0] sm:$0xff] }
  0x35   : > { %5938 = vmatmul.mubr.msk.bf16.gmra.mxu0 %vm11637_vm0, %v6166_v22  ;;  %v6176_v11 = vld [vmem:[%s11870_s1 + $0x58] sm:$0xff]   ;;  %v696_v15 = vld [vmem:[%s11528_s2 + $0x1b0] sm:$0xff]  ;;  %v662_v18 = vld [vmem:[%s11528_s2 + $0xa0] sm:$0xff] }
  0x36   : > { %5970 = vmatmul.mubr.msk.bf16.gmra.mxu1 %vm11637_vm0, %v6166_v22  ;;  %1335 = vmatprep.mubr.bf16.mxu0 %v11551_v0  ;;  %v665_v14 = vld [vmem:[%s11528_s2 + $0xb8] sm:$0xff]  ;;  %v6177_v19 = vld [vmem:[%s11870_s1 + $0x60] sm:$0xff]   ;;  %v663_v20 = vld [vmem:[%s11528_s2 + $0xa8] sm:$0xff] }
  0x37   : > { %1688 = vmatprep.mubr.bf16.mxu1 %v11551_v0  ;;  %918 = vperm.xlu0 %6163, %v684_v25   ;;  %v697_v16 = vld [vmem:[%s11528_s2 + $0x1b8] sm:$0xff]  ;;  %v694_v21 = vld [vmem:[%s11528_s2 + $0x1a0] sm:$0xff]  ;;  %v695_v22 = vld [vmem:[%s11528_s2 + $0x1a8] sm:$0xff] }
  0x38   : > { %923 = vperm.xlu1 %6164, %v685_v26   ;;  %v660_v23 = vld [vmem:[%s11528_s2 + $0x90] sm:$0xff]  ;;  %v6178_v24 = vld [vmem:[%s11870_s1 + $0x68] sm:$0xff]   ;;  %v661_v25 = vld [vmem:[%s11528_s2 + $0x98] sm:$0xff] }
  0x39   : > { %v692_v26 = vld [vmem:[%s11528_s2 + $0x190] sm:$0xff] }
  0x3b   : > { %748 = vperm.xlu0 %6163, %v650_v27   ;;  %v693_v27 = vld [vmem:[%s11528_s2 + $0x198] sm:$0xff] }
  0x3c   : > { %753 = vperm.xlu1 %6164, %v651_v29   ;;  %v6179_v29 = vld [vmem:[%s11870_s1 + $0x70] sm:$0xff]  }
  0x3d   : > { %5939 = vmatmul.mubr.msk.bf16.gmra.mxu0 %vm11637_vm0, %v6167_v28 }
  0x3e   : > { %5971 = vmatmul.mubr.msk.bf16.gmra.mxu1 %vm11637_vm0, %v6167_v28  ;;  %1345 = vmatprep.mubr.bf16.mxu0 %v11551_v0  ;;  %v658_v28 = vld [vmem:[%s11528_s2 + $0x80] sm:$0xff] }
  0x3f   : > { %1698 = vmatprep.mubr.bf16.mxu1 %v11551_v0  ;;  %908 = vperm.xlu0 %6163, %v682_v30   ;;  %v659_v30 = vld [vmem:[%s11528_s2 + $0x88] sm:$0xff] }
  0x40   : > { %913 = vperm.xlu1 %6164, %v683_v31   ;;  %v690_v31 = vld [vmem:[%s11528_s2 + $0x180] sm:$0xff] }
  0x43   : > { %738 = vperm.xlu0 %6163, %v648_v33  }
  0x44   : > { %743 = vperm.xlu1 %6164, %v649_v34  }
  0x45   : > { %5940 = vmatmul.mubr.msk.bf16.gmra.mxu0 %vm11637_vm0, %v6168_v32 }
  0x46   : > { %5972 = vmatmul.mubr.msk.bf16.gmra.mxu1 %vm11637_vm0, %v6168_v32  ;;  %1355 = vmatprep.mubr.bf16.mxu0 %v11551_v0  ;;  %v691_v32 = vld [vmem:[%s11528_s2 + $0x188] sm:$0xff] }
  0x47   : > { %1708 = vmatprep.mubr.bf16.mxu1 %v11551_v0  ;;  %898 = vperm.xlu0 %6163, %v680_v35   ;;  %v2963_v35 = vld [vmem:[%s11530_s4 + $0x70] sm:$0xff] }
  0x48   : > { %903 = vperm.xlu1 %6164, %v681_v36   ;;  %v6180_v36 = vld [vmem:[%s11870_s1 + $0x78] sm:$0xff]  }
  0x4b   : > { %728 = vperm.xlu0 %6163, %v646_v37   ;;  %v2964_v37 = vld [vmem:[%s11530_s4 + $0x78] sm:$0xff] }
  0x4c   : > { %733 = vperm.xlu1 %6164, %v647_v39  }
  0x4d   : > { %5941 = vmatmul.mubr.msk.bf16.gmra.mxu0 %vm11637_vm0, %v6169_v38 }
  0x4e   : > { %5973 = vmatmul.mubr.msk.bf16.gmra.mxu1 %vm11637_vm0, %v6169_v38  ;;  %1365 = vmatprep.mubr.bf16.mxu0 %v11551_v0 }
  0x4f   : > { %1718 = vmatprep.mubr.bf16.mxu1 %v11551_v0  ;;  %888 = vperm.xlu0 %6163, %v678_v40   ;;  %v2961_v40 = vld [vmem:[%s11530_s4 + $0x60] sm:$0xff] }
  0x50   : > { %893 = vperm.xlu1 %6164, %v679_v41   ;;  %v2962_v41 = vld [vmem:[%s11530_s4 + $0x68] sm:$0xff] }
  0x53   : > { %718 = vperm.xlu0 %6163, %v644_v43  }
  0x54   : > { %723 = vperm.xlu1 %6164, %v645_v44   ;;  %v2959_v44 = vld [vmem:[%s11530_s4 + $0x50] sm:$0xff] }
  0x55   : > { %5942 = vmatmul.mubr.msk.bf16.gmra.mxu0 %vm11637_vm0, %v6170_v42 }
  0x56   : > { %5974 = vmatmul.mubr.msk.bf16.gmra.mxu1 %vm11637_vm0, %v6170_v42  ;;  %1375 = vmatprep.mubr.bf16.mxu0 %v11551_v0 }
  0x57   : > { %1728 = vmatprep.mubr.bf16.mxu1 %v11551_v0  ;;  %878 = vperm.xlu0 %6163, %v676_v45   ;;  %v6181_v45 = vld [vmem:[%s11870_s1 + $0x80] sm:$0xff]  }
  0x58   : > { %883 = vperm.xlu1 %6164, %v677_v46   ;;  %v2960_v46 = vld [vmem:[%s11530_s4 + $0x58] sm:$0xff] }
  0x5b   : > { %708 = vperm.xlu0 %6163, %v642_v48  }
  0x5c   : > { %713 = vperm.xlu1 %6164, %v643_v49   ;;  %v2957_v49 = vld [vmem:[%s11530_s4 + $0x40] sm:$0xff] }
  0x5d   : > { %5943 = vmatmul.mubr.msk.bf16.gmra.mxu0 %vm11637_vm0, %v6171_v47 }
  0x5e   : > { %5975 = vmatmul.mubr.msk.bf16.gmra.mxu1 %vm11637_vm0, %v6171_v47  ;;  %1385 = vmatprep.mubr.bf16.mxu0 %v11551_v0 }
  0x5f   : > { %1738 = vmatprep.mubr.bf16.mxu1 %v11551_v0  ;;  %868 = vperm.xlu0 %6163, %v674_v50   ;;  %v2958_v50 = vld [vmem:[%s11530_s4 + $0x48] sm:$0xff] }
  0x60   : > { %873 = vperm.xlu1 %6164, %v675_v51  }
  0x63   : > { %858 = vperm.xlu0 %6163, %v672_v53   ;;  %v2955_v53 = vld [vmem:[%s11530_s4 + $0x30] sm:$0xff] }
  0x64   : > { %863 = vperm.xlu1 %6164, %v673_v54   ;;  %v6182_v54 = vld [vmem:[%s11870_s1 + $0x88] sm:$0xff]  }
  0x65   : > { %5944 = vmatmul.mubr.msk.bf16.gmra.mxu0 %vm11637_vm0, %v6172_v52 }
  0x66   : > { %5976 = vmatmul.mubr.msk.bf16.gmra.mxu1 %vm11637_vm0, %v6172_v52  ;;  %1395 = vmatprep.mubr.bf16.mxu0 %v11551_v0 }
  0x67   : > { %1748 = vmatprep.mubr.bf16.mxu1 %v11551_v0  ;;  %1018 = vperm.xlu0 %6163, %v704_v55   ;;  %v2956_v55 = vld [vmem:[%s11530_s4 + $0x38] sm:$0xff] }
  0x68   : > { %1023 = vperm.xlu1 %6164, %v705_v56  }
  0x6b   : > { %848 = vperm.xlu0 %6163, %v670_v58   ;;  %v2953_v58 = vld [vmem:[%s11530_s4 + $0x20] sm:$0xff] }
  0x6c   : > { %853 = vperm.xlu1 %6164, %v671_v59   ;;  %v2954_v59 = vld [vmem:[%s11530_s4 + $0x28] sm:$0xff] }
  0x6d   : > { %5945 = vmatmul.mubr.msk.bf16.gmra.mxu0 %vm11637_vm0, %v6173_v57 }
  0x6e   : > { %5977 = vmatmul.mubr.msk.bf16.gmra.mxu1 %vm11637_vm0, %v6173_v57  ;;  %1405 = vmatprep.mubr.bf16.mxu0 %v11551_v0 }
  0x6f   : > { %1758 = vmatprep.mubr.bf16.mxu1 %v11551_v0  ;;  %1008 = vperm.xlu0 %6163, %v702_v60  }
  0x70   : > { %1013 = vperm.xlu1 %6164, %v703_v61  }
  0x73   : > { %838 = vperm.xlu0 %6163, %v668_v62   ;;  %v2951_v62 = vld [vmem:[%s11530_s4 + $0x10] sm:$0xff] }
  0x74   : > { %843 = vperm.xlu1 %6164, %v669_v1   ;;  %v2952_v1 = vld [vmem:[%s11530_s4 + $0x18] sm:$0xff] }
  0x75   : > { %5946 = vmatmul.mubr.msk.bf16.gmra.mxu0 %vm11637_vm0, %v6174_v63 }
  0x76   : > { %5978 = vmatmul.mubr.msk.bf16.gmra.mxu1 %vm11637_vm0, %v6174_v63  ;;  %1415 = vmatprep.mubr.bf16.mxu0 %v11551_v0  ;;  %v6183_v63 = vld [vmem:[%s11870_s1 + $0x90] sm:$0xff]  }
  0x77   : > { %1768 = vmatprep.mubr.bf16.mxu1 %v11551_v0  ;;  %998 = vperm.xlu0 %6163, %v700_v2  }
  0x78   : > { %1003 = vperm.xlu1 %6164, %v701_v3  }
  0x7b   : > { %828 = vperm.xlu0 %6163, %v666_v4   ;;  %v2949_v4 = vld [vmem:[%s11530_s4] sm:$0xff] }
  0x7c   : > { %833 = vperm.xlu1 %6164, %v667_v6  }
  0x7d   : > { %5947 = vmatmul.mubr.msk.bf16.gmra.mxu0 %vm11637_vm0, %v6175_v5 }
  0x7e   : > { %5979 = vmatmul.mubr.msk.bf16.gmra.mxu1 %vm11637_vm0, %v6175_v5  ;;  %1425 = vmatprep.mubr.bf16.mxu0 %v11551_v0  ;;  %v2950_v5 = vld [vmem:[%s11530_s4 + $0x8] sm:$0xff] }
  0x7f   : > { %1778 = vmatprep.mubr.bf16.mxu1 %v11551_v0  ;;  %988 = vperm.xlu0 %6163, %v698_v7  }
  0x80   : > { %993 = vperm.xlu1 %6164, %v699_v9   ;;  %v2979_v9 = vld [vmem:[%s11530_s4 + $0xf0] sm:$0xff] }
  0x83   : > { %818 = vperm.xlu0 %6163, %v664_v10   ;;  %v6184_v10 = vld [vmem:[%s11870_s1 + $0x98] sm:$0xff]  }
  0x84   : > { %823 = vperm.xlu1 %6164, %v665_v14  }
  0x85   : > { %5948 = vmatmul.mubr.msk.bf16.gmra.mxu0 %vm11637_vm0, %v6176_v11 }
  0x86   : > { %5980 = vmatmul.mubr.msk.bf16.gmra.mxu1 %vm11637_vm0, %v6176_v11  ;;  %1435 = vmatprep.mubr.bf16.mxu0 %v11551_v0  ;;  %v2980_v11 = vld [vmem:[%s11530_s4 + $0xf8] sm:$0xff] }
  0x87   : > { %1788 = vmatprep.mubr.bf16.mxu1 %v11551_v0  ;;  %978 = vperm.xlu0 %6163, %v696_v15  }
  0x88   : > { %983 = vperm.xlu1 %6164, %v697_v16   ;;  %v2977_v16 = vld [vmem:[%s11530_s4 + $0xe0] sm:$0xff] }
  0x8b   : > { %808 = vperm.xlu0 %6163, %v662_v18   ;;  %v2978_v18 = vld [vmem:[%s11530_s4 + $0xe8] sm:$0xff] }
  0x8c   : > { %813 = vperm.xlu1 %6164, %v663_v20  }
  0x8d   : > { %5949 = vmatmul.mubr.msk.bf16.gmra.mxu0 %vm11637_vm0, %v6177_v19 }
  0x8e   : > { %5981 = vmatmul.mubr.msk.bf16.gmra.mxu1 %vm11637_vm0, %v6177_v19  ;;  %1445 = vmatprep.mubr.bf16.mxu0 %v11551_v0 }
  0x8f   : > { %1798 = vmatprep.mubr.bf16.mxu1 %v11551_v0  ;;  %968 = vperm.xlu0 %6163, %v694_v21   ;;  %v2975_v21 = vld [vmem:[%s11530_s4 + $0xd0] sm:$0xff] }
  0x90   : > { %973 = vperm.xlu1 %6164, %v695_v22   ;;  %v6185_v22 = vld [vmem:[%s11870_s1 + $0xa0] sm:$0xff]  }
  0x93   : > { %798 = vperm.xlu0 %6163, %v660_v23   ;;  %v2976_v23 = vld [vmem:[%s11530_s4 + $0xd8] sm:$0xff] }
  0x94   : > { %803 = vperm.xlu1 %6164, %v661_v25  }
  0x95   : > { %5950 = vmatmul.mubr.msk.bf16.gmra.mxu0 %vm11637_vm0, %v6178_v24 }
  0x96   : > { %5982 = vmatmul.mubr.msk.bf16.gmra.mxu1 %vm11637_vm0, %v6178_v24  ;;  %1455 = vmatprep.mubr.bf16.mxu0 %v11551_v0 }
  0x97   : > { %1808 = vmatprep.mubr.bf16.mxu1 %v11551_v0  ;;  %958 = vperm.xlu0 %6163, %v692_v26   ;;  %v2973_v26 = vld [vmem:[%s11530_s4 + $0xc0] sm:$0xff] }
  0x98   : > { %963 = vperm.xlu1 %6164, %v693_v27   ;;  %v2974_v27 = vld [vmem:[%s11530_s4 + $0xc8] sm:$0xff] }
  0x9b   : > { %788 = vperm.xlu0 %6163, %v658_v28  }
  0x9c   : > { %793 = vperm.xlu1 %6164, %v659_v30   ;;  %v6905_v33 = vpop.permute.xlu0 %778  ;;  %v6908_v34 = vpop.permute.xlu1 %938  ;;  %v2971_v30 = vld [vmem:[%s11530_s4 + $0xb0] sm:$0xff] }
  0x9d   : > { %5951 = vmatmul.mubr.msk.bf16.gmra.mxu0 %vm11637_vm0, %v6179_v29  ;;  %11871 = vst [vmem:[#allocation19_spill] sm:$0xff] %v6905_v33  ;;  %11872 = vst [vmem:[#allocation20_spill] sm:$0xff] %v6908_v34 }
  0x9e   : > { %5983 = vmatmul.mubr.msk.bf16.gmra.mxu1 %vm11637_vm0, %v6179_v29  ;;  %1465 = vmatprep.mubr.bf16.mxu0 %v11551_v0 }
  0x9f   : > { %1818 = vmatprep.mubr.bf16.mxu1 %v11551_v0  ;;  %948 = vperm.xlu0 %6163, %v690_v31   ;;  %v6186_v31 = vld [vmem:[%s11870_s1 + $0xa8] sm:$0xff]  }
  0xa0   : > { %953 = vperm.xlu1 %6164, %v691_v32   ;;  %v6919_v38 = vpop.permute.xlu0 %783  ;;  %v6921_v39 = vpop.permute.xlu1 %943  ;;  %v2972_v32 = vld [vmem:[%s11530_s4 + $0xb8] sm:$0xff] }
  0xa1   : > { %11873 = vst [vmem:[#allocation21_spill] sm:$0xff] %v6919_v38  ;;  %11874 = vst [vmem:[#allocation22_spill] sm:$0xff] %v6921_v39 }
  0xa3   : > { %3053 = vperm.xlu0 %6163, %v2963_v35  }
  0xa4   : > { %3058 = vperm.xlu1 %6164, %v2964_v37   ;;  %v2969_v37 = vld [vmem:[%s11530_s4 + $0xa0] sm:$0xff] }
  0xa5   : > { %5952 = vmatmul.mubr.msk.bf16.gmra.mxu0 %vm11637_vm0, %v6180_v36  ;;  %v6932_v42 = vpop.permute.xlu0 %768 }
  0xa6   : > { %5984 = vmatmul.mubr.msk.bf16.gmra.mxu1 %vm11637_vm0, %v6180_v36  ;;  %1475 = vmatprep.mubr.bf16.mxu0 %v11551_v0  ;;  %11875 = vst [vmem:[#allocation23_spill] sm:$0xff] %v6932_v42  ;;  %v6935_v43 = vpop.permute.xlu1 %773 }
  0xa7   : > { %1828 = vmatprep.mubr.bf16.mxu1 %v11551_v0  ;;  %11876 = vst [vmem:[#allocation24_spill] sm:$0xff] %v6935_v43  ;;  %3043 = vperm.xlu0 %6163, %v2961_v40   ;;  %v2970_v40 = vld [vmem:[%s11530_s4 + $0xa8] sm:$0xff] }
  0xa8   : > { %3048 = vperm.xlu1 %6164, %v2962_v41  }
  0xaa   : > { %v6946_v47 = vpop.permute.xlu0 %928 }
  0xab   : > { %11877 = vst [vmem:[#allocation25_spill] sm:$0xff] %v6946_v47  ;;  %v6948_v48 = vpop.permute.xlu1 %933  ;;  %3033 = vperm.xlu0 %6163, %v2959_v44  }
  0xac   : > { %11878 = vst [vmem:[#allocation26_spill] sm:$0xff] %v6948_v48  ;;  %3038 = vperm.xlu1 %6164, %v2960_v46   ;;  %v6187_v46 = vld [vmem:[%s11870_s1 + $0xb0] sm:$0xff]  }
  0xad   : > { %5953 = vmatmul.mubr.msk.bf16.gmra.mxu0 %vm11637_vm0, %v6181_v45 }
  0xae   : > { %5985 = vmatmul.mubr.msk.bf16.gmra.mxu1 %vm11637_vm0, %v6181_v45  ;;  %1485 = vmatprep.mubr.bf16.mxu0 %v11551_v0  ;;  %v6959_v51 = vpop.permute.xlu0 %758  ;;  %v2967_v45 = vld [vmem:[%s11530_s4 + $0x90] sm:$0xff] }
  0xaf   : > { %11879 = vst [vmem:[#allocation27_spill] sm:$0xff] %v6959_v51  ;;  %1838 = vmatprep.mubr.bf16.mxu1 %v11551_v0  ;;  %v6962_v52 = vpop.permute.xlu1 %763  ;;  %3023 = vperm.xlu0 %6163, %v2957_v49   ;;  %v2968_v49 = vld [vmem:[%s11530_s4 + $0x98] sm:$0xff] }
  0xb0   : > { %11880 = vst [vmem:[#allocation28_spill] sm:$0xff] %v6962_v52  ;;  %3028 = vperm.xlu1 %6164, %v2958_v50  }
  0xb2   : > { %v6973_v56 = vpop.permute.xlu0 %918 }
  0xb3   : > { %11881 = vst [vmem:[#allocation29_spill] sm:$0xff] %v6973_v56  ;;  %v6975_v57 = vpop.permute.xlu1 %923  ;;  %3013 = vperm.xlu0 %6163, %v2955_v53  }
  0xb4   : > { %11882 = vst [vmem:[#allocation30_spill] sm:$0xff] %v6975_v57  ;;  %3018 = vperm.xlu1 %6164, %v2956_v55   ;;  %v2966_v55 = vld [vmem:[%s11530_s4 + $0x88] sm:$0xff] }
  0xb5   : > { %5954 = vmatmul.mubr.msk.bf16.gmra.mxu0 %vm11637_vm0, %v6182_v54 }
  0xb6   : > { %5986 = vmatmul.mubr.msk.bf16.gmra.mxu1 %vm11637_vm0, %v6182_v54  ;;  %1495 = vmatprep.mubr.bf16.mxu0 %v11551_v0  ;;  %v6986_v60 = vpop.permute.xlu0 %748  ;;  %v2965_v54 = vld [vmem:[%s11530_s4 + $0x80] sm:$0xff] }
  0xb7   : > { %11883 = vst [vmem:[#allocation31_spill] sm:$0xff] %v6986_v60  ;;  %1848 = vmatprep.mubr.bf16.mxu1 %v11551_v0  ;;  %v6989_v61 = vpop.permute.xlu1 %753  ;;  %3003 = vperm.xlu0 %6163, %v2953_v58  }
  0xb8   : > { %11884 = vst [vmem:[#allocation32_spill] sm:$0xff] %v6989_v61  ;;  %3008 = vperm.xlu1 %6164, %v2954_v59  }
  0xba   : > { %v7000_v2 = vpop.permute.xlu0 %908 }
  0xbb   : > { %11885 = vst [vmem:[#allocation33_spill] sm:$0xff] %v7000_v2  ;;  %v7002_v3 = vpop.permute.xlu1 %913  ;;  %2993 = vperm.xlu0 %6163, %v2951_v62   ;;  %v4886_v62 = vld [vmem:[%s11534_s8 + $0x30] sm:$0xff] }
  0xbc   : > { %11886 = vst [vmem:[#allocation34_spill] sm:$0xff] %v7002_v3  ;;  %2998 = vperm.xlu1 %6164, %v2952_v1   ;;  %v4887_v1 = vld [vmem:[%s11534_s8 + $0x38] sm:$0xff] }
  0xbd   : > { %5955 = vmatmul.mubr.msk.bf16.gmra.mxu0 %vm11637_vm0, %v6183_v63 }
  0xbe   : > { %5987 = vmatmul.mubr.msk.bf16.gmra.mxu1 %vm11637_vm0, %v6183_v63  ;;  %1505 = vmatprep.mubr.bf16.mxu0 %v11551_v0  ;;  %v7013_v6 = vpop.permute.xlu0 %738  ;;  %v6188_v63 = vld [vmem:[%s11870_s1 + $0xb8] sm:$0xff]  }
  0xbf   : > { %11887 = vst [vmem:[#allocation35_spill] sm:$0xff] %v7013_v6  ;;  %1858 = vmatprep.mubr.bf16.mxu1 %v11551_v0  ;;  %v7016_v7 = vpop.permute.xlu1 %743  ;;  %2983 = vperm.xlu0 %6163, %v2949_v4  }
  0xc0   : > { %11888 = vst [vmem:[#allocation36_spill] sm:$0xff] %v7016_v7  ;;  %2988 = vperm.xlu1 %6164, %v2950_v5  }
  0xc2   : > { %v7027_v14 = vpop.permute.xlu0 %898 }
  0xc3   : > { %11889 = vst [vmem:[#allocation37_spill] sm:$0xff] %v7027_v14  ;;  %v7029_v15 = vpop.permute.xlu1 %903  ;;  %3133 = vperm.xlu0 %6163, %v2979_v9   ;;  %v4884_v9 = vld [vmem:[%s11534_s8 + $0x20] sm:$0xff] }
  0xc4   : > { %11890 = vst [vmem:[#allocation38_spill] sm:$0xff] %v7029_v15  ;;  %3138 = vperm.xlu1 %6164, %v2980_v11  }
  0xc5   : > { %5956 = vmatmul.mubr.msk.bf16.gmra.mxu0 %vm11637_vm0, %v6184_v10 }
  0xc6   : > { %5988 = vmatmul.mubr.msk.bf16.gmra.mxu1 %vm11637_vm0, %v6184_v10  ;;  %1515 = vmatprep.mubr.bf16.mxu0 %v11551_v0  ;;  %v7040_v19 = vpop.permute.xlu0 %728  ;;  %v4885_v10 = vld [vmem:[%s11534_s8 + $0x28] sm:$0xff] }
  0xc7   : > { %1868 = vmatprep.mubr.bf16.mxu1 %v11551_v0  ;;  %v7043_v20 = vpop.permute.xlu1 %733  ;;  %3123 = vperm.xlu0 %6163, %v2977_v16   ;;  %v4882_v16 = vld [vmem:[%s11534_s8 + $0x10] sm:$0xff] }
  0xc8   : > { %3128 = vperm.xlu1 %6164, %v2978_v18   ;;  %v6189_v18 = vld [vmem:[%s11870_s1 + $0xc0] sm:$0xff]  }
  0xca   : > { %v7054_v24 = vpop.permute.xlu0 %888 }
  0xcb   : > { %11891 = vst [vmem:[#allocation39_spill] sm:$0xff] %v7054_v24  ;;  %v7056_v25 = vpop.permute.xlu1 %893  ;;  %3113 = vperm.xlu0 %6163, %v2975_v21   ;;  %v4883_v21 = vld [vmem:[%s11534_s8 + $0x18] sm:$0xff] }
  0xcc   : > { %11892 = vst [vmem:[#allocation40_spill] sm:$0xff] %v7056_v25  ;;  %3118 = vperm.xlu1 %6164, %v2976_v23  }
  0xcd   : > { %5957 = vmatmul.mubr.msk.bf16.gmra.mxu0 %vm11637_vm0, %v6185_v22 }
  0xce   : > { %5989 = vmatmul.mubr.msk.bf16.gmra.mxu1 %vm11637_vm0, %v6185_v22  ;;  %1525 = vmatprep.mubr.bf16.mxu0 %v11551_v0  ;;  %v7067_v28 = vpop.permute.xlu0 %718 }
  0xcf   : > { %1878 = vmatprep.mubr.bf16.mxu1 %v11551_v0  ;;  %v7070_v29 = vpop.permute.xlu1 %723  ;;  %3103 = vperm.xlu0 %6163, %v2973_v26   ;;  %v4880_v26 = vld [vmem:[%s11534_s8] sm:$0xff] }
  0xd0   : > { %3108 = vperm.xlu1 %6164, %v2974_v27  }
  0xd2   : > { %v7081_v35 = vpop.permute.xlu0 %878 }
  0xd3   : > { %11893 = vst [vmem:[#allocation41_spill] sm:$0xff] %v7081_v35  ;;  %v7083_v36 = vpop.permute.xlu1 %883  ;;  %3093 = vperm.xlu0 %6163, %v2971_v30   ;;  %v4881_v30 = vld [vmem:[%s11534_s8 + $0x8] sm:$0xff] }
  0xd4   : > { %11894 = vst [vmem:[#allocation42_spill] sm:$0xff] %v7083_v36  ;;  %3098 = vperm.xlu1 %6164, %v2972_v32  }
  0xd5   : > { %5958 = vmatmul.mubr.msk.bf16.gmra.mxu0 %vm11637_vm0, %v6186_v31 }
  0xd6   : > { %5990 = vmatmul.mubr.msk.bf16.gmra.mxu1 %vm11637_vm0, %v6186_v31  ;;  %1535 = vmatprep.mubr.bf16.mxu0 %v11551_v0  ;;  %v7094_v41 = vpop.permute.xlu0 %708 }
  0xd7   : > { %1888 = vmatprep.mubr.bf16.mxu1 %v11551_v0  ;;  %v7097_v44 = vpop.permute.xlu1 %713  ;;  %3083 = vperm.xlu0 %6163, %v2969_v37  }
  0xd8   : > { %3088 = vperm.xlu1 %6164, %v2970_v40  }
  0xda   : > { %v7108_v50 = vpop.permute.xlu0 %868 }
  0xdb   : > { %11895 = vst [vmem:[#allocation43_spill] sm:$0xff] %v7108_v50  ;;  %v7110_v53 = vpop.permute.xlu1 %873  ;;  %3073 = vperm.xlu0 %6163, %v2967_v45  }
  0xdc   : > { %11896 = vst [vmem:[#allocation44_spill] sm:$0xff] %v7110_v53  ;;  %3078 = vperm.xlu1 %6164, %v2968_v49   ;;  %v5224_v49 = vld [vmem:[%s11536_s10 + $0x10] sm:$0xff] }
  0xdd   : > { %5959 = vmatmul.mubr.msk.bf16.gmra.mxu0 %vm11637_vm0, %v6187_v46 }
  0xde   : > { %5991 = vmatmul.mubr.msk.bf16.gmra.mxu1 %vm11637_vm0, %v6187_v46  ;;  %1545 = vmatprep.mubr.bf16.mxu0 %v11551_v0  ;;  %v7121_v58 = vpop.permute.xlu0 %858 }
  0xdf   : > { %11897 = vst [vmem:[#allocation45_spill] sm:$0xff] %v7121_v58  ;;  %1898 = vmatprep.mubr.bf16.mxu1 %v11551_v0  ;;  %v7124_v59 = vpop.permute.xlu1 %863  ;;  %3063 = vperm.xlu0 %6163, %v2965_v54  }
  0xe0   : > { %11898 = vst [vmem:[#allocation46_spill] sm:$0xff] %v7124_v59  ;;  %3068 = vperm.xlu1 %6164, %v2966_v55  }
  0xe2   : > { %v7135_v4 = vpop.permute.xlu0 %1018 }
  0xe3   : > { %11899 = vst [vmem:[#allocation47_spill] sm:$0xff] %v7135_v4  ;;  %4920 = vperm.xlu0 %6163, %v4886_v62   ;;  %v7137_v5 = vpop.permute.xlu1 %1023 }
  0xe4   : > { %11900 = vst [vmem:[#allocation48_spill] sm:$0xff] %v7137_v5  ;;  %4925 = vperm.xlu1 %6164, %v4887_v1   ;;  %v5225_v1 = vld [vmem:[%s11536_s10 + $0x18] sm:$0xff] }
  0xe5   : > { %5960 = vmatmul.mubr.msk.bf16.gmra.mxu0 %vm11637_vm0, %v6188_v63 }
  0xe6   : > { %5992 = vmatmul.mubr.msk.bf16.gmra.mxu1 %vm11637_vm0, %v6188_v63  ;;  %1555 = vmatprep.mubr.bf16.mxu0 %v11551_v0  ;;  %v7148_v11 = vpop.permute.xlu0 %848  ;;  %v6190_v63 = vld [vmem:[%s11870_s1 + $0xc8] sm:$0xff]  }
  0xe7   : > { %11901 = vst [vmem:[#allocation49_spill] sm:$0xff] %v7148_v11  ;;  %1908 = vmatprep.mubr.bf16.mxu1 %v11551_v0  ;;  %4910 = vperm.xlu0 %6163, %v4884_v9   ;;  %v7160_v22 = vpop.permute.xlu1 %853 }
  0xe8   : > { %4915 = vperm.xlu1 %6164, %v4885_v10   ;;  %11902 = vst [vmem:[#allocation50_spill] sm:$0xff] %v7160_v22 }
  0xea   : > { %v7162_v23 = vpop.permute.xlu0 %1008 }
  0xeb   : > { %4900 = vperm.xlu0 %6163, %v4882_v16   ;;  %11903 = vst [vmem:[#allocation51_spill] sm:$0xff] %v7162_v23  ;;  %v7176_v46 = vpop.permute.xlu1 %1013 }
  0xec   : > { %4905 = vperm.xlu1 %6164, %v4883_v21   ;;  %11904 = vst [vmem:[#allocation52_spill] sm:$0xff] %v7176_v46 }
  0xed   : > { %v1317_v27 = vpop.f32.mrf.mxu0  ;;  %5961 = vmatmul.mubr.msk.bf16.gmra.mxu0 %vm11637_vm0, %v6189_v18 }
  0xee   : > { %v1318_v31 = vadd.f32 %v1317_v27, %v7094_v41  ;;  %v1670_v32 = vpop.f32.mrf.mxu1  ;;  %5993 = vmatmul.mubr.msk.bf16.gmra.mxu1 %vm11637_vm0, %v6189_v18  ;;  %1565 = vmatprep.mubr.bf16.mxu0 %v11551_v0  ;;  %v7191_v18 = vpop.permute.xlu0 %838 }
  0xef   : > { %v1671_v37 = vadd.f32 %v1670_v32, %v7094_v41  ;;  %v1319_v40 = vpop.f32.mrf.mxu0  ;;  %1918 = vmatprep.mubr.bf16.mxu1 %v11551_v0  ;;  %4890 = vperm.xlu0 %6163, %v4880_v26   ;;  %11906 = vst [vmem:[#allocation54_spill] sm:$0xff] %v7191_v18 }
  0xf0   : > { %v1672_v45 = vpop.f32.mrf.mxu1  ;;  %4895 = vperm.xlu1 %6164, %v4881_v30   ;;  %v2245_v9 = vmul.f32 0.01, %v1318_v31  ;;  %vm1989_vm2 = vcmp.ge.f32.partialorder %v1318_v31, 0.0  ;;  %v1320_v27 = vadd.f32 %v1319_v40, %v7094_v41 }
  0xf1   : > { %v2247_v54 = vmul.f32 0.01, %v1671_v37  ;;  %v7182_v55 = vadd.f32 %v1672_v45, %v7094_v41  ;;  %v1321_v62 = vpop.f32.mrf.mxu0  ;;  %vm1991_vm1 = vcmp.ge.f32.partialorder %v1671_v37, 0.0  ;;  %v5223_v41 = vld [vmem:[%s11536_s10 + $0x8] sm:$0xff] }
  0xf2   : > { %v1322_v10 = vadd.f32 %v1321_v62, %v7097_v44  ;;  %v1674_v16 = vpop.f32.mrf.mxu1  ;;  %v5222_v62 = vld [vmem:[%s11536_s10] sm:$0xff]  ;;  %v7209_v40 = vsel %vm1989_vm2, %v1318_v31, %v2245_v9  ;;  %v2246_v9 = vmul.f32 0.01, %v1320_v27  ;;  %vm1990_vm6 = vcmp.ge.f32.partialorder %v1320_v27, 0.0 }
  0xf3   : > { %11905 = vst [vmem:[#allocation53_spill] sm:$0xff] %v7182_v55  ;;  %v1675_v21 = vadd.f32 %v1674_v16, %v7097_v44  ;;  %v1323_v26 = vpop.f32.mrf.mxu0  ;;  %5238 = vperm.xlu0 %6163, %v5224_v49   ;;  %v7199_v0 = vsel %vm1991_vm1, %v1671_v37, %v2247_v54  ;;  %11909 = vst [vmem:[#allocation57_spill] sm:$0xff] %v7209_v40 }
  0xf4   : > { %vm1993_vm3 = vcmp.ge.f32.partialorder %v1322_v10, 0.0  ;;  %v2249_v30 = vmul.f32 0.01, %v1322_v10  ;;  %v1324_v32 = vadd.f32 %v1323_v26, %v7097_v44  ;;  %v1676_v45 = vpop.f32.mrf.mxu1  ;;  %5243 = vperm.xlu1 %6164, %v5225_v1   ;;  %11907 = vst [vmem:[#allocation55_spill] sm:$0xff] %v7199_v0 }
  0xf5   : > { %vm1995_vm4 = vcmp.ge.f32.partialorder %v1675_v21, 0.0  ;;  %v2251_v17 = vmul.f32 0.01, %v1675_v21  ;;  %v7202_v16 = vadd.f32 %v1676_v45, %v7097_v44  ;;  %v1327_v49 = vpop.f32.mrf.mxu0  ;;  %5962 = vmatmul.mubr.msk.bf16.gmra.mxu0 %vm11637_vm0, %v6190_v63  ;;  %v11911_v44 = vmov 0   ;;  %v7216_v45 = vpop.permute.xlu1 %843 }
  0xf6   : > { %v7211_v1 = vsel %vm1993_vm3, %v1322_v10, %v2249_v30  ;;  %v2250_v26 = vmul.f32 0.01, %v1324_v32  ;;  %v1328_v37 = vadd.f32 %v1327_v49, %v7067_v28  ;;  %v1680_v54 = vpop.f32.mrf.mxu1  ;;  %5994 = vmatmul.mubr.msk.bf16.gmra.mxu1 %vm11637_vm0, %v6190_v63  ;;  %1575 = vmatprep.mubr.bf16.mxu0 %v11911_v44  ;;  %11912 = vst [vmem:[#allocation59_spill] sm:$0xff] %v7216_v45  ;;  %vm1994_vm5 = vcmp.ge.f32.partialorder %v1324_v32, 0.0  ;;  %v7228_v49 = vpop.permute.xlu0 %998  ;;  %v6191_v10 = vld [vmem:[%s11870_s1 + $0xd0] sm:$0xff]  }
  0xf7   : > { %11908 = vst [vmem:[#allocation56_spill] sm:$0xff] %v7202_v16  ;;  %11910 = vst [vmem:[#allocation58_spill] sm:$0xff] %v7211_v1  ;;  %v7220_v13 = vsel %vm1995_vm4, %v1675_v21, %v2251_v17  ;;  %v7222_v31 = vpop.f32.mrf.mxu0  ;;  %1928 = vmatprep.mubr.bf16.mxu1 %v11911_v44  ;;  %5228 = vperm.xlu0 %6163, %v5222_v62   ;;  %v1681_v63 = vadd.f32 %v1680_v54, %v7067_v28  ;;  %v5427_v17 = vld [vmem:[%s11538_s12] sm:$0xff]  ;;  %v5428_v54 = vld [vmem:[%s11538_s12 + $0x8] sm:$0xff] }
  0xf8   : > { %11913 = vst [vmem:[#allocation60_spill] sm:$0xff] %v7220_v13  ;;  %v1682_v30 = vpop.f32.mrf.mxu1  ;;  %11914 = vst [vmem:[#allocation61_spill] sm:$0xff] %v7228_v49  ;;  %5233 = vperm.xlu1 %6164, %v5223_v41   ;;  %v2253_v21 = vmul.f32 0.01, %v1328_v37  ;;  %vm1997_vm7 = vcmp.ge.f32.partialorder %v1328_v37, 0.0  ;;  %v7244_v23 = vsel %vm1994_vm5, %v1324_v32, %v2250_v26  ;;  %v7255_v13 = vsel %vm1990_vm6, %v1320_v27, %v2246_v9 }
  0xf9   : > { %v7234_v12 = vadd.f32 %v1682_v30, %v7067_v28  ;;  %v1331_v62 = vpop.f32.mrf.mxu0  ;;  %v2255_v41 = vmul.f32 0.01, %v1681_v63  ;;  %11916 = vst [vmem:[#allocation63_spill] sm:$0xff] %v7244_v23  ;;  %vm1999_vm8 = vcmp.ge.f32.partialorder %v1681_v63, 0.0  ;;  %v7249_v0 = vpop.permute.xlu1 %1003  ;;  %11918 = vst [vmem:[#allocation65_spill] sm:$0xff] %v7255_v13 }
  0xfa   : > { %v1332_v8 = vadd.f32 %v1331_v62, %v7070_v29  ;;  %v1684_v5 = vpop.f32.mrf.mxu1  ;;  %11917 = vst [vmem:[#allocation64_spill] sm:$0xff] %v7249_v0  ;;  %v4682_v62 = vld [vmem:[%s11532_s6] sm:$0x3]  ;;  %v7258_v32 = vsel %vm1997_vm7, %v1328_v37, %v2253_v21  ;;  %v7278_v21 = vpop.permute.xlu0 %828  ;;  %v6192_v0 = vld [vmem:[%s11870_s1 + $0xd8] sm:$0xff]  }
  0xfb   : > { %11915 = vst [vmem:[#allocation62_spill] sm:$0xff] %v7234_v12  ;;  %v7246_v30 = vpop.f32.mrf.mxu0  ;;  %5431 = vperm.xlu0 %6163, %v5427_v17   ;;  %v1685_v4 = vadd.f32 %v1684_v5, %v7070_v29  ;;  %11919 = vst [vmem:[#allocation66_spill] sm:$0xff] %v7258_v32  ;;  %v5563_v5 = vld [vmem:[%s11540_s14] sm:$0x3]  ;;  %v7272_v27 = vsel %vm1999_vm8, %v1681_v63, %v2255_v41 }
  0xfc   : > { %vm2001_vm9 = vcmp.ge.f32.partialorder %v1332_v8, 0.0  ;;  %v2257_v49 = vmul.f32 0.01, %v1332_v8  ;;  %v1686_v46 = vpop.f32.mrf.mxu1  ;;  %5436 = vperm.xlu1 %6164, %v5428_v54   ;;  %11921 = vst [vmem:[#allocation68_spill] sm:$0xff] %v7272_v27  ;;  %11923 = vst [vmem:[#allocation70_spill] sm:$0xff] %v7278_v21 }
  0xfd   : > { %v7261_v26 = vadd.f32 %v1686_v46, %v7070_v29  ;;  %v7263_v17 = vpop.f32.mrf.mxu0  ;;  %5963 = vmatmul.mubr.msk.bf16.gmra.mxu0 %vm11637_vm0, %v6191_v10  ;;  %vm2003_vm10 = vcmp.ge.f32.partialorder %v1685_v4, 0.0  ;;  %v2259_v37 = vmul.f32 0.01, %v1685_v4 }
  0xfe   : > { %v7274_v9 = vsel %vm2001_vm9, %v1332_v8, %v2257_v49  ;;  %v1690_v46 = vpop.f32.mrf.mxu1  ;;  %5995 = vmatmul.mubr.msk.bf16.gmra.mxu1 %vm11637_vm0, %v6191_v10  ;;  %1585 = vmatprep.mubr.bf16.mxu0 %v11911_v44  ;;  %v7302_v49 = vpop.permute.xlu0 %988 }
  0xff   : > { %11920 = vst [vmem:[#allocation67_spill] sm:$0xff] %v7261_v26  ;;  %11922 = vst [vmem:[#allocation69_spill] sm:$0xff] %v7274_v9  ;;  %v7282_v39 = vpop.f32.mrf.mxu0  ;;  %1938 = vmatprep.mubr.bf16.mxu1 %v11911_v44  ;;  %4685 = vperm.xlu0 %6163, %v4682_v62   ;;  %v7285_v63 = vsel %vm2003_vm10, %v1685_v4, %v2259_v37  ;;  %v1691_v10 = vadd.f32 %v1690_v46, %v7040_v19  ;;  %v7298_v62 = vpop.permute.xlu1 %833 }
 0x100   : > { %11924 = vst [vmem:[#allocation71_spill] sm:$0xff] %v7285_v63  ;;  %v1692_v8 = vpop.f32.mrf.mxu1  ;;  %5566 = vperm.xlu1 %6164, %v5563_v5   ;;  %11926 = vst [vmem:[#allocation73_spill] sm:$0xff] %v7298_v62 }
 0x101   : > { %v7291_v41 = vadd.f32 %v1692_v8, %v7040_v19  ;;  %v7293_v54 = vpop.f32.mrf.mxu0  ;;  %v2263_v4 = vmul.f32 0.01, %v1691_v10  ;;  %vm2007_vm11 = vcmp.ge.f32.partialorder %v1691_v10, 0.0  ;;  %11927 = vst [vmem:[#allocation74_spill] sm:$0xff] %v7302_v49 }
 0x102   : > { %v1694_v34 = vpop.f32.mrf.mxu1  ;;  %v7332_v2 = vpop.permute.xlu0 %818  ;;  %v7466_v26 = vadd.f32 %v7293_v54, %v7043_v20 }
 0x103   : > { %11925 = vst [vmem:[#allocation72_spill] sm:$0xff] %v7291_v41  ;;  %v7300_v37 = vpop.f32.mrf.mxu0  ;;  %v1695_v46 = vadd.f32 %v1694_v34, %v7043_v20  ;;  %v7313_v48 = vsel %vm2007_vm11, %v1691_v10, %v2263_v4  ;;  %11933 = vst [vmem:[#allocation80_spill] sm:$0xff] %v7332_v2  ;;  %v7412_v2 = vadd.f32 %v7246_v30, %v7070_v29 }
 0x104   : > { %v1696_v5 = vpop.f32.mrf.mxu1  ;;  %11929 = vst [vmem:[#allocation76_spill] sm:$0xff] %v7313_v48  ;;  %v7433_v29 = vadd.f32 %v7222_v31, %v7067_v28  ;;  %v7437_v30 = vadd.f32 %v7263_v17, %v7040_v19 }
 0x105   : > { %v7306_v8 = vadd.f32 %v1696_v5, %v7043_v20  ;;  %v7308_v27 = vpop.f32.mrf.mxu0  ;;  %5964 = vmatmul.mubr.msk.bf16.gmra.mxu0 %vm11637_vm0, %v6192_v0  ;;  %vm2011_vm12 = vcmp.ge.f32.partialorder %v1695_v46, 0.0  ;;  %v2267_v47 = vmul.f32 0.01, %v1695_v46  ;;  %v7320_v5 = vpop.permute.xlu1 %993 }
 0x106   : > { %v1700_v63 = vpop.f32.mrf.mxu1  ;;  %5996 = vmatmul.mubr.msk.bf16.gmra.mxu1 %vm11637_vm0, %v6192_v0  ;;  %1595 = vmatprep.mubr.bf16.mxu0 %v11911_v44  ;;  %11931 = vst [vmem:[#allocation78_spill] sm:$0xff] %v7320_v5  ;;  %v6193_v0 = vld [vmem:[%s11870_s1 + $0xe0] sm:$0xff]   ;;  %v7353_v24 = vpop.permute.xlu0 %978 }
 0x107   : > { %11928 = vst [vmem:[#allocation75_spill] sm:$0xff] %v7306_v8  ;;  %v7315_v57 = vpop.f32.mrf.mxu0  ;;  %1948 = vmatprep.mubr.bf16.mxu1 %v11911_v44  ;;  %v7322_v49 = vsel %vm2011_vm12, %v1695_v46, %v2267_v47  ;;  %v1701_v56 = vadd.f32 %v1700_v63, %v7013_v6  ;;  %11938 = vst [vmem:[#allocation85_spill] sm:$0xff] %v7353_v24 }
 0x108   : > { %v7318_v34 = vpop.f32.mrf.mxu1  ;;  %11932 = vst [vmem:[#allocation79_spill] sm:$0xff] %v7322_v49  ;;  %v7427_v8 = vadd.f32 %v7315_v57, %v7013_v6  ;;  %v7445_v57 = vmul.f32 0.01, %v7412_v2 }
 0x109   : > { %11930 = vst [vmem:[#allocation77_spill] sm:$0xff] %v7318_v34  ;;  %v7325_v3 = vpop.f32.mrf.mxu0  ;;  %v2271_v15 = vmul.f32 0.01, %v1701_v56  ;;  %vm2015_vm13 = vcmp.ge.f32.partialorder %v1701_v56, 0.0  ;;  %v7344_v10 = vpop.permute.xlu1 %823 }
 0x10a   : > { %v1704_v4 = vpop.f32.mrf.mxu1  ;;  %11935 = vst [vmem:[#allocation82_spill] sm:$0xff] %v7344_v10  ;;  %11955 = vst [vmem:[#allocation102_spill] sm:$0xff] %v7445_v57 }
 0x10b   : > { %v7334_v14 = vpop.f32.mrf.mxu0  ;;  %v1705_v63 = vadd.f32 %v1704_v4, %v7016_v7  ;;  %v7346_v48 = vsel %vm2015_vm13, %v1701_v56, %v2271_v15  ;;  %v6194_v56 = vld [vmem:[%s11870_s1 + $0xe8] sm:$0xff]   ;;  %v7377_v15 = vpop.permute.xlu0 %808 }
 0x10c   : > { %v7336_v47 = vpop.f32.mrf.mxu1  ;;  %11936 = vst [vmem:[#allocation83_spill] sm:$0xff] %v7346_v48  ;;  %v7453_v28 = vadd.f32 %v7334_v14, %v7016_v7 }
 0x10d   : > { %11934 = vst [vmem:[#allocation81_spill] sm:$0xff] %v7336_v47  ;;  %v7339_v46 = vpop.f32.mrf.mxu0  ;;  %5965 = vmatmul.mubr.msk.bf16.gmra.mxu0 %vm11637_vm0, %v6193_v0  ;;  %vm2019_vm14 = vcmp.ge.f32.partialorder %v1705_v63, 0.0  ;;  %v2275_v49 = vmul.f32 0.01, %v1705_v63 }
 0x10e   : > { %v1710_v5 = vpop.f32.mrf.mxu1  ;;  %5997 = vmatmul.mubr.msk.bf16.gmra.mxu1 %vm11637_vm0, %v6193_v0  ;;  %1605 = vmatprep.mubr.bf16.mxu0 %v11911_v44 }
 0x10f   : > { %v7348_v25 = vpop.f32.mrf.mxu0  ;;  %1958 = vmatprep.mubr.bf16.mxu1 %v11911_v44  ;;  %v7355_v36 = vsel %vm2019_vm14, %v1705_v63, %v2275_v49  ;;  %v1711_v0 = vadd.f32 %v1710_v5, %v6986_v60  ;;  %v7368_v49 = vpop.permute.xlu1 %983 }
 0x110   : > { %v7351_v4 = vpop.f32.mrf.mxu1  ;;  %11939 = vst [vmem:[#allocation86_spill] sm:$0xff] %v7355_v36  ;;  %11941 = vst [vmem:[#allocation88_spill] sm:$0xff] %v7368_v49  ;;  %v6195_v36 = vld [vmem:[%s11870_s1 + $0xf0] sm:$0xff]   ;;  %v7395_v62 = vpop.permute.xlu0 %968  ;;  %v7457_v31 = vadd.f32 %v7348_v25, %v6986_v60 }
 0x111   : > { %11937 = vst [vmem:[#allocation84_spill] sm:$0xff] %v7351_v4  ;;  %v7358_v35 = vpop.f32.mrf.mxu0  ;;  %vm2023_vm15 = vcmp.ge.f32.partialorder %v1711_v0, 0.0  ;;  %v2279_v50 = vmul.f32 0.01, %v1711_v0  ;;  %11949 = vst [vmem:[#allocation96_spill] sm:$0xff] %v7395_v62  ;;  %v6196_v62 = vld [vmem:[%s11870_s1 + $0xf8] sm:$0xff]  }
 0x112   : > { %v1714_v53 = vpop.f32.mrf.mxu1  ;;  %v7474_v14 = vadd.f32 %v7358_v35, %v6989_v61 }
 0x113   : > { %v1715_v59 = vadd.f32 %v1714_v53, %v6989_v61  ;;  %v1363_v58 = vpop.f32.mrf.mxu0  ;;  %v7371_v63 = vsel %vm2023_vm15, %v1711_v0, %v2279_v50  ;;  %v7391_v45 = vpop.permute.xlu1 %813 }
 0x114   : > { %v7366_v24 = vpop.f32.mrf.mxu1  ;;  %11942 = vst [vmem:[#allocation89_spill] sm:$0xff] %v7371_v63  ;;  %11947 = vst [vmem:[#allocation94_spill] sm:$0xff] %v7391_v45 }
 0x115   : > { %11940 = vst [vmem:[#allocation87_spill] sm:$0xff] %v7366_v24  ;;  %vm2027_vm1 = vcmp.ge.f32.partialorder %v1715_v59, 0.0  ;;  %v1367_v5 = vpop.f32.mrf.mxu0  ;;  %5966 = vmatmul.mubr.msk.bf16.gmra.mxu0 %vm11637_vm0, %v6194_v56  ;;  %v2283_v22 = vmul.f32 0.01, %v1715_v59 }
 0x116   : > { %v7373_v11 = vpop.f32.mrf.mxu1  ;;  %5998 = vmatmul.mubr.msk.bf16.gmra.mxu1 %vm11637_vm0, %v6194_v56  ;;  %1615 = vmatprep.mubr.bf16.mxu0 %v11911_v44 }
 0x117   : > { %11943 = vst [vmem:[#allocation90_spill] sm:$0xff] %v7373_v11  ;;  %v1369_v53 = vpop.f32.mrf.mxu0  ;;  %1968 = vmatprep.mubr.bf16.mxu1 %v11911_v44  ;;  %v7380_v48 = vsel %vm2027_vm1, %v1715_v59, %v2283_v22 }
 0x118   : > { %11944 = vst [vmem:[#allocation91_spill] sm:$0xff] %v7380_v48  ;;  %v7382_v49 = vpop.f32.mrf.mxu1  ;;  %v7405_v48 = vpop.permute.xlu1 %973  ;;  %v7487_v54 = vadd.f32 %v1369_v53, %v6959_v51  ;;  %v7507_v53 = vmul.f32 0.01, %v7453_v28 }
 0x119   : > { %11945 = vst [vmem:[#allocation92_spill] sm:$0xff] %v7382_v49  ;;  %v1371_v0 = vpop.f32.mrf.mxu0  ;;  %11952 = vst [vmem:[#allocation99_spill] sm:$0xff] %v7405_v48  ;;  %v7423_v48 = vadd.f32 %v7300_v37, %v7043_v20  ;;  %v7484_v20 = vadd.f32 %v1367_v5, %v6959_v51 }
 0x11a   : > { %v7389_v56 = vpop.f32.mrf.mxu1  ;;  %v7501_v49 = vadd.f32 %v1371_v0, %v6962_v52  ;;  %v7521_v0 = vmul.f32 0.01, %v7474_v14  ;;  %vm2030_vm8 = vcmp.ge.f32.partialorder %v7487_v54, 0.0 }
 0x11b   : > { %11946 = vst [vmem:[#allocation93_spill] sm:$0xff] %v7389_v56  ;;  %v1373_v18 = vpop.f32.mrf.mxu0  ;;  %v7528_v47 = vmul.f32 0.01, %v7484_v20  ;;  %vm2029_vm11 = vcmp.ge.f32.partialorder %v7484_v20, 0.0 }
 0x11c   : > { %v7393_v10 = vpop.f32.mrf.mxu1  ;;  %v7462_v17 = vpop.permute.xlu1 %803  ;;  %v7504_v5 = vadd.f32 %v1373_v18, %v6962_v52  ;;  %v7539_v34 = vmul.f32 0.01, %v7501_v49 }
 0x11d   : > { %11948 = vst [vmem:[#allocation95_spill] sm:$0xff] %v7393_v10  ;;  %v1377_v59 = vpop.f32.mrf.mxu0  ;;  %5967 = vmatmul.mubr.msk.bf16.gmra.mxu0 %vm11637_vm0, %v6195_v36  ;;  %11957 = vst [vmem:[#allocation104_spill] sm:$0xff] %v7462_v17 }
 0x11e   : > { %v7398_v22 = vpop.f32.mrf.mxu1  ;;  %5999 = vmatmul.mubr.msk.bf16.gmra.mxu1 %vm11637_vm0, %v6195_v36  ;;  %1625 = vmatprep.mubr.bf16.mxu0 %v11911_v44  ;;  %v7416_v36 = vpop.permute.xlu0 %798  ;;  %vm2034_vm4 = vcmp.ge.f32.partialorder %v7504_v5, 0.0 }
 0x11f   : > { %11950 = vst [vmem:[#allocation97_spill] sm:$0xff] %v7398_v22  ;;  %v1379_v50 = vpop.f32.mrf.mxu0  ;;  %1978 = vmatprep.mubr.bf16.mxu1 %v11911_v44  ;;  %v6199_v44 = vld [vmem:[%s11529_s3 + $0x4] ss:$16 sps:$4 sm:$0xff]  }
 0x120   : > { %v7403_v63 = vpop.f32.mrf.mxu1 }
 0x121   : > { %11951 = vst [vmem:[#allocation98_spill] sm:$0xff] %v7403_v63  ;;  %v1381_v21 = vpop.f32.mrf.mxu0 }
 0x122   : > { %v7414_v10 = vpop.f32.mrf.mxu1  ;;  %v7524_v18 = vadd.f32 %v1381_v21, %v6935_v43  ;;  %v7542_v21 = vmul.f32 0.01, %v7504_v5 }
 0x123   : > { %11953 = vst [vmem:[#allocation100_spill] sm:$0xff] %v7414_v10  ;;  %v1383_v63 = vpop.f32.mrf.mxu0  ;;  %v7441_v10 = vadd.f32 %v7325_v3, %v7016_v7  ;;  %v7536_v7 = vpop.permute.xlu1 %963 }
 0x124   : > { %v7429_v41 = vpop.f32.mrf.mxu1  ;;  %v1384_v4 = vadd.f32 %v1383_v63, %v6935_v43  ;;  %11962 = vst [vmem:[#allocation109_spill] sm:$0xff] %v7536_v7  ;;  %vm2041_vm5 = vcmp.ge.f32.partialorder %v7524_v18, 0.0  ;;  %v2297_v23 = vmul.f32 0.01, %v7524_v18 }
 0x125   : > { %11954 = vst [vmem:[#allocation101_spill] sm:$0xff] %v7429_v41  ;;  %v1387_v37 = vpop.f32.mrf.mxu0  ;;  %5968 = vmatmul.mubr.msk.bf16.gmra.mxu0 %vm11637_vm0, %v6196_v62  ;;  %v7449_v41 = vadd.f32 %v7282_v39, %v7040_v19  ;;  %v7470_v39 = vadd.f32 %v7308_v27, %v7013_v6  ;;  %v1364_v19 = vadd.f32 %v1363_v58, %v6989_v61  ;;  %v7494_v35 = vmul.f32 0.01, %v7441_v10 }
 0x126   : > { %v7459_v3 = vpop.f32.mrf.mxu1  ;;  %6000 = vmatmul.mubr.msk.bf16.gmra.mxu1 %vm11637_vm0, %v6196_v62  ;;  %3493 = vmatprep.mubr.bf16.mxu0 %v6199_v44  ;;  %v7478_v62 = vmul.f32 0.01, %v7423_v48  ;;  %v7481_v44 = vmul.f32 0.01, %v7427_v8  ;;  %v7498_v58 = vadd.f32 %v7339_v46, %v6986_v60  ;;  %v7516_v61 = vadd.f32 %v1379_v50, %v6932_v42 }
 0x127   : > { %11956 = vst [vmem:[#allocation103_spill] sm:$0xff] %v7459_v3  ;;  %v1389_v25 = vpop.f32.mrf.mxu0  ;;  %v7491_v3 = vpop.permute.xlu0 %958  ;;  %vm2026_vm2 = vcmp.ge.f32.partialorder %v1364_v19, 0.0  ;;  %v2282_v12 = vmul.f32 0.01, %v1364_v19  ;;  %v1388_v50 = vadd.f32 %v1387_v37, %v6905_v33  ;;  %vm2042_vm6 = vcmp.ge.f32.partialorder %v1384_v4, 0.0 }
 0x128   : > { %v7489_v27 = vpop.f32.mrf.mxu1  ;;  %11959 = vst [vmem:[#allocation106_spill] sm:$0xff] %v7491_v3  ;;  %v7513_v3 = vadd.f32 %v1377_v59, %v6932_v42  ;;  %v7531_v59 = vmul.f32 0.01, %v7487_v54  ;;  %v1390_v63 = vadd.f32 %v1389_v25, %v6905_v33  ;;  %vm2038_vm3 = vcmp.ge.f32.partialorder %v7516_v61, 0.0  ;;  %v7568_v51 = vpop.permute.xlu1 %793 }
 0x129   : > { %11958 = vst [vmem:[#allocation105_spill] sm:$0xff] %v7489_v27  ;;  %v1391_v24 = vpop.f32.mrf.mxu0  ;;  %v7510_v27 = vmul.f32 0.01, %v7457_v31  ;;  %v7551_v37 = vmul.f32 0.01, %v7516_v61  ;;  %vm2045_vm9 = vcmp.ge.f32.partialorder %v1388_v50, 0.0 }
 0x12a   : > { %v7518_v46 = vpop.f32.mrf.mxu1  ;;  %v1392_v43 = vadd.f32 %v1391_v24, %v6919_v38  ;;  %v7547_v16 = vmul.f32 0.01, %v7513_v3  ;;  %vm2037_vm7 = vcmp.ge.f32.partialorder %v7513_v3, 0.0  ;;  %v2298_v42 = vmul.f32 0.01, %v1384_v4  ;;  %11965 = vst [vmem:[#allocation112_spill] sm:$0xff] %v7568_v51 }
 0x12b   : > { %11960 = vst [vmem:[#allocation107_spill] sm:$0xff] %v7518_v46  ;;  %v1393_v60 = vpop.f32.mrf.mxu0  ;;  %v2301_v55 = vmul.f32 0.01, %v1388_v50  ;;  %v2302_v52 = vmul.f32 0.01, %v1390_v63  ;;  %vm2046_vm12 = vcmp.ge.f32.partialorder %v1390_v63, 0.0 }
 0x12c   : > { %v7534_v46 = vpop.f32.mrf.mxu1  ;;  %v1394_v7 = vadd.f32 %v1393_v60, %v6919_v38  ;;  %v7564_v38 = vsel %vm2026_vm2, %v1364_v19, %v2282_v12  ;;  %v2305_v11 = vmul.f32 0.01, %v1392_v43  ;;  %vm2049_vm13 = vcmp.ge.f32.partialorder %v1392_v43, 0.0 }
 0x12d   : > { %11961 = vst [vmem:[#allocation108_spill] sm:$0xff] %v7534_v46  ;;  %v1397_v6 = vpop.f32.mrf.mxu0  ;;  %v7554_v46 = vpop.permute.xlu0 %788  ;;  %v2554_v57 = vsel %vm2042_vm6, %v1384_v4, %v2298_v42  ;;  %vm2025_vm0 = vcmp.ge.f32.partialorder %v7474_v14, 0.0  ;;  %vm2014_vm6 = vcmp.ge.f32.partialorder %v7427_v8, 0.0 }
 0x12e   : > { %11963 = vst [vmem:[#allocation110_spill] sm:$0xff] %v7554_v46  ;;  %v1750_v22 = vpop.f32.mrf.mxu1  ;;  %v1398_v24 = vadd.f32 %v1397_v6, %v7554_v46  ;;  %v2306_v56 = vmul.f32 0.01, %v1394_v7  ;;  %vm2050_vm10 = vcmp.ge.f32.partialorder %v1394_v7, 0.0 }
 0x12f   : > { %v1751_v25 = vadd.f32 %v1750_v22, %v7554_v46  ;;  %v7560_v33 = vpop.f32.mrf.mxu0 }
 0x130   : > { %11964 = vst [vmem:[#allocation111_spill] sm:$0xff] %v7560_v33  ;;  %v1752_v60 = vpop.f32.mrf.mxu1  ;;  %v2309_v22 = vmul.f32 0.01, %v1398_v24  ;;  %vm2053_vm1 = vcmp.ge.f32.partialorder %v1398_v24, 0.0  ;;  %v2562_v9 = vsel %vm2050_vm10, %v1394_v7, %v2306_v56  ;;  %vm2018_vm10 = vcmp.ge.f32.partialorder %v7453_v28, 0.0 }
 0x131   : > { %v1401_v6 = vpop.f32.mrf.mxu0  ;;  %v2311_v33 = vmul.f32 0.01, %v1751_v25  ;;  %vm2055_vm14 = vcmp.ge.f32.partialorder %v1751_v25, 0.0  ;;  %v7571_v12 = vadd.f32 %v1752_v60, %v7554_v46  ;;  %v2557_v60 = vsel %vm2045_vm9, %v1388_v50, %v2301_v55 }
 0x132   : > { %v1754_v40 = vpop.f32.mrf.mxu1  ;;  %v1402_v19 = vadd.f32 %v1401_v6, %v7568_v51  ;;  %v7592_v42 = vsel %vm2053_vm1, %v1398_v24, %v2309_v22  ;;  %vm2033_vm9 = vcmp.ge.f32.partialorder %v7501_v49, 0.0  ;;  %vm2013_vm1 = vcmp.ge.f32.partialorder %v7470_v39, 0.0 }
 0x133   : > { %11966 = vst [vmem:[#allocation113_spill] sm:$0xff] %v7571_v12  ;;  %v1755_v1 = vadd.f32 %v1754_v40, %v7568_v51  ;;  %v7575_v13 = vpop.f32.mrf.mxu0  ;;  %v2561_v12 = vsel %vm2049_vm13, %v1392_v43, %v2305_v11  ;;  %11970 = vst [vmem:[#allocation117_spill] sm:$0xff] %v7592_v42 }
 0x134   : > { %11967 = vst [vmem:[#allocation114_spill] sm:$0xff] %v7575_v13  ;;  %v7579_v32 = vpop.f32.mrf.mxu1  ;;  %vm2057_vm2 = vcmp.ge.f32.partialorder %v1402_v19, 0.0  ;;  %v2313_v6 = vmul.f32 0.01, %v1402_v19  ;;  %v7587_v13 = vsel %vm2055_vm14, %v1751_v25, %v2311_v33  ;;  %v2785_v4 = vpack.c.bf16 %v2561_v12, %v2557_v60  ;;  %v12017_v33 = vld [vmem:[#allocation77_spill] sm:$0xff] }
 0x135   : > { %11968 = vst [vmem:[#allocation115_spill] sm:$0xff] %v7579_v32  ;;  %v1407_v40 = vpop.f32.mrf.mxu0  ;;  %11969 = vst [vmem:[#allocation116_spill] sm:$0xff] %v7587_v13  ;;  %vm2059_vm15 = vcmp.ge.f32.partialorder %v1755_v1, 0.0  ;;  %v2315_v51 = vmul.f32 0.01, %v1755_v1  ;;  %v2558_v32 = vsel %vm2046_vm12, %v1390_v63, %v2302_v52  ;;  %v2541_v12 = vsel %vm2029_vm11, %v7484_v20, %v7528_v47  ;;  %v12019_v13 = vld [vmem:[#allocation36_spill] sm:$0xff] }
 0x136   : > { %v1760_v46 = vpop.f32.mrf.mxu1  ;;  %v7594_v7 = vsel %vm2057_vm2, %v1402_v19, %v2313_v6  ;;  %v2786_v43 = vpack.c.bf16 %v2562_v9, %v2558_v32  ;;  %v1408_v52 = vadd.f32 %v1407_v40, %v7416_v36  ;;  %v2553_v32 = vsel %vm2041_vm5, %v7524_v18, %v2297_v23 }
 0x137   : > { %11971 = vst [vmem:[#allocation118_spill] sm:$0xff] %v7594_v7  ;;  %v1761_v11 = vadd.f32 %v1760_v46, %v7416_v36  ;;  %v7597_v55 = vpop.f32.mrf.mxu0  ;;  %v7601_v56 = vsel %vm2059_vm15, %v1755_v1, %v2315_v51  ;;  %v2550_v51 = vsel %vm2038_vm3, %v7516_v61, %v7551_v37  ;;  %v2546_v23 = vsel %vm2034_vm4, %v7504_v5, %v7542_v21  ;;  %v12078_v7 = vld [vmem:[#allocation50_spill] sm:$0xff] }
 0x138   : > { %11972 = vst [vmem:[#allocation119_spill] sm:$0xff] %v7601_v56  ;;  %v1762_v50 = vpop.f32.mrf.mxu1  ;;  %3461 = vmatprep.subr.bf16.mxu0 %v2786_v43  ;;  %v2782_v63 = vpack.c.bf16 %v2554_v57, %v2550_v51  ;;  %vm2010_vm5 = vcmp.ge.f32.partialorder %v7423_v48, 0.0  ;;  %v2549_v18 = vsel %vm2037_vm7, %v7513_v3, %v7547_v16  ;;  %v2545_v5 = vsel %vm2033_vm9, %v7501_v49, %v7539_v34  ;;  %v12020_v56 = vld [vmem:[#allocation81_spill] sm:$0xff] }
 0x139   : > { %v1411_v1 = vpop.f32.mrf.mxu0  ;;  %3462 = vmatpush1.bf16.msra.mxu0 %v2785_v4  ;;  %vm2063_vm12 = vcmp.ge.f32.partialorder %v1761_v11, 0.0  ;;  %v2319_v46 = vmul.f32 0.01, %v1761_v11  ;;  %v7625_v61 = vadd.f32 %v1762_v50, %v7416_v36  ;;  %v2781_v21 = vpack.c.bf16 %v2553_v32, %v2549_v18 }
 0x13a   : > { %v1764_v24 = vpop.f32.mrf.mxu1  ;;  %v1412_v37 = vadd.f32 %v1411_v1, %v7462_v17  ;;  %v2317_v22 = vmul.f32 0.01, %v1408_v52  ;;  %3463 = vmatprep.subr.bf16.mxu0 %v2782_v63  ;;  %v2542_v16 = vsel %vm2030_vm8, %v7487_v54, %v7531_v59  ;;  %vm2006_vm3 = vcmp.ge.f32.partialorder %v7449_v41, 0.0 }
 0x13b   : > { %11973 = vst [vmem:[#allocation120_spill] sm:$0xff] %v7625_v61  ;;  %v1765_v57 = vadd.f32 %v1764_v24, %v7462_v17  ;;  %v7629_v25 = vpop.f32.mrf.mxu0  ;;  %vm2061_vm4 = vcmp.ge.f32.partialorder %v1408_v52, 0.0  ;;  %v7647_v34 = vsel %vm2063_vm12, %v1761_v11, %v2319_v46  ;;  %v2778_v49 = vpack.c.bf16 %v2546_v23, %v2542_v16  ;;  %v12025_v61 = vld [vmem:[#allocation84_spill] sm:$0xff] }
 0x13c   : > { %v7639_v3 = vpop.f32.mrf.mxu1  ;;  %11975 = vst [vmem:[#allocation122_spill] sm:$0xff] %v7647_v34  ;;  %vm2002_vm7 = vcmp.ge.f32.partialorder %v7412_v2, 0.0  ;;  %vm2065_vm8 = vcmp.ge.f32.partialorder %v1412_v37, 0.0  ;;  %v2321_v54 = vmul.f32 0.01, %v1412_v37  ;;  %vm2021_vm14 = vcmp.ge.f32.partialorder %v7498_v58, 0.0 }
 0x13d   : > { %11974 = vst [vmem:[#allocation121_spill] sm:$0xff] %v7639_v3  ;;  %v7649_v19 = vpop.f32.mrf.mxu0  ;;  %3464 = vmatpush1.bf16.msra.mxu0 %v2781_v21  ;;  %vm2067_vm13 = vcmp.ge.f32.partialorder %v1765_v57, 0.0  ;;  %v2323_v59 = vmul.f32 0.01, %v1765_v57  ;;  %v2277_v6 = vmul.f32 0.01, %v7498_v58  ;;  %v2777_v47 = vpack.c.bf16 %v2545_v5, %v2541_v12 }
 0x13e   : > { %v1770_v60 = vpop.f32.mrf.mxu1  ;;  %3465 = vmatprep.subr.bf16.mxu0 %v2778_v49  ;;  %vm11976_vm11 = vcmp.ge.f32.partialorder %v7457_v31, 0.0  ;;  %v7661_v43 = vsel %vm2061_vm4, %v1408_v52, %v2317_v22  ;;  %v7663_v11 = vsel %vm2065_vm8, %v1412_v37, %v2321_v54  ;;  %v2537_v51 = vsel %vm2025_vm0, %v7474_v14, %v7521_v0 }
 0x13f   : > { %v2534_v20 = vsel %vm11976_vm11, %v7457_v31, %v7510_v27  ;;  %v7658_v40 = vpop.f32.mrf.mxu0  ;;  %11977 = vst [vmem:[#allocation123_spill] sm:$0xff] %v7661_v43  ;;  %11978 = vst [vmem:[#allocation124_spill] sm:$0xff] %v7663_v11  ;;  %v7665_v4 = vsel %vm2067_vm13, %v1765_v57, %v2323_v59  ;;  %v1771_v50 = vadd.f32 %v1770_v60, %v7377_v15  ;;  %v2269_v46 = vmul.f32 0.01, %v7470_v39 }
 0x140   : > { %11979 = vst [vmem:[#allocation125_spill] sm:$0xff] %v7665_v4  ;;  %v1772_v32 = vpop.f32.mrf.mxu1  ;;  %v2774_v52 = vpack.c.bf16 %v7564_v38, %v2534_v20  ;;  %vm2017_vm15 = vcmp.ge.f32.partialorder %v7441_v10, 0.0  ;;  %v2530_v14 = vsel %vm2018_vm10, %v7453_v28, %v7507_v53  ;;  %v2533_v0 = vsel %vm2021_vm14, %v7498_v58, %v2277_v6  ;;  %v12022_v4 = vld [vmem:[#allocation62_spill] sm:$0xff] }
 0x141   : > { %v7677_v1 = vpop.f32.mrf.mxu0  ;;  %3466 = vmatpush1.bf16.msra.mxu0 %v2777_v47  ;;  %v2327_v63 = vmul.f32 0.01, %v1771_v50  ;;  %vm2071_vm0 = vcmp.ge.f32.partialorder %v1771_v50, 0.0  ;;  %v7689_v38 = vadd.f32 %v1772_v32, %v7377_v15  ;;  %v2262_v37 = vmul.f32 0.01, %v7449_v41 }
 0x142   : > { %v1774_v24 = vpop.f32.mrf.mxu1  ;;  %3467 = vmatprep.subr.bf16.mxu0 %v2774_v52  ;;  %v2773_v57 = vpack.c.bf16 %v2537_v51, %v2533_v0  ;;  %v2526_v28 = vsel %vm2014_vm6, %v7427_v8, %v7481_v44  ;;  %vm2009_vm2 = vcmp.ge.f32.partialorder %v7466_v26, 0.0  ;;  %v2265_v53 = vmul.f32 0.01, %v7466_v26 }
 0x143   : > { %11980 = vst [vmem:[#allocation126_spill] sm:$0xff] %v7689_v38  ;;  %v1775_v23 = vadd.f32 %v1774_v24, %v7391_v45  ;;  %v7692_v18 = vpop.f32.mrf.mxu0  ;;  %v2529_v5 = vsel %vm2017_vm15, %v7441_v10, %v7494_v35  ;;  %v2770_v21 = vpack.c.bf16 %v2530_v14, %v2526_v28  ;;  %v7710_v16 = vsel %vm2071_vm0, %v1771_v50, %v2327_v63  ;;  %v11986_v50 = vld [vmem:[#allocation102_spill] sm:$0xff] }
 0x144   : > { %v7700_v58 = vpop.f32.mrf.mxu1  ;;  %11982 = vst [vmem:[#allocation128_spill] sm:$0xff] %v7710_v16  ;;  %v2522_v44 = vsel %vm2010_vm5, %v7423_v48, %v7478_v62  ;;  %vm1998_vm6 = vcmp.ge.f32.partialorder %v7433_v29, 0.0  ;;  %v2254_v49 = vmul.f32 0.01, %v7433_v29  ;;  %v2261_v10 = vmul.f32 0.01, %v7437_v30 }
 0x145   : > { %11981 = vst [vmem:[#allocation127_spill] sm:$0xff] %v7700_v58  ;;  %v7708_v22 = vpop.f32.mrf.mxu0  ;;  %3468 = vmatpush1.bf16.msra.mxu0 %v2773_v57  ;;  %vm2075_vm10 = vcmp.ge.f32.partialorder %v1775_v23, 0.0  ;;  %v2331_v12 = vmul.f32 0.01, %v1775_v23  ;;  %v2525_v35 = vsel %vm2013_vm1, %v7470_v39, %v2269_v46  ;;  %vm2005_vm9 = vcmp.ge.f32.partialorder %v7437_v30, 0.0  ;;  %v12016_v39 = vld [vmem:[#allocation35_spill] sm:$0xff] }
 0x146   : > { %v7712_v8 = vpop.f32.mrf.mxu1  ;;  %3469 = vmatprep.subr.bf16.mxu0 %v2770_v21  ;;  %v2769_v59 = vpack.c.bf16 %v2529_v5, %v2525_v35  ;;  %v2518_v48 = vsel %vm2006_vm3, %v7449_v41, %v2262_v37  ;;  %v2521_v6 = vsel %vm2009_vm2, %v7466_v26, %v2265_v53  ;;  %v2514_v32 = vsel %vm2002_vm7, %v7412_v2, %v11986_v50  ;;  %v11991_v37 = vld [vmem:[#allocation69_spill] sm:$0xff]  ;;  %v11995_v53 = vld [vmem:[#allocation63_spill] sm:$0xff]  ;;  %v12004_v50 = vld [vmem:[#allocation90_spill] sm:$0xff] }
 0x147   : > { %11983 = vst [vmem:[#allocation129_spill] sm:$0xff] %v7712_v8  ;;  %v7724_v54 = vpop.f32.mrf.mxu0  ;;  %v7727_v60 = vsel %vm2075_vm10, %v1775_v23, %v2331_v12  ;;  %v2766_v47 = vpack.c.bf16 %v2522_v44, %v2518_v48  ;;  %v2517_v41 = vsel %vm2005_vm9, %v7437_v30, %v2261_v10  ;;  %v2510_v26 = vsel %vm1998_vm6, %v7433_v29, %v2254_v49  ;;  %v11992_v29 = vld [vmem:[#allocation66_spill] sm:$0xff]  ;;  %v11996_v5 = vld [vmem:[#allocation65_spill] sm:$0xff] }
 0x148   : > { %11984 = vst [vmem:[#allocation130_spill] sm:$0xff] %v7727_v60  ;;  %v7732_v62 = vpop.f32.mrf.mxu1  ;;  %v2765_v46 = vpack.c.bf16 %v2521_v6, %v2517_v41  ;;  %v2762_v63 = vpack.c.bf16 %v2514_v32, %v2510_v26  ;;  %v11993_v57 = vpack.c.bf16 %v11991_v37, %v11992_v29  ;;  %v11997_v21 = vpack.c.bf16 %v11995_v53, %v11996_v5  ;;  %v11999_v10 = vld [vmem:[#allocation58_spill] sm:$0xff]  ;;  %v12000_v35 = vld [vmem:[#allocation57_spill] sm:$0xff]  ;;  %v12005_v41 = vld [vmem:[#allocation28_spill] sm:$0xff] }
 0x149   : > { %11985 = vst [vmem:[#allocation131_spill] sm:$0xff] %v7732_v62  ;;  %v7739_v20 = vpop.f32.mrf.mxu0  ;;  %3470 = vmatpush1.bf16.msra.mxu0 %v2769_v59  ;;  %v12001_v59 = vpack.c.bf16 %v11999_v10, %v12000_v35  ;;  %v12006_v26 = vld [vmem:[#allocation93_spill] sm:$0xff]  ;;  %v12011_v5 = vld [vmem:[#allocation23_spill] sm:$0xff]  ;;  %v7810_v31 = vadd.f32 %v12017_v33, %v12016_v39  ;;  %v7814_v34 = vadd.f32 %v12020_v56, %v12019_v13  ;;  %v7817_v16 = vmul.f32 0.01, %v12022_v4  ;;  %v12030_v33 = vld [vmem:[#allocation92_spill] sm:$0xff] }
 0x14a   : > { %v7745_v51 = vpop.f32.mrf.mxu1  ;;  %3471 = vmatprep.subr.bf16.mxu0 %v2766_v47  ;;  %v12003_v47 = vld [vmem:[#allocation27_spill] sm:$0xff]  ;;  %v12076_v58 = vld [vmem:[#allocation49_spill] sm:$0xff] }
 0x14b   : > { %11987 = vst [vmem:[#allocation102_spill] sm:$0xff] %v7745_v51  ;;  %v7751_v52 = vpop.f32.mrf.mxu0  ;;  %v1721_v32 = vadd.f32 %v12004_v50, %v12003_v47  ;;  %12018 = vst [vmem:[#allocation28_spill] sm:$0xff] %v7810_v31  ;;  %v12024_v60 = vld [vmem:[#allocation31_spill] sm:$0xff]  ;;  %v7829_v39 = vadd.f32 %v12030_v33, %v12003_v47 }
 0x14c   : > { %v7753_v24 = vpop.f32.mrf.mxu1  ;;  %12021 = vst [vmem:[#allocation93_spill] sm:$0xff] %v7814_v34  ;;  %12023 = vst [vmem:[#allocation23_spill] sm:$0xff] %v7817_v16  ;;  %v12033_v56 = vld [vmem:[#allocation67_spill] sm:$0xff] }
 0x14d   : > { %11988 = vst [vmem:[#allocation132_spill] sm:$0xff] %v7753_v24  ;;  %v7755_v14 = vpop.f32.mrf.mxu0  ;;  %3472 = vmatpush1.bf16.msra.mxu0 %v2765_v46  ;;  %v1725_v46 = vadd.f32 %v12006_v26, %v12005_v41  ;;  %v2287_v50 = vmul.f32 0.01, %v1721_v32  ;;  %vm2031_vm12 = vcmp.ge.f32.partialorder %v1721_v32, 0.0  ;;  %12031 = vst [vmem:[#allocation77_spill] sm:$0xff] %v7829_v39  ;;  %v12042_v33 = vld [vmem:[#allocation75_spill] sm:$0xff] }
 0x14e   : > { %v7757_v2 = vpop.f32.mrf.mxu1  ;;  %3473 = vmatprep.subr.bf16.mxu0 %v2762_v63  ;;  %v12073_v24 = vld [vmem:[#allocation82_spill] sm:$0xff] }
 0x14f   : > { %11989 = vst [vmem:[#allocation133_spill] sm:$0xff] %v7757_v2  ;;  %v7759_v0 = vpop.f32.mrf.mxu0  ;;  %v2291_v27 = vmul.f32 0.01, %v1725_v46  ;;  %vm2035_vm5 = vcmp.ge.f32.partialorder %v1725_v46, 0.0  ;;  %v7972_v38 = vadd.f32 %v7751_v52, %v12073_v24 }
 0x150   : > { %v7761_v30 = vpop.f32.mrf.mxu1 }
 0x151   : > { %11990 = vst [vmem:[#allocation134_spill] sm:$0xff] %v7761_v30  ;;  %v7763_v23 = vpop.f32.mrf.mxu0  ;;  %3474 = vmatpush1.bf16.msra.mxu0 %v11993_v57  ;;  %v12009_v57 = vld [vmem:[#allocation53_spill] sm:$0xff] }
 0x152   : > { %v7768_v28 = vpop.f32.mrf.mxu1  ;;  %3475 = vmatprep.subr.bf16.mxu0 %v11997_v21  ;;  %v7797_v53 = vmul.f32 0.01, %v12009_v57  ;;  %v12012_v21 = vld [vmem:[#allocation97_spill] sm:$0xff] }
 0x153   : > { %11994 = vst [vmem:[#allocation69_spill] sm:$0xff] %v7768_v28  ;;  %v7773_v12 = vpop.f32.mrf.mxu0  ;;  %v1731_v10 = vadd.f32 %v12012_v21, %v12011_v5 }
 0x154   : > { %v7775_v44 = vpop.f32.mrf.mxu1  ;;  %12010 = vst [vmem:[#allocation57_spill] sm:$0xff] %v7797_v53  ;;  %v12027_v53 = vld [vmem:[#allocation32_spill] sm:$0xff] }
 0x155   : > { %11998 = vst [vmem:[#allocation66_spill] sm:$0xff] %v7775_v44  ;;  %v7777_v49 = vpop.f32.mrf.mxu0  ;;  %3476 = vmatpush1.bf16.msra.mxu0 %v12001_v59  ;;  %v12013_v59 = vld [vmem:[#allocation56_spill] sm:$0xff]  ;;  %v2295_v16 = vmul.f32 0.01, %v1731_v10  ;;  %vm2039_vm3 = vcmp.ge.f32.partialorder %v1731_v10, 0.0 }
 0x156   : > { %v7782_v48 = vpop.f32.mrf.mxu1  ;;  %v7804_v9 = vmul.f32 0.01, %v12013_v59  ;;  %v12028_v59 = vld [vmem:[#allocation87_spill] sm:$0xff] }
 0x157   : > { %12002 = vst [vmem:[#allocation63_spill] sm:$0xff] %v7782_v48  ;;  %v7784_v6 = vpop.f32.mrf.mxu0  ;;  %v7825_v57 = vadd.f32 %v12028_v59, %v12027_v53  ;;  %v12039_v53 = vld [vmem:[#allocation24_spill] sm:$0xff]  ;;  %v12074_v48 = vld [vmem:[#allocation54_spill] sm:$0xff] }
 0x158   : > { %v7790_v63 = vpop.f32.mrf.mxu1  ;;  %12014 = vst [vmem:[#allocation27_spill] sm:$0xff] %v7804_v9  ;;  %v7821_v9 = vadd.f32 %v12025_v61, %v12024_v60  ;;  %v7839_v61 = vsel %vm2031_vm12, %v1721_v32, %v2287_v50  ;;  %v7841_v60 = vsel %vm2035_vm5, %v1725_v46, %v2291_v27  ;;  %v12040_v59 = vld [vmem:[#allocation100_spill] sm:$0xff]  ;;  %v7865_v50 = vmul.f32 0.01, %v7829_v39 }
 0x159   : > { %12007 = vst [vmem:[#allocation65_spill] sm:$0xff] %v7790_v63  ;;  %v7792_v37 = vpop.f32.mrf.mxu0  ;;  %12029 = vst [vmem:[#allocation35_spill] sm:$0xff] %v7825_v57  ;;  %v12035_v63 = vld [vmem:[#allocation72_spill] sm:$0xff]  ;;  %v7862_v46 = vmul.f32 0.01, %v7825_v57  ;;  %v7976_v57 = vadd.f32 %v7777_v49, %v12074_v48 }
 0x15a   : > { %v7794_v29 = vpop.f32.mrf.mxu1  ;;  %12026 = vst [vmem:[#allocation97_spill] sm:$0xff] %v7821_v9  ;;  %v7837_v4 = vmul.f32 0.01, %v12035_v63  ;;  %12037 = vst [vmem:[#allocation84_spill] sm:$0xff] %v7839_v61  ;;  %v7859_v27 = vmul.f32 0.01, %v7821_v9  ;;  %v7980_v9 = vadd.f32 %v7784_v6, %v12074_v48 }
 0x15b   : > { %12008 = vst [vmem:[#allocation58_spill] sm:$0xff] %v7794_v29  ;;  %v7801_v35 = vpop.f32.mrf.mxu0  ;;  %12038 = vst [vmem:[#allocation32_spill] sm:$0xff] %v7841_v60  ;;  %v7845_v29 = vadd.f32 %v12040_v59, %v12039_v53  ;;  %v7869_v59 = vadd.f32 %v7649_v19, %v7377_v15  ;;  %v7890_v19 = vadd.f32 %v7658_v40, %v7377_v15  ;;  %v12061_v61 = vld [vmem:[#allocation103_spill] sm:$0xff]  ;;  %v12063_v15 = vld [vmem:[#allocation21_spill] sm:$0xff]  ;;  %v8016_v2 = vmul.f32 0.01, %v7976_v57 }
 0x15c   : > { %v7806_v26 = vpop.f32.mrf.mxu1  ;;  %12036 = vst [vmem:[#allocation31_spill] sm:$0xff] %v7837_v4  ;;  %v7856_v4 = vmul.f32 0.01, %v7814_v34  ;;  %12046 = vst [vmem:[#allocation135_spill] sm:$0xff] %v7859_v27  ;;  %v12064_v40 = vld [vmem:[#allocation107_spill] sm:$0xff]  ;;  %vm2093_vm11 = vcmp.ge.f32.partialorder %v7976_v57, 0.0 }
 0x15d   : > { %12015 = vst [vmem:[#allocation90_spill] sm:$0xff] %v7806_v26  ;;  %v1457_v21 = vpop.f32.mrf.mxu0  ;;  %v7834_v26 = vmul.f32 0.01, %v12033_v56  ;;  %12047 = vst [vmem:[#allocation136_spill] sm:$0xff] %v7862_v46  ;;  %v12053_v46 = vld [vmem:[#allocation98_spill] sm:$0xff]  ;;  %vm2094_vm15 = vcmp.ge.f32.partialorder %v7980_v9, 0.0 }
 0x15e   : > { %v7831_v13 = vpop.f32.mrf.mxu1  ;;  %12045 = vst [vmem:[#allocation100_spill] sm:$0xff] %v7856_v4  ;;  %12048 = vst [vmem:[#allocation137_spill] sm:$0xff] %v7865_v50  ;;  %v12050_v4 = vld [vmem:[#allocation95_spill] sm:$0xff]  ;;  %v7883_v27 = vadd.f32 %v12053_v46, %v12011_v5  ;;  %v7886_v63 = vmul.f32 0.01, %v7845_v29  ;;  %v12058_v5 = vld [vmem:[#allocation101_spill] sm:$0xff]  ;;  %v7912_v50 = vadd.f32 %v12064_v40, %v12063_v15 }
 0x15f   : > { %12032 = vst [vmem:[#allocation36_spill] sm:$0xff] %v7831_v13  ;;  %12034 = vst [vmem:[#allocation81_spill] sm:$0xff] %v7834_v26  ;;  %v1459_v44 = vpop.f32.mrf.mxu0  ;;  %v7850_v13 = vmul.f32 0.01, %v12042_v33  ;;  %v7853_v26 = vmul.f32 0.01, %v7810_v31  ;;  %v7877_v56 = vadd.f32 %v12050_v4, %v12005_v41 }
 0x160   : > { %v7847_v47 = vpop.f32.mrf.mxu1  ;;  %12054 = vst [vmem:[#allocation98_spill] sm:$0xff] %v7883_v27  ;;  %12055 = vst [vmem:[#allocation140_spill] sm:$0xff] %v7886_v63  ;;  %v12056_v4 = vld [vmem:[#allocation80_spill] sm:$0xff]  ;;  %v12060_v46 = vld [vmem:[#allocation19_spill] sm:$0xff]  ;;  %v7952_v30 = vmul.f32 0.01, %v7890_v19  ;;  %v1460_v52 = vadd.f32 %v1459_v44, %v12076_v58 }
 0x161   : > { %12041 = vst [vmem:[#allocation87_spill] sm:$0xff] %v7847_v47  ;;  %12043 = vst [vmem:[#allocation92_spill] sm:$0xff] %v7850_v13  ;;  %v1461_v32 = vpop.f32.mrf.mxu0  ;;  %v7879_v47 = vsel %vm2039_vm3, %v1731_v10, %v2295_v16  ;;  %v7898_v16 = vadd.f32 %v7708_v22, %v12056_v4  ;;  %v7904_v10 = vadd.f32 %v12058_v5, %v12039_v53 }
 0x162   : > { %12044 = vst [vmem:[#allocation24_spill] sm:$0xff] %v7853_v26  ;;  %v7871_v13 = vpop.f32.mrf.mxu1  ;;  %12051 = vst [vmem:[#allocation95_spill] sm:$0xff] %v7877_v56  ;;  %v7894_v26 = vadd.f32 %v7677_v1, %v7391_v45  ;;  %v7908_v60 = vadd.f32 %v12061_v61, %v12060_v46  ;;  %v12066_v1 = vld [vmem:[#allocation110_spill] sm:$0xff]  ;;  %v7924_v53 = vadd.f32 %v7629_v25, %v7462_v17  ;;  %v7927_v61 = vmul.f32 0.01, %v7869_v59  ;;  %v12071_v25 = vld [vmem:[#allocation73_spill] sm:$0xff] }
 0x163   : > { %12049 = vst [vmem:[#allocation138_spill] sm:$0xff] %v7871_v13  ;;  %12052 = vst [vmem:[#allocation139_spill] sm:$0xff] %v7879_v47  ;;  %v1463_v33 = vpop.f32.mrf.mxu0  ;;  %v12067_v13 = vld [vmem:[#allocation111_spill] sm:$0xff]  ;;  %v7931_v5 = vadd.f32 %v7724_v54, %v12056_v4  ;;  %v7949_v31 = vadd.f32 %v7763_v23, %v12071_v25  ;;  %v7968_v23 = vadd.f32 %v7739_v20, %v12073_v24  ;;  %vm2102_vm4 = vcmp.ge.f32.partialorder %v1460_v52, 0.0 }
 0x164   : > { %v7900_v41 = vpop.f32.mrf.mxu1  ;;  %12059 = vst [vmem:[#allocation101_spill] sm:$0xff] %v7904_v10  ;;  %12062 = vst [vmem:[#allocation103_spill] sm:$0xff] %v7908_v60  ;;  %v7916_v34 = vadd.f32 %v12067_v13, %v12066_v1  ;;  %v7937_v13 = vadd.f32 %v7692_v18, %v7391_v45  ;;  %v12070_v1 = vld [vmem:[#allocation70_spill] sm:$0xff]  ;;  %v7958_v18 = vmul.f32 0.01, %v7898_v16  ;;  %v7990_v45 = vadd.f32 %v1457_v21, %v12076_v58  ;;  %v12079_v58 = vld [vmem:[#allocation45_spill] sm:$0xff] }
 0x165   : > { %12057 = vst [vmem:[#allocation141_spill] sm:$0xff] %v7900_v41  ;;  %12065 = vst [vmem:[#allocation107_spill] sm:$0xff] %v7912_v50  ;;  %v1467_v22 = vpop.f32.mrf.mxu0  ;;  %v7920_v41 = vadd.f32 %v7597_v55, %v7416_v36  ;;  %v7941_v36 = vadd.f32 %v7755_v14, %v12070_v1  ;;  %v7945_v55 = vadd.f32 %v7759_v0, %v12070_v1  ;;  %v7983_v62 = vmul.f32 0.01, %v7931_v5  ;;  %v12085_v10 = vld [vmem:[#allocation44_spill] sm:$0xff] }
 0x166   : > { %12068 = vst [vmem:[#allocation110_spill] sm:$0xff] %v7916_v34  ;;  %v7933_v40 = vpop.f32.mrf.mxu1  ;;  %v7962_v14 = vadd.f32 %v7773_v12, %v12071_v25  ;;  %v8002_v48 = vmul.f32 0.01, %v7949_v31  ;;  %v8005_v28 = vadd.f32 %v1461_v32, %v12078_v7  ;;  %v1464_v44 = vadd.f32 %v1463_v33, %v12078_v7  ;;  %v12080_v25 = vld [vmem:[#allocation46_spill] sm:$0xff] }
 0x167   : > { %12069 = vst [vmem:[#allocation111_spill] sm:$0xff] %v7933_v40  ;;  %v1469_v54 = vpop.f32.mrf.mxu0  ;;  %v7955_v40 = vmul.f32 0.01, %v7894_v26  ;;  %v7996_v49 = vmul.f32 0.01, %v7941_v36  ;;  %vm2101_vm8 = vcmp.ge.f32.partialorder %v7990_v45, 0.0 }
 0x168   : > { %v7964_v0 = vpop.f32.mrf.mxu1  ;;  %v7999_v6 = vmul.f32 0.01, %v7945_v55  ;;  %v8008_v21 = vmul.f32 0.01, %v7962_v14  ;;  %v8019_v1 = vmul.f32 0.01, %v7980_v9 }
 0x169   : > { %12072 = vst [vmem:[#allocation142_spill] sm:$0xff] %v7964_v0  ;;  %v1471_v12 = vpop.f32.mrf.mxu0  ;;  %v12075_v0 = vld [vmem:[#allocation59_spill] sm:$0xff]  ;;  %v2358_v7 = vmul.f32 0.01, %v1460_v52  ;;  %vm2105_vm13 = vcmp.ge.f32.partialorder %v8005_v28, 0.0  ;;  %vm2106_vm14 = vcmp.ge.f32.partialorder %v1464_v44, 0.0 }
 0x16a   : > { %v7987_v20 = vadd.f32 %v7801_v35, %v12075_v0  ;;  %v7993_v42 = vpop.f32.mrf.mxu1  ;;  %v8023_v32 = vadd.f32 %v7792_v37, %v12075_v0  ;;  %v1472_v39 = vadd.f32 %v1471_v12, %v12080_v25  ;;  %v2361_v37 = vmul.f32 0.01, %v8005_v28  ;;  %v12082_v0 = vld [vmem:[#allocation43_spill] sm:$0xff] }
 0x16b   : > { %12077 = vst [vmem:[#allocation143_spill] sm:$0xff] %v7993_v42  ;;  %v1473_v35 = vpop.f32.mrf.mxu0  ;;  %v1468_v42 = vadd.f32 %v1467_v22, %v12079_v58  ;;  %v8030_v22 = vmul.f32 0.01, %v7990_v45  ;;  %v2614_v46 = vsel %vm2102_vm4, %v1460_v52, %v2358_v7  ;;  %vm2086_vm5 = vcmp.ge.f32.partialorder %v7945_v55, 0.0 }
 0x16c   : > { %v1474_v3 = vadd.f32 %v1473_v35, %v12080_v25  ;;  %v8013_v17 = vpop.f32.mrf.mxu1  ;;  %v8027_v33 = vmul.f32 0.01, %v7987_v20  ;;  %v1470_v35 = vadd.f32 %v1469_v54, %v12079_v58  ;;  %vm2098_vm7 = vcmp.ge.f32.partialorder %v7987_v20, 0.0 }
 0x16d   : > { %12081 = vst [vmem:[#allocation144_spill] sm:$0xff] %v8013_v17  ;;  %v1477_v51 = vpop.f32.mrf.mxu0  ;;  %v2365_v8 = vmul.f32 0.01, %v1468_v42  ;;  %v2362_v58 = vmul.f32 0.01, %v1464_v44  ;;  %vm2109_vm0 = vcmp.ge.f32.partialorder %v1468_v42, 0.0 }
 0x16e   : > { %v1830_v17 = vpop.f32.mrf.mxu1  ;;  %v1478_v12 = vadd.f32 %v1477_v51, %v12082_v0  ;;  %v2370_v4 = vmul.f32 0.01, %v1474_v3  ;;  %v2369_v43 = vmul.f32 0.01, %v1472_v39  ;;  %vm2114_vm1 = vcmp.ge.f32.partialorder %v1474_v3, 0.0 }
 0x16f   : > { %v1831_v25 = vadd.f32 %v1830_v17, %v12082_v0  ;;  %v8038_v24 = vpop.f32.mrf.mxu0  ;;  %vm2110_vm2 = vcmp.ge.f32.partialorder %v1470_v35, 0.0  ;;  %v2366_v17 = vmul.f32 0.01, %v1470_v35  ;;  %vm2113_vm10 = vcmp.ge.f32.partialorder %v1472_v39, 0.0 }
 0x170   : > { %12083 = vst [vmem:[#allocation145_spill] sm:$0xff] %v8038_v24  ;;  %v8041_v54 = vpop.f32.mrf.mxu1  ;;  %v2373_v11 = vmul.f32 0.01, %v1478_v12  ;;  %v2621_v27 = vsel %vm2109_vm0, %v1468_v42, %v2365_v8  ;;  %vm2117_vm12 = vcmp.ge.f32.partialorder %v1478_v12, 0.0  ;;  %v2626_v34 = vsel %vm2114_vm1, %v1474_v3, %v2370_v4  ;;  %v12091_v4 = vld [vmem:[#allocation41_spill] sm:$0xff] }
 0x171   : > { %12084 = vst [vmem:[#allocation146_spill] sm:$0xff] %v8041_v54  ;;  %v1481_v51 = vpop.f32.mrf.mxu0  ;;  %v2375_v24 = vmul.f32 0.01, %v1831_v25  ;;  %vm2119_vm9 = vcmp.ge.f32.partialorder %v1831_v25, 0.0  ;;  %v2625_v50 = vsel %vm2113_vm10, %v1472_v39, %v2369_v43  ;;  %vm2089_vm6 = vcmp.ge.f32.partialorder %v7949_v31, 0.0 }
 0x172   : > { %v1834_v0 = vpop.f32.mrf.mxu1  ;;  %v1482_v54 = vadd.f32 %v1481_v51, %v12085_v10  ;;  %v2618_v51 = vsel %vm2106_vm14, %v1464_v44, %v2362_v58  ;;  %v2622_v8 = vsel %vm2110_vm2, %v1470_v35, %v2366_v17  ;;  %vm2085_vm4 = vcmp.ge.f32.partialorder %v7941_v36, 0.0 }
 0x173   : > { %v1835_v47 = vadd.f32 %v1834_v0, %v12085_v10  ;;  %v8048_v15 = vpop.f32.mrf.mxu0  ;;  %v8058_v0 = vsel %vm2119_vm9, %v1831_v25, %v2375_v24  ;;  %v8063_v7 = vsel %vm2117_vm12, %v1478_v12, %v2373_v11  ;;  %v2818_v39 = vpack.c.bf16 %v2626_v34, %v2622_v8  ;;  %v12095_v12 = vld [vmem:[#allocation42_spill] sm:$0xff] }
 0x174   : > { %12086 = vst [vmem:[#allocation147_spill] sm:$0xff] %v8048_v15  ;;  %v8050_v56 = vpop.f32.mrf.mxu1  ;;  %vm2121_vm3 = vcmp.ge.f32.partialorder %v1482_v54, 0.0  ;;  %v2377_v60 = vmul.f32 0.01, %v1482_v54  ;;  %12088 = vst [vmem:[#allocation149_spill] sm:$0xff] %v8058_v0  ;;  %v2817_v44 = vpack.c.bf16 %v2625_v50, %v2621_v27  ;;  %v2617_v34 = vsel %vm2105_vm13, %v8005_v28, %v2361_v37 }
 0x175   : > { %12087 = vst [vmem:[#allocation148_spill] sm:$0xff] %v8050_v56  ;;  %v1487_v63 = vpop.f32.mrf.mxu0  ;;  %vm2123_vm0 = vcmp.ge.f32.partialorder %v1835_v47, 0.0  ;;  %v2379_v42 = vmul.f32 0.01, %v1835_v47  ;;  %12089 = vst [vmem:[#allocation150_spill] sm:$0xff] %v8063_v7  ;;  %3477 = vmatprep.subr.bf16.mxu0 %v2818_v39  ;;  %vm2078_vm14 = vcmp.ge.f32.partialorder %v7931_v5, 0.0 }
 0x176   : > { %v1840_v3 = vpop.f32.mrf.mxu1  ;;  %v8065_v43 = vsel %vm2121_vm3, %v1482_v54, %v2377_v60  ;;  %v1488_v58 = vadd.f32 %v1487_v63, %v12091_v4  ;;  %v2353_v11 = vmul.f32 0.01, %v8023_v32  ;;  %v2814_v60 = vpack.c.bf16 %v2618_v51, %v2614_v46  ;;  %3478 = vmatpush2.bf16.msra.mxu0 %v2817_v44 }
 0x177   : > { %12090 = vst [vmem:[#allocation151_spill] sm:$0xff] %v8065_v43  ;;  %v8068_v52 = vpop.f32.mrf.mxu0  ;;  %v8072_v25 = vsel %vm2123_vm0, %v1835_v47, %v2379_v42  ;;  %v1841_v35 = vadd.f32 %v1840_v3, %v12091_v4  ;;  %vm2081_vm1 = vcmp.ge.f32.partialorder %v7968_v23, 0.0  ;;  %vm2097_vm2 = vcmp.ge.f32.partialorder %v8023_v32, 0.0 }
 0x178   : > { %12092 = vst [vmem:[#allocation152_spill] sm:$0xff] %v8068_v52  ;;  %12093 = vst [vmem:[#allocation153_spill] sm:$0xff] %v8072_v25  ;;  %v8075_v17 = vpop.f32.mrf.mxu1  ;;  %v2613_v47 = vsel %vm2101_vm8, %v7990_v45, %v8030_v22  ;;  %v2610_v46 = vsel %vm2098_vm7, %v7987_v20, %v8027_v33  ;;  %v2381_v37 = vmul.f32 0.01, %v1488_v58  ;;  %3479 = vmatprep.subr.bf16.mxu0 %v2814_v60  ;;  %vm2125_vm8 = vcmp.ge.f32.partialorder %v1488_v58, 0.0  ;;  %v12131_v25 = vld [vmem:[#allocation139_spill] sm:$0xff] }
 0x179   : > { %12094 = vst [vmem:[#allocation154_spill] sm:$0xff] %v8075_v17  ;;  %v1491_v27 = vpop.f32.mrf.mxu0  ;;  %v2383_v50 = vmul.f32 0.01, %v1841_v35  ;;  %vm2127_vm13 = vcmp.ge.f32.partialorder %v1841_v35, 0.0  ;;  %v2605_v45 = vsel %vm2093_vm11, %v7976_v57, %v8016_v2  ;;  %v2813_v22 = vpack.c.bf16 %v2617_v34, %v2613_v47  ;;  %v12192_v52 = vld [vmem:[#allocation143_spill] sm:$0xff] }
 0x17a   : > { %v1844_v28 = vpop.f32.mrf.mxu1  ;;  %v1492_v54 = vadd.f32 %v1491_v27, %v12095_v12  ;;  %v2606_v20 = vsel %vm2094_vm15, %v7980_v9, %v8019_v1  ;;  %v2609_v8 = vsel %vm2097_vm2, %v8023_v32, %v2353_v11  ;;  %vm2073_vm10 = vcmp.ge.f32.partialorder %v7894_v26, 0.0 }
 0x17b   : > { %v1845_v51 = vadd.f32 %v1844_v28, %v12095_v12  ;;  %v8096_v42 = vpop.f32.mrf.mxu0  ;;  %v2810_v39 = vpack.c.bf16 %v2610_v46, %v2606_v20  ;;  %v8113_v2 = vsel %vm2127_vm13, %v1841_v35, %v2383_v50  ;;  %3480 = vmatpush2.bf16.msra.mxu0 %v2813_v22  ;;  %vm12099_vm15 = vcmp.ge.f32.partialorder %v7962_v14, 0.0  ;;  %v12102_v35 = vld [vmem:[#allocation39_spill] sm:$0xff]  ;;  %v12191_v12 = vld [vmem:[#allocation46_spill] sm:$0xff] }
 0x17c   : > { %12096 = vst [vmem:[#allocation155_spill] sm:$0xff] %v8096_v42  ;;  %v8106_v33 = vpop.f32.mrf.mxu1  ;;  %vm2129_vm7 = vcmp.ge.f32.partialorder %v1492_v54, 0.0  ;;  %v2385_v3 = vmul.f32 0.01, %v1492_v54  ;;  %12098 = vst [vmem:[#allocation157_spill] sm:$0xff] %v8113_v2  ;;  %v2602_v9 = vsel %vm12099_vm15, %v7962_v14, %v8008_v21  ;;  %vm2070_vm9 = vcmp.ge.f32.partialorder %v7890_v19, 0.0 }
 0x17d   : > { %12097 = vst [vmem:[#allocation156_spill] sm:$0xff] %v8106_v33  ;;  %v1497_v44 = vpop.f32.mrf.mxu0  ;;  %vm2131_vm11 = vcmp.ge.f32.partialorder %v1845_v51, 0.0  ;;  %v2387_v57 = vmul.f32 0.01, %v1845_v51  ;;  %vm2074_vm12 = vcmp.ge.f32.partialorder %v7937_v13, 0.0  ;;  %v8122_v1 = vsel %vm2125_vm8, %v1488_v58, %v2381_v37  ;;  %3481 = vmatprep.subr.bf16.mxu0 %v2810_v39  ;;  %v12127_v14 = vld [vmem:[#allocation98_spill] sm:$0xff] }
 0x17e   : > { %v1850_v34 = vpop.f32.mrf.mxu1  ;;  %12100 = vst [vmem:[#allocation158_spill] sm:$0xff] %v8122_v1  ;;  %v8124_v32 = vsel %vm2129_vm7, %v1492_v54, %v2385_v3  ;;  %v1498_v11 = vadd.f32 %v1497_v44, %v12102_v35  ;;  %v2809_v47 = vpack.c.bf16 %v2609_v8, %v2605_v45  ;;  %v2598_v58 = vsel %vm2086_vm5, %v7945_v55, %v7999_v6  ;;  %v12143_v33 = vld [vmem:[#allocation77_spill] sm:$0xff]  ;;  %v12156_v1 = vld [vmem:[#allocation127_spill] sm:$0xff] }
 0x17f   : > { %12101 = vst [vmem:[#allocation159_spill] sm:$0xff] %v8124_v32  ;;  %v1851_v60 = vadd.f32 %v1850_v34, %v12102_v35  ;;  %v8128_v27 = vpop.f32.mrf.mxu0  ;;  %v8132_v21 = vsel %vm2131_vm11, %v1845_v51, %v2387_v57  ;;  %v2337_v28 = vmul.f32 0.01, %v7968_v23  ;;  %v2601_v46 = vsel %vm2089_vm6, %v7949_v31, %v8002_v48  ;;  %v12105_v48 = vld [vmem:[#allocation40_spill] sm:$0xff] }
 0x180   : > { %12103 = vst [vmem:[#allocation160_spill] sm:$0xff] %v8132_v21  ;;  %v8138_v50 = vpop.f32.mrf.mxu1  ;;  %v2806_v54 = vpack.c.bf16 %v2602_v9, %v2598_v58  ;;  %vm2043_vm3 = vcmp.ge.f32.partialorder %v7845_v29, 0.0  ;;  %vm2082_vm0 = vcmp.ge.f32.partialorder %v7972_v38, 0.0  ;;  %v2338_v55 = vmul.f32 0.01, %v7972_v38  ;;  %3482 = vmatpush2.bf16.msra.mxu0 %v2809_v47 }
 0x181   : > { %12104 = vst [vmem:[#allocation161_spill] sm:$0xff] %v8138_v50  ;;  %v1501_v51 = vpop.f32.mrf.mxu0  ;;  %v2597_v6 = vsel %vm2085_vm4, %v7941_v36, %v7996_v49  ;;  %v2391_v45 = vmul.f32 0.01, %v1851_v60  ;;  %v2389_v31 = vmul.f32 0.01, %v1498_v11  ;;  %vm2135_vm6 = vcmp.ge.f32.partialorder %v1851_v60, 0.0 }
 0x182   : > { %v1854_v22 = vpop.f32.mrf.mxu1  ;;  %3483 = vmatprep.subr.bf16.mxu0 %v2806_v54  ;;  %v1502_v20 = vadd.f32 %v1501_v51, %v12105_v48  ;;  %v2330_v39 = vmul.f32 0.01, %v7937_v13  ;;  %vm2077_vm5 = vcmp.ge.f32.partialorder %v7898_v16, 0.0  ;;  %v2805_v44 = vpack.c.bf16 %v2601_v46, %v2597_v6  ;;  %v12147_v50 = vld [vmem:[#allocation104_spill] sm:$0xff] }
 0x183   : > { %v1855_v8 = vadd.f32 %v1854_v22, %v12105_v48  ;;  %v8156_v3 = vpop.f32.mrf.mxu0  ;;  %vm2133_vm2 = vcmp.ge.f32.partialorder %v1498_v11, 0.0  ;;  %v2593_v36 = vsel %vm2081_vm1, %v7968_v23, %v2337_v28  ;;  %v2590_v34 = vsel %vm2078_vm14, %v7931_v5, %v7983_v62  ;;  %v12114_v22 = vld [vmem:[#allocation114_spill] sm:$0xff] }
 0x184   : > { %v8160_v57 = vpop.f32.mrf.mxu1  ;;  %vm2137_vm4 = vcmp.ge.f32.partialorder %v1502_v20, 0.0  ;;  %v2393_v49 = vmul.f32 0.01, %v1502_v20  ;;  %v8171_v47 = vsel %vm2135_vm6, %v1851_v60, %v2391_v45  ;;  %3484 = vmatpush2.bf16.msra.mxu0 %v2805_v44  ;;  %v2594_v46 = vsel %vm2082_vm0, %v7972_v38, %v2338_v55  ;;  %v12113_v55 = vld [vmem:[#allocation112_spill] sm:$0xff] }
 0x185   : > { %12106 = vst [vmem:[#allocation162_spill] sm:$0xff] %v8160_v57  ;;  %v8169_v9 = vpop.f32.mrf.mxu0  ;;  %12108 = vst [vmem:[#allocation164_spill] sm:$0xff] %v8171_v47  ;;  %vm2139_vm13 = vcmp.ge.f32.partialorder %v1855_v8, 0.0  ;;  %v2395_v58 = vmul.f32 0.01, %v1855_v8  ;;  %v2589_v23 = vsel %vm2077_vm5, %v7898_v16, %v7958_v18  ;;  %v8178_v28 = vsel %vm2133_vm2, %v1498_v11, %v2389_v31  ;;  %v12136_v47 = vld [vmem:[#allocation33_spill] sm:$0xff] }
 0x186   : > { %12107 = vst [vmem:[#allocation163_spill] sm:$0xff] %v8169_v9  ;;  %v1860_v54 = vpop.f32.mrf.mxu1  ;;  %12109 = vst [vmem:[#allocation165_spill] sm:$0xff] %v8178_v28  ;;  %v8180_v51 = vsel %vm2137_vm4, %v1502_v20, %v2393_v49  ;;  %v2802_v62 = vpack.c.bf16 %v2594_v46, %v2590_v34  ;;  %vm2069_vm14 = vcmp.ge.f32.partialorder %v7869_v59, 0.0  ;;  %v2801_v60 = vpack.c.bf16 %v2593_v36, %v2589_v23 }
 0x187   : > { %12110 = vst [vmem:[#allocation166_spill] sm:$0xff] %v8180_v51  ;;  %v8182_v5 = vpop.f32.mrf.mxu0  ;;  %v8187_v45 = vsel %vm2139_vm13, %v1855_v8, %v2395_v58  ;;  %v1404_v16 = vadd.f32 %v12114_v22, %v12113_v55  ;;  %vm2062_vm1 = vcmp.ge.f32.partialorder %v7920_v41, 0.0  ;;  %v2585_v18 = vsel %vm2073_vm10, %v7894_v26, %v7955_v40  ;;  %v12115_v8 = vld [vmem:[#allocation37_spill] sm:$0xff] }
 0x188   : > { %12111 = vst [vmem:[#allocation167_spill] sm:$0xff] %v8187_v45  ;;  %v8189_v38 = vpop.f32.mrf.mxu1  ;;  %3485 = vmatprep.subr.bf16.mxu0 %v2802_v62  ;;  %v2318_v20 = vmul.f32 0.01, %v7920_v41  ;;  %v1861_v44 = vadd.f32 %v1860_v54, %v12115_v8  ;;  %v2582_v36 = vsel %vm2070_vm9, %v7890_v19, %v7952_v30  ;;  %v2586_v26 = vsel %vm2074_vm12, %v7937_v13, %v2330_v39  ;;  %v12116_v19 = vld [vmem:[#allocation38_spill] sm:$0xff]  ;;  %v12118_v13 = vld [vmem:[#allocation140_spill] sm:$0xff] }
 0x189   : > { %12112 = vst [vmem:[#allocation168_spill] sm:$0xff] %v8189_v38  ;;  %v8200_v31 = vpop.f32.mrf.mxu0  ;;  %3486 = vmatpush2.bf16.msra.mxu0 %v2801_v60  ;;  %vm2066_vm8 = vcmp.ge.f32.partialorder %v7924_v53, 0.0  ;;  %v2322_v49 = vmul.f32 0.01, %v7924_v53  ;;  %v2581_v34 = vsel %vm2069_vm14, %v7869_v59, %v7927_v61  ;;  %v2798_v58 = vpack.c.bf16 %v2586_v26, %v2582_v36  ;;  %v12119_v60 = vld [vmem:[#allocation103_spill] sm:$0xff]  ;;  %v12122_v26 = vld [vmem:[#allocation105_spill] sm:$0xff] }
 0x18a   : > { %v1864_v40 = vpop.f32.mrf.mxu1  ;;  %v2797_v54 = vpack.c.bf16 %v2585_v18, %v2581_v34  ;;  %vm2143_vm7 = vcmp.ge.f32.partialorder %v1861_v44, 0.0  ;;  %v2399_v30 = vmul.f32 0.01, %v1861_v44  ;;  %v8226_v39 = vsel %vm2043_vm3, %v7845_v29, %v12118_v13  ;;  %v12120_v61 = vld [vmem:[#allocation107_spill] sm:$0xff]  ;;  %v12123_v34 = vld [vmem:[#allocation110_spill] sm:$0xff]  ;;  %v12148_v38 = vld [vmem:[#allocation121_spill] sm:$0xff] }
 0x18b   : > { %v8217_v46 = vpop.f32.mrf.mxu0  ;;  %v1865_v23 = vadd.f32 %v1864_v40, %v12116_v19  ;;  %vm2047_vm10 = vcmp.ge.f32.partialorder %v12119_v60, 0.0  ;;  %v2303_v59 = vmul.f32 0.01, %v12119_v60  ;;  %v2307_v22 = vmul.f32 0.01, %v12120_v61  ;;  %3487 = vmatprep.subr.bf16.mxu0 %v2798_v58  ;;  %v12121_v36 = vld [vmem:[#allocation19_spill] sm:$0xff] }
 0x18c   : > { %v8220_v62 = vpop.f32.mrf.mxu1  ;;  %v8235_v40 = vadd.f32 %v12122_v26, %v12121_v36  ;;  %v2310_v63 = vmul.f32 0.01, %v12123_v34  ;;  %v2314_v37 = vmul.f32 0.01, %v1404_v16  ;;  %v8239_v13 = vsel %vm2143_vm7, %v1861_v44, %v2399_v30  ;;  %v12126_v44 = vld [vmem:[#allocation95_spill] sm:$0xff] }
 0x18d   : > { %12117 = vst [vmem:[#allocation114_spill] sm:$0xff] %v8220_v62  ;;  %v8231_v18 = vpop.f32.mrf.mxu0  ;;  %3488 = vmatpush2.bf16.msra.mxu0 %v2797_v54  ;;  %vm2147_vm11 = vcmp.ge.f32.partialorder %v1865_v23, 0.0  ;;  %12124 = vst [vmem:[#allocation140_spill] sm:$0xff] %v8239_v13  ;;  %v2403_v11 = vmul.f32 0.01, %v1865_v23  ;;  %v2574_v58 = vsel %vm2062_vm1, %v7920_v41, %v2318_v20  ;;  %v2578_v24 = vsel %vm2066_vm8, %v7924_v53, %v2322_v49  ;;  %v12128_v41 = vld [vmem:[#allocation21_spill] sm:$0xff] }
 0x18e   : > { %v1870_v29 = vpop.f32.mrf.mxu1  ;;  %vm2051_vm15 = vcmp.ge.f32.partialorder %v12120_v61, 0.0  ;;  %vm2054_vm9 = vcmp.ge.f32.partialorder %v12123_v34, 0.0  ;;  %vm2058_vm12 = vcmp.ge.f32.partialorder %v1404_v16, 0.0  ;;  %v2794_v54 = vpack.c.bf16 %v2578_v24, %v2574_v58  ;;  %v12129_v20 = vld [vmem:[#allocation108_spill] sm:$0xff]  ;;  %v12132_v58 = vld [vmem:[#allocation101_spill] sm:$0xff] }
 0x18f   : > { %v8247_v36 = vpop.f32.mrf.mxu0  ;;  %v8254_v30 = vmul.f32 0.01, %v12126_v44  ;;  %v8257_v6 = vmul.f32 0.01, %v12127_v14  ;;  %v1747_v0 = vadd.f32 %v12129_v20, %v12128_v41  ;;  %v8261_v53 = vsel %vm2147_vm11, %v1865_v23, %v2403_v11  ;;  %v12133_v41 = vld [vmem:[#allocation124_spill] sm:$0xff]  ;;  %v12134_v20 = vld [vmem:[#allocation123_spill] sm:$0xff] }
 0x190   : > { %v8251_v26 = vpop.f32.mrf.mxu1  ;;  %12130 = vst [vmem:[#allocation107_spill] sm:$0xff] %v8261_v53  ;;  %vm2040_vm3 = vcmp.ge.f32.partialorder %v12127_v14, 0.0  ;;  %vm2044_vm0 = vcmp.ge.f32.partialorder %v12132_v58, 0.0  ;;  %v8272_v2 = vsel %vm2047_vm10, %v12119_v60, %v2303_v59  ;;  %3489 = vmatprep.subr.bf16.mxu0 %v2794_v54  ;;  %v8279_v23 = vsel %vm2051_vm15, %v12120_v61, %v2307_v22  ;;  %v12137_v61 = vld [vmem:[#allocation80_spill] sm:$0xff]  ;;  %v12138_v22 = vld [vmem:[#allocation129_spill] sm:$0xff] }
 0x191   : > { %12125 = vst [vmem:[#allocation103_spill] sm:$0xff] %v8251_v26  ;;  %v8263_v49 = vpop.f32.mrf.mxu0  ;;  %v12135_v24 = vpack.c.bf16 %v12133_v41, %v12134_v20  ;;  %v1871_v45 = vadd.f32 %v1870_v29, %v12136_v47  ;;  %v2566_v60 = vsel %vm2054_vm9, %v12123_v34, %v2310_v63  ;;  %v2570_v59 = vsel %vm2058_vm12, %v1404_v16, %v2314_v37  ;;  %v12141_v20 = vld [vmem:[#allocation102_spill] sm:$0xff]  ;;  %v12151_v26 = vld [vmem:[#allocation69_spill] sm:$0xff] }
 0x192   : > { %v1874_v11 = vpop.f32.mrf.mxu1  ;;  %v2300_v54 = vmul.f32 0.01, %v12132_v58  ;;  %v2304_v13 = vmul.f32 0.01, %v8235_v40  ;;  %v1781_v53 = vadd.f32 %v12138_v22, %v12137_v61  ;;  %v2790_v56 = vpack.c.bf16 %v2570_v59, %v2566_v60  ;;  %v12142_v34 = vld [vmem:[#allocation34_spill] sm:$0xff]  ;;  %v12145_v59 = vld [vmem:[#allocation133_spill] sm:$0xff] }
 0x193   : > { %3490 = vmatpush2.bf16.msra.mxu0 %v12135_v24  ;;  %v8289_v21 = vpop.f32.mrf.mxu0  ;;  %vm2048_vm6 = vcmp.ge.f32.partialorder %v8235_v40, 0.0  ;;  %v2308_v29 = vmul.f32 0.01, %v1747_v0  ;;  %v12140_v24 = vld [vmem:[#allocation82_spill] sm:$0xff]  ;;  %v1875_v37 = vadd.f32 %v1874_v11, %v12142_v34  ;;  %vm2032_vm5 = vcmp.ge.f32.partialorder %v12143_v33, 0.0 }
 0x194   : > { %v8295_v41 = vpop.f32.mrf.mxu1  ;;  %v1785_v63 = vadd.f32 %v12141_v20, %v12140_v24  ;;  %vm2036_vm2 = vcmp.ge.f32.partialorder %v12126_v44, 0.0  ;;  %v2787_v22 = vpack.c.bf16 %v8279_v23, %v8272_v2  ;;  %vm2052_vm4 = vcmp.ge.f32.partialorder %v1747_v0, 0.0  ;;  %v12144_v60 = vld [vmem:[#allocation70_spill] sm:$0xff]  ;;  %3491 = vmatprep.subr.bf16.mxu0 %v2790_v56  ;;  %v12153_v23 = vld [vmem:[#allocation117_spill] sm:$0xff] }
 0x195   : > { %12139 = vst [vmem:[#allocation19_spill] sm:$0xff] %v8295_v41  ;;  %v8301_v16 = vpop.f32.mrf.mxu0  ;;  %v1791_v17 = vadd.f32 %v12145_v59, %v12144_v60  ;;  %v2407_v57 = vmul.f32 0.01, %v1871_v45  ;;  %v6197_v20 = vld [vmem:[%s11529_s3] ss:$16 sps:$4 sm:$0xff]   ;;  %v8316_v62 = vadd.f32 %v12148_v38, %v12147_v50  ;;  %v12150_v41 = vld [vmem:[#allocation73_spill] sm:$0xff]  ;;  %v2560_v38 = vsel %vm2048_vm6, %v8235_v40, %v2304_v13 }
 0x196   : > { %v8312_v11 = vpop.f32.mrf.mxu1  ;;  %v1795_v7 = vadd.f32 %v12151_v26, %v12150_v41  ;;  %vm2151_vm13 = vcmp.ge.f32.partialorder %v1871_v45, 0.0  ;;  %v12152_v2 = vld [vmem:[#allocation118_spill] sm:$0xff]  ;;  %vm2155_vm14 = vcmp.ge.f32.partialorder %v1875_v37, 0.0  ;;  %vm2079_vm1 = vcmp.ge.f32.partialorder %v1781_v53, 0.0  ;;  %v12163_v13 = vld [vmem:[#allocation97_spill] sm:$0xff] }
 0x197   : > { %12146 = vst [vmem:[#allocation105_spill] sm:$0xff] %v8312_v11  ;;  %12149 = vst [vmem:[#allocation110_spill] sm:$0xff] %v8316_v62  ;;  %v12154_v43 = vpack.c.bf16 %v12152_v2, %v12153_v23  ;;  %v8323_v56 = vpop.f32.mrf.mxu0  ;;  %v6202_v59 = vld [vmem:[%s11529_s3 + $0x24] ss:$16 sps:$4 sm:$0xff]   ;;  %v2411_v50 = vmul.f32 0.01, %v1875_v37  ;;  %v2564_v51 = vsel %vm2052_vm4, %v1747_v0, %v2308_v29 }
 0x198   : > { %v12155_v11 = vld [vmem:[#allocation94_spill] sm:$0xff]  ;;  %v8335_v26 = vpop.f32.mrf.mxu1  ;;  %v12159_v2 = vld [vmem:[#allocation131_spill] sm:$0xff]  ;;  %v2339_v28 = vmul.f32 0.01, %v1785_v63  ;;  %vm2083_vm8 = vcmp.ge.f32.partialorder %v1785_v63, 0.0  ;;  %vm2024_vm7 = vcmp.ge.f32.partialorder %v12163_v13, 0.0  ;;  %v2788_v62 = vpack.c.bf16 %v2564_v51, %v2560_v38 }
 0x199   : > { %3492 = vmatpush2.bf16.msra.mxu0 %v12154_v43  ;;  %v8330_v32 = vadd.f32 %v12156_v1, %v12155_v11  ;;  %12158 = vst [vmem:[#allocation98_spill] sm:$0xff] %v8335_v26  ;;  %v2335_v43 = vmul.f32 0.01, %v1781_v53  ;;  %v8339_v23 = vadd.f32 %v12159_v2, %v12137_v61  ;;  %v8342_v15 = vpop.f32.mrf.mxu0  ;;  %v2343_v1 = vmul.f32 0.01, %v1791_v17  ;;  %v12164_v61 = vld [vmem:[#allocation35_spill] sm:$0xff] }
 0x19a   : > { %v8345_v11 = vsel %vm2151_vm13, %v1871_v45, %v2407_v57  ;;  %v8348_v10 = vsel %vm2155_vm14, %v1875_v37, %v2411_v50  ;;  %v8350_v40 = vpop.f32.mrf.mxu1  ;;  %vm2028_vm10 = vcmp.ge.f32.partialorder %v12164_v61, 0.0  ;;  %v2347_v2 = vmul.f32 0.01, %v1795_v7  ;;  %v12165_v26 = vld [vmem:[#allocation54_spill] sm:$0xff]  ;;  %v12166_v0 = vld [vmem:[#allocation63_spill] sm:$0xff]  ;;  %3847 = vmatprep.subr.bf16.mxu0 %v2788_v62 }
 0x19b   : > { %12157 = vst [vmem:[#allocation95_spill] sm:$0xff] %v8330_v32  ;;  %12160 = vst [vmem:[#allocation21_spill] sm:$0xff] %v8345_v11  ;;  %v1801_v29 = vadd.f32 %v12166_v0, %v12165_v26  ;;  %v8358_v57 = vpop.f32.mrf.mxu0  ;;  %v12167_v45 = vld [vmem:[#allocation126_spill] sm:$0xff]  ;;  %vm2087_vm11 = vcmp.ge.f32.partialorder %v1791_v17, 0.0  ;;  %vm2091_vm15 = vcmp.ge.f32.partialorder %v1795_v7, 0.0  ;;  %v8372_v0 = vsel %vm2083_vm8, %v1785_v63, %v2339_v28 }
 0x19c   : > { %12161 = vst [vmem:[#allocation108_spill] sm:$0xff] %v8348_v10  ;;  %3494 = vmatmul.mubr.bf16.vlgmr.msra.gmra.mxu0 %v6197_v20  ;;  %12162 = vst [vmem:[#allocation139_spill] sm:$0xff] %v8350_v40  ;;  %v8361_v37 = vmul.f32 0.01, %v12167_v45  ;;  %v8364_v20 = vmul.f32 0.01, %v8330_v32  ;;  %v8366_v50 = vpop.f32.mrf.mxu1  ;;  %v8369_v40 = vsel %vm2079_vm1, %v1781_v53, %v2335_v43  ;;  %v2552_v51 = vsel %vm2040_vm3, %v12127_v14, %v8257_v6 }
 0x19d   : > { %3503 = vmatprep.mubr.bf16.mxu0 %v6202_v59  ;;  %12170 = vst [vmem:[#allocation123_spill] sm:$0xff] %v8366_v50  ;;  %12171 = vst [vmem:[#allocation80_spill] sm:$0xff] %v8369_v40  ;;  %v2556_v59 = vsel %vm2044_vm0, %v12132_v58, %v2300_v54  ;;  %v8381_v38 = vpop.f32.mrf.mxu0  ;;  %v8384_v55 = vmul.f32 0.01, %v8339_v23  ;;  %v12174_v53 = vld [vmem:[#allocation132_spill] sm:$0xff]  ;;  %v12176_v28 = vld [vmem:[#allocation134_spill] sm:$0xff]  ;;  %3848 = vmatpush1.bf16.msra.mxu0 %v2787_v22  ;;  %v8399_v54 = vsel %vm2087_vm11, %v1791_v17, %v2343_v1 }
 0x19e   : > { %12168 = vst [vmem:[#allocation101_spill] sm:$0xff] %v8361_v37  ;;  %12169 = vst [vmem:[#allocation124_spill] sm:$0xff] %v8364_v20  ;;  %v8388_v43 = vadd.f32 %v12174_v53, %v12140_v24  ;;  %v8392_v62 = vadd.f32 %v12176_v28, %v12144_v60  ;;  %v2784_v63 = vpack.c.bf16 %v2556_v59, %v2552_v51  ;;  %v8394_v14 = vpop.f32.mrf.mxu1  ;;  %v12178_v6 = vld [vmem:[#allocation28_spill] sm:$0xff]  ;;  %v12179_v58 = vld [vmem:[#allocation93_spill] sm:$0xff]  ;;  %v2351_v24 = vmul.f32 0.01, %v1801_v29 }
 0x19f   : > { %12172 = vst [vmem:[#allocation129_spill] sm:$0xff] %v8372_v0  ;;  %12173 = vst [vmem:[#allocation82_spill] sm:$0xff] %v8384_v55  ;;  %vm2016_vm9 = vcmp.ge.f32.partialorder %v12178_v6, 0.0  ;;  %vm2020_vm12 = vcmp.ge.f32.partialorder %v12179_v58, 0.0  ;;  %v8402_v11 = vsel %vm2091_vm15, %v1795_v7, %v2347_v2  ;;  %v12182_v53 = vld [vmem:[#allocation59_spill] sm:$0xff]  ;;  %v12183_v10 = vld [vmem:[#allocation58_spill] sm:$0xff]  ;;  %v8409_v60 = vpop.f32.mrf.mxu0  ;;  %v1825_v51 = vadd.f32 %v12192_v52, %v12191_v12 }
 0x1a0   : > { %12175 = vst [vmem:[#allocation102_spill] sm:$0xff] %v8388_v43  ;;  %12177 = vst [vmem:[#allocation77_spill] sm:$0xff] %v8394_v14  ;;  %v1805_v50 = vadd.f32 %v12183_v10, %v12182_v53  ;;  %v6200_v22 = vld [vmem:[%s11529_s3 + $0x20] ss:$16 sps:$4 sm:$0xff]   ;;  %vm2095_vm3 = vcmp.ge.f32.partialorder %v1801_v29, 0.0  ;;  %v12184_v59 = vld [vmem:[#allocation49_spill] sm:$0xff]  ;;  %3849 = vmatprep.subr.bf16.mxu0 %v2784_v63  ;;  %v8417_v14 = vpop.f32.mrf.mxu1  ;;  %v2548_v63 = vsel %vm2036_vm2, %v12126_v44, %v8254_v30 }
 0x1a1   : > { %12180 = vst [vmem:[#allocation70_spill] sm:$0xff] %v8399_v54  ;;  %12181 = vst [vmem:[#allocation133_spill] sm:$0xff] %v8402_v11  ;;  %v12185_v17 = vld [vmem:[#allocation36_spill] sm:$0xff]  ;;  %v12186_v28 = vld [vmem:[#allocation50_spill] sm:$0xff]  ;;  %v8443_v52 = vmul.f32 0.01, %v8392_v62  ;;  %v12197_v44 = vpack.c.bf16 %v8226_v39, %v12131_v25  ;;  %v8457_v4 = vsel %vm2095_vm3, %v1801_v29, %v2351_v24 }
 0x1a2   : > { %v1811_v1 = vadd.f32 %v12185_v17, %v12184_v59  ;;  %v12187_v7 = vld [vmem:[#allocation138_spill] sm:$0xff]  ;;  %12188 = vst [vmem:[#allocation104_spill] sm:$0xff] %v8417_v14  ;;  %v12189_v20 = vld [vmem:[#allocation45_spill] sm:$0xff]  ;;  %v12190_v37 = vld [vmem:[#allocation111_spill] sm:$0xff]  ;;  %v8454_v30 = vpop.f32.mrf.mxu1  ;;  %vm2099_vm0 = vcmp.ge.f32.partialorder %v1805_v50, 0.0  ;;  %vm2115_vm14 = vcmp.ge.f32.partialorder %v1825_v51, 0.0 }
 0x1a3   : > { %v1815_v2 = vadd.f32 %v12187_v7, %v12186_v28  ;;  %v6205_v10 = vld [vmem:[%s11529_s3 + $0x44] ss:$16 sps:$4 sm:$0xff]   ;;  %v1821_v42 = vadd.f32 %v12190_v37, %v12189_v20  ;;  %v12193_v40 = vld [vmem:[#allocation137_spill] sm:$0xff]  ;;  %v8434_v7 = vpop.f32.mrf.mxu0  ;;  %v8440_v37 = vmul.f32 0.01, %v8388_v43  ;;  %12195 = vst [vmem:[#allocation73_spill] sm:$0xff] %v8443_v52  ;;  %3850 = vmatpush1.bf16.msra.mxu0 %v12197_v44 }
 0x1a4   : > { %v2544_v17 = vsel %vm2032_vm5, %v12143_v33, %v12193_v40  ;;  %v6247_v14 = vld [vmem:[%s11529_s3 + $0xc] ss:$16 sps:$4 sm:$0xff]   ;;  %v12196_v40 = vld [vmem:[#allocation66_spill] sm:$0xff]  ;;  %12198 = vst [vmem:[#allocation69_spill] sm:$0xff] %v8454_v30  ;;  %12199 = vst [vmem:[#allocation118_spill] sm:$0xff] %v8457_v4  ;;  %3504 = vmatmul.mubr.bf16.gmra.mxu0 %v6200_v22  ;;  %vm2103_vm2 = vcmp.ge.f32.partialorder %v1811_v1, 0.0  ;;  %v8579_v4 = vadd.f32 %v8128_v27, %v12102_v35 }
 0x1a5   : > { %12194 = vst [vmem:[#allocation121_spill] sm:$0xff] %v8440_v37  ;;  %v8449_v0 = vadd.f32 %v12196_v40, %v12150_v41  ;;  %v12200_v37 = vld [vmem:[#allocation65_spill] sm:$0xff]  ;;  %v2355_v52 = vmul.f32 0.01, %v1805_v50  ;;  %v8463_v33 = vpop.f32.mrf.mxu0  ;;  %3686 = vmatprep.mubr.bf16.mxu1 %v6247_v14  ;;  %v12202_v41 = vld [vmem:[#allocation72_spill] sm:$0xff]  ;;  %v12203_v40 = vld [vmem:[#allocation75_spill] sm:$0xff]  ;;  %v2780_v44 = vpack.c.bf16 %v2548_v63, %v2544_v17  ;;  %3513 = vmatprep.mubr.bf16.mxu0 %v6205_v10 }
 0x1a6   : > { %v8461_v55 = vadd.f32 %v12200_v37, %v12165_v26  ;;  %vm2008_vm6 = vcmp.ge.f32.partialorder %v12202_v41, 0.0  ;;  %vm2012_vm5 = vcmp.ge.f32.partialorder %v12203_v40, 0.0  ;;  %v12204_v25 = vld [vmem:[#allocation90_spill] sm:$0xff]  ;;  %v2359_v29 = vmul.f32 0.01, %v1811_v1  ;;  %v8471_v26 = vpop.f32.mrf.mxu1  ;;  %v12206_v14 = vld [vmem:[#allocation135_spill] sm:$0xff] }
 0x1a7   : > { %v8469_v39 = vadd.f32 %v12204_v25, %v12182_v53  ;;  %v2363_v24 = vmul.f32 0.01, %v1815_v2  ;;  %12205 = vst [vmem:[#allocation94_spill] sm:$0xff] %v8471_v26  ;;  %vm2107_vm4 = vcmp.ge.f32.partialorder %v1815_v2, 0.0  ;;  %v2367_v22 = vmul.f32 0.01, %v1821_v42  ;;  %v8473_v30 = vpop.f32.mrf.mxu0  ;;  %3851 = vmatprep.subr.bf16.mxu0 %v2780_v44 }
 0x1a8   : > { %12201 = vst [vmem:[#allocation117_spill] sm:$0xff] %v8461_v55  ;;  %v2371_v37 = vmul.f32 0.01, %v1825_v51  ;;  %vm2111_vm13 = vcmp.ge.f32.partialorder %v1821_v42, 0.0  ;;  %v2536_v53 = vsel %vm2024_vm7, %v12163_v13, %v12206_v14  ;;  %v12207_v25 = vld [vmem:[#allocation136_spill] sm:$0xff]  ;;  %v8483_v17 = vpop.f32.mrf.mxu1  ;;  %v8486_v63 = vsel %vm2099_vm0, %v1805_v50, %v2355_v52  ;;  %v12210_v26 = vld [vmem:[#allocation87_spill] sm:$0xff] }
 0x1a9   : > { %v2540_v10 = vsel %vm2028_vm10, %v12164_v61, %v12207_v25  ;;  %12208 = vst [vmem:[#allocation127_spill] sm:$0xff] %v8483_v17  ;;  %12209 = vst [vmem:[#allocation131_spill] sm:$0xff] %v8486_v63  ;;  %v8490_v54 = vadd.f32 %v12210_v26, %v12184_v59  ;;  %v12211_v44 = vld [vmem:[#allocation141_spill] sm:$0xff]  ;;  %v12212_v13 = vld [vmem:[#allocation142_spill] sm:$0xff]  ;;  %v8503_v25 = vpop.f32.mrf.mxu0  ;;  %v8508_v59 = vsel %vm2103_vm2, %v1811_v1, %v2359_v29  ;;  %v8526_v1 = vmul.f32 0.01, %v8461_v55 }
 0x1aa   : > { %v8494_v11 = vadd.f32 %v12211_v44, %v12186_v28  ;;  %v8498_v14 = vadd.f32 %v12212_v13, %v12189_v20  ;;  %v12213_v32 = vld [vmem:[#allocation32_spill] sm:$0xff]  ;;  %v12216_v50 = vld [vmem:[#allocation62_spill] sm:$0xff]  ;;  %v12217_v52 = vld [vmem:[#allocation67_spill] sm:$0xff]  ;;  %v8511_v28 = vsel %vm2107_vm4, %v1815_v2, %v2363_v24  ;;  %v2776_v44 = vpack.c.bf16 %v2540_v10, %v2536_v53  ;;  %12231 = vst [vmem:[#allocation134_spill] sm:$0xff] %v8579_v4 }
 0x1ab   : > { %v12214_v45 = vld [vmem:[#allocation84_spill] sm:$0xff]  ;;  %vm2000_vm1 = vcmp.ge.f32.partialorder %v12216_v50, 0.0  ;;  %vm2004_vm8 = vcmp.ge.f32.partialorder %v12217_v52, 0.0  ;;  %v8523_v13 = vmul.f32 0.01, %v8449_v0  ;;  %12221 = vst [vmem:[#allocation54_spill] sm:$0xff] %v8526_v1  ;;  %v8529_v2 = vsel %vm2111_vm13, %v1821_v42, %v2367_v22 }
 0x1ac   : > { %v12215_v61 = vpack.c.bf16 %v12213_v32, %v12214_v45  ;;  %v12218_v26 = vld [vmem:[#allocation144_spill] sm:$0xff]  ;;  %v8520_v45 = vpop.f32.mrf.mxu1  ;;  %v8532_v29 = vsel %vm2115_vm14, %v1825_v51, %v2371_v37  ;;  %v8542_v10 = vmul.f32 0.01, %v8469_v39  ;;  %v8563_v17 = vmul.f32 0.01, %v8498_v14 }
 0x1ad   : > { %v8515_v20 = vadd.f32 %v12218_v26, %v12191_v12  ;;  %v6203_v32 = vld [vmem:[%s11529_s3 + $0x40] ss:$16 sps:$4 sm:$0xff]   ;;  %12219 = vst [vmem:[#allocation97_spill] sm:$0xff] %v8520_v45  ;;  %12220 = vst [vmem:[#allocation35_spill] sm:$0xff] %v8523_v13  ;;  %v8534_v12 = vpop.f32.mrf.mxu0  ;;  %v6208_v24 = vld [vmem:[%s11529_s3 + $0x64] ss:$16 sps:$4 sm:$0xff]   ;;  %v8597_v63 = vadd.f32 %v8263_v49, %v12142_v34 }
 0x1ae   : > { %3852 = vmatpush1.bf16.msra.mxu0 %v12215_v61  ;;  %12222 = vst [vmem:[#allocation63_spill] sm:$0xff] %v8542_v10  ;;  %v12223_v61 = vld [vmem:[#allocation24_spill] sm:$0xff]  ;;  %v8552_v37 = vpop.f32.mrf.mxu1  ;;  %v8555_v26 = vmul.f32 0.01, %v8490_v54  ;;  %vm2112_vm11 = vcmp.ge.f32.partialorder %v8498_v14, 0.0  ;;  %vm2108_vm3 = vcmp.ge.f32.partialorder %v8494_v11, 0.0 }
 0x1af   : > { %3853 = vmatprep.subr.bf16.mxu0 %v2776_v44  ;;  %v2528_v42 = vsel %vm2016_vm9, %v12178_v6, %v12223_v61  ;;  %v12224_v51 = vld [vmem:[#allocation100_spill] sm:$0xff]  ;;  %12225 = vst [vmem:[#allocation132_spill] sm:$0xff] %v8552_v37  ;;  %v8560_v44 = vmul.f32 0.01, %v8494_v11  ;;  %v12226_v6 = vld [vmem:[#allocation91_spill] sm:$0xff]  ;;  %v12227_v61 = vld [vmem:[#allocation89_spill] sm:$0xff]  ;;  %v8568_v13 = vpop.f32.mrf.mxu0  ;;  %3514 = vmatmul.mubr.bf16.gmra.mxu0 %v6203_v32  ;;  %v8593_v37 = vadd.f32 %v8247_v36, %v12136_v47 }
 0x1b0   : > { %v2532_v22 = vsel %vm2020_vm12, %v12179_v58, %v12224_v51  ;;  %v12228_v45 = vpack.c.bf16 %v12226_v6, %v12227_v61  ;;  %v12229_v58 = vld [vmem:[#allocation53_spill] sm:$0xff]  ;;  %v12230_v51 = vld [vmem:[#allocation56_spill] sm:$0xff]  ;;  %v8575_v53 = vmul.f32 0.01, %v8515_v20  ;;  %v8583_v6 = vadd.f32 %v8231_v18, %v12136_v47  ;;  %3523 = vmatprep.mubr.bf16.mxu0 %v6208_v24  ;;  %v12246_v47 = vld [vmem:[#allocation83_spill] sm:$0xff] }
 0x1b1   : > { %vm1992_vm7 = vcmp.ge.f32.partialorder %v12229_v58, 0.0  ;;  %vm1996_vm10 = vcmp.ge.f32.partialorder %v12230_v51, 0.0  ;;  %v8589_v61 = vadd.f32 %v8156_v3, %v12105_v48  ;;  %v2772_v27 = vpack.c.bf16 %v2532_v22, %v2528_v42  ;;  %v1557_v35 = vpop.f32.mrf.mxu0  ;;  %v12237_v36 = vld [vmem:[#allocation29_spill] sm:$0xff]  ;;  %v12239_v42 = vld [vmem:[#allocation30_spill] sm:$0xff]  ;;  %v12241_v22 = vld [vmem:[#allocation92_spill] sm:$0xff] }
 0x1b2   : > { %3854 = vmatpush1.bf16.msra.mxu0 %v12228_v45  ;;  %12232 = vst [vmem:[#allocation28_spill] sm:$0xff] %v8583_v6  ;;  %v8585_v45 = vpop.f32.mrf.mxu1  ;;  %v8601_v18 = vadd.f32 %v8182_v5, %v12115_v8  ;;  %v8605_v32 = vadd.f32 %v8200_v31, %v12116_v19  ;;  %v8609_v3 = vadd.f32 %v8289_v21, %v12142_v34  ;;  %v12240_v31 = vld [vmem:[#allocation31_spill] sm:$0xff]  ;;  %vm2116_vm15 = vcmp.ge.f32.partialorder %v8515_v20, 0.0  ;;  %v12272_v10 = vld [vmem:[#allocation60_spill] sm:$0xff] }
 0x1b3   : > { %12233 = vst [vmem:[#allocation93_spill] sm:$0xff] %v8585_v45  ;;  %12234 = vst [vmem:[#allocation59_spill] sm:$0xff] %v8589_v61  ;;  %v8613_v48 = vadd.f32 %v8301_v16, %v12237_v36  ;;  %v8617_v24 = vadd.f32 %v8217_v46, %v12116_v19  ;;  %v8621_v5 = vadd.f32 %v8342_v15, %v12239_v42  ;;  %3855 = vmatprep.subr.bf16.mxu0 %v2772_v27  ;;  %v8631_v34 = vpop.f32.mrf.mxu0  ;;  %v12244_v27 = vld [vmem:[#allocation25_spill] sm:$0xff]  ;;  %v12253_v61 = vld [vmem:[#allocation20_spill] sm:$0xff] }
 0x1b4   : > { %12235 = vst [vmem:[#allocation58_spill] sm:$0xff] %v8601_v18  ;;  %12236 = vst [vmem:[#allocation49_spill] sm:$0xff] %v8605_v32  ;;  %v1910_v49 = vpop.f32.mrf.mxu1  ;;  %v2520_v21 = vsel %vm2008_vm6, %v12202_v41, %v12240_v31  ;;  %v2524_v16 = vsel %vm2012_vm5, %v12203_v40, %v12241_v22  ;;  %v8634_v46 = vmul.f32 0.01, %v8583_v6  ;;  %v8638_v15 = vadd.f32 %v8358_v57, %v12239_v42  ;;  %v12245_v31 = vld [vmem:[#allocation86_spill] sm:$0xff]  ;;  %v8702_v18 = vpop.permute.xlu0 %948 }
 0x1b5   : > { %12238 = vst [vmem:[#allocation36_spill] sm:$0xff] %v8617_v24  ;;  %12242 = vst [vmem:[#allocation50_spill] sm:$0xff] %v8631_v34  ;;  %v8642_v19 = vadd.f32 %v8381_v38, %v12244_v27  ;;  %v8646_v41 = vadd.f32 %v8409_v60, %v12244_v27  ;;  %v12247_v40 = vpack.c.bf16 %v12245_v31, %v12246_v47  ;;  %v8656_v57 = vmul.f32 0.01, %v8593_v37  ;;  %v12251_v42 = vld [vmem:[#allocation26_spill] sm:$0xff]  ;;  %v1561_v31 = vpop.f32.mrf.mxu0 }
 0x1b6   : > { %12243 = vst [vmem:[#allocation138_spill] sm:$0xff] %v8634_v46  ;;  %v8651_v22 = vpop.f32.mrf.mxu1  ;;  %v8659_v38 = vmul.f32 0.01, %v8597_v63  ;;  %v8663_v60 = vadd.f32 %v8434_v7, %v12251_v42  ;;  %v2768_v27 = vpack.c.bf16 %v2524_v16, %v2520_v21  ;;  %v6206_v47 = vld [vmem:[%s11529_s3 + $0x60] ss:$16 sps:$4 sm:$0xff]   ;;  %v8676_v45 = vadd.f32 %v8323_v56, %v12237_v36  ;;  %v12254_v46 = vld [vmem:[#allocation23_spill] sm:$0xff] }
 0x1b7   : > { %3856 = vmatpush1.bf16.msra.mxu0 %v12247_v40  ;;  %12248 = vst [vmem:[#allocation45_spill] sm:$0xff] %v8651_v22  ;;  %12249 = vst [vmem:[#allocation111_spill] sm:$0xff] %v8656_v57  ;;  %v8669_v40 = vmul.f32 0.01, %v8609_v3  ;;  %v8672_v22 = vmul.f32 0.01, %v8613_v48  ;;  %v8680_v7 = vadd.f32 %v8463_v33, %v12251_v42  ;;  %v8690_v4 = vadd.f32 %v8473_v30, %v12253_v61  ;;  %v8700_v42 = vpop.f32.mrf.mxu0 }
 0x1b8   : > { %12250 = vst [vmem:[#allocation46_spill] sm:$0xff] %v8659_v38  ;;  %v1914_v21 = vpop.f32.mrf.mxu1  ;;  %v6211_v16 = vld [vmem:[%s11529_s3 + $0x84] ss:$16 sps:$4 sm:$0xff]   ;;  %v8686_v34 = vmul.f32 0.01, %v8621_v5  ;;  %3857 = vmatprep.subr.bf16.mxu0 %v2768_v27  ;;  %v2512_v56 = vsel %vm2000_vm1, %v12216_v50, %v12254_v46  ;;  %v12255_v33 = vld [vmem:[#allocation81_spill] sm:$0xff]  ;;  %v8715_v50 = vadd.f32 %v8503_v25, %v12253_v61  ;;  %3524 = vmatmul.mubr.bf16.gmra.mxu0 %v6206_v47 }
 0x1b9   : > { %12252 = vst [vmem:[#allocation143_spill] sm:$0xff] %v8669_v40  ;;  %v2516_v36 = vsel %vm2004_vm8, %v12217_v52, %v12255_v33  ;;  %12256 = vst [vmem:[#allocation137_spill] sm:$0xff] %v8700_v42  ;;  %v8705_v40 = vmul.f32 0.01, %v8638_v15  ;;  %v8708_v30 = vmul.f32 0.01, %v8642_v19  ;;  %v1558_v6 = vadd.f32 %v1557_v35, %v8702_v18  ;;  %v8729_v32 = vpop.f32.mrf.mxu0  ;;  %3533 = vmatprep.mubr.bf16.mxu0 %v6211_v16  ;;  %v8754_v16 = vpop.permute.xlu1 %953 }
 0x1ba   : > { %12257 = vst [vmem:[#allocation66_spill] sm:$0xff] %v8702_v18  ;;  %v8711_v27 = vmul.f32 0.01, %v8646_v41  ;;  %v12258_v46 = vld [vmem:[#allocation79_spill] sm:$0xff]  ;;  %v12259_v57 = vld [vmem:[#allocation76_spill] sm:$0xff]  ;;  %v8720_v33 = vpop.f32.mrf.mxu1  ;;  %vm2169_vm9 = vcmp.ge.f32.partialorder %v8663_v60, 0.0  ;;  %v1911_v35 = vadd.f32 %v1910_v49, %v8702_v18  ;;  %v1562_v9 = vadd.f32 %v1561_v31, %v8754_v16 }
 0x1bb   : > { %v12260_v52 = vpack.c.bf16 %v12258_v46, %v12259_v57  ;;  %12261 = vst [vmem:[#allocation65_spill] sm:$0xff] %v8720_v33  ;;  %v8724_v42 = vmul.f32 0.01, %v8663_v60  ;;  %v12262_v38 = vld [vmem:[#allocation22_spill] sm:$0xff]  ;;  %vm2104_vm12 = vcmp.ge.f32.partialorder %v8490_v54, 0.0  ;;  %vm2170_vm0 = vcmp.ge.f32.partialorder %v8680_v7, 0.0 }
 0x1bc   : > { %v1552_v24 = vadd.f32 %v8534_v12, %v12262_v38  ;;  %v8735_v25 = vmul.f32 0.01, %v8680_v7  ;;  %v1554_v57 = vadd.f32 %v8568_v13, %v12262_v38  ;;  %v2764_v46 = vpack.c.bf16 %v2516_v36, %v2512_v56  ;;  %v8739_v12 = vpop.f32.mrf.mxu1  ;;  %v12263_v47 = vld [vmem:[#allocation57_spill] sm:$0xff]  ;;  %v12264_v33 = vld [vmem:[#allocation27_spill] sm:$0xff]  ;;  %v8752_v36 = vpop.f32.mrf.mxu0  ;;  %12266 = vst [vmem:[#allocation75_spill] sm:$0xff] %v8754_v16  ;;  %v12269_v38 = vld [vmem:[#allocation68_spill] sm:$0xff] }
 0x1bd   : > { %3858 = vmatpush1.bf16.msra.mxu0 %v12260_v52  ;;  %vm2173_vm5 = vcmp.ge.f32.partialorder %v8690_v4, 0.0  ;;  %v2504_v52 = vsel %vm1992_vm7, %v12229_v58, %v12263_v47  ;;  %v2508_v13 = vsel %vm1996_vm10, %v12230_v51, %v12264_v33  ;;  %12265 = vst [vmem:[#allocation72_spill] sm:$0xff] %v8752_v36  ;;  %v2429_v56 = vmul.f32 0.01, %v8690_v4  ;;  %v6209_v58 = vld [vmem:[%s11529_s3 + $0x80] ss:$16 sps:$4 sm:$0xff]  }
 0x1be   : > { %vm2174_vm4 = vcmp.ge.f32.partialorder %v8715_v50, 0.0  ;;  %v2430_v49 = vmul.f32 0.01, %v8715_v50  ;;  %3859 = vmatprep.subr.bf16.mxu0 %v2764_v46  ;;  %v2760_v61 = vpack.c.bf16 %v2508_v13, %v2504_v52  ;;  %v8763_v47 = vpop.f32.mrf.mxu1  ;;  %v2433_v51 = vmul.f32 0.01, %v1552_v24  ;;  %v12268_v33 = vld [vmem:[#allocation71_spill] sm:$0xff]  ;;  %v8771_v46 = vpop.f32.mrf.mxu0 }
 0x1bf   : > { %12267 = vst [vmem:[#allocation90_spill] sm:$0xff] %v8763_v47  ;;  %v12270_v18 = vpack.c.bf16 %v12268_v33, %v12269_v38  ;;  %v2437_v36 = vmul.f32 0.01, %v1558_v6  ;;  %v1915_v8 = vadd.f32 %v1914_v21, %v8754_v16  ;;  %v6214_v52 = vld [vmem:[%s11529_s3 + $0xa4] ss:$16 sps:$4 sm:$0xff]   ;;  %vm2177_vm14 = vcmp.ge.f32.partialorder %v1552_v24, 0.0 }
 0x1c0   : > { %v2434_v13 = vmul.f32 0.01, %v1554_v57  ;;  %vm2181_vm1 = vcmp.ge.f32.partialorder %v1558_v6, 0.0  ;;  %v2439_v47 = vmul.f32 0.01, %v1911_v35  ;;  %vm2183_vm8 = vcmp.ge.f32.partialorder %v1911_v35, 0.0  ;;  %v1924_v33 = vpop.f32.mrf.mxu1  ;;  %3534 = vmatmul.mubr.bf16.gmra.mxu0 %v6209_v58 }
 0x1c1   : > { %3860 = vmatpush1.bf16.msra.mxu0 %v12270_v18  ;;  %vm2185_vm7 = vcmp.ge.f32.partialorder %v1562_v9, 0.0  ;;  %v2441_v38 = vmul.f32 0.01, %v1562_v9  ;;  %vm2187_vm10 = vcmp.ge.f32.partialorder %v1915_v8, 0.0  ;;  %v8776_v18 = vpop.f32.mrf.mxu0  ;;  %vm2096_vm13 = vcmp.ge.f32.partialorder %v8461_v55, 0.0  ;;  %v12273_v55 = vld [vmem:[#allocation55_spill] sm:$0xff]  ;;  %3543 = vmatprep.mubr.bf16.mxu0 %v6214_v52 }
 0x1c2   : > { %3861 = vmatprep.subr.bf16.mxu0 %v2760_v61  ;;  %12271 = vst [vmem:[#allocation135_spill] sm:$0xff] %v8776_v18  ;;  %vm2178_vm2 = vcmp.ge.f32.partialorder %v1554_v57, 0.0  ;;  %v2443_v31 = vmul.f32 0.01, %v1915_v8  ;;  %v2624_v21 = vsel %vm2112_vm11, %v8498_v14, %v8563_v17  ;;  %v2628_v61 = vsel %vm2116_vm15, %v8515_v20, %v8575_v53  ;;  %v8826_v58 = vpop.f32.mrf.mxu1 }
 0x1c3   : > { %vm2100_vm6 = vcmp.ge.f32.partialorder %v8469_v39, 0.0  ;;  %v2689_v16 = vsel %vm2177_vm14, %v1552_v24, %v2433_v51  ;;  %v8790_v18 = vsel %vm2181_vm1, %v1558_v6, %v2437_v36  ;;  %v12274_v1 = vpack.c.bf16 %v12272_v10, %v12273_v55  ;;  %v8797_v14 = vpop.f32.mrf.mxu0  ;;  %v12277_v36 = vld [vmem:[#allocation106_spill] sm:$0xff]  ;;  %12278 = vst [vmem:[#allocation141_spill] sm:$0xff] %v8826_v58 }
 0x1c4   : > { %v8795_v43 = vsel %vm2185_vm7, %v1562_v9, %v2441_v38  ;;  %v2820_v17 = vpack.c.bf16 %v2628_v61, %v2624_v21  ;;  %v2685_v20 = vsel %vm2173_vm5, %v8690_v4, %v2429_v56  ;;  %v8803_v53 = vsel %vm2183_vm8, %v1911_v35, %v2439_v47  ;;  %v12286_v38 = vld [vmem:[#allocation54_spill] sm:$0xff]  ;;  %v12340_v9 = vld [vmem:[#allocation128_spill] sm:$0xff] }
 0x1c5   : > { %3862 = vmatpush1.bf16.msra.mxu0 %v12274_v1  ;;  %12275 = vst [vmem:[#allocation136_spill] sm:$0xff] %v8803_v53  ;;  %v8808_v24 = vsel %vm2187_vm10, %v1915_v8, %v2443_v31  ;;  %vm2166_vm11 = vcmp.ge.f32.partialorder %v8646_v41, 0.0  ;;  %v2686_v4 = vsel %vm2174_vm4, %v8715_v50, %v2430_v49  ;;  %v2690_v55 = vsel %vm2178_vm2, %v1554_v57, %v2434_v13  ;;  %v8817_v1 = vpop.f32.mrf.mxu0  ;;  %v12285_v13 = vld [vmem:[#allocation102_spill] sm:$0xff]  ;;  %v12287_v31 = vld [vmem:[#allocation117_spill] sm:$0xff] }
 0x1c6   : > { %12276 = vst [vmem:[#allocation87_spill] sm:$0xff] %v8808_v24  ;;  %3863 = vmatprep.subr.bf16.mxu0 %v2820_v17  ;;  %vm2153_vm15 = vcmp.ge.f32.partialorder %v8597_v63, 0.0  ;;  %v2681_v8 = vsel %vm2169_vm9, %v8663_v60, %v8724_v42  ;;  %v2849_v10 = vpack.c.bf16 %v2689_v16, %v2685_v20  ;;  %v2850_v35 = vpack.c.bf16 %v2690_v55, %v2686_v4  ;;  %v12367_v55 = vld [vmem:[#allocation52_spill] sm:$0xff]  ;;  %v12374_v24 = vld [vmem:[#allocation61_spill] sm:$0xff] }
 0x1c7   : > { %v1568_v56 = vadd.f32 %v8729_v32, %v12277_v36  ;;  %vm2088_vm5 = vcmp.ge.f32.partialorder %v8392_v62, 0.0  ;;  %vm2092_vm2 = vcmp.ge.f32.partialorder %v8449_v0, 0.0  ;;  %vm2150_vm4 = vcmp.ge.f32.partialorder %v8593_v37, 0.0  ;;  %v9172_v53 = vld [vmem:[%s11529_s3 + $0x184] ss:$16 sps:$4 sm:$0xff]  }
 0x1c8   : > { %vm2154_vm14 = vcmp.ge.f32.partialorder %v8609_v3, 0.0  ;;  %v12279_v50 = vpack.c.bf16 %v8532_v29, %v8529_v2  ;;  %v1921_v42 = vadd.f32 %v8739_v12, %v12277_v36  ;;  %v2682_v32 = vsel %vm2170_vm0, %v8680_v7, %v8735_v25  ;;  %v8849_v2 = vpop.f32.mrf.mxu0  ;;  %3654 = vmatprep.subr.bf16.mxu1 %v2850_v35  ;;  %v12283_v25 = vld [vmem:[#allocation109_spill] sm:$0xff]  ;;  %12373 = vst [vmem:[#allocation83_spill] sm:$0xff] %v9172_v53 }
 0x1c9   : > { %v2616_v60 = vsel %vm2104_vm12, %v8490_v54, %v8555_v26  ;;  %v2620_v57 = vsel %vm2108_vm3, %v8494_v11, %v8560_v44  ;;  %vm12280_vm9 = vcmp.ge.f32.partialorder %v8613_v48, 0.0  ;;  %v2414_v12 = vmul.f32 0.01, %v8676_v45  ;;  %3655 = vmatpush1.bf16.msra.mxu1 %v2849_v10  ;;  %v6212_v44 = vld [vmem:[%s11529_s3 + $0xa0] ss:$16 sps:$4 sm:$0xff]  }
 0x1ca   : > { %3864 = vmatpush2.bf16.msra.mxu0 %v12279_v50  ;;  %v2669_v29 = vsel %vm12280_vm9, %v8613_v48, %v8672_v22  ;;  %vm2162_vm0 = vcmp.ge.f32.partialorder %v8638_v15, 0.0  ;;  %v2678_v54 = vsel %vm2166_vm11, %v8646_v41, %v8711_v27  ;;  %vm2158_vm12 = vcmp.ge.f32.partialorder %v8676_v45, 0.0  ;;  %v8869_v22 = vpop.f32.mrf.mxu0  ;;  %v12292_v50 = vld [vmem:[#allocation163_spill] sm:$0xff] }
 0x1cb   : > { %vm12281_vm3 = vcmp.ge.f32.partialorder %v8642_v19, 0.0  ;;  %v2846_v26 = vpack.c.bf16 %v2682_v32, %v2678_v54  ;;  %v2816_v48 = vpack.c.bf16 %v2620_v57, %v2616_v60  ;;  %vm12282_vm1 = vcmp.ge.f32.partialorder %v8621_v5, 0.0  ;;  %3544 = vmatmul.mubr.bf16.gmra.mxu0 %v6212_v44  ;;  %v12293_v60 = vld [vmem:[#allocation49_spill] sm:$0xff]  ;;  %v12294_v57 = vld [vmem:[#allocation28_spill] sm:$0xff] }
 0x1cc   : > { %v2677_v11 = vsel %vm12281_vm3, %v8642_v19, %v8708_v30  ;;  %v2673_v41 = vsel %vm12282_vm1, %v8621_v5, %v8686_v34  ;;  %v2445_v27 = vmul.f32 0.01, %v1568_v56  ;;  %v1572_v16 = vadd.f32 %v8771_v46, %v12283_v25  ;;  %v1930_v19 = vpop.f32.mrf.mxu1  ;;  %v6217_v30 = vld [vmem:[%s11529_s3 + $0xc4] ss:$16 sps:$4 sm:$0xff]   ;;  %v8885_v5 = vpop.f32.mrf.mxu0 }
 0x1cd   : > { %v2845_v7 = vpack.c.bf16 %v2681_v8, %v2677_v11  ;;  %vm2189_vm8 = vcmp.ge.f32.partialorder %v1568_v56, 0.0  ;;  %v2447_v49 = vmul.f32 0.01, %v1921_v42  ;;  %3656 = vmatprep.subr.bf16.mxu1 %v2846_v26  ;;  %3865 = vmatprep.subr.bf16.mxu0 %v2816_v48  ;;  %v1925_v47 = vadd.f32 %v1924_v33, %v12283_v25  ;;  %v12288_v33 = vld [vmem:[#allocation63_spill] sm:$0xff]  ;;  %v12297_v54 = vld [vmem:[#allocation36_spill] sm:$0xff]  ;;  %v12298_v26 = vld [vmem:[#allocation46_spill] sm:$0xff] }
 0x1ce   : > { %v2674_v34 = vsel %vm2162_vm0, %v8638_v15, %v8705_v40  ;;  %vm2191_vm7 = vcmp.ge.f32.partialorder %v1921_v42, 0.0  ;;  %v12284_v51 = vpack.c.bf16 %v8511_v28, %v8508_v59  ;;  %vm2193_vm10 = vcmp.ge.f32.partialorder %v1572_v16, 0.0  ;;  %v8899_v28 = vpop.f32.mrf.mxu0  ;;  %v8910_v20 = vpop.f32.mrf.mxu1  ;;  %3553 = vmatprep.mubr.bf16.mxu0 %v6217_v30  ;;  %v12299_v44 = vld [vmem:[#allocation96_spill] sm:$0xff] }
 0x1cf   : > { %v2449_v46 = vmul.f32 0.01, %v1572_v16  ;;  %v2670_v52 = vsel %vm2158_vm12, %v8676_v45, %v2414_v12  ;;  %vm2080_vm11 = vcmp.ge.f32.partialorder %v8339_v23, 0.0  ;;  %vm2084_vm9 = vcmp.ge.f32.partialorder %v12285_v13, 0.0  ;;  %3657 = vmatpush1.bf16.msra.mxu1 %v2845_v7  ;;  %v12296_v12 = vld [vmem:[#allocation95_spill] sm:$0xff] }
 0x1d0   : > { %3866 = vmatpush2.bf16.msra.mxu0 %v12284_v51  ;;  %vm2195_vm3 = vcmp.ge.f32.partialorder %v1925_v47, 0.0  ;;  %v2451_v15 = vmul.f32 0.01, %v1925_v47  ;;  %v2842_v40 = vpack.c.bf16 %v2674_v34, %v2670_v52  ;;  %v2608_v59 = vsel %vm2096_vm13, %v12287_v31, %v12286_v38  ;;  %v8919_v35 = vpop.f32.mrf.mxu0  ;;  %v12304_v34 = vld [vmem:[#allocation143_spill] sm:$0xff]  ;;  %v12305_v51 = vld [vmem:[#allocation73_spill] sm:$0xff] }
 0x1d1   : > { %v2841_v21 = vpack.c.bf16 %v2673_v41, %v2669_v29  ;;  %v8902_v61 = vsel %vm2189_vm8, %v1568_v56, %v2445_v27  ;;  %v8904_v45 = vsel %vm2193_vm10, %v1572_v16, %v2449_v46  ;;  %v2612_v17 = vsel %vm2100_vm6, %v8469_v39, %v12288_v33  ;;  %v12291_v56 = vld [vmem:[#allocation37_spill] sm:$0xff]  ;;  %v12295_v29 = vld [vmem:[#allocation126_spill] sm:$0xff]  ;;  %v12300_v27 = vld [vmem:[#allocation131_spill] sm:$0xff] }
 0x1d2   : > { %v8913_v4 = vsel %vm2191_vm7, %v1921_v42, %v2447_v49  ;;  %v8917_v8 = vsel %vm2195_vm3, %v1925_v47, %v2451_v15  ;;  %3658 = vmatprep.subr.bf16.mxu1 %v2842_v40  ;;  %v2812_v10 = vpack.c.bf16 %v2612_v17, %v2608_v59  ;;  %v1508_v32 = vadd.f32 %v12292_v50, %v12291_v56  ;;  %v8936_v7 = vpop.f32.mrf.mxu0  ;;  %v12301_v16 = vld [vmem:[#allocation118_spill] sm:$0xff]  ;;  %v12303_v49 = vld [vmem:[#allocation111_spill] sm:$0xff]  ;;  %v1934_v15 = vpop.f32.mrf.mxu1 }
 0x1d3   : > { %12289 = vst [vmem:[#allocation142_spill] sm:$0xff] %v8913_v4  ;;  %12290 = vst [vmem:[#allocation32_spill] sm:$0xff] %v8917_v8  ;;  %v2401_v39 = vmul.f32 0.01, %v12293_v60  ;;  %vm2149_vm6 = vcmp.ge.f32.partialorder %v12294_v57, 0.0  ;;  %vm2072_vm13 = vcmp.ge.f32.partialorder %v12295_v29, 0.0  ;;  %v2665_v48 = vsel %vm2153_vm15, %v8597_v63, %v12298_v26  ;;  %3659 = vmatpush1.bf16.msra.mxu1 %v2841_v21 }
 0x1d4   : > { %vm2076_vm0 = vcmp.ge.f32.partialorder %v12296_v12, 0.0  ;;  %vm2146_vm12 = vcmp.ge.f32.partialorder %v12297_v54, 0.0  ;;  %v2402_v11 = vmul.f32 0.01, %v12297_v54  ;;  %3867 = vmatprep.subr.bf16.mxu0 %v2812_v10  ;;  %v1931_v41 = vadd.f32 %v1930_v19, %v12299_v44  ;;  %v12306_v46 = vld [vmem:[#allocation35_spill] sm:$0xff]  ;;  %v12307_v40 = vld [vmem:[#allocation58_spill] sm:$0xff]  ;;  %v8963_v59 = vpop.f32.mrf.mxu0 }
 0x1d5   : > { %v12302_v30 = vpack.c.bf16 %v12300_v27, %v12301_v16  ;;  %v2662_v47 = vsel %vm2150_vm4, %v8593_v37, %v12303_v49  ;;  %v2666_v63 = vsel %vm2154_vm14, %v8609_v3, %v12304_v34  ;;  %v2600_v19 = vsel %vm2088_vm5, %v8392_v62, %v12305_v51  ;;  %v12308_v37 = vld [vmem:[#allocation138_spill] sm:$0xff]  ;;  %v12309_v10 = vld [vmem:[#allocation99_spill] sm:$0xff] }
 0x1d6   : > { %v2604_v52 = vsel %vm2092_vm2, %v8449_v0, %v12306_v46  ;;  %v2398_v38 = vmul.f32 0.01, %v12307_v40  ;;  %vm2145_vm15 = vcmp.ge.f32.partialorder %v12293_v60, 0.0  ;;  %v2661_v3 = vsel %vm2149_vm6, %v12294_v57, %v12308_v37  ;;  %v6215_v0 = vld [vmem:[%s11529_s3 + $0xc0] ss:$16 sps:$4 sm:$0xff]   ;;  %v8976_v27 = vpop.f32.mrf.mxu0 }
 0x1d7   : > { %3868 = vmatpush2.bf16.msra.mxu0 %v12302_v30  ;;  %v2838_v31 = vpack.c.bf16 %v2666_v63, %v2662_v47  ;;  %v2397_v21 = vmul.f32 0.01, %v1508_v32  ;;  %vm2142_vm5 = vcmp.ge.f32.partialorder %v12307_v40, 0.0  ;;  %v2837_v62 = vpack.c.bf16 %v2665_v48, %v2661_v3  ;;  %v6220_v26 = vld [vmem:[%s11529_s3 + $0xe4] ss:$16 sps:$4 sm:$0xff]   ;;  %v12311_v30 = vld [vmem:[#allocation59_spill] sm:$0xff] }
 0x1d8   : > { %v2808_v33 = vpack.c.bf16 %v2604_v52, %v2600_v19  ;;  %vm2141_vm2 = vcmp.ge.f32.partialorder %v1508_v32, 0.0  ;;  %v2455_v17 = vmul.f32 0.01, %v1931_v41  ;;  %v1935_v50 = vadd.f32 %v1934_v15, %v12309_v10  ;;  %v12310_v48 = vld [vmem:[#allocation134_spill] sm:$0xff]  ;;  %v8990_v19 = vpop.f32.mrf.mxu0  ;;  %v12316_v15 = vld [vmem:[#allocation121_spill] sm:$0xff]  ;;  %3554 = vmatmul.mubr.bf16.gmra.mxu0 %v6215_v0 }
 0x1d9   : > { %3660 = vmatprep.subr.bf16.mxu1 %v2838_v31  ;;  %v2658_v57 = vsel %vm2146_vm12, %v12297_v54, %v2402_v11  ;;  %v2390_v16 = vmul.f32 0.01, %v12310_v48  ;;  %vm2138_vm4 = vcmp.ge.f32.partialorder %v12311_v30, 0.0  ;;  %v2657_v49 = vsel %vm2145_vm15, %v12293_v60, %v2401_v39  ;;  %v12312_v54 = vld [vmem:[#allocation133_spill] sm:$0xff]  ;;  %v12313_v11 = vld [vmem:[#allocation70_spill] sm:$0xff]  ;;  %3563 = vmatprep.mubr.bf16.mxu0 %v6220_v26 }
 0x1da   : > { %vm2199_vm14 = vcmp.ge.f32.partialorder %v1931_v41, 0.0  ;;  %3869 = vmatprep.subr.bf16.mxu0 %v2808_v33  ;;  %3661 = vmatpush1.bf16.msra.mxu1 %v2837_v62  ;;  %v2394_v47 = vmul.f32 0.01, %v12311_v30  ;;  %v12314_v34 = vpack.c.bf16 %v12312_v54, %v12313_v11  ;;  %vm2203_vm1 = vcmp.ge.f32.partialorder %v1935_v50, 0.0  ;;  %v12315_v39 = vld [vmem:[#allocation82_spill] sm:$0xff]  ;;  %v12320_v62 = vld [vmem:[#allocation152_spill] sm:$0xff] }
 0x1db   : > { %v2459_v63 = vmul.f32 0.01, %v1935_v50  ;;  %v2654_v51 = vsel %vm2142_vm5, %v12307_v40, %v2398_v38  ;;  %v2653_v46 = vsel %vm2141_vm2, %v1508_v32, %v2397_v21  ;;  %v2592_v52 = vsel %vm2080_vm11, %v8339_v23, %v12315_v39  ;;  %v9005_v32 = vpop.f32.mrf.mxu0  ;;  %v12319_v21 = vld [vmem:[#allocation41_spill] sm:$0xff]  ;;  %v12322_v23 = vld [vmem:[#allocation155_spill] sm:$0xff] }
 0x1dc   : > { %3870 = vmatpush2.bf16.msra.mxu0 %v12314_v34  ;;  %v2834_v60 = vpack.c.bf16 %v2658_v57, %v2654_v51  ;;  %v2596_v37 = vsel %vm2084_vm9, %v12285_v13, %v12316_v15  ;;  %v2833_v3 = vpack.c.bf16 %v2657_v49, %v2653_v46  ;;  %v9001_v31 = vsel %vm2199_vm14, %v1931_v41, %v2455_v17  ;;  %v12321_v57 = vld [vmem:[#allocation42_spill] sm:$0xff]  ;;  %v12323_v0 = vld [vmem:[#allocation129_spill] sm:$0xff]  ;;  %v12324_v17 = vld [vmem:[#allocation80_spill] sm:$0xff] }
 0x1dd   : > { %12317 = vst [vmem:[#allocation84_spill] sm:$0xff] %v9001_v31  ;;  %v9003_v40 = vsel %vm2203_vm1, %v1935_v50, %v2459_v63  ;;  %v2804_v38 = vpack.c.bf16 %v2596_v37, %v2592_v52  ;;  %v1490_v33 = vadd.f32 %v12320_v62, %v12319_v21  ;;  %v1494_v54 = vadd.f32 %v12322_v23, %v12321_v57  ;;  %v9014_v41 = vpop.f32.mrf.mxu0  ;;  %v12326_v49 = vld [vmem:[#allocation101_spill] sm:$0xff]  ;;  %v12327_v34 = vld [vmem:[#allocation124_spill] sm:$0xff]  ;;  %v12332_v23 = vld [vmem:[#allocation43_spill] sm:$0xff] }
 0x1de   : > { %12318 = vst [vmem:[#allocation62_spill] sm:$0xff] %v9003_v40  ;;  %vm2134_vm8 = vcmp.ge.f32.partialorder %v12310_v48, 0.0  ;;  %3662 = vmatprep.subr.bf16.mxu1 %v2834_v60  ;;  %v12325_v50 = vpack.c.bf16 %v12323_v0, %v12324_v17  ;;  %v2650_v26 = vsel %vm2138_vm4, %v12311_v30, %v2394_v47  ;;  %v2584_v11 = vsel %vm2072_vm13, %v12295_v29, %v12326_v49  ;;  %v12328_v51 = vld [vmem:[#allocation120_spill] sm:$0xff]  ;;  %v12329_v60 = vld [vmem:[#allocation110_spill] sm:$0xff]  ;;  %v12333_v0 = vld [vmem:[#allocation145_spill] sm:$0xff] }
 0x1df   : > { %3871 = vmatprep.subr.bf16.mxu0 %v2804_v38  ;;  %3663 = vmatpush1.bf16.msra.mxu1 %v2833_v3  ;;  %v2588_v63 = vsel %vm2076_vm0, %v12296_v12, %v12327_v34  ;;  %v2320_v46 = vmul.f32 0.01, %v12328_v51  ;;  %v2324_v39 = vmul.f32 0.01, %v12329_v60  ;;  %v2646_v52 = vsel %vm2134_vm8, %v12310_v48, %v2390_v16  ;;  %v9033_v15 = vpop.f32.mrf.mxu0  ;;  %v6218_v29 = vld [vmem:[%s11529_s3 + $0xe0] ss:$16 sps:$4 sm:$0xff]  }
 0x1e0   : > { %3872 = vmatpush2.bf16.msra.mxu0 %v12325_v50  ;;  %v2382_v37 = vmul.f32 0.01, %v1490_v33  ;;  %v2386_v30 = vmul.f32 0.01, %v1494_v54  ;;  %v2830_v47 = vpack.c.bf16 %v2650_v26, %v2646_v52  ;;  %v2800_v3 = vpack.c.bf16 %v2588_v63, %v2584_v11  ;;  %v6223_v12 = vld [vmem:[%s11529_s3 + $0x104] ss:$16 sps:$4 sm:$0xff]  }
 0x1e1   : > { %vm2064_vm7 = vcmp.ge.f32.partialorder %v12328_v51, 0.0  ;;  %vm2068_vm10 = vcmp.ge.f32.partialorder %v12329_v60, 0.0  ;;  %vm2126_vm11 = vcmp.ge.f32.partialorder %v1490_v33, 0.0  ;;  %vm2130_vm9 = vcmp.ge.f32.partialorder %v1494_v54, 0.0  ;;  %v9043_v48 = vpop.f32.mrf.mxu0  ;;  %v12330_v16 = vld [vmem:[#allocation112_spill] sm:$0xff]  ;;  %v12331_v38 = vld [vmem:[#allocation115_spill] sm:$0xff]  ;;  %3564 = vmatmul.mubr.bf16.gmra.mxu0 %v6218_v29  ;;  %v9078_v29 = vpop.f32.mrf.mxu1 }
 0x1e2   : > { %v1757_v62 = vadd.f32 %v12331_v38, %v12330_v16  ;;  %v1480_v17 = vadd.f32 %v12333_v0, %v12332_v23  ;;  %v12334_v50 = vld [vmem:[#allocation44_spill] sm:$0xff]  ;;  %v12335_v26 = vld [vmem:[#allocation147_spill] sm:$0xff]  ;;  %3664 = vmatprep.subr.bf16.mxu1 %v2830_v47  ;;  %3873 = vmatprep.subr.bf16.mxu0 %v2800_v3  ;;  %v12336_v11 = vld [vmem:[#allocation166_spill] sm:$0xff]  ;;  %v2638_v6 = vsel %vm2126_vm11, %v1490_v33, %v2382_v37 }
 0x1e3   : > { %v1484_v49 = vadd.f32 %v12335_v26, %v12334_v50  ;;  %v12337_v34 = vld [vmem:[#allocation165_spill] sm:$0xff]  ;;  %v12339_v52 = vld [vmem:[#allocation130_spill] sm:$0xff]  ;;  %v9057_v13 = vpop.f32.mrf.mxu0  ;;  %v2642_v16 = vsel %vm2130_vm9, %v1494_v54, %v2386_v30  ;;  %v2576_v38 = vsel %vm2064_vm7, %v12328_v51, %v2320_v46  ;;  %v2580_v47 = vsel %vm2068_vm10, %v12329_v60, %v2324_v39  ;;  %3573 = vmatprep.mubr.bf16.mxu0 %v6223_v12  ;;  %v12343_v54 = vld [vmem:[#allocation159_spill] sm:$0xff] }
 0x1e4   : > { %v12338_v63 = vpack.c.bf16 %v12336_v11, %v12337_v34  ;;  %v12341_v42 = vpack.c.bf16 %v12339_v52, %v12340_v9  ;;  %v12342_v3 = vld [vmem:[#allocation113_spill] sm:$0xff]  ;;  %v2826_v26 = vpack.c.bf16 %v2642_v16, %v2638_v6  ;;  %v2796_v11 = vpack.c.bf16 %v2580_v47, %v2576_v38  ;;  %v12344_v51 = vld [vmem:[#allocation158_spill] sm:$0xff]  ;;  %12349 = vst [vmem:[#allocation67_spill] sm:$0xff] %v9078_v29 }
 0x1e5   : > { %v2312_v0 = vmul.f32 0.01, %v12342_v3  ;;  %v9066_v9 = vpop.f32.mrf.mxu0  ;;  %v2374_v34 = vmul.f32 0.01, %v1480_v17  ;;  %v2378_v33 = vmul.f32 0.01, %v1484_v49  ;;  %v12345_v46 = vpack.c.bf16 %v12343_v54, %v12344_v51  ;;  %v9086_v54 = vpop.f32.mrf.mxu1 }
 0x1e6   : > { %3665 = vmatpush1.bf16.msra.mxu1 %v12338_v63  ;;  %3874 = vmatpush2.bf16.msra.mxu0 %v12341_v42  ;;  %v2316_v42 = vmul.f32 0.01, %v1757_v62  ;;  %vm2056_vm3 = vcmp.ge.f32.partialorder %v12342_v3, 0.0  ;;  %vm2060_vm6 = vcmp.ge.f32.partialorder %v1757_v62, 0.0  ;;  %vm2118_vm13 = vcmp.ge.f32.partialorder %v1480_v17, 0.0  ;;  %v12346_v60 = vld [vmem:[#allocation125_spill] sm:$0xff] }
 0x1e7   : > { %vm2122_vm0 = vcmp.ge.f32.partialorder %v1484_v49, 0.0  ;;  %3666 = vmatprep.subr.bf16.mxu1 %v2826_v26  ;;  %3875 = vmatprep.subr.bf16.mxu0 %v2796_v11  ;;  %v12347_v6 = vld [vmem:[#allocation122_spill] sm:$0xff]  ;;  %v1619_v30 = vpop.f32.mrf.mxu0  ;;  %v2630_v12 = vsel %vm2118_vm13, %v1480_v17, %v2374_v34  ;;  %v2568_v52 = vsel %vm2056_vm3, %v12342_v3, %v2312_v0  ;;  %12351 = vst [vmem:[#allocation24_spill] sm:$0xff] %v9086_v54  ;;  %v12352_v51 = vld [vmem:[#allocation151_spill] sm:$0xff]  ;;  %v12356_v3 = vld [vmem:[#allocation116_spill] sm:$0xff]  ;;  %v9100_v34 = vpop.f32.mrf.mxu1 }
 0x1e8   : > { %v12348_v39 = vpack.c.bf16 %v12346_v60, %v12347_v6  ;;  %v6221_v37 = vld [vmem:[%s11529_s3 + $0x100] ss:$16 sps:$4 sm:$0xff]   ;;  %v2634_v63 = vsel %vm2122_vm0, %v1484_v49, %v2378_v33  ;;  %v2572_v16 = vsel %vm2060_vm6, %v1757_v62, %v2316_v42  ;;  %v9084_v26 = vld [vmem:[%s11529_s3 + $0x124] ss:$16 sps:$4 sm:$0xff]   ;;  %v12355_v49 = vld [vmem:[#allocation119_spill] sm:$0xff]  ;;  %v9180_v4 = vadd.f32 %v9033_v15, %v12374_v24 }
 0x1e9   : > { %v2822_v38 = vpack.c.bf16 %v2634_v63, %v2630_v12  ;;  %v2792_v47 = vpack.c.bf16 %v2572_v16, %v2568_v52  ;;  %12350 = vst [vmem:[#allocation144_spill] sm:$0xff] %v9084_v26  ;;  %3574 = vmatmul.mubr.bf16.gmra.mxu0 %v6221_v37  ;;  %v1621_v11 = vpop.f32.mrf.mxu0  ;;  %v12357_v62 = vpack.c.bf16 %v12355_v49, %v12356_v3  ;;  %v9098_v0 = vld [vmem:[%s11529_s3 + $0x120] ss:$16 sps:$4 sm:$0xff]   ;;  %v9105_v33 = vld [vmem:[%s11529_s3 + $0x144] ss:$16 sps:$4 sm:$0xff]   ;;  %v9108_v6 = vpop.f32.mrf.mxu1 }
 0x1ea   : > { %3667 = vmatpush1.bf16.msra.mxu1 %v12345_v46  ;;  %3876 = vmatpush2.bf16.msra.mxu0 %v12348_v39  ;;  %v12353_v46 = vld [vmem:[#allocation150_spill] sm:$0xff]  ;;  %12358 = vst [vmem:[#allocation100_spill] sm:$0xff] %v9098_v0  ;;  %12359 = vst [vmem:[#allocation91_spill] sm:$0xff] %v9105_v33  ;;  %v12366_v3 = vld [vmem:[#allocation88_spill] sm:$0xff]  ;;  %v1622_v40 = vadd.f32 %v1621_v11, %v12367_v55  ;;  %vm2222_vm10 = vcmp.ge.f32.partialorder %v9180_v4, 0.0 }
 0x1eb   : > { %3668 = vmatprep.subr.bf16.mxu1 %v2822_v38  ;;  %3877 = vmatprep.subr.bf16.mxu0 %v2792_v47  ;;  %v12354_v17 = vpack.c.bf16 %v12352_v51, %v12353_v46  ;;  %v1623_v42 = vpop.f32.mrf.mxu0  ;;  %v9114_v39 = vld [vmem:[%s11529_s3 + $0x140] ss:$16 sps:$4 sm:$0xff]   ;;  %v9116_v12 = vpop.f32.mrf.mxu1  ;;  %v9121_v63 = vld [vmem:[%s11529_s3 + $0x164] ss:$16 sps:$4 sm:$0xff]   ;;  %v9133_v51 = vadd.f32 %v8817_v1, %v12299_v44  ;;  %v9137_v46 = vadd.f32 %v8849_v2, %v12309_v10 }
 0x1ec   : > { %3583 = vmatprep.mubr.bf16.mxu0 %v9084_v26  ;;  %12360 = vst [vmem:[#allocation89_spill] sm:$0xff] %v9114_v39  ;;  %12361 = vst [vmem:[#allocation53_spill] sm:$0xff] %v9116_v12  ;;  %v12364_v38 = vld [vmem:[#allocation72_spill] sm:$0xff]  ;;  %v12370_v2 = vld [vmem:[#allocation74_spill] sm:$0xff]  ;;  %vm2233_vm1 = vcmp.ge.f32.partialorder %v1622_v40, 0.0 }
 0x1ed   : > { %v1627_v60 = vpop.f32.mrf.mxu0  ;;  %12362 = vst [vmem:[#allocation56_spill] sm:$0xff] %v9121_v63  ;;  %v9124_v16 = vpop.f32.mrf.mxu1  ;;  %v9129_v47 = vadd.f32 %v12364_v38, %v12277_v36  ;;  %v12368_v38 = vld [vmem:[#allocation47_spill] sm:$0xff]  ;;  %v9152_v1 = vld [vmem:[%s11529_s3 + $0x160] ss:$16 sps:$4 sm:$0xff]  }
 0x1ee   : > { %3669 = vmatpush1.bf16.msra.mxu1 %v12354_v17  ;;  %3878 = vmatpush2.bf16.msra.mxu0 %v12357_v62  ;;  %12363 = vst [vmem:[#allocation31_spill] sm:$0xff] %v9124_v16  ;;  %v12365_v17 = vld [vmem:[#allocation85_spill] sm:$0xff]  ;;  %v9145_v62 = vadd.f32 %v8919_v35, %v12366_v3  ;;  %12369 = vst [vmem:[#allocation92_spill] sm:$0xff] %v9152_v1  ;;  %v12372_v26 = vld [vmem:[#allocation78_spill] sm:$0xff] }
 0x1ef   : > { %v1629_v37 = vpop.f32.mrf.mxu0  ;;  %v9141_v49 = vadd.f32 %v8899_v28, %v12365_v17  ;;  %v9158_v28 = vpop.f32.mrf.mxu1  ;;  %v9162_v35 = vadd.f32 %v8990_v19, %v12372_v26  ;;  %v12375_v19 = vld [vmem:[#allocation64_spill] sm:$0xff] }
 0x1f0   : > { %12371 = vst [vmem:[#allocation86_spill] sm:$0xff] %v9158_v28  ;;  %v9184_v8 = vadd.f32 %v9043_v48, %v12375_v19  ;;  %v12377_v36 = vld [vmem:[#allocation48_spill] sm:$0xff] }
 0x1f1   : > { %3584 = vmatmul.mubr.bf16.gmra.mxu0 %v9098_v0  ;;  %v1631_v52 = vpop.f32.mrf.mxu0  ;;  %v9156_v0 = vadd.f32 %v8976_v27, %v12370_v2  ;;  %v9176_v27 = vadd.f32 %v9014_v41, %v12374_v24  ;;  %v9195_v48 = vpop.f32.mrf.mxu1  ;;  %vm2217_vm13 = vcmp.ge.f32.partialorder %v9162_v35, 0.0 }
 0x1f2   : > { %3593 = vmatprep.mubr.bf16.mxu0 %v9105_v33  ;;  %v1632_v58 = vadd.f32 %v1631_v52, %v12377_v36  ;;  %12378 = vst [vmem:[#allocation23_spill] sm:$0xff] %v9195_v48  ;;  %vm2225_vm11 = vcmp.ge.f32.partialorder %v9184_v8, 0.0 }
 0x1f3   : > { %v1633_v33 = vpop.f32.mrf.mxu0  ;;  %vm2221_vm3 = vcmp.ge.f32.partialorder %v9176_v27, 0.0  ;;  %vm2214_vm6 = vcmp.ge.f32.partialorder %v9156_v0, 0.0 }
 0x1f4   : > { %v1634_v41 = vadd.f32 %v1633_v33, %v12377_v36  ;;  %vm2241_vm5 = vcmp.ge.f32.partialorder %v1632_v58, 0.0 }
 0x1f6   : > { %vm2242_vm4 = vcmp.ge.f32.partialorder %v1634_v41, 0.0  ;;  %v2498_v33 = vmul.f32 0.01, %v1634_v41 }
 0x1f8   : > { %v2754_v24 = vsel %vm2242_vm4, %v1634_v41, %v2498_v33  ;;  %v1584_v41 = vadd.f32 %v8869_v22, %v12309_v10  ;;  %v9261_v33 = vld [vmem:[%s11529_s3 + $0x1c4] ss:$16 sps:$4 sm:$0xff]  }
 0x1f9   : > { %3594 = vmatmul.mubr.bf16.gmra.mxu0 %v9114_v39  ;;  %v1630_v39 = vadd.f32 %v1629_v37, %v12368_v38  ;;  %v1628_v37 = vadd.f32 %v1627_v60, %v12368_v38  ;;  %v1614_v60 = vadd.f32 %v9057_v13, %v12375_v19  ;;  %v2497_v13 = vmul.f32 0.01, %v1632_v58 }
 0x1fa   : > { %3603 = vmatprep.mubr.bf16.mxu0 %v9121_v63  ;;  %v1624_v63 = vadd.f32 %v1623_v42, %v12367_v55  ;;  %v9166_v42 = vadd.f32 %v9005_v32, %v12372_v26  ;;  %v12376_v32 = vld [vmem:[#allocation51_spill] sm:$0xff] }
 0x1fb   : > { %v1620_v31 = vadd.f32 %v1619_v30, %v12376_v32  ;;  %v1618_v54 = vadd.f32 %v9066_v9, %v12376_v32  ;;  %v2494_v29 = vmul.f32 0.01, %v1630_v39  ;;  %v2493_v30 = vmul.f32 0.01, %v1628_v37  ;;  %v9204_v32 = vpop.f32.mrf.mxu1 }
 0x1fc   : > { %vm2234_vm12 = vcmp.ge.f32.partialorder %v1624_v63, 0.0  ;;  %v2490_v15 = vmul.f32 0.01, %v1624_v63  ;;  %vm2238_vm15 = vcmp.ge.f32.partialorder %v1630_v39, 0.0  ;;  %vm2237_vm2 = vcmp.ge.f32.partialorder %v1628_v37, 0.0 }
 0x1fd   : > { %v2486_v11 = vmul.f32 0.01, %v1620_v31  ;;  %v2482_v52 = vmul.f32 0.01, %v1614_v60  ;;  %vm2230_vm14 = vcmp.ge.f32.partialorder %v1620_v31, 0.0  ;;  %v2753_v16 = vsel %vm2241_vm5, %v1632_v58, %v2497_v13 }
 0x1fe   : > { %v2489_v9 = vmul.f32 0.01, %v1622_v40  ;;  %v2750_v12 = vsel %vm2238_vm15, %v1630_v39, %v2494_v29  ;;  %v2746_v19 = vsel %vm2234_vm12, %v1624_v63, %v2490_v15  ;;  %vm2226_vm8 = vcmp.ge.f32.partialorder %v1614_v60, 0.0  ;;  %v9209_v58 = vld [vmem:[%s11529_s3 + $0x1a4] ss:$16 sps:$4 sm:$0xff]  }
 0x1ff   : > { %v2749_v48 = vsel %vm2237_vm2, %v1628_v37, %v2493_v30  ;;  %v2882_v26 = vpack.c.bf16 %v2754_v24, %v2750_v12  ;;  %v2478_v13 = vmul.f32 0.01, %v9180_v4  ;;  %vm2229_vm7 = vcmp.ge.f32.partialorder %v1618_v54, 0.0 }
 0x200   : > { %v2881_v28 = vpack.c.bf16 %v2753_v16, %v2749_v48  ;;  %v2742_v29 = vsel %vm2230_vm14, %v1620_v31, %v2486_v11  ;;  %v2481_v39 = vmul.f32 0.01, %v9184_v8  ;;  %v2745_v63 = vsel %vm2233_vm1, %v1622_v40, %v2489_v9 }
 0x201   : > { %3604 = vmatmul.mubr.bf16.gmra.mxu0 %v9152_v1  ;;  %v9201_v1 = vld [vmem:[%s11529_s3 + $0x180] ss:$16 sps:$4 sm:$0xff]   ;;  %3670 = vmatprep.subr.bf16.mxu1 %v2882_v26  ;;  %v2878_v37 = vpack.c.bf16 %v2746_v19, %v2742_v29  ;;  %v1594_v24 = vadd.f32 %v8936_v7, %v12366_v3  ;;  %v2474_v12 = vmul.f32 0.01, %v9166_v42  ;;  %v2738_v31 = vsel %vm2226_vm8, %v1614_v60, %v2482_v52  ;;  %v9226_v26 = vpop.f32.mrf.mxu1  ;;  %v12379_v29 = vld [vmem:[#allocation135_spill] sm:$0xff] }
 0x202   : > { %3613 = vmatprep.mubr.bf16.mxu0 %v9172_v53  ;;  %v2485_v53 = vmul.f32 0.01, %v1618_v54  ;;  %3671 = vmatpush2.bf16.msra.mxu1 %v2881_v28  ;;  %v1598_v16 = vadd.f32 %v8963_v59, %v12370_v2  ;;  %vm2218_vm9 = vcmp.ge.f32.partialorder %v9166_v42, 0.0  ;;  %v2477_v40 = vmul.f32 0.01, %v9176_v27 }
 0x203   : > { %3672 = vmatprep.subr.bf16.mxu1 %v2878_v37  ;;  %v2470_v19 = vmul.f32 0.01, %v9156_v0  ;;  %v2734_v59 = vsel %vm2222_vm10, %v9180_v4, %v2478_v13  ;;  %v2473_v60 = vmul.f32 0.01, %v9162_v35  ;;  %v2466_v15 = vmul.f32 0.01, %v1594_v24  ;;  %v9256_v11 = vpop.f32.mrf.mxu1 }
 0x204   : > { %v2741_v7 = vsel %vm2229_vm7, %v1618_v54, %v2485_v53  ;;  %v2737_v53 = vsel %vm2225_vm11, %v9184_v8, %v2481_v39  ;;  %v2874_v54 = vpack.c.bf16 %v2738_v31, %v2734_v59  ;;  %v9246_v4 = vld [vmem:[%s11529_s3 + $0x1a0] ss:$16 sps:$4 sm:$0xff]   ;;  %v2730_v48 = vsel %vm2218_vm9, %v9166_v42, %v2474_v12  ;;  %v12381_v59 = vld [vmem:[#allocation137_spill] sm:$0xff] }
 0x205   : > { %v2877_v28 = vpack.c.bf16 %v2745_v63, %v2741_v7  ;;  %v1588_v8 = vadd.f32 %v8885_v5, %v12365_v17  ;;  %vm2210_vm0 = vcmp.ge.f32.partialorder %v1594_v24, 0.0  ;;  %v2469_v30 = vmul.f32 0.01, %v1598_v16 }
 0x206   : > { %v2733_v22 = vsel %vm2221_vm3, %v9176_v27, %v2477_v40  ;;  %v2462_v52 = vmul.f32 0.01, %v9141_v49  ;;  %vm2213_vm12 = vcmp.ge.f32.partialorder %v1598_v16, 0.0  ;;  %v2726_v5 = vsel %vm2214_vm6, %v9156_v0, %v2470_v19 }
 0x207   : > { %3673 = vmatpush2.bf16.msra.mxu1 %v2877_v28  ;;  %v2873_v42 = vpack.c.bf16 %v2737_v53, %v2733_v22  ;;  %vm2206_vm15 = vcmp.ge.f32.partialorder %v9141_v49, 0.0  ;;  %v2465_v27 = vmul.f32 0.01, %v9145_v62  ;;  %v2729_v9 = vsel %vm2217_vm13, %v9162_v35, %v2473_v60  ;;  %v9280_v35 = vpop.f32.mrf.mxu1  ;;  %v12380_v28 = vld [vmem:[#allocation75_spill] sm:$0xff] }
 0x208   : > { %3674 = vmatprep.subr.bf16.mxu1 %v2874_v54  ;;  %v2870_v13 = vpack.c.bf16 %v2730_v48, %v2726_v5  ;;  %v1574_v39 = vadd.f32 %v12379_v29, %v12283_v25  ;;  %v2458_v63 = vmul.f32 0.01, %v1584_v41  ;;  %vm2209_vm5 = vcmp.ge.f32.partialorder %v9145_v62, 0.0  ;;  %v12383_v48 = vld [vmem:[#allocation50_spill] sm:$0xff]  ;;  %v12385_v29 = vld [vmem:[#allocation93_spill] sm:$0xff] }
 0x209   : > { %3614 = vmatmul.mubr.bf16.gmra.mxu0 %v9201_v1  ;;  %v2722_v0 = vsel %vm2210_vm0, %v1594_v24, %v2466_v15  ;;  %v1578_v37 = vadd.f32 %v8797_v14, %v12299_v44  ;;  %vm2202_vm2 = vcmp.ge.f32.partialorder %v1584_v41, 0.0  ;;  %v2461_v12 = vmul.f32 0.01, %v1588_v8  ;;  %v12382_v15 = vld [vmem:[#allocation66_spill] sm:$0xff] }
 0x20a   : > { %3623 = vmatprep.mubr.bf16.mxu0 %v9209_v58  ;;  %v2725_v31 = vsel %vm2213_vm12, %v1598_v16, %v2469_v30  ;;  %v2454_v40 = vmul.f32 0.01, %v9133_v51  ;;  %vm2205_vm4 = vcmp.ge.f32.partialorder %v1588_v8, 0.0  ;;  %v2718_v24 = vsel %vm2206_vm15, %v9141_v49, %v2462_v52  ;;  %v9298_v49 = vld [vmem:[%s11529_s3 + $0x1c0] ss:$16 sps:$4 sm:$0xff]   ;;  %v9304_v52 = vpop.f32.mrf.mxu1 }
 0x20b   : > { %3675 = vmatpush2.bf16.msra.mxu1 %v2873_v42  ;;  %v2869_v7 = vpack.c.bf16 %v2729_v9, %v2725_v31  ;;  %vm2198_vm14 = vcmp.ge.f32.partialorder %v9133_v51, 0.0  ;;  %v2457_v14 = vmul.f32 0.01, %v9137_v46  ;;  %v2721_v16 = vsel %vm2209_vm5, %v9145_v62, %v2465_v27  ;;  %v9309_v42 = vld [vmem:[%s11529_s3 + $0x1e4] ss:$16 sps:$4 sm:$0xff]  }
 0x20c   : > { %3676 = vmatprep.subr.bf16.mxu1 %v2870_v13  ;;  %v2866_v19 = vpack.c.bf16 %v2722_v0, %v2718_v24  ;;  %v1564_v60 = vadd.f32 %v12381_v59, %v12380_v28  ;;  %v2450_v53 = vmul.f32 0.01, %v1574_v39  ;;  %vm2201_vm1 = vcmp.ge.f32.partialorder %v9137_v46, 0.0  ;;  %v12384_v13 = vld [vmem:[#allocation22_spill] sm:$0xff] }
 0x20d   : > { %v2714_v54 = vsel %vm2202_vm2, %v1584_v41, %v2458_v63  ;;  %v1560_v30 = vadd.f32 %v12383_v48, %v12382_v15  ;;  %vm2194_vm8 = vcmp.ge.f32.partialorder %v1574_v39, 0.0  ;;  %v2453_v62 = vmul.f32 0.01, %v1578_v37 }
 0x20e   : > { %v2717_v22 = vsel %vm2205_vm4, %v1588_v8, %v2461_v12  ;;  %v2446_v5 = vmul.f32 0.01, %v9129_v47  ;;  %vm2197_vm7 = vcmp.ge.f32.partialorder %v1578_v37, 0.0  ;;  %v2710_v41 = vsel %vm2198_vm14, %v9133_v51, %v2454_v40  ;;  %v12386_v51 = vld [vmem:[#allocation20_spill] sm:$0xff]  ;;  %v12387_v40 = vld [vmem:[#allocation97_spill] sm:$0xff] }
 0x20f   : > { %3677 = vmatpush2.bf16.msra.mxu1 %v2869_v7  ;;  %v2865_v27 = vpack.c.bf16 %v2721_v16, %v2717_v22  ;;  %vm2190_vm10 = vcmp.ge.f32.partialorder %v9129_v47, 0.0  ;;  %v2713_v8 = vsel %vm2201_vm1, %v9137_v46, %v2457_v14  ;;  %v2862_v9 = vpack.c.bf16 %v2714_v54, %v2710_v41  ;;  %v9323_v7 = vpop.f32.mrf.mxu1  ;;  %v12393_v41 = vld [vmem:[#allocation33_spill] sm:$0xff] }
 0x210   : > { %3678 = vmatprep.subr.bf16.mxu1 %v2866_v19  ;;  %v1907_v63 = vadd.f32 %v12385_v29, %v12384_v13  ;;  %v2442_v0 = vmul.f32 0.01, %v1564_v60  ;;  %v2706_v12 = vsel %vm2194_vm8, %v1574_v39, %v2450_v53  ;;  %vm2186_vm11 = vcmp.ge.f32.partialorder %v1564_v60, 0.0  ;;  %v12388_v19 = vld [vmem:[#allocation132_spill] sm:$0xff]  ;;  %v12390_v53 = vld [vmem:[#allocation94_spill] sm:$0xff] }
 0x211   : > { %3624 = vmatmul.mubr.bf16.gmra.mxu0 %v9246_v4  ;;  %v2709_v31 = vsel %vm2197_vm7, %v1578_v37, %v2453_v62  ;;  %v1903_v46 = vadd.f32 %v12387_v40, %v12386_v51  ;;  %v2438_v24 = vmul.f32 0.01, %v1560_v30  ;;  %v2702_v16 = vsel %vm2190_vm10, %v9129_v47, %v2446_v5  ;;  %v12389_v37 = vld [vmem:[#allocation26_spill] sm:$0xff]  ;;  %v9343_v5 = vpop.f32.mrf.mxu1  ;;  %v12396_v29 = vld [vmem:[#allocation104_spill] sm:$0xff] }
 0x212   : > { %3633 = vmatprep.mubr.bf16.mxu0 %v9261_v33  ;;  %v2861_v14 = vpack.c.bf16 %v2713_v8, %v2709_v31  ;;  %v1905_v59 = vadd.f32 %v12388_v19, %v12384_v13  ;;  %vm2182_vm9 = vcmp.ge.f32.partialorder %v1560_v30, 0.0  ;;  %v2858_v39 = vpack.c.bf16 %v2706_v12, %v2702_v16  ;;  %v9338_v62 = vld [vmem:[%s11529_s3 + $0x1e0] ss:$16 sps:$4 sm:$0xff]   ;;  %v12394_v8 = vld [vmem:[#allocation103_spill] sm:$0xff]  ;;  %v12395_v13 = vld [vmem:[#allocation25_spill] sm:$0xff] }
 0x213   : > { %3679 = vmatpush2.bf16.msra.mxu1 %v2865_v27  ;;  %v1897_v54 = vadd.f32 %v12390_v53, %v12389_v37  ;;  %v2436_v48 = vmul.f32 0.01, %v1907_v63  ;;  %12391 = vst [vmem:[#allocation81_spill] sm:$0xff] %v9338_v62  ;;  %v2698_v22 = vsel %vm2186_vm11, %v1564_v60, %v2442_v0  ;;  %v12392_v27 = vld [vmem:[#allocation127_spill] sm:$0xff]  ;;  %vm2180_vm3 = vcmp.ge.f32.partialorder %v1907_v63, 0.0 }
 0x214   : > { %3680 = vmatprep.subr.bf16.mxu1 %v2862_v9  ;;  %v1901_v47 = vadd.f32 %v12392_v27, %v12386_v51  ;;  %v9347_v9 = vadd.f32 %v12394_v8, %v12393_v41  ;;  %v1893_v12 = vadd.f32 %v12396_v29, %v12395_v13  ;;  %v2432_v31 = vmul.f32 0.01, %v1903_v46  ;;  %v12398_v51 = vld [vmem:[#allocation30_spill] sm:$0xff]  ;;  %v12399_v19 = vld [vmem:[#allocation123_spill] sm:$0xff] }
 0x215   : > { %v2694_v40 = vsel %vm2182_vm9, %v1560_v30, %v2438_v24  ;;  %vm2176_vm6 = vcmp.ge.f32.partialorder %v1903_v46, 0.0  ;;  %v2435_v60 = vmul.f32 0.01, %v1905_v59  ;;  %v1887_v53 = vadd.f32 %v12399_v19, %v12398_v51  ;;  %v12401_v30 = vld [vmem:[#allocation29_spill] sm:$0xff]  ;;  %v12402_v24 = vld [vmem:[#allocation98_spill] sm:$0xff] }
 0x216   : > { %v2854_v0 = vpack.c.bf16 %v2698_v22, %v2694_v40  ;;  %v2428_v27 = vmul.f32 0.01, %v1897_v54  ;;  %vm2179_vm13 = vcmp.ge.f32.partialorder %v1905_v59, 0.0  ;;  %v2692_v41 = vsel %vm2180_vm3, %v1907_v63, %v2436_v48  ;;  %v9364_v40 = vpop.f32.mrf.mxu1 }
 0x217   : > { %3681 = vmatpush2.bf16.msra.mxu1 %v2861_v14  ;;  %v12397_v14 = vld [vmem:[#allocation69_spill] sm:$0xff]  ;;  %v1883_v8 = vadd.f32 %v12402_v24, %v12401_v30  ;;  %vm2172_vm0 = vcmp.ge.f32.partialorder %v1897_v54, 0.0  ;;  %v2431_v22 = vmul.f32 0.01, %v1901_v47  ;;  %v2424_v63 = vmul.f32 0.01, %v1893_v12 }
 0x218   : > { %3682 = vmatprep.subr.bf16.mxu1 %v2858_v39  ;;  %v1895_v16 = vadd.f32 %v12397_v14, %v12389_v37  ;;  %v12400_v39 = vpack.c.bf16 %v8904_v45, %v8902_v61  ;;  %v12403_v37 = vld [vmem:[#allocation77_spill] sm:$0xff]  ;;  %v6316_v14 = vld [vmem:[%s11529_s3 + $0x4] ss:$16 sps:$4 sm:$0xff]   ;;  %v12404_v61 = vld [vmem:[#allocation139_spill] sm:$0xff]  ;;  %vm2175_vm12 = vcmp.ge.f32.partialorder %v1901_v47, 0.0  ;;  %v2688_v48 = vsel %vm2176_vm6, %v1903_v46, %v2432_v31 }
 0x219   : > { %3634 = vmatmul.mubr.bf16.gmra.mxu0 %v9298_v49  ;;  %v1891_v29 = vadd.f32 %v12403_v37, %v12395_v13  ;;  %v1885_v45 = vadd.f32 %v12404_v61, %v12398_v51  ;;  %vm2168_vm15 = vcmp.ge.f32.partialorder %v1893_v12, 0.0  ;;  %v2691_v13 = vsel %vm2179_vm13, %v1905_v59, %v2435_v60  ;;  %v12405_v24 = vld [vmem:[#allocation34_spill] sm:$0xff]  ;;  %v12406_v37 = vld [vmem:[#allocation19_spill] sm:$0xff]  ;;  %v12408_v31 = vld [vmem:[#allocation105_spill] sm:$0xff]  ;;  %v9386_v61 = vpop.f32.mrf.mxu1 }
 0x21a   : > { %3643 = vmatprep.mubr.bf16.mxu0 %v9309_v42  ;;  %v2427_v19 = vmul.f32 0.01, %v1895_v16  ;;  %vm2171_vm5 = vcmp.ge.f32.partialorder %v1895_v16, 0.0  ;;  %v12407_v51 = vpack.c.bf16 %v8795_v43, %v8790_v18  ;;  %v2684_v46 = vsel %vm2172_vm0, %v1897_v54, %v2428_v27 }
 0x21b   : > { %3683 = vmatpush2.bf16.msra.mxu1 %v12400_v39  ;;  %v2852_v39 = vpack.c.bf16 %v2692_v41, %v2688_v48  ;;  %v1881_v59 = vadd.f32 %v12408_v31, %v12401_v30  ;;  %vm2164_vm2 = vcmp.ge.f32.partialorder %v1887_v53, 0.0  ;;  %v2423_v60 = vmul.f32 0.01, %v1891_v29  ;;  %v9391_v48 = vld [vmem:[%s11529_s3 + $0x2c] ss:$16 sps:$4 sm:$0xff]   ;;  %v12409_v30 = vld [vmem:[#allocation38_spill] sm:$0xff] }
 0x21c   : > { %3684 = vmatprep.subr.bf16.mxu1 %v2854_v0  ;;  %v9376_v0 = vld [vmem:[%s11529_s3 + $0x8] ss:$16 sps:$4 sm:$0xff]   ;;  %v2687_v41 = vsel %vm2175_vm12, %v1901_v47, %v2431_v22  ;;  %vm2167_vm4 = vcmp.ge.f32.partialorder %v1891_v29, 0.0  ;;  %v2680_v18 = vsel %vm2168_vm15, %v1893_v12, %v2424_v63  ;;  %vm2160_vm14 = vcmp.ge.f32.partialorder %v1883_v8, 0.0  ;;  %v12410_v22 = vld [vmem:[#allocation114_spill] sm:$0xff]  ;;  %v12411_v63 = vld [vmem:[#allocation168_spill] sm:$0xff] }
 0x21d   : > { %v2851_v43 = vpack.c.bf16 %v2691_v13, %v2687_v41  ;;  %v2419_v54 = vmul.f32 0.01, %v1885_v45  ;;  %v2683_v27 = vsel %vm2171_vm5, %v1895_v16, %v2427_v19  ;;  %v2848_v47 = vpack.c.bf16 %v2684_v46, %v2680_v18  ;;  %v9405_v46 = vpop.f32.mrf.mxu1  ;;  %v12413_v18 = vld [vmem:[#allocation161_spill] sm:$0xff] }
 0x21e   : > { %vm2163_vm1 = vcmp.ge.f32.partialorder %v1885_v45, 0.0  ;;  %v1863_v13 = vadd.f32 %v12411_v63, %v12291_v56  ;;  %v2415_v16 = vmul.f32 0.01, %v1881_v59  ;;  %v2679_v19 = vsel %vm2167_vm4, %v1891_v29, %v2423_v60  ;;  %v9418_v29 = vld [vmem:[%s11529_s3 + $0x28] ss:$16 sps:$4 sm:$0xff]  }
 0x21f   : > { %3685 = vmatpush2.bf16.msra.mxu1 %v12407_v51  ;;  %v6317_v51 = vld [vmem:[%s11529_s3] ss:$16 sps:$4 sm:$0xff]   ;;  %v2408_v31 = vmul.f32 0.01, %v9347_v9  ;;  %vm2159_vm7 = vcmp.ge.f32.partialorder %v1881_v59, 0.0  ;;  %v2847_v41 = vpack.c.bf16 %v2683_v27, %v2679_v19  ;;  %vm2152_vm10 = vcmp.ge.f32.partialorder %v9347_v9, 0.0  ;;  %v1982_v63 = vpop.f32.mrf.mxu1 }
 0x220   : > { %4040 = vmatprep.subr.bf16.mxu1 %v2852_v39  ;;  %v1867_v39 = vadd.f32 %v12410_v22, %v12409_v30  ;;  %v2675_v56 = vsel %vm2163_vm1, %v1885_v45, %v2419_v54  ;;  %v12412_v60 = vld [vmem:[#allocation39_spill] sm:$0xff]  ;;  %v2400_v54 = vmul.f32 0.01, %v1863_v13  ;;  %vm2144_vm9 = vcmp.ge.f32.partialorder %v1863_v13, 0.0 }
 0x221   : > { %3644 = vmatmul.mubr.bf16.gmra.mxu0 %v9338_v62  ;;  %v2420_v62 = vmul.f32 0.01, %v1887_v53  ;;  %v1853_v27 = vadd.f32 %v12413_v18, %v12412_v60  ;;  %v9428_v45 = vld [vmem:[%s11529_s3 + $0x4c] ss:$16 sps:$4 sm:$0xff]   ;;  %v2664_v19 = vsel %vm2152_vm10, %v9347_v9, %v2408_v31  ;;  %v12419_v18 = vld [vmem:[#allocation148_spill] sm:$0xff] }
 0x222   : > { %3879 = vmatprep.mubr.bf16.mxu0 %v6316_v14  ;;  %v1877_v14 = vadd.f32 %v12406_v37, %v12405_v24  ;;  %v2416_v24 = vmul.f32 0.01, %v1883_v8  ;;  %3687 = vmatmul.mubr.bf16.vlgmr.msra.gmra.mxu1 %v9376_v0  ;;  %v2404_v30 = vmul.f32 0.01, %v1867_v39  ;;  %vm2148_vm11 = vcmp.ge.f32.partialorder %v1867_v39, 0.0 }
 0x223   : > { %4041 = vmatpush1.bf16.msra.mxu1 %v2851_v43  ;;  %v2676_v12 = vsel %vm2164_vm2, %v1887_v53, %v2420_v62  ;;  %3696 = vmatprep.mubr.bf16.mxu1 %v9391_v48  ;;  %v6318_v62 = vld [vmem:[%s11529_s3 + $0x24] ss:$16 sps:$4 sm:$0xff]   ;;  %vm2136_vm3 = vcmp.ge.f32.partialorder %v1853_v27, 0.0  ;;  %v2656_v31 = vsel %vm2144_vm9, %v1863_v13, %v2400_v54 }
 0x224   : > { %v2412_v37 = vmul.f32 0.01, %v1877_v14  ;;  %vm2156_vm8 = vcmp.ge.f32.partialorder %v1877_v14, 0.0  ;;  %4042 = vmatprep.subr.bf16.mxu1 %v2848_v47  ;;  %v2672_v43 = vsel %vm2160_vm14, %v1883_v8, %v2416_v24  ;;  %v12414_v47 = vld [vmem:[#allocation40_spill] sm:$0xff]  ;;  %v12415_v8 = vld [vmem:[#allocation162_spill] sm:$0xff]  ;;  %v2660_v9 = vsel %vm2148_vm11, %v1867_v39, %v2404_v30 }
 0x225   : > { %v2844_v53 = vpack.c.bf16 %v2676_v12, %v2672_v43  ;;  %v1857_v24 = vadd.f32 %v12415_v8, %v12414_v47  ;;  %v12416_v43 = vld [vmem:[#allocation154_spill] sm:$0xff]  ;;  %v1837_v47 = vadd.f32 %v12419_v18, %v12334_v50  ;;  %v2836_v8 = vpack.c.bf16 %v2660_v9, %v2656_v31  ;;  %v9453_v39 = vld [vmem:[%s11529_s3 + $0x48] ss:$16 sps:$4 sm:$0xff]   ;;  %v12420_v13 = vld [vmem:[#allocation108_spill] sm:$0xff] }
 0x226   : > { %v2668_v22 = vsel %vm2156_vm8, %v1877_v14, %v2412_v37  ;;  %v9461_v50 = vld [vmem:[%s11529_s3 + $0x6c] ss:$16 sps:$4 sm:$0xff]   ;;  %v9478_v18 = vadd.f32 %v8910_v20, %v12299_v44  ;;  %v9493_v20 = vadd.f32 %v9100_v34, %v12365_v17  ;;  %v1981_v44 = vadd.f32 %v9405_v46, %v12368_v38  ;;  %v12430_v34 = vld [vmem:[#allocation78_spill] sm:$0xff] }
 0x227   : > { %4043 = vmatpush1.bf16.msra.mxu1 %v2847_v41  ;;  %v1843_v41 = vadd.f32 %v12416_v43, %v12319_v21  ;;  %v2840_v14 = vpack.c.bf16 %v2668_v22, %v2664_v19  ;;  %vm2140_vm6 = vcmp.ge.f32.partialorder %v1857_v24, 0.0  ;;  %v1984_v21 = vpop.f32.mrf.mxu1  ;;  %vm2124_vm15 = vcmp.ge.f32.partialorder %v1837_v47, 0.0 }
 0x228   : > { %4044 = vmatprep.subr.bf16.mxu1 %v2844_v53  ;;  %v12418_v53 = vld [vmem:[#allocation146_spill] sm:$0xff]  ;;  %vm2239_vm1 = vcmp.ge.f32.partialorder %v1981_v44, 0.0 }
 0x229   : > { %3880 = vmatmul.mubr.bf16.vlgmr.msra.gmra.mxu0 %v6317_v51  ;;  %v2671_v51 = vsel %vm2159_vm7, %v1881_v59, %v2415_v16  ;;  %v12417_v59 = vld [vmem:[#allocation156_spill] sm:$0xff]  ;;  %v2392_v16 = vmul.f32 0.01, %v1853_v27  ;;  %v1833_v60 = vadd.f32 %v12418_v53, %v12332_v23  ;;  %v2384_v30 = vmul.f32 0.01, %v1843_v41  ;;  %v1986_v23 = vpop.f32.mrf.mxu1 }
 0x22a   : > { %3889 = vmatprep.mubr.bf16.mxu0 %v6318_v62  ;;  %v2843_v12 = vpack.c.bf16 %v2675_v56, %v2671_v51  ;;  %3697 = vmatmul.mubr.bf16.gmra.mxu1 %v9418_v29  ;;  %v1847_v37 = vadd.f32 %v12417_v59, %v12321_v57  ;;  %v2396_v62 = vmul.f32 0.01, %v1857_v24  ;;  %v6319_v56 = vld [vmem:[%s11529_s3 + $0x20] ss:$16 sps:$4 sm:$0xff]   ;;  %v6320_v57 = vld [vmem:[%s11529_s3 + $0x44] ss:$16 sps:$4 sm:$0xff]  }
 0x22b   : > { %3706 = vmatprep.mubr.bf16.mxu1 %v9428_v45  ;;  %v12421_v51 = vld [vmem:[#allocation21_spill] sm:$0xff]  ;;  %vm2128_vm13 = vcmp.ge.f32.partialorder %v1843_v41, 0.0  ;;  %v2376_v43 = vmul.f32 0.01, %v1833_v60  ;;  %v2380_v59 = vmul.f32 0.01, %v1837_v47 }
 0x22c   : > { %4045 = vmatpush1.bf16.msra.mxu1 %v2843_v12  ;;  %v2388_v22 = vmul.f32 0.01, %v1847_v37  ;;  %v12422_v54 = vpack.c.bf16 %v12420_v13, %v12421_v51  ;;  %v2648_v12 = vsel %vm2136_vm3, %v1853_v27, %v2392_v16  ;;  %v2652_v19 = vsel %vm2140_vm6, %v1857_v24, %v2396_v62  ;;  %v6321_v27 = vld [vmem:[%s11529_s3 + $0x40] ss:$16 sps:$4 sm:$0xff]   ;;  %v12423_v24 = vld [vmem:[#allocation107_spill] sm:$0xff] }
 0x22d   : > { %4046 = vmatprep.subr.bf16.mxu1 %v2840_v14  ;;  %vm2132_vm0 = vcmp.ge.f32.partialorder %v1847_v37, 0.0  ;;  %v2832_v14 = vpack.c.bf16 %v2652_v19, %v2648_v12  ;;  %v12424_v16 = vld [vmem:[#allocation140_spill] sm:$0xff]  ;;  %v2640_v9 = vsel %vm2128_vm13, %v1843_v41, %v2384_v30  ;;  %vm2120_vm12 = vcmp.ge.f32.partialorder %v1833_v60, 0.0 }
 0x22e   : > { %v12425_v62 = vpack.c.bf16 %v12423_v24, %v12424_v16  ;;  %v2644_v31 = vsel %vm2132_vm0, %v1847_v37, %v2388_v22  ;;  %v6322_v53 = vld [vmem:[%s11529_s3 + $0x64] ss:$16 sps:$4 sm:$0xff]   ;;  %v9484_v37 = vld [vmem:[%s11529_s3 + $0x68] ss:$16 sps:$4 sm:$0xff]   ;;  %v2636_v12 = vsel %vm2124_vm15, %v1837_v47, %v2380_v59  ;;  %v6323_v16 = vld [vmem:[%s11529_s3 + $0x60] ss:$16 sps:$4 sm:$0xff]  }
 0x22f   : > { %v2828_v41 = vpack.c.bf16 %v2644_v31, %v2640_v9  ;;  %v12426_v22 = vld [vmem:[#allocation167_spill] sm:$0xff]  ;;  %v12427_v13 = vld [vmem:[#allocation164_spill] sm:$0xff] }
 0x230   : > { %4047 = vmatpush1.bf16.msra.mxu1 %v12422_v54  ;;  %v12428_v51 = vpack.c.bf16 %v12426_v22, %v12427_v13  ;;  %v2632_v54 = vsel %vm2120_vm12, %v1833_v60, %v2376_v43  ;;  %v12431_v47 = vld [vmem:[#allocation23_spill] sm:$0xff]  ;;  %v12433_v59 = vld [vmem:[#allocation64_spill] sm:$0xff] }
 0x231   : > { %3890 = vmatmul.mubr.bf16.gmra.mxu0 %v6319_v56  ;;  %4048 = vmatprep.subr.bf16.mxu1 %v2836_v8  ;;  %v1987_v56 = vadd.f32 %v1986_v23, %v12377_v36  ;;  %v1985_v8 = vadd.f32 %v1984_v21, %v12377_v36  ;;  %v9497_v36 = vadd.f32 %v9108_v6, %v12366_v3  ;;  %v12429_v21 = vld [vmem:[#allocation86_spill] sm:$0xff]  ;;  %v12432_v6 = vld [vmem:[#allocation51_spill] sm:$0xff] }
 0x232   : > { %3899 = vmatprep.mubr.bf16.mxu0 %v6320_v57  ;;  %3707 = vmatmul.mubr.bf16.gmra.mxu1 %v9453_v39  ;;  %v1983_v57 = vadd.f32 %v1982_v63, %v12368_v38  ;;  %v1977_v63 = vadd.f32 %v9386_v61, %v12367_v55  ;;  %v9504_v61 = vld [vmem:[%s11529_s3 + $0x8c] ss:$16 sps:$4 sm:$0xff]   ;;  %v9508_v60 = vadd.f32 %v12429_v21, %v12370_v2 }
 0x233   : > { %3716 = vmatprep.mubr.bf16.mxu1 %v9461_v50  ;;  %v2500_v30 = vmul.f32 0.01, %v1987_v56  ;;  %vm2244_vm5 = vcmp.ge.f32.partialorder %v1987_v56, 0.0  ;;  %v9512_v19 = vadd.f32 %v12431_v47, %v12430_v34  ;;  %v1973_v23 = vadd.f32 %v9343_v5, %v12432_v6  ;;  %v12434_v5 = vld [vmem:[#allocation160_spill] sm:$0xff] }
 0x234   : > { %4049 = vmatpush1.bf16.msra.mxu1 %v12425_v62  ;;  %v2496_v43 = vmul.f32 0.01, %v1983_v57  ;;  %v1975_v38 = vadd.f32 %v9364_v40, %v12367_v55  ;;  %vm2240_vm2 = vcmp.ge.f32.partialorder %v1983_v57, 0.0  ;;  %v2499_v46 = vmul.f32 0.01, %v1985_v8  ;;  %v12435_v62 = vld [vmem:[#allocation157_spill] sm:$0xff] }
 0x235   : > { %4050 = vmatprep.subr.bf16.mxu1 %v2832_v14  ;;  %v2824_v14 = vpack.c.bf16 %v2636_v12, %v2632_v54  ;;  %v2492_v24 = vmul.f32 0.01, %v1977_v63  ;;  %vm2243_vm4 = vcmp.ge.f32.partialorder %v1985_v8, 0.0  ;;  %v12436_v9 = vpack.c.bf16 %v12434_v5, %v12435_v62  ;;  %v12437_v40 = vld [vmem:[#allocation61_spill] sm:$0xff]  ;;  %v6325_v5 = vld [vmem:[%s11529_s3 + $0x80] ss:$16 sps:$4 sm:$0xff]  }
 0x236   : > { %v2756_v55 = vsel %vm2244_vm5, %v1987_v56, %v2500_v30  ;;  %v1963_v31 = vadd.f32 %v9256_v11, %v12437_v40  ;;  %vm2236_vm14 = vcmp.ge.f32.partialorder %v1977_v63, 0.0  ;;  %v2488_v22 = vmul.f32 0.01, %v1973_v23  ;;  %v6324_v56 = vld [vmem:[%s11529_s3 + $0x84] ss:$16 sps:$4 sm:$0xff]   ;;  %v12439_v12 = vld [vmem:[#allocation149_spill] sm:$0xff] }
 0x237   : > { %v2752_v13 = vsel %vm2240_vm2, %v1983_v57, %v2496_v43  ;;  %vm2232_vm8 = vcmp.ge.f32.partialorder %v1973_v23, 0.0  ;;  %v2491_v11 = vmul.f32 0.01, %v1975_v38  ;;  %vm2235_vm7 = vcmp.ge.f32.partialorder %v1975_v38, 0.0  ;;  %v12438_v57 = vld [vmem:[#allocation153_spill] sm:$0xff] }
 0x238   : > { %4051 = vmatpush1.bf16.msra.mxu1 %v12428_v51  ;;  %v2884_v30 = vpack.c.bf16 %v2756_v55, %v2752_v13  ;;  %v9543_v51 = vld [vmem:[%s11529_s3 + $0x88] ss:$16 sps:$4 sm:$0xff]   ;;  %v12440_v21 = vpack.c.bf16 %v12438_v57, %v12439_v12  ;;  %v2748_v47 = vsel %vm2236_vm14, %v1977_v63, %v2492_v24  ;;  %vm2224_vm9 = vcmp.ge.f32.partialorder %v1963_v31, 0.0  ;;  %v9594_v12 = vld [vmem:[%s11529_s3 + $0xcc] ss:$16 sps:$4 sm:$0xff]  }
 0x239   : > { %3900 = vmatmul.mubr.bf16.gmra.mxu0 %v6321_v27  ;;  %4052 = vmatprep.subr.bf16.mxu1 %v2828_v41  ;;  %v1967_v27 = vadd.f32 %v9304_v52, %v12433_v59  ;;  %v2495_v52 = vmul.f32 0.01, %v1981_v44  ;;  %v1965_v41 = vadd.f32 %v9280_v35, %v12433_v59  ;;  %v1957_v35 = vadd.f32 %v9204_v32, %v12430_v34  ;;  %v9557_v32 = vld [vmem:[%s11529_s3 + $0xac] ss:$16 sps:$4 sm:$0xff]   ;;  %v9582_v13 = vld [vmem:[%s11529_s3 + $0xa8] ss:$16 sps:$4 sm:$0xff]  }
 0x23a   : > { %3909 = vmatprep.mubr.bf16.mxu0 %v6322_v53  ;;  %3717 = vmatmul.mubr.bf16.gmra.mxu1 %v9484_v37  ;;  %v1971_v53 = vadd.f32 %v9323_v7, %v12432_v6  ;;  %v2755_v7 = vsel %vm2243_vm4, %v1985_v8, %v2499_v46  ;;  %v1961_v8 = vadd.f32 %v9226_v26, %v12437_v40  ;;  %v2480_v34 = vmul.f32 0.01, %v1963_v31  ;;  %v12441_v24 = vld [vmem:[#allocation53_spill] sm:$0xff] }
 0x23b   : > { %3726 = vmatprep.mubr.bf16.mxu1 %v9504_v61  ;;  %v2484_v54 = vmul.f32 0.01, %v1967_v27  ;;  %vm2228_vm10 = vcmp.ge.f32.partialorder %v1967_v27, 0.0  ;;  %v2751_v43 = vsel %vm2239_vm1, %v1981_v44, %v2495_v52  ;;  %v2483_v63 = vmul.f32 0.01, %v1965_v41 }
 0x23c   : > { %4053 = vmatpush1.bf16.msra.mxu1 %v12436_v9  ;;  %v2487_v6 = vmul.f32 0.01, %v1971_v53  ;;  %vm2231_vm11 = vcmp.ge.f32.partialorder %v1971_v53, 0.0  ;;  %v2883_v46 = vpack.c.bf16 %v2755_v7, %v2751_v43  ;;  %v2747_v59 = vsel %vm2235_vm7, %v1975_v38, %v2491_v11 }
 0x23d   : > { %4054 = vmatprep.subr.bf16.mxu1 %v2824_v14  ;;  %v2744_v14 = vsel %vm2232_vm8, %v1973_v23, %v2488_v22  ;;  %v1947_v44 = vadd.f32 %v12441_v24, %v12366_v3  ;;  %vm2227_vm3 = vcmp.ge.f32.partialorder %v1965_v41, 0.0  ;;  %v2740_v62 = vsel %vm2228_vm10, %v1967_v27, %v2484_v54  ;;  %v12442_v23 = vld [vmem:[#allocation31_spill] sm:$0xff]  ;;  %v6326_v27 = vld [vmem:[%s11529_s3 + $0xa4] ss:$16 sps:$4 sm:$0xff]  }
 0x23e   : > { %v2880_v26 = vpack.c.bf16 %v2748_v47, %v2744_v14  ;;  %v1951_v9 = vadd.f32 %v12442_v23, %v12370_v2  ;;  %vm2220_vm6 = vcmp.ge.f32.partialorder %v1957_v35, 0.0  ;;  %v2479_v38 = vmul.f32 0.01, %v1961_v8  ;;  %v12446_v14 = vld [vmem:[#allocation106_spill] sm:$0xff]  ;;  %v9629_v23 = vld [vmem:[%s11529_s3 + $0xc8] ss:$16 sps:$4 sm:$0xff]  }
 0x23f   : > { %v2743_v55 = vsel %vm2231_vm11, %v1971_v53, %v2487_v6  ;;  %v2472_v3 = vmul.f32 0.01, %v9508_v60  ;;  %vm2223_vm13 = vcmp.ge.f32.partialorder %v1961_v8, 0.0  ;;  %v2736_v52 = vsel %vm2224_vm9, %v1963_v31, %v2480_v34  ;;  %v12445_v6 = vld [vmem:[#allocation141_spill] sm:$0xff] }
 0x240   : > { %4055 = vmatpush1.bf16.msra.mxu1 %v12440_v21  ;;  %v2879_v40 = vpack.c.bf16 %v2747_v59, %v2743_v55  ;;  %vm2216_vm0 = vcmp.ge.f32.partialorder %v9508_v60, 0.0  ;;  %v2475_v2 = vmul.f32 0.01, %v9512_v19  ;;  %v2739_v53 = vsel %vm2227_vm3, %v1965_v41, %v2483_v63  ;;  %v12447_v63 = vld [vmem:[#allocation90_spill] sm:$0xff] }
 0x241   : > { %3910 = vmatmul.mubr.bf16.gmra.mxu0 %v6323_v16  ;;  %4056 = vmatprep.subr.bf16.mxu1 %v2884_v30  ;;  %v2476_v16 = vmul.f32 0.01, %v1957_v35  ;;  %v2876_v22 = vpack.c.bf16 %v2740_v62, %v2736_v52  ;;  %v2468_v11 = vmul.f32 0.01, %v1947_v44  ;;  %vm2219_vm12 = vcmp.ge.f32.partialorder %v9512_v19, 0.0  ;;  %v12444_v30 = vld [vmem:[#allocation24_spill] sm:$0xff] }
 0x242   : > { %3919 = vmatprep.mubr.bf16.mxu0 %v6324_v56  ;;  %3727 = vmatmul.mubr.bf16.gmra.mxu1 %v9543_v51  ;;  %v12443_v56 = vld [vmem:[#allocation67_spill] sm:$0xff]  ;;  %v1941_v54 = vadd.f32 %v12444_v30, %v12365_v17  ;;  %vm2212_vm15 = vcmp.ge.f32.partialorder %v1947_v44, 0.0  ;;  %v2471_v41 = vmul.f32 0.01, %v1951_v9  ;;  %v2735_v57 = vsel %vm2223_vm13, %v1961_v8, %v2479_v38 }
 0x243   : > { %3736 = vmatprep.mubr.bf16.mxu1 %v9557_v32  ;;  %v1937_v31 = vadd.f32 %v12443_v56, %v12309_v10  ;;  %v2732_v7 = vsel %vm2220_vm6, %v1957_v35, %v2476_v16  ;;  %v2464_v10 = vmul.f32 0.01, %v9493_v20  ;;  %vm2215_vm5 = vcmp.ge.f32.partialorder %v1951_v9, 0.0  ;;  %v6329_v56 = vld [vmem:[%s11529_s3 + $0xc0] ss:$16 sps:$4 sm:$0xff]  }
 0x244   : > { %4057 = vmatpush2.bf16.msra.mxu1 %v2883_v46  ;;  %v2875_v21 = vpack.c.bf16 %v2739_v53, %v2735_v57  ;;  %v2728_v35 = vsel %vm2216_vm0, %v9508_v60, %v2472_v3  ;;  %vm2208_vm2 = vcmp.ge.f32.partialorder %v9493_v20, 0.0  ;;  %v2467_v17 = vmul.f32 0.01, %v9497_v36  ;;  %v6327_v46 = vld [vmem:[%s11529_s3 + $0xa0] ss:$16 sps:$4 sm:$0xff]  }
 0x245   : > { %4058 = vmatprep.subr.bf16.mxu1 %v2880_v26  ;;  %v2731_v47 = vsel %vm2219_vm12, %v9512_v19, %v2475_v2  ;;  %v2872_v8 = vpack.c.bf16 %v2732_v7, %v2728_v35  ;;  %v1927_v43 = vadd.f32 %v12445_v6, %v12283_v25  ;;  %v2460_v34 = vmul.f32 0.01, %v1937_v31  ;;  %v9653_v30 = vld [vmem:[%s11529_s3 + $0xe8] ss:$16 sps:$4 sm:$0xff]   ;;  %v12453_v6 = vld [vmem:[#allocation32_spill] sm:$0xff] }
 0x246   : > { %vm2211_vm4 = vcmp.ge.f32.partialorder %v9497_v36, 0.0  ;;  %v2724_v60 = vsel %vm2212_vm15, %v1947_v44, %v2468_v11  ;;  %v1923_v19 = vadd.f32 %v12447_v63, %v12446_v14  ;;  %vm2204_vm14 = vcmp.ge.f32.partialorder %v1937_v31, 0.0  ;;  %v6328_v44 = vld [vmem:[%s11529_s3 + $0xc4] ss:$16 sps:$4 sm:$0xff]   ;;  %v9683_v63 = vld [vmem:[%s11529_s3 + $0x108] ss:$16 sps:$4 sm:$0xff]  }
 0x247   : > { %v2463_v59 = vmul.f32 0.01, %v1941_v54  ;;  %v2727_v26 = vsel %vm2215_vm5, %v1951_v9, %v2471_v41  ;;  %v2456_v25 = vmul.f32 0.01, %v9478_v18  ;;  %vm2207_vm1 = vcmp.ge.f32.partialorder %v1941_v54, 0.0  ;;  %v12448_v9 = vld [vmem:[#allocation65_spill] sm:$0xff] }
 0x248   : > { %4059 = vmatpush2.bf16.msra.mxu1 %v2879_v40  ;;  %v2871_v24 = vpack.c.bf16 %v2731_v47, %v2727_v26  ;;  %v2720_v16 = vsel %vm2208_vm2, %v9493_v20, %v2464_v10  ;;  %vm2200_vm8 = vcmp.ge.f32.partialorder %v9478_v18, 0.0  ;;  %v1917_v20 = vadd.f32 %v12448_v9, %v12380_v28  ;;  %v12449_v40 = vld [vmem:[#allocation45_spill] sm:$0xff]  ;;  %v12451_v41 = vld [vmem:[#allocation84_spill] sm:$0xff] }
 0x249   : > { %3920 = vmatmul.mubr.bf16.gmra.mxu0 %v6325_v5  ;;  %4060 = vmatprep.subr.bf16.mxu1 %v2876_v22  ;;  %v2723_v5 = vsel %vm2211_vm4, %v9497_v36, %v2467_v17  ;;  %v2868_v62 = vpack.c.bf16 %v2724_v60, %v2720_v16  ;;  %v2452_v38 = vmul.f32 0.01, %v1927_v43  ;;  %v2716_v55 = vsel %vm2204_vm14, %v1937_v31, %v2460_v34  ;;  %v9637_v36 = vld [vmem:[%s11529_s3 + $0xec] ss:$16 sps:$4 sm:$0xff]   ;;  %v6332_v60 = vld [vmem:[%s11529_s3 + $0x104] ss:$16 sps:$4 sm:$0xff]  }
 0x24a   : > { %3929 = vmatprep.mubr.bf16.mxu0 %v6326_v27  ;;  %3737 = vmatmul.mubr.bf16.gmra.mxu1 %v9582_v13  ;;  %vm2196_vm7 = vcmp.ge.f32.partialorder %v1927_v43, 0.0  ;;  %v2719_v3 = vsel %vm2207_vm1, %v1941_v54, %v2463_v59  ;;  %v1913_v52 = vadd.f32 %v12449_v40, %v12382_v15  ;;  %v2448_v27 = vmul.f32 0.01, %v1923_v19  ;;  %v12450_v54 = vld [vmem:[#allocation62_spill] sm:$0xff]  ;;  %v12457_v59 = vld [vmem:[#allocation136_spill] sm:$0xff] }
 0x24b   : > { %3746 = vmatprep.mubr.bf16.mxu1 %v9594_v12  ;;  %v2867_v2 = vpack.c.bf16 %v2723_v5, %v2719_v3  ;;  %v2712_v53 = vsel %vm2200_vm8, %v9478_v18, %v2456_v25  ;;  %vm2192_vm10 = vcmp.ge.f32.partialorder %v1923_v19, 0.0  ;;  %v2444_v22 = vmul.f32 0.01, %v1917_v20  ;;  %v6330_v18 = vld [vmem:[%s11529_s3 + $0xe4] ss:$16 sps:$4 sm:$0xff]  }
 0x24c   : > { %4061 = vmatpush2.bf16.msra.mxu1 %v2875_v21  ;;  %v2864_v28 = vpack.c.bf16 %v2716_v55, %v2712_v53  ;;  %v2708_v31 = vsel %vm2196_vm7, %v1927_v43, %v2452_v38  ;;  %vm2188_vm11 = vcmp.ge.f32.partialorder %v1917_v20, 0.0  ;;  %v2440_v15 = vmul.f32 0.01, %v1913_v52  ;;  %v9661_v21 = vld [vmem:[%s11529_s3 + $0x10c] ss:$16 sps:$4 sm:$0xff]   ;;  %v12454_v43 = vld [vmem:[#allocation142_spill] sm:$0xff] }
 0x24d   : > { %4062 = vmatprep.subr.bf16.mxu1 %v2872_v8  ;;  %v2704_v11 = vsel %vm2192_vm10, %v1923_v19, %v2448_v27  ;;  %vm2184_vm9 = vcmp.ge.f32.partialorder %v1913_v52, 0.0  ;;  %v12452_v57 = vpack.c.bf16 %v12450_v54, %v12451_v41  ;;  %v2700_v10 = vsel %vm2188_vm11, %v1917_v20, %v2444_v22  ;;  %v6331_v8 = vld [vmem:[%s11529_s3 + $0xe0] ss:$16 sps:$4 sm:$0xff]   ;;  %v12456_v19 = vld [vmem:[#allocation87_spill] sm:$0xff] }
 0x24e   : > { %v2860_v7 = vpack.c.bf16 %v2708_v31, %v2704_v11  ;;  %v2696_v35 = vsel %vm2184_vm9, %v1913_v52, %v2440_v15  ;;  %v12455_v34 = vpack.c.bf16 %v12453_v6, %v12454_v43  ;;  %v12458_v26 = vpack.c.bf16 %v12456_v19, %v12457_v59  ;;  %v12459_v5 = vld [vmem:[#allocation144_spill] sm:$0xff]  ;;  %v9708_v9 = vld [vmem:[%s11529_s3 + $0x128] ss:$16 sps:$4 sm:$0xff]   ;;  %v9715_v38 = vld [vmem:[%s11529_s3 + $0x14c] ss:$16 sps:$4 sm:$0xff]  }
 0x24f   : > { %v2856_v47 = vpack.c.bf16 %v2700_v10, %v2696_v35  ;;  %v12460_v3 = vld [vmem:[#allocation100_spill] sm:$0xff]  ;;  %v12461_v52 = vld [vmem:[#allocation91_spill] sm:$0xff] }
 0x250   : > { %4063 = vmatpush2.bf16.msra.mxu1 %v2871_v24  ;;  %v9693_v24 = vld [vmem:[%s11529_s3 + $0x12c] ss:$16 sps:$4 sm:$0xff]   ;;  %v12463_v31 = vld [vmem:[#allocation56_spill] sm:$0xff]  ;;  %v9750_v11 = vld [vmem:[%s11529_s3 + $0x168] ss:$16 sps:$4 sm:$0xff]  }
 0x251   : > { %3930 = vmatmul.mubr.bf16.gmra.mxu0 %v6327_v46  ;;  %4064 = vmatprep.subr.bf16.mxu1 %v2868_v62  ;;  %v12465_v10 = vld [vmem:[#allocation83_spill] sm:$0xff] }
 0x252   : > { %3939 = vmatprep.mubr.bf16.mxu0 %v6328_v44  ;;  %3747 = vmatmul.mubr.bf16.gmra.mxu1 %v9629_v23  ;;  %v6333_v44 = vld [vmem:[%s11529_s3 + $0x100] ss:$16 sps:$4 sm:$0xff]   ;;  %v9779_v6 = vld [vmem:[%s11529_s3 + $0x1ac] ss:$16 sps:$4 sm:$0xff]  }
 0x253   : > { %3756 = vmatprep.mubr.bf16.mxu1 %v9637_v36  ;;  %v9799_v59 = vld [vmem:[%s11529_s3 + $0x1cc] ss:$16 sps:$4 sm:$0xff]  }
 0x254   : > { %4065 = vmatpush2.bf16.msra.mxu1 %v2867_v2  ;;  %v9730_v2 = vld [vmem:[%s11529_s3 + $0x148] ss:$16 sps:$4 sm:$0xff]  }
 0x255   : > { %4066 = vmatprep.subr.bf16.mxu1 %v2864_v28  ;;  %v9737_v28 = vld [vmem:[%s11529_s3 + $0x16c] ss:$16 sps:$4 sm:$0xff]  }
 0x258   : > { %4067 = vmatpush2.bf16.msra.mxu1 %v12452_v57  ;;  %v12464_v57 = vld [vmem:[#allocation92_spill] sm:$0xff] }
 0x259   : > { %3940 = vmatmul.mubr.bf16.gmra.mxu0 %v6329_v56  ;;  %4068 = vmatprep.subr.bf16.mxu1 %v2860_v7  ;;  %v12462_v56 = vld [vmem:[#allocation89_spill] sm:$0xff] }
 0x25a   : > { %3949 = vmatprep.mubr.bf16.mxu0 %v6330_v18  ;;  %3757 = vmatmul.mubr.bf16.gmra.mxu1 %v9653_v30  ;;  %v9757_v7 = vld [vmem:[%s11529_s3 + $0x18c] ss:$16 sps:$4 sm:$0xff]  }
 0x25b   : > { %3766 = vmatprep.mubr.bf16.mxu1 %v9661_v21 }
 0x25c   : > { %v9663_v17 = vpop.f32.mrf.mxu0  ;;  %4069 = vmatpush2.bf16.msra.mxu1 %v12455_v34 }
 0x25d   : > { %4070 = vmatprep.subr.bf16.mxu1 %v2856_v47  ;;  %v9772_v47 = vld [vmem:[%s11529_s3 + $0x188] ss:$16 sps:$4 sm:$0xff]  }
 0x25e   : > { %v9672_v46 = vpop.f32.mrf.mxu0 }
 0x260   : > { %v9678_v14 = vpop.f32.mrf.mxu0  ;;  %4071 = vmatpush2.bf16.msra.mxu1 %v12458_v26 }
 0x261   : > { %3950 = vmatmul.mubr.bf16.gmra.mxu0 %v6331_v8 }
 0x262   : > { %3959 = vmatprep.mubr.bf16.mxu0 %v6332_v60  ;;  %v9688_v25 = vpop.f32.mrf.mxu0  ;;  %3767 = vmatmul.mubr.bf16.gmra.mxu1 %v9683_v63  ;;  %v9792_v60 = vld [vmem:[%s11529_s3 + $0x1a8] ss:$16 sps:$4 sm:$0xff]  }
 0x263   : > { %3776 = vmatprep.mubr.bf16.mxu1 %v9693_v24 }
 0x264   : > { %v9696_v16 = vpop.f32.mrf.mxu0 }
 0x266   : > { %v9703_v62 = vpop.f32.mrf.mxu0 }
 0x268   : > { %v9710_v20 = vpop.f32.mrf.mxu0 }
 0x269   : > { %3960 = vmatmul.mubr.bf16.gmra.mxu0 %v6333_v44  ;;  %v9814_v44 = vld [vmem:[%s11529_s3 + $0x1c8] ss:$16 sps:$4 sm:$0xff]  }
 0x26a   : > { %3969 = vmatprep.mubr.bf16.mxu0 %v12459_v5  ;;  %v9717_v55 = vpop.f32.mrf.mxu0  ;;  %3777 = vmatmul.mubr.bf16.gmra.mxu1 %v9708_v9  ;;  %v9819_v5 = vld [vmem:[%s11529_s3 + $0x1ec] ss:$16 sps:$4 sm:$0xff]  }
 0x26b   : > { %3786 = vmatprep.mubr.bf16.mxu1 %v9715_v38 }
 0x26f   : > { %v9722_v40 = vpop.f32.mrf.mxu0 }
 0x271   : > { %3970 = vmatmul.mubr.bf16.gmra.mxu0 %v12460_v3  ;;  %v9725_v27 = vpop.f32.mrf.mxu0 }
 0x272   : > { %3979 = vmatprep.mubr.bf16.mxu0 %v12461_v52  ;;  %3787 = vmatmul.mubr.bf16.gmra.mxu1 %v9730_v2  ;;  %v9834_v52 = vld [vmem:[%s11529_s3 + $0x1e8] ss:$16 sps:$4 sm:$0xff]  }
 0x273   : > { %v9732_v53 = vpop.f32.mrf.mxu0  ;;  %3796 = vmatprep.mubr.bf16.mxu1 %v9737_v28  ;;  %12467 = vst [vmem:[#allocation76_spill] sm:$0xff] %v9834_v52 }
 0x275   : > { %v9739_v22 = vpop.f32.mrf.mxu0 }
 0x278   : > { %v9745_v15 = vpop.f32.mrf.mxu0 }
 0x279   : > { %3980 = vmatmul.mubr.bf16.gmra.mxu0 %v12462_v56 }
 0x27a   : > { %3989 = vmatprep.mubr.bf16.mxu0 %v12463_v31  ;;  %v9752_v18 = vpop.f32.mrf.mxu0  ;;  %3797 = vmatmul.mubr.bf16.gmra.mxu1 %v9750_v11 }
 0x27b   : > { %3806 = vmatprep.mubr.bf16.mxu1 %v9757_v7 }
 0x27c   : > { %v9759_v54 = vpop.f32.mrf.mxu0 }
 0x27e   : > { %v9762_v41 = vpop.f32.mrf.mxu0 }
 0x280   : > { %v9767_v35 = vpop.f32.mrf.mxu0 }
 0x281   : > { %3990 = vmatmul.mubr.bf16.gmra.mxu0 %v12464_v57  ;;  %v6334_v57 = vld [vmem:[%s11529_s3 + $0xc] ss:$16 sps:$4 sm:$0xff]  }
 0x282   : > { %3999 = vmatprep.mubr.bf16.mxu0 %v12465_v10  ;;  %v9774_v8 = vpop.f32.mrf.mxu0  ;;  %3807 = vmatmul.mubr.bf16.gmra.mxu1 %v9772_v47 }
 0x283   : > { %3816 = vmatprep.mubr.bf16.mxu1 %v9779_v6 }
 0x284   : > { %v9781_v43 = vpop.f32.mrf.mxu0 }
 0x286   : > { %v9785_v34 = vpop.f32.mrf.mxu0 }
 0x289   : > { %4000 = vmatmul.mubr.bf16.gmra.mxu0 %v9201_v1 }
 0x28a   : > { %4009 = vmatprep.mubr.bf16.mxu0 %v9209_v58  ;;  %3817 = vmatmul.mubr.bf16.gmra.mxu1 %v9792_v60 }
 0x28b   : > { %v9794_v19 = vpop.f32.mrf.mxu0  ;;  %3826 = vmatprep.mubr.bf16.mxu1 %v9799_v59 }
 0x28d   : > { %v9801_v26 = vpop.f32.mrf.mxu0 }
 0x28f   : > { %v9804_v1 = vpop.f32.mrf.mxu0 }
 0x291   : > { %4010 = vmatmul.mubr.bf16.gmra.mxu0 %v9246_v4  ;;  %v9809_v58 = vpop.f32.mrf.mxu0 }
 0x292   : > { %4019 = vmatprep.mubr.bf16.mxu0 %v9261_v33  ;;  %3827 = vmatmul.mubr.bf16.gmra.mxu1 %v9814_v44 }
 0x293   : > { %3836 = vmatprep.mubr.bf16.mxu1 %v9819_v5 }
 0x298   : > { %v9821_v3 = vpop.f32.mrf.mxu0 }
 0x299   : > { %4020 = vmatmul.mubr.bf16.gmra.mxu0 %v9298_v49  ;;  %v12470_v49 = vld [vmem:[#allocation81_spill] sm:$0xff] }
 0x29a   : > { %v9825_v4 = vpop.f32.mrf.mxu0  ;;  %4029 = vmatprep.mubr.bf16.mxu0 %v9309_v42  ;;  %3837 = vmatmul.mubr.bf16.gmra.mxu1 %v9834_v52 }
 0x29b   : > { %4072 = vmatprep.mubr.bf16.mxu1 %v6334_v57 }
 0x29c   : > { %v9829_v33 = vpop.f32.mrf.mxu0 }
 0x29d   : > { %12466 = vst [vmem:[#allocation79_spill] sm:$0xff] %v9829_v33 }
 0x29e   : > { %v9836_v56 = vpop.f32.mrf.mxu0 }
 0x29f   : > { %12468 = vst [vmem:[#allocation57_spill] sm:$0xff] %v9836_v56 }
 0x2a1   : > { %v9839_v31 = vpop.f32.mrf.mxu0  ;;  %4030 = vmatmul.mubr.bf16.gmra.mxu0 %v12470_v49 }
 0x2a2   : > { %12469 = vst [vmem:[#allocation27_spill] sm:$0xff] %v9839_v31  ;;  %4073 = vmatmul.mubr.bf16.vlgmr.msra.gmra.mxu1 %v9376_v0 }
 0x2a3   : > { %v9845_v42 = vpop.f32.mrf.mxu0  ;;  %4082 = vmatprep.mubr.bf16.mxu1 %v9391_v48 }
 0x2a4   : > { %12471 = vst [vmem:[#allocation71_spill] sm:$0xff] %v9845_v42 }
 0x2a5   : > { %v9847_v10 = vpop.f32.mrf.mxu0 }
 0x2a6   : > { %12472 = vst [vmem:[#allocation68_spill] sm:$0xff] %v9847_v10 }
 0x2a7   : > { %v9849_v33 = vpop.f32.mrf.mxu0 }
 0x2a8   : > { %12473 = vst [vmem:[#allocation60_spill] sm:$0xff] %v9849_v33 }
 0x2a9   : > { %v9852_v56 = vpop.f32.mrf.mxu0 }
 0x2aa   : > { %12474 = vst [vmem:[#allocation55_spill] sm:$0xff] %v9852_v56  ;;  %4083 = vmatmul.mubr.bf16.gmra.mxu1 %v9418_v29 }
 0x2ab   : > { %v9855_v52 = vpop.f32.mrf.mxu0  ;;  %4092 = vmatprep.mubr.bf16.mxu1 %v9428_v45  ;;  %v9883_v45 = vpop.permute.xlu1 %3058 }
 0x2ac   : > { %12475 = vst [vmem:[#allocation109_spill] sm:$0xff] %v9855_v52  ;;  %12487 = vst [vmem:[#allocation46_spill] sm:$0xff] %v9883_v45 }
 0x2ad   : > { %v9857_v49 = vpop.f32.mrf.mxu0 }
 0x2ae   : > { %12476 = vst [vmem:[#allocation102_spill] sm:$0xff] %v9857_v49 }
 0x2af   : > { %v9859_v31 = vpop.f32.mrf.mxu0 }
 0x2b0   : > { %12477 = vst [vmem:[#allocation54_spill] sm:$0xff] %v9859_v31  ;;  %v9877_v31 = vpop.permute.xlu0 %3053 }
 0x2b1   : > { %v9862_v57 = vpop.f32.mrf.mxu0  ;;  %12484 = vst [vmem:[#allocation126_spill] sm:$0xff] %v9877_v31 }
 0x2b2   : > { %12478 = vst [vmem:[#allocation117_spill] sm:$0xff] %v9862_v57  ;;  %4093 = vmatmul.mubr.bf16.gmra.mxu1 %v9453_v39 }
 0x2b3   : > { %v9865_v10 = vpop.f32.mrf.mxu0  ;;  %4102 = vmatprep.mubr.bf16.mxu1 %v9461_v50 }
 0x2b4   : > { %12479 = vst [vmem:[#allocation63_spill] sm:$0xff] %v9865_v10  ;;  %v9889_v39 = vpop.permute.xlu0 %3043 }
 0x2b5   : > { %v9867_v33 = vpop.f32.mrf.mxu0  ;;  %12489 = vst [vmem:[#allocation131_spill] sm:$0xff] %v9889_v39 }
 0x2b6   : > { %12480 = vst [vmem:[#allocation37_spill] sm:$0xff] %v9867_v33 }
 0x2b7   : > { %v9869_v0 = vpop.f32.mrf.mxu0 }
 0x2b8   : > { %12481 = vst [vmem:[#allocation163_spill] sm:$0xff] %v9869_v0 }
 0x2b9   : > { %v9872_v48 = vpop.f32.mrf.mxu0 }
 0x2ba   : > { %12482 = vst [vmem:[#allocation49_spill] sm:$0xff] %v9872_v48  ;;  %4103 = vmatmul.mubr.bf16.gmra.mxu1 %v9484_v37 }
 0x2bb   : > { %v9875_v49 = vpop.f32.mrf.mxu0  ;;  %4112 = vmatprep.mubr.bf16.mxu1 %v9504_v61 }
 0x2bc   : > { %12483 = vst [vmem:[#allocation28_spill] sm:$0xff] %v9875_v49  ;;  %v9895_v49 = vpop.permute.xlu1 %3048 }
 0x2bd   : > { %v9879_v29 = vpop.f32.mrf.mxu0  ;;  %12492 = vst [vmem:[#allocation143_spill] sm:$0xff] %v9895_v49 }
 0x2be   : > { %12485 = vst [vmem:[#allocation95_spill] sm:$0xff] %v9879_v29  ;;  %v9899_v29 = vpop.permute.xlu0 %3033 }
 0x2bf   : > { %v9881_v57 = vpop.f32.mrf.mxu0  ;;  %12494 = vst [vmem:[#allocation35_spill] sm:$0xff] %v9899_v29 }
 0x2c0   : > { %12486 = vst [vmem:[#allocation36_spill] sm:$0xff] %v9881_v57  ;;  %v9907_v61 = vpop.permute.xlu1 %3038 }
 0x2c1   : > { %v9886_v33 = vpop.f32.mrf.mxu0  ;;  %12497 = vst [vmem:[#allocation99_spill] sm:$0xff] %v9907_v61 }
 0x2c2   : > { %12488 = vst [vmem:[#allocation96_spill] sm:$0xff] %v9886_v33  ;;  %4113 = vmatmul.mubr.bf16.gmra.mxu1 %v9543_v51 }
 0x2c3   : > { %v9891_v0 = vpop.f32.mrf.mxu0  ;;  %4122 = vmatprep.mubr.bf16.mxu1 %v9557_v32 }
 0x2c4   : > { %12490 = vst [vmem:[#allocation118_spill] sm:$0xff] %v9891_v0  ;;  %v9911_v0 = vpop.permute.xlu0 %3023  ;;  %v9919_v51 = vpop.permute.xlu1 %3028 }
 0x2c5   : > { %v9893_v50 = vpop.f32.mrf.mxu0  ;;  %12499 = vst [vmem:[#allocation59_spill] sm:$0xff] %v9911_v0  ;;  %12502 = vst [vmem:[#allocation82_spill] sm:$0xff] %v9919_v51 }
 0x2c6   : > { %12491 = vst [vmem:[#allocation111_spill] sm:$0xff] %v9893_v50 }
 0x2c7   : > { %v9897_v48 = vpop.f32.mrf.mxu0 }
 0x2c8   : > { %12493 = vst [vmem:[#allocation73_spill] sm:$0xff] %v9897_v48  ;;  %v9923_v32 = vpop.permute.xlu0 %3013 }
 0x2c9   : > { %v9902_v57 = vpop.f32.mrf.mxu0  ;;  %12504 = vst [vmem:[#allocation41_spill] sm:$0xff] %v9923_v32 }
 0x2ca   : > { %12495 = vst [vmem:[#allocation58_spill] sm:$0xff] %v9902_v57  ;;  %4123 = vmatmul.mubr.bf16.gmra.mxu1 %v9582_v13 }
 0x2cb   : > { %v9905_v37 = vpop.f32.mrf.mxu0  ;;  %4132 = vmatprep.mubr.bf16.mxu1 %v9594_v12 }
 0x2cc   : > { %12496 = vst [vmem:[#allocation138_spill] sm:$0xff] %v9905_v37  ;;  %v9935_v13 = vpop.permute.xlu0 %3003 }
 0x2cd   : > { %v9909_v33 = vpop.f32.mrf.mxu0  ;;  %12509 = vst [vmem:[#allocation80_spill] sm:$0xff] %v9935_v13 }
 0x2ce   : > { %12498 = vst [vmem:[#allocation134_spill] sm:$0xff] %v9909_v33  ;;  %v9929_v33 = vpop.permute.xlu1 %3018 }
 0x2cf   : > { %v9913_v50 = vpop.f32.mrf.mxu0  ;;  %12507 = vst [vmem:[#allocation155_spill] sm:$0xff] %v9929_v33 }
 0x2d0   : > { %12500 = vst [vmem:[#allocation133_spill] sm:$0xff] %v9913_v50 }
 0x2d1   : > { %v9916_v48 = vpop.f32.mrf.mxu0 }
 0x2d2   : > { %12501 = vst [vmem:[#allocation70_spill] sm:$0xff] %v9916_v48  ;;  %4133 = vmatmul.mubr.bf16.gmra.mxu1 %v9629_v23 }
 0x2d3   : > { %v9921_v57 = vpop.f32.mrf.mxu0  ;;  %4142 = vmatprep.mubr.bf16.mxu1 %v9637_v36 }
 0x2d4   : > { %12503 = vst [vmem:[#allocation121_spill] sm:$0xff] %v9921_v57  ;;  %v9941_v57 = vpop.permute.xlu1 %3008 }
 0x2d5   : > { %v9925_v37 = vpop.f32.mrf.mxu0  ;;  %12512 = vst [vmem:[#allocation120_spill] sm:$0xff] %v9941_v57 }
 0x2d6   : > { %12505 = vst [vmem:[#allocation152_spill] sm:$0xff] %v9925_v37  ;;  %v9945_v37 = vpop.permute.xlu0 %2993 }
 0x2d7   : > { %v9927_v10 = vpop.f32.mrf.mxu0  ;;  %12514 = vst [vmem:[#allocation112_spill] sm:$0xff] %v9945_v37 }
 0x2d8   : > { %12506 = vst [vmem:[#allocation42_spill] sm:$0xff] %v9927_v10  ;;  %v9953_v36 = vpop.permute.xlu1 %2998 }
 0x2d9   : > { %v9932_v50 = vpop.f32.mrf.mxu0  ;;  %12517 = vst [vmem:[#allocation145_spill] sm:$0xff] %v9953_v36 }
 0x2da   : > { %12508 = vst [vmem:[#allocation129_spill] sm:$0xff] %v9932_v50  ;;  %4143 = vmatmul.mubr.bf16.gmra.mxu1 %v9653_v30 }
 0x2db   : > { %v9937_v12 = vpop.f32.mrf.mxu0  ;;  %4152 = vmatprep.mubr.bf16.mxu1 %v9661_v21 }
 0x2dc   : > { %12510 = vst [vmem:[#allocation101_spill] sm:$0xff] %v9937_v12  ;;  %v9957_v12 = vpop.permute.xlu0 %2983 }
 0x2dd   : > { %v9939_v48 = vpop.f32.mrf.mxu0  ;;  %12519 = vst [vmem:[#allocation147_spill] sm:$0xff] %v9957_v12  ;;  %v3498_v30 = vadd.f32 %v9672_v46, %v9957_v12 }
 0x2de   : > { %12511 = vst [vmem:[#allocation124_spill] sm:$0xff] %v9939_v48  ;;  %v3496_v48 = vadd.f32 %v9663_v17, %v9957_v12 }
 0x2df   : > { %v9943_v52 = vpop.f32.mrf.mxu0 }
 0x2e0   : > { %12513 = vst [vmem:[#allocation110_spill] sm:$0xff] %v9943_v52 }
 0x2e1   : > { %v9948_v10 = vpop.f32.mrf.mxu0 }
 0x2e2   : > { %12515 = vst [vmem:[#allocation115_spill] sm:$0xff] %v9948_v10  ;;  %v3688_v56 = vpop.f32.mrf.mxu1  ;;  %4153 = vmatmul.mubr.bf16.gmra.mxu1 %v9683_v63 }
 0x2e3   : > { %v9951_v23 = vpop.f32.mrf.mxu0  ;;  %v3689_v21 = vadd.f32 %v3688_v56, %v3496_v48  ;;  %4162 = vmatprep.mubr.bf16.mxu1 %v9693_v24  ;;  %v3506_v24 = vadd.f32 %v9696_v16, %v9945_v37 }
 0x2e4   : > { %12516 = vst [vmem:[#allocation43_spill] sm:$0xff] %v9951_v23  ;;  %v9969_v23 = vpop.permute.xlu1 %2988 }
 0x2e5   : > { %v9955_v50 = vpop.f32.mrf.mxu0  ;;  %12522 = vst [vmem:[#allocation130_spill] sm:$0xff] %v9969_v23  ;;  %v3500_v45 = vadd.f32 %v9678_v14, %v9969_v23  ;;  %v3502_v63 = vadd.f32 %v9688_v25, %v9969_v23  ;;  %vm4233_vm3 = vcmp.ge.f32.partialorder %v3689_v21, 0.0 }
 0x2e6   : > { %12518 = vst [vmem:[#allocation44_spill] sm:$0xff] %v9955_v50  ;;  %v3690_v50 = vpop.f32.mrf.mxu1 }
 0x2e7   : > { %v9961_v52 = vpop.f32.mrf.mxu0  ;;  %v3691_v17 = vadd.f32 %v3690_v50, %v3498_v30  ;;  %v3508_v30 = vadd.f32 %v9703_v62, %v9945_v37  ;;  %v3510_v62 = vadd.f32 %v9710_v20, %v9953_v36  ;;  %v3516_v20 = vadd.f32 %v9722_v40, %v9935_v13 }
 0x2e8   : > { %12520 = vst [vmem:[#allocation166_spill] sm:$0xff] %v9961_v52  ;;  %v4361_v52 = vmul.f32 0.01, %v3689_v21  ;;  %v3692_v31 = vpop.f32.mrf.mxu1 }
 0x2e9   : > { %v9966_v10 = vpop.f32.mrf.mxu0  ;;  %v3693_v46 = vadd.f32 %v3692_v31, %v3500_v45  ;;  %vm4234_vm13 = vcmp.ge.f32.partialorder %v3691_v17, 0.0 }
 0x2ea   : > { %12521 = vst [vmem:[#allocation165_spill] sm:$0xff] %v9966_v10  ;;  %v3694_v48 = vpop.f32.mrf.mxu1  ;;  %v4362_v10 = vmul.f32 0.01, %v3691_v17  ;;  %4163 = vmatmul.mubr.bf16.gmra.mxu1 %v9708_v9 }
 0x2eb   : > { %v9973_v42 = vpop.f32.mrf.mxu0  ;;  %vm4237_vm6 = vcmp.ge.f32.partialorder %v3693_v46, 0.0  ;;  %v4365_v12 = vmul.f32 0.01, %v3693_v46  ;;  %v3695_v14 = vadd.f32 %v3694_v48, %v3502_v63  ;;  %4172 = vmatprep.mubr.bf16.mxu1 %v9715_v38  ;;  %v3512_v38 = vadd.f32 %v9717_v55, %v9953_v36  ;;  %v10005_v63 = vpop.permute.xlu0 %3133 }
 0x2ec   : > { %12523 = vst [vmem:[#allocation128_spill] sm:$0xff] %v9973_v42  ;;  %v9985_v42 = vsel %vm4233_vm3, %v3689_v21, %v4361_v52  ;;  %v3698_v25 = vpop.f32.mrf.mxu1  ;;  %v9997_v37 = vsel %vm4234_vm13, %v3691_v17, %v4362_v10  ;;  %12527 = vst [vmem:[#allocation125_spill] sm:$0xff] %v10005_v63  ;;  %v10009_v10 = vpop.permute.xlu1 %3138 }
 0x2ed   : > { %v9977_v56 = vpop.f32.mrf.mxu0  ;;  %v9988_v31 = vsel %vm4237_vm6, %v3693_v46, %v4365_v12  ;;  %vm4238_vm0 = vcmp.ge.f32.partialorder %v3695_v14, 0.0  ;;  %v4366_v16 = vmul.f32 0.01, %v3695_v14  ;;  %v3699_v45 = vadd.f32 %v3698_v25, %v3506_v24  ;;  %12528 = vst [vmem:[#allocation122_spill] sm:$0xff] %v10009_v10 }
 0x2ee   : > { %12524 = vst [vmem:[#allocation113_spill] sm:$0xff] %v9977_v56  ;;  %v3700_v48 = vpop.f32.mrf.mxu1  ;;  %v3518_v24 = vadd.f32 %v9725_v27, %v9935_v13  ;;  %v3520_v27 = vadd.f32 %v9732_v53, %v9941_v57 }
 0x2ef   : > { %v9981_v50 = vpop.f32.mrf.mxu0  ;;  %v3701_v21 = vadd.f32 %v3700_v48, %v3508_v30  ;;  %v9999_v9 = vsel %vm4238_vm0, %v3695_v14, %v4366_v16  ;;  %v4369_v12 = vmul.f32 0.01, %v3699_v45  ;;  %vm4241_vm12 = vcmp.ge.f32.partialorder %v3699_v45, 0.0 }
 0x2f0   : > { %12525 = vst [vmem:[#allocation159_spill] sm:$0xff] %v9981_v50  ;;  %v3702_v46 = vpop.f32.mrf.mxu1 }
 0x2f1   : > { %v9995_v52 = vpop.f32.mrf.mxu0  ;;  %v3703_v25 = vadd.f32 %v3702_v46, %v3510_v62  ;;  %v4370_v17 = vmul.f32 0.01, %v3701_v21  ;;  %v10015_v55 = vsel %vm4241_vm12, %v3699_v45, %v4369_v12  ;;  %vm4242_vm5 = vcmp.ge.f32.partialorder %v3701_v21, 0.0 }
 0x2f2   : > { %12526 = vst [vmem:[#allocation158_spill] sm:$0xff] %v9995_v52  ;;  %v3704_v30 = vpop.f32.mrf.mxu1  ;;  %4173 = vmatmul.mubr.bf16.gmra.mxu1 %v9730_v2  ;;  %v12548_v52 = vlaneseq }
 0x2f3   : > { %v10011_v14 = vpop.f32.mrf.mxu0  ;;  %vm4245_vm15 = vcmp.ge.f32.partialorder %v3703_v25, 0.0  ;;  %v4373_v16 = vmul.f32 0.01, %v3703_v25  ;;  %v3705_v48 = vadd.f32 %v3704_v30, %v3512_v38  ;;  %4182 = vmatprep.mubr.bf16.mxu1 %v9737_v28  ;;  %v10027_v30 = vsel %vm4242_vm5, %v3701_v21, %v4370_v17 }
 0x2f4   : > { %12529 = vst [vmem:[#allocation151_spill] sm:$0xff] %v10011_v14  ;;  %v3708_v62 = vpop.f32.mrf.mxu1  ;;  %v3522_v14 = vadd.f32 %v9739_v22, %v9941_v57  ;;  %v3526_v21 = vadd.f32 %v9745_v15, %v9923_v32  ;;  %v3528_v28 = vadd.f32 %v9752_v18, %v9923_v32 }
 0x2f5   : > { %v10018_v46 = vsel %vm4245_vm15, %v3703_v25, %v4373_v16  ;;  %vm4246_vm2 = vcmp.ge.f32.partialorder %v3705_v48, 0.0  ;;  %v4374_v40 = vmul.f32 0.01, %v3705_v48  ;;  %v3709_v36 = vadd.f32 %v3708_v62, %v3516_v20  ;;  %v10025_v45 = vpop.f32.mrf.mxu0  ;;  %v10031_v25 = vpop.permute.xlu0 %3123 }
 0x2f6   : > { %v3710_v38 = vpop.f32.mrf.mxu1  ;;  %12530 = vst [vmem:[#allocation150_spill] sm:$0xff] %v10025_v45  ;;  %12531 = vst [vmem:[#allocation119_spill] sm:$0xff] %v10031_v25  ;;  %v10035_v62 = vpop.permute.xlu1 %3128 }
 0x2f7   : > { %v3711_v12 = vadd.f32 %v3710_v38, %v3518_v24  ;;  %v10029_v2 = vsel %vm4246_vm2, %v3705_v48, %v4374_v40  ;;  %v4377_v16 = vmul.f32 0.01, %v3709_v36  ;;  %12532 = vst [vmem:[#allocation116_spill] sm:$0xff] %v10035_v62  ;;  %vm4249_vm4 = vcmp.ge.f32.partialorder %v3709_v36, 0.0  ;;  %v10041_v17 = vpop.f32.mrf.mxu0 }
 0x2f8   : > { %v3712_v20 = vpop.f32.mrf.mxu1  ;;  %12533 = vst [vmem:[#allocation72_spill] sm:$0xff] %v10041_v17 }
 0x2f9   : > { %v3713_v53 = vadd.f32 %v3712_v20, %v3520_v27  ;;  %v4378_v48 = vmul.f32 0.01, %v3711_v12  ;;  %v10045_v13 = vsel %vm4249_vm4, %v3709_v36, %v4377_v16  ;;  %vm4250_vm1 = vcmp.ge.f32.partialorder %v3711_v12, 0.0  ;;  %v10051_v20 = vpop.permute.xlu0 %3113  ;;  %v10059_v16 = vpop.f32.mrf.mxu0 }
 0x2fa   : > { %v3714_v24 = vpop.f32.mrf.mxu1  ;;  %4183 = vmatmul.mubr.bf16.gmra.mxu1 %v9750_v11  ;;  %12534 = vst [vmem:[#allocation85_spill] sm:$0xff] %v10051_v20  ;;  %v10055_v18 = vpop.permute.xlu1 %3118  ;;  %v3530_v36 = vadd.f32 %v9759_v54, %v9929_v33  ;;  %12536 = vst [vmem:[#allocation52_spill] sm:$0xff] %v10059_v16 }
 0x2fb   : > { %vm4253_vm14 = vcmp.ge.f32.partialorder %v3713_v53, 0.0  ;;  %v4381_v40 = vmul.f32 0.01, %v3713_v53  ;;  %v3715_v38 = vadd.f32 %v3714_v24, %v3522_v14  ;;  %4192 = vmatprep.mubr.bf16.mxu1 %v9757_v7  ;;  %12535 = vst [vmem:[#allocation88_spill] sm:$0xff] %v10055_v18  ;;  %v10069_v17 = vpop.f32.mrf.mxu0 }
 0x2fc   : > { %v3718_v45 = vpop.f32.mrf.mxu1  ;;  %12537 = vst [vmem:[#allocation47_spill] sm:$0xff] %v10069_v17 }
 0x2fd   : > { %v10048_v22 = vsel %vm4253_vm14, %v3713_v53, %v4381_v40  ;;  %vm4254_vm8 = vcmp.ge.f32.partialorder %v3715_v38, 0.0  ;;  %v4382_v15 = vmul.f32 0.01, %v3715_v38  ;;  %v3719_v27 = vadd.f32 %v3718_v45, %v3526_v21 }
 0x2fe   : > { %v3720_v24 = vpop.f32.mrf.mxu1  ;;  %v10061_v53 = vsel %vm4250_vm1, %v3711_v12, %v4378_v48  ;;  %v3532_v21 = vadd.f32 %v9762_v41, %v9929_v33  ;;  %v10071_v48 = vpop.permute.xlu0 %3103 }
 0x2ff   : > { %v3721_v11 = vadd.f32 %v3720_v24, %v3528_v28  ;;  %v10063_v40 = vsel %vm4254_vm8, %v3715_v38, %v4382_v15  ;;  %v4385_v14 = vmul.f32 0.01, %v3719_v27  ;;  %vm4257_vm7 = vcmp.ge.f32.partialorder %v3719_v27, 0.0  ;;  %12538 = vst [vmem:[#allocation74_spill] sm:$0xff] %v10071_v48  ;;  %v10076_v15 = vpop.permute.xlu1 %3108 }
 0x300   : > { %v3722_v45 = vpop.f32.mrf.mxu1  ;;  %12539 = vst [vmem:[#allocation48_spill] sm:$0xff] %v10076_v15 }
 0x301   : > { %v3723_v32 = vadd.f32 %v3722_v45, %v3530_v36  ;;  %v4386_v54 = vmul.f32 0.01, %v3721_v11  ;;  %vm4258_vm11 = vcmp.ge.f32.partialorder %v3721_v11, 0.0  ;;  %v10078_v41 = vsel %vm4257_vm7, %v3719_v27, %v4385_v14 }
 0x302   : > { %v3724_v57 = vpop.f32.mrf.mxu1  ;;  %4193 = vmatmul.mubr.bf16.gmra.mxu1 %v9772_v47  ;;  %v10095_v27 = vpop.permute.xlu0 %3093 }
 0x303   : > { %vm4261_vm10 = vcmp.ge.f32.partialorder %v3723_v32, 0.0  ;;  %v4389_v28 = vmul.f32 0.01, %v3723_v32  ;;  %v3725_v12 = vadd.f32 %v3724_v57, %v3532_v21  ;;  %4202 = vmatprep.mubr.bf16.mxu1 %v9779_v6  ;;  %v10085_v21 = vpop.f32.mrf.mxu0  ;;  %v10087_v7 = vsel %vm4258_vm11, %v3721_v11, %v4386_v54  ;;  %12541 = vst [vmem:[#allocation75_spill] sm:$0xff] %v10095_v27 }
 0x304   : > { %v10073_v38 = vpop.f32.mrf.mxu1  ;;  %12540 = vst [vmem:[#allocation135_spill] sm:$0xff] %v10085_v21 }
 0x305   : > { %v10080_v24 = vsel %vm4261_vm10, %v3723_v32, %v4389_v28  ;;  %vm4262_vm9 = vcmp.ge.f32.partialorder %v3725_v12, 0.0  ;;  %v4390_v36 = vmul.f32 0.01, %v3725_v12  ;;  %v10097_v28 = vpop.permute.xlu1 %3098  ;;  %v10099_v6 = vpop.f32.mrf.mxu0 }
 0x306   : > { %v3730_v45 = vpop.f32.mrf.mxu1  ;;  %12542 = vst [vmem:[#allocation137_spill] sm:$0xff] %v10097_v28  ;;  %12543 = vst [vmem:[#allocation66_spill] sm:$0xff] %v10099_v6  ;;  %v10112_v32 = vpop.permute.xlu0 %3083  ;;  %v6444_v6 = vmov 1966171168  }
 0x307   : > { %v10089_v33 = vsel %vm4262_vm9, %v3725_v12, %v4390_v36  ;;  %v10105_v12 = vpop.f32.mrf.mxu0  ;;  %v10110_v36 = vld.sshfl [vmem:[%s11531_s5] sm:$0x11 pattern:$0x75316420]  ;;  %12546 = vst [vmem:[#allocation93_spill] sm:$0xff] %v10112_v32  ;;  %v4698_v17 = vunpack.c.l.s4 %v6444_v6 }
 0x308   : > { %v10091_v47 = vpop.f32.mrf.mxu1  ;;  %12544 = vst [vmem:[#allocation50_spill] sm:$0xff] %v10105_v12  ;;  %12545 = vst [vmem:[#allocation22_spill] sm:$0xff] %v10110_v36  ;;  %v10121_v12 = vshrl.u32 %v12548_v52, 7  ;;  %v3536_v52 = vadd.f32 %v9767_v35, %v9911_v0  ;;  %v3550_v35 = vadd.f32 %v9804_v1, %v9907_v61 }
 0x309   : > { %v10116_v16 = vpop.permute.xlu1 %3088  ;;  %v4699_v54 = vunpack.c.0.s8 %v4698_v17  ;;  %v10123_v50 = vpop.f32.mrf.mxu0 }
 0x30a   : > { %v3734_v14 = vpop.f32.mrf.mxu1  ;;  %4203 = vmatmul.mubr.bf16.gmra.mxu1 %v9792_v60  ;;  %12547 = vst [vmem:[#allocation20_spill] sm:$0xff] %v10116_v16  ;;  %12549 = vst [vmem:[#allocation97_spill] sm:$0xff] %v10121_v12  ;;  %v10130_v6 = vpop.permute.xlu0 %3073 }
 0x30b   : > { %4212 = vmatprep.mubr.bf16.mxu1 %v9799_v59  ;;  %v4696_v59 = vcombine.high %v10110_v36, %v10110_v36  ;;  %12550 = vst [vmem:[#allocation132_spill] sm:$0xff] %v10123_v50  ;;  %v10127_v23 = vsub.s32 %v4699_v54, %v10121_v12  ;;  %12552 = vst [vmem:[#allocation94_spill] sm:$0xff] %v10130_v6  ;;  %v10135_v17 = vpop.f32.mrf.mxu0  ;;  %v3542_v54 = vadd.f32 %v9785_v34, %v9919_v51  ;;  %v12555_v34 = vld [vmem:[#allocation79_spill] sm:$0xff] }
 0x30c   : > { %v10101_v57 = vpop.f32.mrf.mxu1  ;;  %12554 = vst [vmem:[#allocation33_spill] sm:$0xff] %v10135_v17  ;;  %v3548_v12 = vadd.f32 %v9801_v26, %v9899_v29  ;;  %v12557_v26 = vld [vmem:[#allocation126_spill] sm:$0xff] }
 0x30d   : > { %12551 = vst [vmem:[#allocation26_spill] sm:$0xff] %v10127_v23  ;;  %v4710_v63 = vrot.slane %v4696_v59, %v10127_v23  ;;  %v10133_v36 = vpop.permute.xlu1 %3078  ;;  %v3546_v59 = vadd.f32 %v9794_v19, %v9899_v29  ;;  %v12556_v19 = vld [vmem:[#allocation57_spill] sm:$0xff]  ;;  %v12558_v29 = vld [vmem:[#allocation27_spill] sm:$0xff]  ;;  %v10163_v1 = vpop.f32.mrf.mxu0  ;;  %v10175_v15 = vadd.f32 %v3734_v14, %v3542_v54 }
 0x30e   : > { %v3740_v11 = vpop.f32.mrf.mxu1  ;;  %12553 = vst [vmem:[#allocation127_spill] sm:$0xff] %v10133_v36  ;;  %v3562_v23 = vadd.f32 %v12556_v19, %v9895_v49  ;;  %v3566_v62 = vadd.f32 %v12558_v29, %v12557_v26  ;;  %12559 = vst [vmem:[#allocation103_spill] sm:$0xff] %v10163_v1  ;;  %v12568_v1 = vld [vmem:[#allocation109_spill] sm:$0xff] }
 0x30f   : > { %4745 = vmatprep.mubr.bf16.mxu0 %v4710_v63  ;;  %v12570_v54 = vld [vmem:[#allocation117_spill] sm:$0xff]  ;;  %vm4270_vm0 = vcmp.ge.f32.partialorder %v10175_v15, 0.0 }
 0x310   : > { %v10114_v21 = vpop.f32.mrf.mxu1 }
 0x311   : > { %v10178_v29 = vpop.permute.xlu1 %3068 }
 0x312   : > { %v3744_v60 = vpop.f32.mrf.mxu1  ;;  %4213 = vmatmul.mubr.bf16.gmra.mxu1 %v9814_v44  ;;  %v3538_v44 = vadd.f32 %v9774_v8, %v9911_v0  ;;  %v3552_v8 = vadd.f32 %v9809_v58, %v9907_v61  ;;  %v3556_v0 = vadd.f32 %v9821_v3, %v9889_v39  ;;  %v10167_v58 = vpop.permute.xlu0 %3063  ;;  %v12561_v3 = vld [vmem:[#allocation71_spill] sm:$0xff]  ;;  %12566 = vst [vmem:[#allocation104_spill] sm:$0xff] %v10178_v29 }
 0x313   : > { %4222 = vmatprep.mubr.bf16.mxu1 %v9819_v5  ;;  %v3540_v5 = vadd.f32 %v9781_v43, %v9919_v51  ;;  %v3558_v43 = vadd.f32 %v9825_v4, %v9889_v39  ;;  %v3560_v51 = vadd.f32 %v12555_v34, %v9895_v49  ;;  %12560 = vst [vmem:[#allocation25_spill] sm:$0xff] %v10167_v58  ;;  %v12562_v4 = vld [vmem:[#allocation46_spill] sm:$0xff]  ;;  %v12563_v39 = vld [vmem:[#allocation68_spill] sm:$0xff] }
 0x314   : > { %v3748_v56 = vpop.f32.mrf.mxu1  ;;  %v10165_v25 = vadd.f32 %v3730_v45, %v3538_v44  ;;  %v3568_v61 = vadd.f32 %v12561_v3, %v12557_v26  ;;  %v3570_v18 = vadd.f32 %v12563_v39, %v12562_v4  ;;  %v12564_v34 = vld [vmem:[#allocation60_spill] sm:$0xff]  ;;  %v12567_v45 = vld [vmem:[#allocation55_spill] sm:$0xff]  ;;  %v3578_v48 = vadd.f32 %v12568_v1, %v10167_v58  ;;  %v12569_v39 = vld [vmem:[#allocation102_spill] sm:$0xff] }
 0x315   : > { %v3572_v20 = vadd.f32 %v12564_v34, %v12562_v4  ;;  %v12565_v49 = vld [vmem:[#allocation76_spill] sm:$0xff]  ;;  %v3576_v44 = vadd.f32 %v12567_v45, %v10167_v58  ;;  %v10184_v3 = vadd.f32 %v3740_v11, %v3548_v12  ;;  %v10186_v26 = vadd.f32 %v3744_v60, %v3552_v8  ;;  %v10201_v11 = vpop.f32.mrf.mxu0 }
 0x316   : > { %v3750_v10 = vpop.f32.mrf.mxu1  ;;  %v3580_v14 = vadd.f32 %v12569_v39, %v10178_v29  ;;  %v10192_v34 = vadd.f32 %v12570_v54, %v10130_v6  ;;  %v10199_v1 = vadd.f32 %v10073_v38, %v3536_v52  ;;  %12572 = vst [vmem:[#allocation69_spill] sm:$0xff] %v10201_v11  ;;  %v10207_v12 = vadd.f32 %v10091_v47, %v3540_v5 }
 0x317   : > { %v10210_v8 = vmul.f32 0.01, %v10175_v15  ;;  %v10213_v39 = vadd.f32 %v10101_v57, %v3546_v59  ;;  %vm4274_vm3 = vcmp.ge.f32.partialorder %v10184_v3, 0.0  ;;  %v4402_v52 = vmul.f32 0.01, %v10184_v3  ;;  %v10222_v59 = vpop.f32.mrf.mxu0 }
 0x318   : > { %v3752_v50 = vpop.f32.mrf.mxu1  ;;  %v10218_v38 = vadd.f32 %v10114_v21, %v3550_v35  ;;  %vm4278_vm6 = vcmp.ge.f32.partialorder %v10186_v26, 0.0  ;;  %12573 = vst [vmem:[#allocation30_spill] sm:$0xff] %v10222_v59  ;;  %vm4266_vm4 = vcmp.ge.f32.partialorder %v10165_v25, 0.0 }
 0x319   : > { %v3753_v5 = vadd.f32 %v3752_v50, %v3560_v51  ;;  %vm4273_vm9 = vcmp.ge.f32.partialorder %v10213_v39, 0.0 }
 0x31a   : > { %v3754_v17 = vpop.f32.mrf.mxu1  ;;  %4223 = vmatmul.mubr.bf16.gmra.mxu1 %v12565_v49  ;;  %v12571_v49 = vld [vmem:[#allocation63_spill] sm:$0xff]  ;;  %vm4277_vm10 = vcmp.ge.f32.partialorder %v10218_v38, 0.0 }
 0x31b   : > { %4786 = vmatprep.mubr.bf16.mxu1 %v4710_v63  ;;  %v10196_v4 = vadd.f32 %v12571_v49, %v10130_v6  ;;  %v3755_v45 = vadd.f32 %v3754_v17, %v3562_v23  ;;  %v10204_v63 = vmul.f32 0.01, %v10165_v25  ;;  %v3751_v23 = vadd.f32 %v3750_v10, %v3558_v43 }
 0x31c   : > { %v3758_v19 = vpop.f32.mrf.mxu1  ;;  %vm4285_vm1 = vcmp.ge.f32.partialorder %v3753_v5, 0.0  ;;  %v4413_v51 = vmul.f32 0.01, %v3753_v5 }
 0x31d   : > { %v3759_v17 = vadd.f32 %v3758_v19, %v3566_v62  ;;  %v4414_v49 = vmul.f32 0.01, %v3755_v45  ;;  %v4410_v19 = vmul.f32 0.01, %v3751_v23  ;;  %vm4286_vm12 = vcmp.ge.f32.partialorder %v3755_v45, 0.0 }
 0x31e   : > { %v3760_v28 = vpop.f32.mrf.mxu1  ;;  %vm4282_vm14 = vcmp.ge.f32.partialorder %v3751_v23, 0.0 }
 0x31f   : > { %v3761_v60 = vadd.f32 %v3760_v28, %v3568_v61  ;;  %v4406_v61 = vmul.f32 0.01, %v10186_v26  ;;  %v3749_v28 = vadd.f32 %v3748_v56, %v3556_v0  ;;  %v4417_v21 = vmul.f32 0.01, %v3759_v17 }
 0x320   : > { %v3762_v54 = vpop.f32.mrf.mxu1  ;;  %vm4289_vm5 = vcmp.ge.f32.partialorder %v3759_v17, 0.0  ;;  %v4542_v58 = vsel %vm4286_vm12, %v3755_v45, %v4414_v49 }
 0x321   : > { %v3763_v47 = vadd.f32 %v3762_v54, %v3570_v18  ;;  %v4418_v10 = vmul.f32 0.01, %v3761_v60  ;;  %vm4290_vm15 = vcmp.ge.f32.partialorder %v3761_v60, 0.0  ;;  %vm4281_vm8 = vcmp.ge.f32.partialorder %v3749_v28, 0.0 }
 0x322   : > { %v3764_v57 = vpop.f32.mrf.mxu1  ;;  %v4409_v59 = vmul.f32 0.01, %v3749_v28 }
 0x323   : > { %vm4293_vm13 = vcmp.ge.f32.partialorder %v3763_v47, 0.0  ;;  %v4421_v62 = vmul.f32 0.01, %v3763_v47  ;;  %v3765_v43 = vadd.f32 %v3764_v57, %v3572_v20  ;;  %v10227_v20 = vpop.f32.mrf.mxu0  ;;  %v4546_v57 = vsel %vm4290_vm15, %v3761_v60, %v4418_v10 }
 0x324   : > { %v3768_v35 = vpop.f32.mrf.mxu1  ;;  %12574 = vst [vmem:[#allocation123_spill] sm:$0xff] %v10227_v20 }
 0x325   : > { %vm4294_vm2 = vcmp.ge.f32.partialorder %v3765_v43, 0.0  ;;  %v4422_v18 = vmul.f32 0.01, %v3765_v43  ;;  %v3769_v0 = vadd.f32 %v3768_v35, %v3576_v44  ;;  %v4549_v56 = vsel %vm4293_vm13, %v3763_v47, %v4421_v62  ;;  %v10238_v49 = vpop.f32.mrf.mxu0 }
 0x326   : > { %v3770_v50 = vpop.f32.mrf.mxu1  ;;  %v4545_v44 = vsel %vm4289_vm5, %v3759_v17, %v4417_v21  ;;  %v4538_v47 = vsel %vm4282_vm14, %v3751_v23, %v4410_v19  ;;  %v4405_v62 = vmul.f32 0.01, %v10218_v38  ;;  %12576 = vst [vmem:[#allocation98_spill] sm:$0xff] %v10238_v49  ;;  %v4401_v23 = vmul.f32 0.01, %v10213_v39 }
 0x327   : > { %v10229_v54 = vadd.f32 %v3770_v50, %v3578_v48  ;;  %v4550_v6 = vsel %vm4294_vm2, %v3765_v43, %v4422_v18  ;;  %v4645_v27 = vpack.c.bf16 %v4549_v56, %v4545_v44  ;;  %v4425_v16 = vmul.f32 0.01, %v3769_v0 }
 0x328   : > { %v3772_v35 = vpop.f32.mrf.mxu1  ;;  %v4646_v11 = vpack.c.bf16 %v4550_v6, %v4546_v57  ;;  %v4541_v48 = vsel %vm4285_vm1, %v3753_v5, %v4413_v51  ;;  %vm4297_vm7 = vcmp.ge.f32.partialorder %v3769_v0, 0.0  ;;  %v4642_v45 = vpack.c.bf16 %v4542_v58, %v4538_v47  ;;  %v12582_v57 = vld [vmem:[#allocation49_spill] sm:$0xff] }
 0x329   : > { %12575 = vst [vmem:[#allocation29_spill] sm:$0xff] %v10229_v54  ;;  %v3773_v29 = vadd.f32 %v3772_v35, %v3580_v14  ;;  %v4534_v14 = vsel %vm4278_vm6, %v10186_v26, %v4406_v61  ;;  %v4537_v17 = vsel %vm4281_vm8, %v3749_v28, %v4409_v59  ;;  %v4530_v58 = vsel %vm4274_vm3, %v10184_v3, %v4402_v52  ;;  %v12579_v3 = vld [vmem:[#allocation37_spill] sm:$0xff] }
 0x32a   : > { %v10236_v60 = vpop.f32.mrf.mxu1  ;;  %4713 = vmatprep.subr.bf16.mxu0 %v4646_v11  ;;  %v4641_v11 = vpack.c.bf16 %v4541_v48, %v4537_v17  ;;  %v10251_v10 = vsel %vm4297_vm7, %v3769_v0, %v4425_v16  ;;  %v4397_v61 = vmul.f32 0.01, %v10207_v12  ;;  %v4533_v28 = vsel %vm4277_vm10, %v10218_v38, %v4405_v62  ;;  %v10265_v16 = vpop.f32.mrf.mxu0 }
 0x32b   : > { %vm4301_vm11 = vcmp.ge.f32.partialorder %v3773_v29, 0.0  ;;  %v4429_v6 = vmul.f32 0.01, %v3773_v29  ;;  %4714 = vmatpush1.bf16.msra.mxu0 %v4645_v27  ;;  %12577 = vst [vmem:[#allocation77_spill] sm:$0xff] %v10251_v10  ;;  %v4638_v19 = vpack.c.bf16 %v4534_v14, %v4530_v58  ;;  %v3590_v52 = vadd.f32 %v12579_v3, %v10133_v36  ;;  %12580 = vst [vmem:[#allocation34_spill] sm:$0xff] %v10265_v16 }
 0x32c   : > { %v3778_v5 = vpop.f32.mrf.mxu1  ;;  %4715 = vmatprep.subr.bf16.mxu0 %v4642_v45  ;;  %vm4269_vm3 = vcmp.ge.f32.partialorder %v10207_v12, 0.0  ;;  %vm4265_vm6 = vcmp.ge.f32.partialorder %v10199_v1, 0.0  ;;  %v4393_v38 = vmul.f32 0.01, %v10199_v1  ;;  %v4529_v21 = vsel %vm4273_vm9, %v10213_v39, %v4401_v23  ;;  %v10288_v39 = vpop.f32.mrf.mxu0  ;;  %v12621_v45 = vld [vmem:[#allocation70_spill] sm:$0xff] }
 0x32d   : > { %v10253_v27 = vsel %vm4301_vm11, %v3773_v29, %v4429_v6  ;;  %v3779_v26 = vadd.f32 %v3778_v5, %v10192_v34  ;;  %v4526_v34 = vsel %vm4270_vm0, %v10175_v15, %v10210_v8  ;;  %v4637_v0 = vpack.c.bf16 %v4533_v28, %v4529_v21  ;;  %12583 = vst [vmem:[#allocation105_spill] sm:$0xff] %v10288_v39  ;;  %v12603_v21 = vld [vmem:[#allocation163_spill] sm:$0xff]  ;;  %v12640_v39 = vld [vmem:[#allocation165_spill] sm:$0xff] }
 0x32e   : > { %12578 = vst [vmem:[#allocation139_spill] sm:$0xff] %v10253_v27  ;;  %v3780_v43 = vpop.f32.mrf.mxu1  ;;  %v4522_v56 = vsel %vm4266_vm4, %v10165_v25, %v10204_v63  ;;  %v4525_v15 = vsel %vm4269_vm3, %v10207_v12, %v4397_v61  ;;  %v3596_v44 = vadd.f32 %v12582_v57, %v10112_v32  ;;  %v4521_v47 = vsel %vm4265_vm6, %v10199_v1, %v4393_v38  ;;  %v10303_v14 = vpop.f32.mrf.mxu0  ;;  %v12608_v57 = vld [vmem:[#allocation75_spill] sm:$0xff]  ;;  %v12650_v27 = vld [vmem:[#allocation150_spill] sm:$0xff] }
 0x32f   : > { %v10268_v29 = vadd.f32 %v3780_v43, %v10196_v4  ;;  %4716 = vmatpush1.bf16.msra.mxu0 %v4641_v11  ;;  %v4433_v51 = vmul.f32 0.01, %v3779_v26  ;;  %vm4305_vm13 = vcmp.ge.f32.partialorder %v3779_v26, 0.0  ;;  %v4634_v50 = vpack.c.bf16 %v4526_v34, %v4522_v56  ;;  %12586 = vst [vmem:[#allocation168_spill] sm:$0xff] %v10303_v14  ;;  %v12638_v14 = vld [vmem:[#allocation166_spill] sm:$0xff] }
 0x330   : > { %v3782_v18 = vpop.f32.mrf.mxu1  ;;  %4717 = vmatprep.subr.bf16.mxu0 %v4638_v19  ;;  %v4633_v25 = vpack.c.bf16 %v4525_v15, %v4521_v47  ;;  %v12587_v1 = vpack.c.bf16 %v10089_v33, %v10087_v7  ;;  %v10312_v5 = vpop.f32.mrf.mxu0  ;;  %v12589_v58 = vpack.c.bf16 %v10080_v24, %v10078_v41  ;;  %v12592_v33 = vpack.c.bf16 %v10048_v22, %v10045_v13  ;;  %v12607_v15 = vld [vmem:[#allocation36_spill] sm:$0xff]  ;;  %v12610_v47 = vld [vmem:[#allocation118_spill] sm:$0xff] }
 0x331   : > { %12581 = vst [vmem:[#allocation19_spill] sm:$0xff] %v10268_v29  ;;  %v3783_v4 = vadd.f32 %v3782_v18, %v3590_v52  ;;  %v10293_v63 = vsel %vm4305_vm13, %v3779_v26, %v4433_v51  ;;  %12588 = vst [vmem:[#allocation39_spill] sm:$0xff] %v10312_v5  ;;  %v12590_v26 = vpack.c.bf16 %v10063_v40, %v10061_v53  ;;  %v12605_v51 = vld [vmem:[#allocation20_spill] sm:$0xff] }
 0x332   : > { %v10284_v8 = vpop.f32.mrf.mxu1  ;;  %12584 = vst [vmem:[#allocation38_spill] sm:$0xff] %v10293_v63  ;;  %v10322_v28 = vpop.f32.mrf.mxu0  ;;  %v12593_v43 = vpack.c.bf16 %v10029_v2, %v10027_v30  ;;  %v12595_v53 = vpack.c.bf16 %v10018_v46, %v10015_v55  ;;  %v12596_v19 = vpack.c.bf16 %v9999_v9, %v9997_v37  ;;  %v12598_v30 = vpack.c.bf16 %v9988_v31, %v9985_v42  ;;  %v12601_v37 = vld [vmem:[#allocation104_spill] sm:$0xff]  ;;  %v12602_v9 = vld [vmem:[#allocation54_spill] sm:$0xff] }
 0x333   : > { %vm4309_vm0 = vcmp.ge.f32.partialorder %v3783_v4, 0.0  ;;  %v4437_v35 = vmul.f32 0.01, %v3783_v4  ;;  %4718 = vmatpush1.bf16.msra.mxu0 %v4637_v0  ;;  %12591 = vst [vmem:[#allocation161_spill] sm:$0xff] %v10322_v28  ;;  %v3582_v38 = vadd.f32 %v12602_v9, %v12601_v37  ;;  %v3592_v18 = vadd.f32 %v12603_v21, %v10133_v36  ;;  %v12604_v0 = vld [vmem:[#allocation28_spill] sm:$0xff]  ;;  %v12627_v36 = vld [vmem:[#allocation119_spill] sm:$0xff] }
 0x334   : > { %v3788_v62 = vpop.f32.mrf.mxu1  ;;  %4719 = vmatprep.subr.bf16.mxu0 %v4634_v50  ;;  %v10332_v24 = vpop.f32.mrf.mxu0  ;;  %v3598_v42 = vadd.f32 %v12604_v0, %v10112_v32  ;;  %v3602_v50 = vadd.f32 %v12607_v15, %v12605_v51  ;;  %v12617_v0 = vld [vmem:[#allocation48_spill] sm:$0xff]  ;;  %v12628_v37 = vld [vmem:[#allocation129_spill] sm:$0xff]  ;;  %v12636_v28 = vld [vmem:[#allocation122_spill] sm:$0xff] }
 0x335   : > { %v10295_v12 = vsel %vm4309_vm0, %v3783_v4, %v4437_v35  ;;  %v10297_v48 = vadd.f32 %v3788_v62, %v3596_v44  ;;  %12594 = vst [vmem:[#allocation40_spill] sm:$0xff] %v10332_v24  ;;  %v12606_v4 = vld [vmem:[#allocation95_spill] sm:$0xff]  ;;  %v12609_v44 = vld [vmem:[#allocation96_spill] sm:$0xff]  ;;  %v3608_v62 = vadd.f32 %v12610_v47, %v12608_v57  ;;  %v12620_v47 = vld [vmem:[#allocation85_spill] sm:$0xff] }
 0x336   : > { %12585 = vst [vmem:[#allocation114_spill] sm:$0xff] %v10295_v12  ;;  %v10301_v6 = vpop.f32.mrf.mxu1  ;;  %v10342_v22 = vpop.f32.mrf.mxu0  ;;  %v3600_v56 = vadd.f32 %v12606_v4, %v12605_v51  ;;  %v3606_v35 = vadd.f32 %v12609_v44, %v12608_v57  ;;  %v12618_v4 = vld [vmem:[#allocation134_spill] sm:$0xff]  ;;  %v12619_v44 = vld [vmem:[#allocation133_spill] sm:$0xff]  ;;  %v3626_v57 = vadd.f32 %v12621_v45, %v12620_v47  ;;  %v12630_v45 = vld [vmem:[#allocation116_spill] sm:$0xff] }
 0x337   : > { %4720 = vmatpush1.bf16.msra.mxu0 %v4633_v25  ;;  %12597 = vst [vmem:[#allocation162_spill] sm:$0xff] %v10342_v22  ;;  %v12611_v25 = vld [vmem:[#allocation137_spill] sm:$0xff]  ;;  %v3620_v15 = vadd.f32 %v12618_v4, %v12617_v0  ;;  %v3622_v59 = vadd.f32 %v12619_v44, %v12617_v0  ;;  %v10395_v4 = vadd.f32 %v12628_v37, %v12627_v36  ;;  %v12637_v37 = vld [vmem:[#allocation44_spill] sm:$0xff] }
 0x338   : > { %v10305_v23 = vpop.f32.mrf.mxu1  ;;  %4721 = vmatprep.subr.bf16.mxu0 %v12587_v1  ;;  %v10349_v52 = vpop.f32.mrf.mxu0  ;;  %v12612_v1 = vld [vmem:[#allocation111_spill] sm:$0xff]  ;;  %v12629_v44 = vld [vmem:[#allocation101_spill] sm:$0xff]  ;;  %v3650_v5 = vadd.f32 %v12637_v37, %v12636_v28  ;;  %v12653_v63 = vld [vmem:[#allocation52_spill] sm:$0xff] }
 0x339   : > { %12599 = vst [vmem:[#allocation154_spill] sm:$0xff] %v10349_v52  ;;  %v3638_v0 = vadd.f32 %v12629_v44, %v12627_v36  ;;  %v12631_v52 = vld [vmem:[#allocation124_spill] sm:$0xff]  ;;  %v12633_v22 = vld [vmem:[#allocation125_spill] sm:$0xff]  ;;  %v10413_v44 = vadd.f32 %v12638_v14, %v12636_v28  ;;  %v12639_v36 = vld [vmem:[#allocation147_spill] sm:$0xff] }
 0x33a   : > { %v10310_v17 = vpop.f32.mrf.mxu1  ;;  %v10353_v34 = vpop.f32.mrf.mxu0  ;;  %v10417_v16 = vadd.f32 %v12640_v39, %v12639_v36  ;;  %v12644_v37 = vld [vmem:[#allocation159_spill] sm:$0xff]  ;;  %v10437_v39 = vadd.f32 %v10301_v6, %v3598_v42  ;;  %v12651_v6 = vld [vmem:[#allocation72_spill] sm:$0xff] }
 0x33b   : > { %4722 = vmatpush1.bf16.msra.mxu0 %v12589_v58  ;;  %12600 = vst [vmem:[#allocation156_spill] sm:$0xff] %v10353_v34  ;;  %v3610_v58 = vadd.f32 %v12612_v1, %v12611_v25  ;;  %v12622_v1 = vld [vmem:[#allocation121_spill] sm:$0xff] }
 0x33c   : > { %v3798_v11 = vpop.f32.mrf.mxu1  ;;  %4723 = vmatprep.subr.bf16.mxu0 %v12590_v26  ;;  %v12613_v26 = vld [vmem:[#allocation73_spill] sm:$0xff]  ;;  %v3628_v51 = vadd.f32 %v12622_v1, %v12620_v47  ;;  %v3640_v1 = vadd.f32 %v12631_v52, %v12630_v45  ;;  %v12632_v47 = vld [vmem:[#allocation110_spill] sm:$0xff]  ;;  %v10420_v52 = vadd.f32 %v10284_v8, %v3592_v18  ;;  %v12646_v8 = vld [vmem:[#allocation112_spill] sm:$0xff] }
 0x33d   : > { %v12647_v18 = vld [vmem:[#allocation158_spill] sm:$0xff]  ;;  %v10450_v10 = vadd.f32 %v3798_v11, %v3606_v35 }
 0x33e   : > { %v10320_v61 = vpop.f32.mrf.mxu1  ;;  %v10441_v20 = vadd.f32 %v12647_v18, %v12646_v8  ;;  %v12652_v18 = vld [vmem:[#allocation80_spill] sm:$0xff]  ;;  %v10471_v11 = vmul.f32 0.01, %v10420_v52 }
 0x33f   : > { %4724 = vmatpush1.bf16.msra.mxu0 %v12592_v33  ;;  %v3612_v33 = vadd.f32 %v12613_v26, %v12611_v25  ;;  %v10387_v26 = vpop.f32.mrf.mxu0  ;;  %v12624_v25 = vld [vmem:[#allocation88_spill] sm:$0xff]  ;;  %v10462_v12 = vadd.f32 %v12653_v63, %v12652_v18  ;;  %v10483_v63 = vadd.f32 %v10305_v23, %v3600_v56 }
 0x340   : > { %v10327_v7 = vpop.f32.mrf.mxu1  ;;  %4725 = vmatprep.subr.bf16.mxu0 %v12593_v43  ;;  %v12614_v43 = vld [vmem:[#allocation74_spill] sm:$0xff]  ;;  %12623 = vst [vmem:[#allocation146_spill] sm:$0xff] %v10387_v26  ;;  %v3642_v26 = vadd.f32 %v12632_v47, %v12630_v45  ;;  %12655 = vst [vmem:[#allocation21_spill] sm:$0xff] %v10471_v11 }
 0x341   : > { %v10434_v28 = vpop.f32.mrf.mxu0 }
 0x342   : > { %v3804_v41 = vpop.f32.mrf.mxu1  ;;  %12645 = vst [vmem:[#allocation148_spill] sm:$0xff] %v10434_v28 }
 0x343   : > { %4726 = vmatpush1.bf16.msra.mxu0 %v12595_v53  ;;  %v12615_v53 = vld [vmem:[#allocation58_spill] sm:$0xff] }
 0x344   : > { %v3808_v40 = vpop.f32.mrf.mxu1  ;;  %4727 = vmatprep.subr.bf16.mxu0 %v12596_v19  ;;  %v3616_v19 = vadd.f32 %v12615_v53, %v12614_v43  ;;  %v12625_v53 = vld [vmem:[#allocation152_spill] sm:$0xff] }
 0x345   : > { %v3630_v32 = vadd.f32 %v12625_v53, %v12624_v25  ;;  %v12634_v53 = vld [vmem:[#allocation115_spill] sm:$0xff] }
 0x346   : > { %v10340_v13 = vpop.f32.mrf.mxu1  ;;  %v3646_v24 = vadd.f32 %v12634_v53, %v12633_v22  ;;  %v12641_v53 = vld [vmem:[#allocation128_spill] sm:$0xff] }
 0x347   : > { %4728 = vmatpush1.bf16.msra.mxu0 %v12598_v30  ;;  %v12616_v30 = vld [vmem:[#allocation138_spill] sm:$0xff]  ;;  %v10424_v45 = vadd.f32 %v12641_v53, %v12639_v36  ;;  %v12648_v36 = vld [vmem:[#allocation151_spill] sm:$0xff] }
 0x348   : > { %v3812_v2 = vpop.f32.mrf.mxu1  ;;  %v3618_v9 = vadd.f32 %v12616_v30, %v12614_v43  ;;  %v12626_v30 = vld [vmem:[#allocation42_spill] sm:$0xff]  ;;  %v10445_v53 = vadd.f32 %v12648_v36, %v12646_v8  ;;  %v10465_v8 = vadd.f32 %v10320_v61, %v3608_v62  ;;  %v10477_v36 = vpop.f32.mrf.mxu0 }
 0x349   : > { %v3632_v43 = vadd.f32 %v12626_v30, %v12624_v25  ;;  %v12635_v30 = vld [vmem:[#allocation43_spill] sm:$0xff]  ;;  %12656 = vst [vmem:[#allocation107_spill] sm:$0xff] %v10477_v36 }
 0x34a   : > { %v10347_v3 = vpop.f32.mrf.mxu1  ;;  %v3648_v25 = vadd.f32 %v12635_v30, %v12633_v22  ;;  %v12642_v30 = vld [vmem:[#allocation130_spill] sm:$0xff]  ;;  %v12643_v22 = vld [vmem:[#allocation113_spill] sm:$0xff]  ;;  %v10486_v61 = vadd.f32 %v10340_v13, %v3618_v9  ;;  %v10502_v23 = vmul.f32 0.01, %v10465_v8  ;;  %v10505_v13 = vadd.f32 %v10327_v7, %v3610_v58  ;;  %v10518_v9 = vpop.f32.mrf.mxu0 }
 0x34b   : > { %v10428_v49 = vadd.f32 %v12643_v22, %v12642_v30  ;;  %v10432_v14 = vadd.f32 %v12644_v37, %v12642_v30  ;;  %v10448_v22 = vadd.f32 %v10310_v17, %v3602_v50  ;;  %v12649_v37 = vld [vmem:[#allocation145_spill] sm:$0xff]  ;;  %v10468_v17 = vadd.f32 %v10236_v60, %v3582_v38  ;;  %12658 = vst [vmem:[#allocation167_spill] sm:$0xff] %v10518_v9 }
 0x34c   : > { %v3818_v55 = vpop.f32.mrf.mxu1  ;;  %v10454_v28 = vadd.f32 %v12650_v27, %v12649_v37  ;;  %v10458_v42 = vadd.f32 %v12651_v6, %v12649_v37  ;;  %v10473_v50 = vadd.f32 %v3804_v41, %v3612_v33  ;;  %v10475_v27 = vadd.f32 %v3808_v40, %v3616_v19 }
 0x34d   : > { %12654 = vst [vmem:[#allocation108_spill] sm:$0xff] %v10468_v17  ;;  %v10480_v37 = vmul.f32 0.01, %v10437_v39  ;;  %v10488_v60 = vadd.f32 %v3812_v2, %v3620_v15  ;;  %v10491_v38 = vmul.f32 0.01, %v10448_v22  ;;  %v10497_v40 = vadd.f32 %v10347_v3, %v3622_v59 }
 0x34e   : > { %v10351_v46 = vpop.f32.mrf.mxu1  ;;  %v10494_v41 = vmul.f32 0.01, %v10450_v10  ;;  %v10499_v62 = vadd.f32 %v3818_v55, %v3626_v57  ;;  %v10513_v19 = vmul.f32 0.01, %v10473_v50  ;;  %v10516_v59 = vmul.f32 0.01, %v10475_v27 }
 0x34f   : > { %12657 = vst [vmem:[#allocation140_spill] sm:$0xff] %v10480_v37  ;;  %v10508_v2 = vadd.f32 %v10351_v46, %v3628_v51  ;;  %v10521_v15 = vmul.f32 0.01, %v10486_v61  ;;  %v10524_v7 = vmul.f32 0.01, %v10488_v60  ;;  %vm4334_vm14 = vcmp.ge.f32.partialorder %v10497_v40, 0.0 }
 0x350   : > { %v10361_v31 = vpop.f32.mrf.mxu1  ;;  %v10530_v58 = vmul.f32 0.01, %v10497_v40  ;;  %vm4330_vm7 = vcmp.ge.f32.partialorder %v10486_v61, 0.0  ;;  %vm4337_vm10 = vcmp.ge.f32.partialorder %v10499_v62, 0.0  ;;  %vm4329_vm0 = vcmp.ge.f32.partialorder %v10475_v27, 0.0 }
 0x351   : > { %v10527_v46 = vadd.f32 %v10361_v31, %v3630_v32  ;;  %vm4338_vm12 = vcmp.ge.f32.partialorder %v10508_v2, 0.0 }
 0x352   : > { %v3824_v21 = vpop.f32.mrf.mxu1 }
 0x353   : > { %v10510_v56 = vadd.f32 %v3824_v21, %v3632_v43  ;;  %v10533_v43 = vmul.f32 0.01, %v10499_v62  ;;  %vm4341_vm2 = vcmp.ge.f32.partialorder %v10527_v46, 0.0 }
 0x354   : > { %v10399_v34 = vpop.f32.mrf.mxu1 }
 0x355   : > { %vm4342_vm15 = vcmp.ge.f32.partialorder %v10510_v56, 0.0  ;;  %v4470_v32 = vmul.f32 0.01, %v10510_v56 }
 0x356   : > { %v3830_v47 = vpop.f32.mrf.mxu1 }
 0x357   : > { %v3831_v3 = vadd.f32 %v3830_v47, %v3638_v0  ;;  %v10537_v47 = vmul.f32 0.01, %v10508_v2 }
 0x358   : > { %v3832_v30 = vpop.f32.mrf.mxu1 }
 0x359   : > { %v3833_v21 = vadd.f32 %v3832_v30, %v3640_v1  ;;  %vm4346_vm5 = vcmp.ge.f32.partialorder %v3831_v3, 0.0  ;;  %v4474_v6 = vmul.f32 0.01, %v3831_v3  ;;  %v10543_v1 = vpop.f32.mrf.mxu0 }
 0x35a   : > { %v3834_v35 = vpop.f32.mrf.mxu1  ;;  %12659 = vst [vmem:[#allocation164_spill] sm:$0xff] %v10543_v1 }
 0x35b   : > { %v3835_v55 = vadd.f32 %v3834_v35, %v3642_v26  ;;  %v4477_v9 = vmul.f32 0.01, %v3833_v21  ;;  %vm4349_vm6 = vcmp.ge.f32.partialorder %v3833_v21, 0.0  ;;  %v10552_v36 = vpop.f32.mrf.mxu0 }
 0x35c   : > { %v3838_v33 = vpop.f32.mrf.mxu1  ;;  %12660 = vst [vmem:[#allocation86_spill] sm:$0xff] %v10552_v36 }
 0x35d   : > { %v3839_v0 = vadd.f32 %v3838_v33, %v3646_v24  ;;  %v4478_v35 = vmul.f32 0.01, %v3835_v55  ;;  %vm4350_vm1 = vcmp.ge.f32.partialorder %v3835_v55, 0.0 }
 0x35e   : > { %v3840_v57 = vpop.f32.mrf.mxu1 }
 0x35f   : > { %v3841_v51 = vadd.f32 %v3840_v57, %v3648_v25  ;;  %v3829_v25 = vadd.f32 %v10399_v34, %v10395_v4  ;;  %vm4353_vm11 = vcmp.ge.f32.partialorder %v3839_v0, 0.0  ;;  %v4606_v17 = vsel %vm4350_vm1, %v3835_v55, %v4478_v35 }
 0x360   : > { %v3842_v26 = vpop.f32.mrf.mxu1 }
 0x361   : > { %v3843_v31 = vadd.f32 %v3842_v26, %v3650_v5  ;;  %v4482_v24 = vmul.f32 0.01, %v3841_v51  ;;  %v4481_v5 = vmul.f32 0.01, %v3839_v0  ;;  %vm4354_vm8 = vcmp.ge.f32.partialorder %v3841_v51, 0.0 }
 0x362   : > { %v3844_v57 = vpop.f32.mrf.mxu1  ;;  %vm4345_vm3 = vcmp.ge.f32.partialorder %v3829_v25, 0.0  ;;  %v4473_v1 = vmul.f32 0.01, %v3829_v25 }
 0x363   : > { %vm4357_vm4 = vcmp.ge.f32.partialorder %v3843_v31, 0.0  ;;  %v4485_v30 = vmul.f32 0.01, %v3843_v31  ;;  %v3845_v33 = vadd.f32 %v3844_v57, %v10413_v44  ;;  %v4610_v54 = vsel %vm4354_vm8, %v3841_v51, %v4482_v24 }
 0x364   : > { %v4074_v34 = vpop.f32.mrf.mxu1  ;;  %v4469_v51 = vmul.f32 0.01, %v10527_v46  ;;  %v4601_v24 = vsel %vm4345_vm3, %v3829_v25, %v4473_v1  ;;  %vm4318_vm8 = vcmp.ge.f32.partialorder %v10448_v22, 0.0  ;;  %vm4314_vm3 = vcmp.ge.f32.partialorder %v10437_v39, 0.0 }
 0x365   : > { %vm4358_vm9 = vcmp.ge.f32.partialorder %v3845_v33, 0.0  ;;  %v4486_v4 = vmul.f32 0.01, %v3845_v33  ;;  %v4075_v26 = vadd.f32 %v4074_v34, %v10417_v16  ;;  %v4613_v44 = vsel %vm4357_vm4, %v3843_v31, %v4485_v30 }
 0x366   : > { %v4076_v57 = vpop.f32.mrf.mxu1  ;;  %v4609_v16 = vsel %vm4353_vm11, %v3839_v0, %v4481_v5  ;;  %v4602_v31 = vsel %vm4346_vm5, %v3831_v3, %v4474_v6  ;;  %vm4322_vm4 = vcmp.ge.f32.partialorder %v10465_v8, 0.0  ;;  %v4605_v30 = vsel %vm4349_vm6, %v3833_v21, %v4477_v9 }
 0x367   : > { %v4077_v18 = vadd.f32 %v4076_v57, %v10424_v45  ;;  %v4614_v11 = vsel %vm4358_vm9, %v3845_v33, %v4486_v4  ;;  %v4363_v34 = vmul.f32 0.01, %v4075_v26  ;;  %v4677_v36 = vpack.c.bf16 %v4613_v44, %v4609_v16 }
 0x368   : > { %v4078_v37 = vpop.f32.mrf.mxu1  ;;  %v4678_v29 = vpack.c.bf16 %v4614_v11, %v4610_v54  ;;  %vm4235_vm13 = vcmp.ge.f32.partialorder %v4075_v26, 0.0  ;;  %v4674_v0 = vpack.c.bf16 %v4606_v17, %v4602_v31  ;;  %v4598_v54 = vsel %vm4342_vm15, %v10510_v56, %v4470_v32  ;;  %v10569_v11 = vpop.f32.mrf.mxu0 }
 0x369   : > { %v4079_v45 = vadd.f32 %v4078_v37, %v10428_v49  ;;  %vm4325_vm5 = vcmp.ge.f32.partialorder %v10505_v13, 0.0  ;;  %v4364_v3 = vmul.f32 0.01, %v4077_v18  ;;  %v4673_v37 = vpack.c.bf16 %v4605_v30, %v4601_v24 }
 0x36a   : > { %v4080_v55 = vpop.f32.mrf.mxu1  ;;  %4729 = vmatprep.subr.bf16.mxu0 %v4678_v29  ;;  %v10575_v29 = vsel %vm4235_vm13, %v4075_v26, %v4363_v34  ;;  %vm4236_vm11 = vcmp.ge.f32.partialorder %v4077_v18, 0.0  ;;  %v4594_v56 = vsel %vm4338_vm12, %v10508_v2, %v10537_v47  ;;  %vm4321_vm15 = vcmp.ge.f32.partialorder %v10450_v10, 0.0  ;;  %v10592_v6 = vpop.f32.mrf.mxu0 }
 0x36b   : > { %vm4239_vm1 = vcmp.ge.f32.partialorder %v4079_v45, 0.0  ;;  %v4367_v9 = vmul.f32 0.01, %v4079_v45  ;;  %v4081_v49 = vadd.f32 %v4080_v55, %v10432_v14  ;;  %4730 = vmatpush2.bf16.msra.mxu0 %v4677_v36  ;;  %12661 = vst [vmem:[#allocation78_spill] sm:$0xff] %v10575_v29  ;;  %vm4333_vm6 = vcmp.ge.f32.partialorder %v10488_v60, 0.0 }
 0x36c   : > { %v4084_v17 = vpop.f32.mrf.mxu1  ;;  %4731 = vmatprep.subr.bf16.mxu0 %v4674_v0  ;;  %v4597_v32 = vsel %vm4341_vm2, %v10527_v46, %v4469_v51  ;;  %v4670_v47 = vpack.c.bf16 %v4598_v54, %v4594_v56  ;;  %v10600_v1 = vsel %vm4236_vm11, %v4077_v18, %v4364_v3  ;;  %v4593_v46 = vsel %vm4337_vm10, %v10499_v62, %v10533_v43  ;;  %v10628_v57 = vpop.f32.mrf.mxu0  ;;  %v12672_v56 = vld [vmem:[#allocation108_spill] sm:$0xff] }
 0x36d   : > { %v10582_v21 = vsel %vm4239_vm1, %v4079_v45, %v4367_v9  ;;  %vm4240_vm9 = vcmp.ge.f32.partialorder %v4081_v49, 0.0  ;;  %v4368_v14 = vmul.f32 0.01, %v4081_v49  ;;  %v4085_v36 = vadd.f32 %v4084_v17, %v10441_v20  ;;  %12663 = vst [vmem:[#allocation51_spill] sm:$0xff] %v10600_v1  ;;  %v12734_v1 = vld [vmem:[#allocation104_spill] sm:$0xff] }
 0x36e   : > { %12662 = vst [vmem:[#allocation23_spill] sm:$0xff] %v10582_v21  ;;  %v4086_v2 = vpop.f32.mrf.mxu1  ;;  %v4590_v20 = vsel %vm4334_vm14, %v10497_v40, %v10530_v58  ;;  %v4589_v18 = vsel %vm4333_vm6, %v10488_v60, %v10524_v7  ;;  %v4669_v58 = vpack.c.bf16 %v4597_v32, %v4593_v46  ;;  %v4453_v43 = vmul.f32 0.01, %v10505_v13  ;;  %v12673_v32 = vld [vmem:[#allocation21_spill] sm:$0xff]  ;;  %v12715_v40 = vld [vmem:[#allocation168_spill] sm:$0xff] }
 0x36f   : > { %v4087_v35 = vadd.f32 %v4086_v2, %v10445_v53  ;;  %4732 = vmatpush2.bf16.msra.mxu0 %v4673_v37  ;;  %v10602_v33 = vsel %vm4240_vm9, %v4081_v49, %v4368_v14  ;;  %v4371_v5 = vmul.f32 0.01, %v4085_v36  ;;  %v4586_v53 = vsel %vm4330_vm7, %v10486_v61, %v10521_v15  ;;  %v12671_v49 = vld [vmem:[#allocation140_spill] sm:$0xff] }
 0x370   : > { %12664 = vst [vmem:[#allocation64_spill] sm:$0xff] %v10602_v33  ;;  %v4088_v4 = vpop.f32.mrf.mxu1  ;;  %4733 = vmatprep.subr.bf16.mxu0 %v4670_v47  ;;  %vm4243_vm12 = vcmp.ge.f32.partialorder %v4085_v36, 0.0  ;;  %v4585_v26 = vsel %vm4329_vm0, %v10475_v27, %v10516_v59  ;;  %v4666_v15 = vpack.c.bf16 %v4590_v20, %v4586_v53  ;;  %vm12665_vm2 = vcmp.ge.f32.partialorder %v10473_v50, 0.0  ;;  %v12735_v33 = vld [vmem:[#allocation86_spill] sm:$0xff] }
 0x371   : > { %v4089_v62 = vadd.f32 %v4088_v4, %v10454_v28  ;;  %v4582_v44 = vsel %vm12665_vm2, %v10473_v50, %v10513_v19  ;;  %v4372_v60 = vmul.f32 0.01, %v4087_v35  ;;  %v4665_v16 = vpack.c.bf16 %v4589_v18, %v4585_v26  ;;  %v12676_v26 = vld [vmem:[#allocation114_spill] sm:$0xff] }
 0x372   : > { %v4090_v61 = vpop.f32.mrf.mxu1  ;;  %v10631_v34 = vsel %vm4243_vm12, %v4085_v36, %v4371_v5  ;;  %vm4244_vm7 = vcmp.ge.f32.partialorder %v4087_v35, 0.0  ;;  %v4578_v59 = vsel %vm4322_vm4, %v10465_v8, %v10502_v23  ;;  %v4581_v30 = vsel %vm4325_vm5, %v10505_v13, %v4453_v43  ;;  %v10650_v8 = vpop.f32.mrf.mxu0 }
 0x373   : > { %vm4247_vm14 = vcmp.ge.f32.partialorder %v4089_v62, 0.0  ;;  %v4375_v7 = vmul.f32 0.01, %v4089_v62  ;;  %v4091_v28 = vadd.f32 %v4090_v61, %v10458_v42  ;;  %4734 = vmatpush2.bf16.msra.mxu0 %v4669_v58  ;;  %12666 = vst [vmem:[#allocation160_spill] sm:$0xff] %v10631_v34  ;;  %v4445_v42 = vmul.f32 0.01, %v10483_v63 }
 0x374   : > { %v4094_v27 = vpop.f32.mrf.mxu1  ;;  %4735 = vmatprep.subr.bf16.mxu0 %v4666_v15  ;;  %v4662_v24 = vpack.c.bf16 %v4582_v44, %v4578_v59  ;;  %vm4317_vm13 = vcmp.ge.f32.partialorder %v10483_v63, 0.0  ;;  %v10658_v23 = vsel %vm4244_vm7, %v4087_v35, %v4372_v60  ;;  %vm4310_vm0 = vcmp.ge.f32.partialorder %v10420_v52, 0.0  ;;  %v10685_v36 = vpop.f32.mrf.mxu0  ;;  %v12677_v61 = vld [vmem:[#allocation38_spill] sm:$0xff]  ;;  %v12683_v59 = vld [vmem:[#allocation139_spill] sm:$0xff] }
 0x375   : > { %v10637_v50 = vsel %vm4247_vm14, %v4089_v62, %v4375_v7  ;;  %vm4248_vm10 = vcmp.ge.f32.partialorder %v4091_v28, 0.0  ;;  %v4376_v19 = vmul.f32 0.01, %v4091_v28  ;;  %v10640_v31 = vadd.f32 %v4094_v27, %v10462_v12  ;;  %12668 = vst [vmem:[#allocation61_spill] sm:$0xff] %v10658_v23  ;;  %v12679_v7 = vld [vmem:[#allocation26_spill] sm:$0xff] }
 0x376   : > { %12667 = vst [vmem:[#allocation157_spill] sm:$0xff] %v10637_v50  ;;  %v10648_v51 = vpop.f32.mrf.mxu1  ;;  %v4574_v12 = vsel %vm4318_vm8, %v10448_v22, %v10491_v38  ;;  %v4441_v55 = vmul.f32 0.01, %v10297_v48  ;;  %v4577_v0 = vsel %vm4321_vm15, %v10450_v10, %v10494_v41  ;;  %v12670_v38 = vld [vmem:[#allocation19_spill] sm:$0xff]  ;;  %vm4313_vm4 = vcmp.ge.f32.partialorder %v10297_v48, 0.0  ;;  %v10700_v53 = vpop.f32.mrf.mxu0 }
 0x377   : > { %4736 = vmatpush2.bf16.msra.mxu0 %v4665_v16  ;;  %v10660_v13 = vsel %vm4248_vm10, %v4091_v28, %v4376_v19  ;;  %v4434_v3 = vmul.f32 0.01, %v12670_v38  ;;  %v4661_v9 = vpack.c.bf16 %v4581_v30, %v4577_v0  ;;  %v4570_v37 = vsel %vm4314_vm3, %v10437_v39, %v12671_v49  ;;  %v12680_v28 = vld [vmem:[#allocation22_spill] sm:$0xff]  ;;  %v12684_v19 = vld [vmem:[#allocation77_spill] sm:$0xff]  ;;  %v10743_v49 = vld [vmem:[%s11533_s7] sm:$0xff]  }
 0x378   : > { %12669 = vst [vmem:[#allocation153_spill] sm:$0xff] %v10660_v13  ;;  %v10668_v54 = vpop.f32.mrf.mxu1  ;;  %4737 = vmatprep.subr.bf16.mxu0 %v4662_v24  ;;  %vm4306_vm5 = vcmp.ge.f32.partialorder %v12670_v38, 0.0  ;;  %v4573_v10 = vsel %vm4317_vm13, %v10483_v63, %v4445_v42  ;;  %v4658_v17 = vpack.c.bf16 %v4574_v12, %v4570_v37  ;;  %v4430_v14 = vmul.f32 0.01, %v12672_v56  ;;  %v12674_v63 = vld [vmem:[#allocation29_spill] sm:$0xff]  ;;  %v10708_v43 = vpop.f32.mrf.mxu0  ;;  %v12686_v24 = vld [vmem:[#allocation15_spill] sm:$0xff] }
 0x379   : > { %v4566_v2 = vsel %vm4310_vm0, %v10420_v52, %v12673_v32  ;;  %vm4302_vm1 = vcmp.ge.f32.partialorder %v12672_v56, 0.0  ;;  %v4569_v39 = vsel %vm4313_vm4, %v10297_v48, %v4441_v55  ;;  %v4426_v35 = vmul.f32 0.01, %v12674_v63  ;;  %12675 = vst [vmem:[#allocation149_spill] sm:$0xff] %v10708_v43  ;;  %v12688_v0 = vld [vmem:[#allocation17_spill] sm:$0xff]  ;;  %12690 = vst [vmem:[#allocation24_spill] sm:$0xff] %v10743_v49 }
 0x37a   : > { %v10682_v41 = vpop.f32.mrf.mxu1  ;;  %v4657_v20 = vpack.c.bf16 %v4573_v10, %v4569_v39  ;;  %v4562_v46 = vsel %vm4306_vm5, %v12670_v38, %v4434_v3  ;;  %vm4298_vm8 = vcmp.ge.f32.partialorder %v12674_v63, 0.0  ;;  %v4558_v52 = vsel %vm4302_vm1, %v12672_v56, %v4430_v14  ;;  %v10721_v27 = vpop.f32.mrf.mxu0  ;;  %v12693_v56 = vld [vmem:[#allocation47_spill] sm:$0xff]  ;;  %v12694_v32 = vld [vmem:[#allocation120_spill] sm:$0xff] }
 0x37b   : > { %4738 = vmatpush2.bf16.msra.mxu0 %v4661_v9  ;;  %v4654_v4 = vpack.c.bf16 %v4566_v2, %v4562_v46  ;;  %v4554_v48 = vsel %vm4298_vm8, %v12674_v63, %v4426_v35  ;;  %v12678_v15 = vpack.c.bf16 %v12676_v26, %v12677_v61  ;;  %v10719_v16 = vrot.slane %v12680_v28, %v12679_v7  ;;  %v12695_v2 = vld [vmem:[#allocation135_spill] sm:$0xff]  ;;  %v12696_v63 = vld [vmem:[#allocation66_spill] sm:$0xff]  ;;  %v12701_v26 = vld [vmem:[#allocation33_spill] sm:$0xff] }
 0x37c   : > { %v10693_v47 = vpop.f32.mrf.mxu1  ;;  %4739 = vmatprep.subr.bf16.mxu0 %v4658_v17  ;;  %v4650_v62 = vpack.c.bf16 %v4558_v52, %v4554_v48  ;;  %12682 = vst [vmem:[#allocation31_spill] sm:$0xff] %v10721_v27  ;;  %v12685_v42 = vpack.c.bf16 %v12683_v59, %v12684_v19  ;;  %v10732_v55 = vpop.f32.mrf.mxu0  ;;  %v12689_v38 = vmov 0   ;;  %v12692_v17 = vld [vmem:[#allocation80_spill] sm:$0xff]  ;;  %v3906_v39 = vadd.f32 %v12695_v2, %v12694_v32  ;;  %v12698_v46 = vld [vmem:[#allocation50_spill] sm:$0xff]  ;;  %v12703_v28 = vld [vmem:[#allocation103_spill] sm:$0xff] }
 0x37d   : > { %12681 = vst [vmem:[#allocation53_spill] sm:$0xff] %v10719_v16  ;;  %12687 = vst [vmem:[#allocation67_spill] sm:$0xff] %v10732_v55  ;;  %v3904_v14 = vadd.f32 %v12693_v56, %v12692_v17  ;;  %v3908_v35 = vadd.f32 %v12696_v63, %v12694_v32  ;;  %v12699_v52 = vld [vmem:[#allocation132_spill] sm:$0xff]  ;;  %vm12702_vm11 = vcmask 130048   ;;  %v12704_v19 = vld [vmem:[#allocation59_spill] sm:$0xff]  ;;  %v10826_v34 = vadd.f32 %v12735_v33, %v12734_v1 }
 0x37e   : > { %v10698_v5 = vpop.f32.mrf.mxu1  ;;  %v10745_v37 = vpop.f32.mrf.mxu0  ;;  %v12707_v56 = vld [vmem:[#allocation82_spill] sm:$0xff]  ;;  %v12708_v32 = vld [vmem:[#allocation123_spill] sm:$0xff]  ;;  %v12718_v7 = vld [vmem:[#allocation161_spill] sm:$0xff] }
 0x37f   : > { %4740 = vmatpush2.bf16.msra.mxu0 %v4657_v20  ;;  %12691 = vst [vmem:[#allocation141_spill] sm:$0xff] %v10745_v37  ;;  %v12697_v20 = vld [vmem:[#allocation41_spill] sm:$0xff]  ;;  %v3926_v2 = vadd.f32 %v12708_v32, %v12707_v56  ;;  %v12717_v22 = vld [vmem:[#allocation131_spill] sm:$0xff]  ;;  %v12723_v37 = vld [vmem:[#allocation126_spill] sm:$0xff] }
 0x380   : > { %v10703_v18 = vpop.f32.mrf.mxu1  ;;  %4741 = vmatprep.subr.bf16.mxu0 %v4654_v4  ;;  %v3912_v4 = vadd.f32 %v12698_v46, %v12697_v20  ;;  %v3914_v48 = vadd.f32 %v12699_v52, %v12697_v20  ;;  %v10771_v63 = vpop.f32.mrf.mxu0  ;;  %v12710_v20 = vld [vmem:[#allocation98_spill] sm:$0xff]  ;;  %v12711_v52 = vld [vmem:[#allocation35_spill] sm:$0xff]  ;;  %vm12739_vm15 = vmmov %vm12702_vm11 }
 0x381   : > { %12709 = vst [vmem:[#allocation106_spill] sm:$0xff] %v10771_v63  ;;  %v3928_v46 = vadd.f32 %v12710_v20, %v12707_v56  ;;  %v12719_v56 = vld [vmem:[#allocation40_spill] sm:$0xff]  ;;  %v12725_v27 = vld [vmem:[#allocation146_spill] sm:$0xff]  ;;  %v12737_v33 = vld [vmem:[#allocation127_spill] sm:$0xff] }
 0x382   : > { %v10706_v58 = vpop.f32.mrf.mxu1  ;;  %v3944_v20 = vadd.f32 %v12719_v56, %v12717_v22  ;;  %v3954_v43 = vadd.f32 %v12725_v27, %v12723_v37  ;;  %v12729_v56 = vld [vmem:[#allocation107_spill] sm:$0xff]  ;;  %vm12745_vm12 = vmmov %vm12702_vm11 }
 0x383   : > { %4742 = vmatpush2.bf16.msra.mxu0 %v12678_v15 }
 0x384   : > { %v10713_v44 = vpop.f32.mrf.mxu1  ;;  %4743 = vmatprep.subr.bf16.mxu0 %v4650_v62  ;;  %v12700_v62 = vld [vmem:[#allocation155_spill] sm:$0xff] }
 0x385   : > { %v3916_v61 = vadd.f32 %v12701_v26, %v12700_v62  ;;  %v3918_v59 = vadd.f32 %v12703_v28, %v12700_v62  ;;  %v12712_v26 = vld [vmem:[#allocation34_spill] sm:$0xff]  ;;  %v12713_v62 = vld [vmem:[#allocation105_spill] sm:$0xff] }
 0x386   : > { %v10715_v60 = vpop.f32.mrf.mxu1  ;;  %v3932_v25 = vadd.f32 %v12712_v26, %v12711_v52  ;;  %v3934_v28 = vadd.f32 %v12713_v62, %v12711_v52  ;;  %v12721_v26 = vld [vmem:[#allocation162_spill] sm:$0xff] }
 0x387   : > { %4744 = vmatpush2.bf16.msra.mxu0 %v12685_v42  ;;  %v12705_v42 = vld [vmem:[#allocation69_spill] sm:$0xff]  ;;  %v12722_v52 = vld [vmem:[#allocation154_spill] sm:$0xff] }
 0x388   : > { %v10726_v30 = vpop.f32.mrf.mxu1  ;;  %4974 = vmatprep.subr.bf16.mxu0 %v12686_v24  ;;  %v3922_v24 = vadd.f32 %v12705_v42, %v12704_v19  ;;  %v12714_v42 = vld [vmem:[#allocation99_spill] sm:$0xff] }
 0x389   : > { %v3936_v45 = vadd.f32 %v12715_v40, %v12714_v42  ;;  %v12724_v40 = vld [vmem:[#allocation156_spill] sm:$0xff] }
 0x38a   : > { %v10729_v12 = vpop.f32.mrf.mxu1  ;;  %4746 = vmatmul.mubr.bf16.vlgmr.msra.gmra.mxu0 %v10719_v16  ;;  %v12720_v16 = vld [vmem:[#allocation143_spill] sm:$0xff]  ;;  %v3952_v55 = vadd.f32 %v12724_v40, %v12723_v37  ;;  %v12732_v40 = vld [vmem:[#allocation164_spill] sm:$0xff]  ;;  %v10819_v37 = vpop.f32.mrf.mxu0 }
 0x38b   : > { %4975 = vmatpush1.bf16.msra.mxu0 %v12688_v0  ;;  %4992 = vmatprep.mubr.bf16.mxu0 %v12689_v38  ;;  %v12706_v0 = vld [vmem:[#allocation30_spill] sm:$0xff]  ;;  %v3946_v63 = vadd.f32 %v12721_v26, %v12720_v16  ;;  %v3948_v62 = vadd.f32 %v12722_v52, %v12720_v16  ;;  %v12730_v16 = vld [vmem:[#allocation25_spill] sm:$0xff]  ;;  %v12731_v52 = vld [vmem:[#allocation167_spill] sm:$0xff]  ;;  %12733 = vst [vmem:[#allocation65_spill] sm:$0xff] %v10819_v37 }
 0x38c   : > { %v10736_v3 = vpop.f32.mrf.mxu1  ;;  %v3924_v17 = vadd.f32 %v12706_v0, %v12704_v19  ;;  %v12716_v0 = vld [vmem:[#allocation39_spill] sm:$0xff]  ;;  %v10813_v21 = vadd.f32 %v12731_v52, %v12730_v16  ;;  %v10817_v27 = vadd.f32 %v12732_v40, %v12730_v16  ;;  %v10836_v52 = vadd.f32 %v10693_v47, %v3912_v4  ;;  %v12736_v40 = vld [vmem:[#allocation94_spill] sm:$0xff] }
 0x38d   : > { %v3938_v32 = vadd.f32 %v12716_v0, %v12714_v42  ;;  %v12726_v42 = vld [vmem:[#allocation46_spill] sm:$0xff]  ;;  %v12727_v0 = vld [vmem:[#allocation148_spill] sm:$0xff]  ;;  %v10840_v37 = vadd.f32 %v10592_v6, %v12736_v40  ;;  %v10862_v6 = vadd.f32 %v10706_v58, %v3918_v59  ;;  %v10881_v58 = vadd.f32 %v10726_v30, %v3926_v2 }
 0x38e   : > { %v10738_v9 = vpop.f32.mrf.mxu1  ;;  %v3956_v29 = vadd.f32 %v12727_v0, %v12726_v42  ;;  %v10809_v26 = vadd.f32 %v12729_v56, %v12726_v42  ;;  %v10822_v0 = vadd.f32 %v10648_v51, %v3904_v14  ;;  %v10830_v42 = vadd.f32 %v10569_v11, %v12734_v1 }
 0x38f   : > { %v10833_v56 = vadd.f32 %v10682_v41, %v3908_v35  ;;  %v10844_v51 = vadd.f32 %v10628_v57, %v12736_v40  ;;  %v10848_v14 = vadd.f32 %v10650_v8, %v12737_v33  ;;  %v10851_v11 = vadd.f32 %v10698_v5, %v3914_v48  ;;  %v12738_v41 = vld [vmem:[#allocation93_spill] sm:$0xff]  ;;  %v10869_v8 = vpop.f32.mrf.mxu0 }
 0x390   : > { %v10747_v10 = vpop.f32.mrf.mxu1  ;;  %v10855_v1 = vadd.f32 %v10685_v36, %v12737_v33  ;;  %v10859_v47 = vadd.f32 %v10700_v53, %v12738_v41  ;;  %v10865_v57 = vadd.f32 %v10713_v44, %v3922_v24  ;;  %12740 = vst [vmem:[#allocation45_spill] sm:$0xff] %v10869_v8  ;;  %v10872_v5 = vmul.f32 0.01, %v10822_v0 }
 0x391   : > { %v10875_v36 = vadd.f32 %v10668_v54, %v3906_v39  ;;  %v10878_v53 = vadd.f32 %v10715_v60, %v3924_v17  ;;  %v10885_v44 = vmul.f32 0.01, %v10833_v56  ;;  %v10888_v4 = vmul.f32 0.01, %v10836_v52 }
 0x392   : > { %v4130_v15 = vpop.f32.mrf.mxu1  ;;  %6070 = vmatmul.mubr.msk.bf16.vlgmr.msra.gmra.mxu0 %vm12702_vm11, %v10743_v49  ;;  %v10788_v49 = vadd.f32 %v12718_v7, %v12717_v22  ;;  %v10805_v22 = vld [vmem:[%s11533_s7 + $0x8] sm:$0xff]   ;;  %12741 = vst [vmem:[#allocation62_spill] sm:$0xff] %v10872_v5  ;;  %v10891_v48 = vadd.f32 %v10729_v12, %v3928_v46  ;;  %v10894_v54 = vadd.f32 %v10736_v3, %v3932_v25  ;;  %v10897_v60 = vmul.f32 0.01, %v10851_v11  ;;  %v10916_v46 = vld [vmem:[%s11533_s7 + $0x10] sm:$0xff]  }
 0x393   : > { %5002 = vmatprep.mubr.bf16.mxu0 %v12689_v38  ;;  %12728 = vst [vmem:[#allocation90_spill] sm:$0xff] %v10805_v22  ;;  %12742 = vst [vmem:[#allocation84_spill] sm:$0xff] %v10888_v4  ;;  %v10900_v30 = vadd.f32 %v10703_v18, %v3916_v61  ;;  %v10903_v59 = vadd.f32 %v10738_v9, %v3934_v28  ;;  %v10905_v24 = vadd.f32 %v4130_v15, %v3938_v32  ;;  %v10918_v18 = vpop.f32.mrf.mxu0 }
 0x394   : > { %v10782_v19 = vpop.f32.mrf.mxu1  ;;  %v10908_v17 = vmul.f32 0.01, %v10862_v6  ;;  %v10911_v12 = vmul.f32 0.01, %v10865_v57  ;;  %12743 = vst [vmem:[#allocation32_spill] sm:$0xff] %v10916_v46  ;;  %12744 = vst [vmem:[#allocation142_spill] sm:$0xff] %v10918_v18  ;;  %v10927_v15 = vadd.f32 %v10747_v10, %v3936_v45 }
 0x395   : > { %v10921_v9 = vmul.f32 0.01, %v10878_v53  ;;  %v10924_v61 = vmul.f32 0.01, %v10881_v58  ;;  %v10930_v32 = vmul.f32 0.01, %v10891_v48 }
 0x396   : > { %v4136_v7 = vpop.f32.mrf.mxu1  ;;  %vm4276_vm9 = vcmp.ge.f32.partialorder %v10903_v59, 0.0  ;;  %v10937_v33 = vmul.f32 0.01, %v10903_v59  ;;  %vm4280_vm3 = vcmp.ge.f32.partialorder %v10905_v24, 0.0  ;;  %v4408_v45 = vmul.f32 0.01, %v10905_v24 }
 0x397   : > { %v4137_v25 = vadd.f32 %v4136_v7, %v3944_v20  ;;  %v10933_v20 = vmul.f32 0.01, %v10894_v54  ;;  %vm4279_vm2 = vcmp.ge.f32.partialorder %v10927_v15, 0.0  ;;  %vm4272_vm7 = vcmp.ge.f32.partialorder %v10891_v48, 0.0  ;;  %v10958_v18 = vld [vmem:[%s11533_s7 + $0x18] sm:$0xff]  }
 0x398   : > { %v4138_v16 = vpop.f32.mrf.mxu1  ;;  %vm4268_vm0 = vcmp.ge.f32.partialorder %v10878_v53, 0.0  ;;  %vm4275_vm4 = vcmp.ge.f32.partialorder %v10894_v54, 0.0  ;;  %12747 = vst [vmem:[#allocation136_spill] sm:$0xff] %v10958_v18 }
 0x399   : > { %vm4284_vm6 = vcmp.ge.f32.partialorder %v4137_v25, 0.0 }
 0x39a   : > { %v4140_v35 = vpop.f32.mrf.mxu1  ;;  %6071 = vmatmul.mubr.msk.bf16.gmra.mxu0 %vm12739_vm15, %v10805_v22 }
 0x39b   : > { %5012 = vmatprep.mubr.bf16.mxu0 %v12689_v38  ;;  %v4141_v3 = vadd.f32 %v4140_v35, %v3948_v62  ;;  %v4139_v62 = vadd.f32 %v4138_v16, %v3946_v63  ;;  %v4412_v35 = vmul.f32 0.01, %v4137_v25 }
 0x39c   : > { %v4144_v39 = vpop.f32.mrf.mxu1 }
 0x39d   : > { %v4145_v7 = vadd.f32 %v4144_v39, %v3952_v55  ;;  %v10945_v55 = vpop.f32.mrf.mxu0  ;;  %vm4288_vm10 = vcmp.ge.f32.partialorder %v4141_v3, 0.0  ;;  %vm4287_vm11 = vcmp.ge.f32.partialorder %v4139_v62, 0.0  ;;  %v4540_v5 = vsel %vm4284_vm6, %v4137_v25, %v4412_v35 }
 0x39e   : > { %v4146_v2 = vpop.f32.mrf.mxu1  ;;  %12746 = vst [vmem:[#allocation87_spill] sm:$0xff] %v10945_v55  ;;  %v4536_v25 = vsel %vm4280_vm3, %v10905_v24, %v4408_v45  ;;  %vm4263_vm6 = vcmp.ge.f32.partialorder %v10900_v30, 0.0  ;;  %v4532_v24 = vsel %vm4276_vm9, %v10903_v59, %v10937_v33  ;;  %vm4259_vm3 = vcmp.ge.f32.partialorder %v10836_v52, 0.0 }
 0x39f   : > { %v4147_v28 = vadd.f32 %v4146_v2, %v3954_v43  ;;  %v4135_v43 = vadd.f32 %v10782_v19, %v10788_v49  ;;  %v4416_v2 = vmul.f32 0.01, %v4141_v3  ;;  %v4419_v49 = vmul.f32 0.01, %v4145_v7  ;;  %v10960_v8 = vpop.f32.mrf.mxu0 }
 0x3a0   : > { %v4148_v40 = vpop.f32.mrf.mxu1  ;;  %vm4291_vm5 = vcmp.ge.f32.partialorder %v4145_v7, 0.0  ;;  %12748 = vst [vmem:[#allocation144_spill] sm:$0xff] %v10960_v8  ;;  %v4640_v33 = vpack.c.bf16 %v4536_v25, %v4532_v24 }
 0x3a1   : > { %v4149_v10 = vadd.f32 %v4148_v40, %v3956_v29  ;;  %v4420_v63 = vmul.f32 0.01, %v4147_v28  ;;  %v4415_v29 = vmul.f32 0.01, %v4139_v62  ;;  %vm4292_vm13 = vcmp.ge.f32.partialorder %v4147_v28, 0.0  ;;  %v10979_v35 = vpop.f32.mrf.mxu0 }
 0x3a2   : > { %v4150_v22 = vpop.f32.mrf.mxu1  ;;  %6072 = vmatmul.mubr.msk.bf16.gmra.mxu0 %vm12745_vm12, %v10916_v46  ;;  %vm4283_vm8 = vcmp.ge.f32.partialorder %v4135_v43, 0.0  ;;  %vm4267_vm12 = vcmp.ge.f32.partialorder %v10865_v57, 0.0  ;;  %v4544_v50 = vsel %vm4288_vm10, %v4141_v3, %v4416_v2  ;;  %vm12749_vm10 = vcmask 130048  }
 0x3a3   : > { %vm4295_vm14 = vcmp.ge.f32.partialorder %v4149_v10, 0.0  ;;  %v4423_v16 = vmul.f32 0.01, %v4149_v10  ;;  %v4151_v39 = vadd.f32 %v4150_v22, %v10809_v26  ;;  %5022 = vmatprep.mubr.bf16.mxu0 %v12689_v38  ;;  %v4411_v22 = vmul.f32 0.01, %v4135_v43 }
 0x3a4   : > { %v4154_v19 = vpop.f32.mrf.mxu1  ;;  %v4543_v8 = vsel %vm4287_vm11, %v4139_v62, %v4415_v29  ;;  %vm4252_vm11 = vcmp.ge.f32.partialorder %v10822_v0, 0.0 }
 0x3a5   : > { %vm4296_vm1 = vcmp.ge.f32.partialorder %v4151_v39, 0.0  ;;  %v4424_v40 = vmul.f32 0.01, %v4151_v39  ;;  %v4155_v46 = vadd.f32 %v4154_v19, %v10813_v21  ;;  %v4551_v26 = vsel %vm4295_vm14, %v4149_v10, %v4423_v16 }
 0x3a6   : > { %v4156_v55 = vpop.f32.mrf.mxu1  ;;  %v4548_v21 = vsel %vm4292_vm13, %v4147_v28, %v4420_v63  ;;  %v4547_v10 = vsel %vm4291_vm5, %v4145_v7, %v4419_v49  ;;  %vm4260_vm14 = vcmp.ge.f32.partialorder %v10851_v11, 0.0  ;;  %v4407_v28 = vmul.f32 0.01, %v10927_v15 }
 0x3a7   : > { %v4157_v41 = vadd.f32 %v4156_v55, %v10817_v27  ;;  %v4552_v19 = vsel %vm4296_vm1, %v4151_v39, %v4424_v40  ;;  %v4427_v16 = vmul.f32 0.01, %v4155_v46  ;;  %v4647_v4 = vpack.c.bf16 %v4551_v26, %v4547_v10 }
 0x3a8   : > { %v4158_v23 = vpop.f32.mrf.mxu1  ;;  %v4648_v13 = vpack.c.bf16 %v4552_v19, %v4548_v21  ;;  %vm4299_vm15 = vcmp.ge.f32.partialorder %v4155_v46, 0.0  ;;  %v4539_v55 = vsel %vm4283_vm8, %v4135_v43, %v4411_v22  ;;  %v4644_v7 = vpack.c.bf16 %v4544_v50, %v4540_v5  ;;  %v11003_v43 = vpop.f32.mrf.mxu0 }
 0x3a9   : > { %v4159_v27 = vadd.f32 %v4158_v23, %v10826_v34  ;;  %v4428_v62 = vmul.f32 0.01, %v4157_v41  ;;  %vm4256_vm5 = vcmp.ge.f32.partialorder %v10833_v56, 0.0  ;;  %v10986_v50 = vsel %vm4299_vm15, %v4155_v46, %v4427_v16  ;;  %v12783_v46 = vld [vmem:[#allocation144_spill] sm:$0xff] }
 0x3aa   : > { %v4160_v3 = vpop.f32.mrf.mxu1  ;;  %4754 = vmatprep.subr.bf16.mxu1 %v4648_v13  ;;  %6073 = vmatmul.mubr.msk.bf16.gmra.mxu0 %vm12749_vm10, %v10958_v18  ;;  %v4643_v13 = vpack.c.bf16 %v4543_v8, %v4539_v55  ;;  %12750 = vst [vmem:[#allocation100_spill] sm:$0xff] %v10986_v50  ;;  %vm4300_vm1 = vcmp.ge.f32.partialorder %v4157_v41, 0.0  ;;  %vm4271_vm15 = vcmp.ge.f32.partialorder %v10881_v58, 0.0  ;;  %v4535_v8 = vsel %vm4279_vm2, %v10927_v15, %v4407_v28  ;;  %v11039_v26 = vpop.f32.mrf.mxu0  ;;  %v12787_v18 = vld [vmem:[#allocation116_spill] sm:$0xff] }
 0x3ab   : > { %vm4303_vm13 = vcmp.ge.f32.partialorder %v4159_v27, 0.0  ;;  %v4431_v34 = vmul.f32 0.01, %v4159_v27  ;;  %v4161_v23 = vadd.f32 %v4160_v3, %v10830_v42  ;;  %4755 = vmatpush1.bf16.msra.mxu1 %v4647_v4  ;;  %5295 = vmatprep.mubr.bf16.mxu0 %v12689_v38  ;;  %v11011_v63 = vsel %vm4300_vm1, %v4157_v41, %v4428_v62 }
 0x3ac   : > { %v4164_v5 = vpop.f32.mrf.mxu1  ;;  %4756 = vmatprep.subr.bf16.mxu1 %v4644_v7  ;;  %12752 = vst [vmem:[#allocation89_spill] sm:$0xff] %v11011_v63  ;;  %v4531_v15 = vsel %vm4275_vm4, %v10894_v54, %v10933_v20  ;;  %v4527_v41 = vsel %vm4271_vm15, %v10881_v58, %v10924_v61  ;;  %v4391_v20 = vmul.f32 0.01, %v10900_v30  ;;  %v4523_v40 = vsel %vm4267_vm12, %v10865_v57, %v10911_v12  ;;  %v12754_v7 = vld [vmem:[#allocation84_spill] sm:$0xff] }
 0x3ad   : > { %v10993_v42 = vsel %vm4303_vm13, %v4159_v27, %v4431_v34  ;;  %vm4304_vm8 = vcmp.ge.f32.partialorder %v4161_v23, 0.0  ;;  %v4432_v4 = vmul.f32 0.01, %v4161_v23  ;;  %v4165_v45 = vadd.f32 %v4164_v5, %v10840_v37  ;;  %v12785_v27 = vld [vmem:[#allocation88_spill] sm:$0xff] }
 0x3ae   : > { %12751 = vst [vmem:[#allocation91_spill] sm:$0xff] %v10993_v42  ;;  %v4166_v59 = vpop.f32.mrf.mxu1  ;;  %v4528_v37 = vsel %vm4272_vm7, %v10891_v48, %v10930_v32  ;;  %v4639_v32 = vpack.c.bf16 %v4535_v8, %v4531_v15  ;;  %vm12753_vm2 = vcmp.ge.f32.partialorder %v10862_v6, 0.0  ;;  %v4635_v21 = vpack.c.bf16 %v4527_v41, %v4523_v40  ;;  %v12757_v15 = vld [vmem:[#allocation61_spill] sm:$0xff] }
 0x3af   : > { %v4167_v2 = vadd.f32 %v4166_v59, %v10844_v51  ;;  %4757 = vmatpush1.bf16.msra.mxu1 %v4643_v13  ;;  %v11013_v39 = vsel %vm4304_vm8, %v4161_v23, %v4432_v4  ;;  %v4435_v29 = vmul.f32 0.01, %v4165_v45  ;;  %v4524_v51 = vsel %vm4268_vm0, %v10878_v53, %v10921_v9 }
 0x3b0   : > { %v4168_v49 = vpop.f32.mrf.mxu1  ;;  %4758 = vmatprep.subr.bf16.mxu1 %v4640_v33  ;;  %vm4307_vm9 = vcmp.ge.f32.partialorder %v4165_v45, 0.0  ;;  %v4636_v9 = vpack.c.bf16 %v4528_v37, %v4524_v51  ;;  %v4520_v22 = vsel %vm12753_vm2, %v10862_v6, %v10908_v17  ;;  %v4516_v12 = vsel %vm4260_vm14, %v10851_v11, %v10897_v60  ;;  %v11061_v11 = vpop.f32.mrf.mxu0  ;;  %v12756_v37 = vld [vmem:[#allocation153_spill] sm:$0xff]  ;;  %v12760_v51 = vld [vmem:[#allocation160_spill] sm:$0xff] }
 0x3b1   : > { %v4169_v54 = vadd.f32 %v4168_v49, %v10848_v14  ;;  %v4436_v58 = vmul.f32 0.01, %v4167_v2  ;;  %v11042_v19 = vsel %vm4307_vm9, %v4165_v45, %v4435_v29  ;;  %vm4308_vm0 = vcmp.ge.f32.partialorder %v4167_v2, 0.0  ;;  %v12759_v49 = vld [vmem:[#allocation157_spill] sm:$0xff] }
 0x3b2   : > { %v4170_v53 = vpop.f32.mrf.mxu1  ;;  %v4519_v16 = vsel %vm4263_vm6, %v10900_v30, %v4391_v20  ;;  %v4632_v55 = vpack.c.bf16 %v4520_v22, %v4516_v12  ;;  %vm4255_vm12 = vcmp.ge.f32.partialorder %v10875_v36, 0.0  ;;  %v4379_v3 = vmul.f32 0.01, %v10640_v31  ;;  %v12766_v22 = vld [vmem:[#allocation78_spill] sm:$0xff] }
 0x3b3   : > { %vm4311_vm7 = vcmp.ge.f32.partialorder %v4169_v54, 0.0  ;;  %v4439_v61 = vmul.f32 0.01, %v4169_v54  ;;  %v4171_v14 = vadd.f32 %v4170_v53, %v10855_v1  ;;  %4759 = vmatpush1.bf16.msra.mxu1 %v4639_v32  ;;  %v4383_v1 = vmul.f32 0.01, %v10875_v36  ;;  %v12762_v32 = vld [vmem:[#allocation64_spill] sm:$0xff] }
 0x3b4   : > { %v4174_v57 = vpop.f32.mrf.mxu1  ;;  %4760 = vmatprep.subr.bf16.mxu1 %v4636_v9  ;;  %v11069_v60 = vsel %vm4308_vm0, %v4167_v2, %v4436_v58  ;;  %v4515_v25 = vsel %vm4259_vm3, %v10836_v52, %v12754_v7  ;;  %vm4251_vm14 = vcmp.ge.f32.partialorder %v10640_v31, 0.0  ;;  %v4017_v52 = vpop.f32.mrf.mxu0  ;;  %v12761_v41 = vpack.c.bf16 %v12759_v49, %v12760_v51  ;;  %v12765_v9 = vld [vmem:[#allocation23_spill] sm:$0xff]  ;;  %v12775_v51 = vld [vmem:[#allocation106_spill] sm:$0xff] }
 0x3b5   : > { %v11048_v6 = vsel %vm4311_vm7, %v4169_v54, %v4439_v61  ;;  %vm4312_vm4 = vcmp.ge.f32.partialorder %v4171_v14, 0.0  ;;  %v4440_v17 = vmul.f32 0.01, %v4171_v14  ;;  %v11051_v10 = vadd.f32 %v4174_v57, %v10859_v47  ;;  %v12763_v54 = vld [vmem:[#allocation51_spill] sm:$0xff] }
 0x3b6   : > { %v11059_v28 = vpop.f32.mrf.mxu1  ;;  %v4512_v47 = vsel %vm4256_vm5, %v10833_v56, %v10885_v44  ;;  %v4631_v56 = vpack.c.bf16 %v4519_v16, %v4515_v25  ;;  %v12755_v44 = vld [vmem:[#allocation62_spill] sm:$0xff]  ;;  %v4511_v13 = vsel %vm4255_vm12, %v10875_v36, %v4383_v1  ;;  %v4507_v4 = vsel %vm4251_vm14, %v10640_v31, %v4379_v3  ;;  %v4021_v33 = vpop.f32.mrf.mxu0  ;;  %v12768_v25 = vld [vmem:[#allocation93_spill] sm:$0xff] }
 0x3b7   : > { %4761 = vmatpush1.bf16.msra.mxu1 %v4635_v21  ;;  %v11071_v30 = vsel %vm4312_vm4, %v4171_v14, %v4440_v17  ;;  %v4508_v23 = vsel %vm4252_vm11, %v10822_v0, %v12755_v44  ;;  %v4627_v8 = vpack.c.bf16 %v4511_v13, %v4507_v4  ;;  %v12758_v0 = vpack.c.bf16 %v12756_v37, %v12757_v15  ;;  %v12770_v13 = vld [vmem:[#allocation20_spill] sm:$0xff]  ;;  %v12773_v15 = vld [vmem:[#allocation75_spill] sm:$0xff] }
 0x3b8   : > { %v11078_v62 = vpop.f32.mrf.mxu1  ;;  %4762 = vmatprep.subr.bf16.mxu1 %v4632_v55  ;;  %v4628_v24 = vpack.c.bf16 %v4512_v47, %v4508_v23  ;;  %v4023_v29 = vpop.f32.mrf.mxu0  ;;  %v12764_v20 = vpack.c.bf16 %v12762_v32, %v12763_v54  ;;  %v12767_v58 = vpack.c.bf16 %v12765_v9, %v12766_v22  ;;  %v12776_v32 = vld [vmem:[#allocation137_spill] sm:$0xff]  ;;  %v4018_v34 = vadd.f32 %v4017_v52, %v12785_v27 }
 0x3b9   : > { %v12777_v54 = vld [vmem:[#allocation65_spill] sm:$0xff] }
 0x3ba   : > { %v11088_v5 = vpop.f32.mrf.mxu1  ;;  %v4025_v53 = vpop.f32.mrf.mxu0  ;;  %v12778_v9 = vld [vmem:[#allocation45_spill] sm:$0xff] }
 0x3bb   : > { %4763 = vmatpush1.bf16.msra.mxu1 %v4631_v56  ;;  %v12769_v56 = vld [vmem:[#allocation149_spill] sm:$0xff]  ;;  %v11127_v22 = vadd.f32 %v12778_v9, %v12776_v32 }
 0x3bc   : > { %v11091_v45 = vpop.f32.mrf.mxu1  ;;  %4764 = vmatprep.subr.bf16.mxu1 %v4628_v24  ;;  %v4027_v21 = vpop.f32.mrf.mxu0  ;;  %v3984_v44 = vadd.f32 %v12769_v56, %v12768_v25  ;;  %v12771_v24 = vld [vmem:[#allocation31_spill] sm:$0xff]  ;;  %v12780_v25 = vld [vmem:[#allocation142_spill] sm:$0xff] }
 0x3bd   : > { %v3986_v4 = vadd.f32 %v12771_v24, %v12770_v13  ;;  %v4028_v38 = vadd.f32 %v4027_v21, %v12787_v18 }
 0x3be   : > { %v4186_v59 = vpop.f32.mrf.mxu1  ;;  %v4031_v17 = vpop.f32.mrf.mxu0 }
 0x3bf   : > { %4765 = vmatpush1.bf16.msra.mxu1 %v4627_v8  ;;  %v12772_v8 = vld [vmem:[#allocation67_spill] sm:$0xff] }
 0x3c0   : > { %v4188_v2 = vpop.f32.mrf.mxu1  ;;  %4766 = vmatprep.subr.bf16.mxu1 %v12758_v0  ;;  %v4033_v55 = vpop.f32.mrf.mxu0  ;;  %v11115_v37 = vadd.f32 %v12772_v8, %v12770_v13  ;;  %v12774_v0 = vld [vmem:[#allocation141_spill] sm:$0xff]  ;;  %v12781_v13 = vld [vmem:[#allocation87_spill] sm:$0xff] }
 0x3c1   : > { %v11119_v49 = vadd.f32 %v12774_v0, %v12773_v15  ;;  %v12782_v0 = vld [vmem:[#allocation48_spill] sm:$0xff] }
 0x3c2   : > { %v11096_v36 = vpop.f32.mrf.mxu1  ;;  %v4035_v7 = vpop.f32.mrf.mxu0  ;;  %v4006_v48 = vadd.f32 %v12783_v46, %v12782_v0 }
 0x3c3   : > { %4767 = vmatpush1.bf16.msra.mxu1 %v12761_v41  ;;  %v3994_v41 = vadd.f32 %v12775_v51, %v12773_v15  ;;  %v4008_v15 = vadd.f32 %v10979_v35, %v12782_v0  ;;  %v12784_v51 = vld [vmem:[#allocation85_spill] sm:$0xff]  ;;  %v4026_v35 = vadd.f32 %v4025_v53, %v12787_v18 }
 0x3c4   : > { %v11101_v31 = vpop.f32.mrf.mxu1  ;;  %4768 = vmatprep.subr.bf16.mxu1 %v12764_v20  ;;  %v3996_v20 = vadd.f32 %v12777_v54, %v12776_v32  ;;  %v4012_v54 = vadd.f32 %v11003_v43, %v12784_v51  ;;  %v4014_v32 = vadd.f32 %v11039_v26, %v12784_v51  ;;  %v4037_v9 = vpop.f32.mrf.mxu0  ;;  %v12788_v0 = vld [vmem:[#allocation125_spill] sm:$0xff]  ;;  %v12789_v26 = vld [vmem:[#allocation122_spill] sm:$0xff] }
 0x3c5   : > { %v4032_v43 = vadd.f32 %v4031_v17, %v12788_v0  ;;  %v4034_v42 = vadd.f32 %v4033_v55, %v12788_v0  ;;  %v4036_v51 = vadd.f32 %v4035_v7, %v12789_v26  ;;  %v4038_v63 = vadd.f32 %v4037_v9, %v12789_v26 }
 0x3c6   : > { %v4196_v40 = vpop.f32.mrf.mxu1  ;;  %v11160_v21 = vadd.f32 %v4186_v59, %v3994_v41 }
 0x3c7   : > { %4769 = vmatpush1.bf16.msra.mxu1 %v12767_v58  ;;  %v12779_v58 = vld [vmem:[#allocation74_spill] sm:$0xff] }
 0x3c8   : > { %v4198_v61 = vpop.f32.mrf.mxu1  ;;  %v11131_v56 = vadd.f32 %v12780_v25, %v12779_v58  ;;  %v4004_v24 = vadd.f32 %v12781_v13, %v12779_v58  ;;  %v4016_v25 = vadd.f32 %v11061_v11, %v12785_v27  ;;  %v12786_v58 = vld [vmem:[#allocation119_spill] sm:$0xff]  ;;  %v11155_v11 = vadd.f32 %v11059_v28, %v3984_v44 }
 0x3c9   : > { %v4022_v13 = vadd.f32 %v4021_v33, %v12786_v58  ;;  %v4024_v50 = vadd.f32 %v4023_v29, %v12786_v58  ;;  %v11158_v33 = vadd.f32 %v11078_v62, %v3986_v4  ;;  %v11162_v29 = vadd.f32 %v4188_v2, %v3996_v20 }
 0x3ca   : > { %v4200_v14 = vpop.f32.mrf.mxu1  ;;  %v11164_v53 = vadd.f32 %v4196_v40, %v4004_v24  ;;  %v11166_v17 = vadd.f32 %v4198_v61, %v4006_v48  ;;  %v4195_v0 = vadd.f32 %v11101_v31, %v11131_v56  ;;  %v4181_v56 = vadd.f32 %v11088_v5, %v11115_v37 }
 0x3cb   : > { %v11168_v55 = vadd.f32 %v4200_v14, %v4008_v15 }
 0x3cc   : > { %v4204_v57 = vpop.f32.mrf.mxu1  ;;  %vm4332_vm4 = vcmp.ge.f32.partialorder %v11164_v53, 0.0  ;;  %vm4335_vm12 = vcmp.ge.f32.partialorder %v11166_v17, 0.0 }
 0x3cd   : > { %v11170_v28 = vadd.f32 %v4204_v57, %v4012_v54  ;;  %vm4336_vm7 = vcmp.ge.f32.partialorder %v11168_v55, 0.0 }
 0x3ce   : > { %v4206_v12 = vpop.f32.mrf.mxu1 }
 0x3cf   : > { %vm4339_vm0 = vcmp.ge.f32.partialorder %v11170_v28, 0.0 }
 0x3d0   : > { %v4208_v1 = vpop.f32.mrf.mxu1 }
 0x3d1   : > { %v4209_v62 = vadd.f32 %v4208_v1, %v4016_v25 }
 0x3d2   : > { %v4210_v16 = vpop.f32.mrf.mxu1 }
 0x3d3   : > { %v4211_v4 = vadd.f32 %v4210_v16, %v4018_v34  ;;  %vm4343_vm2 = vcmp.ge.f32.partialorder %v4209_v62, 0.0 }
 0x3d4   : > { %v4214_v47 = vpop.f32.mrf.mxu1 }
 0x3d5   : > { %v4215_v48 = vadd.f32 %v4214_v47, %v4022_v13  ;;  %vm4344_vm11 = vcmp.ge.f32.partialorder %v4211_v4, 0.0  ;;  %v4191_v13 = vadd.f32 %v11096_v36, %v11127_v22 }
 0x3d6   : > { %v4216_v3 = vpop.f32.mrf.mxu1 }
 0x3d7   : > { %v4217_v44 = vadd.f32 %v4216_v3, %v4024_v50  ;;  %vm4347_vm15 = vcmp.ge.f32.partialorder %v4215_v48, 0.0  ;;  %vm4328_vm14 = vcmp.ge.f32.partialorder %v4191_v13, 0.0 }
 0x3d8   : > { %v4218_v23 = vpop.f32.mrf.mxu1 }
 0x3d9   : > { %v4219_v59 = vadd.f32 %v4218_v23, %v4026_v35  ;;  %v4476_v14 = vmul.f32 0.01, %v4217_v44  ;;  %vm4348_vm3 = vcmp.ge.f32.partialorder %v4217_v44, 0.0  ;;  %v4475_v23 = vmul.f32 0.01, %v4215_v48 }
 0x3da   : > { %v4220_v8 = vpop.f32.mrf.mxu1 }
 0x3db   : > { %v4221_v27 = vadd.f32 %v4220_v8, %v4028_v38  ;;  %v4207_v38 = vadd.f32 %v4206_v12, %v4014_v32  ;;  %v4472_v12 = vmul.f32 0.01, %v4211_v4  ;;  %v4479_v50 = vmul.f32 0.01, %v4219_v59 }
 0x3dc   : > { %v4224_v46 = vpop.f32.mrf.mxu1  ;;  %vm4351_vm8 = vcmp.ge.f32.partialorder %v4219_v59, 0.0  ;;  %v4604_v54 = vsel %vm4348_vm3, %v4217_v44, %v4476_v14  ;;  %v4471_v32 = vmul.f32 0.01, %v4209_v62  ;;  %v4603_v26 = vsel %vm4347_vm15, %v4215_v48, %v4475_v23 }
 0x3dd   : > { %v4225_v7 = vadd.f32 %v4224_v46, %v4032_v43  ;;  %v4480_v41 = vmul.f32 0.01, %v4221_v27  ;;  %vm4352_vm6 = vcmp.ge.f32.partialorder %v4221_v27, 0.0  ;;  %v4468_v47 = vmul.f32 0.01, %v4207_v38 }
 0x3de   : > { %v4226_v52 = vpop.f32.mrf.mxu1  ;;  %vm4340_vm9 = vcmp.ge.f32.partialorder %v4207_v38, 0.0  ;;  %v4607_v25 = vsel %vm4351_vm8, %v4219_v59, %v4479_v50  ;;  %v4464_v46 = vmul.f32 0.01, %v11168_v55  ;;  %v4600_v35 = vsel %vm4344_vm11, %v4211_v4, %v4472_v12 }
 0x3df   : > { %v4227_v18 = vadd.f32 %v4226_v52, %v4034_v42  ;;  %v4483_v61 = vmul.f32 0.01, %v4225_v7  ;;  %vm4355_vm5 = vcmp.ge.f32.partialorder %v4225_v7, 0.0  ;;  %v4608_v3 = vsel %vm4352_vm6, %v4221_v27, %v4480_v41 }
 0x3e0   : > { %v4228_v9 = vpop.f32.mrf.mxu1  ;;  %v4676_v58 = vpack.c.bf16 %v4608_v3, %v4604_v54  ;;  %v4467_v43 = vmul.f32 0.01, %v11170_v28  ;;  %v4675_v36 = vpack.c.bf16 %v4607_v25, %v4603_v26  ;;  %v4596_v22 = vsel %vm4340_vm9, %v4207_v38, %v4468_v47  ;;  %v12795_v3 = vld [vmem:[#allocation100_spill] sm:$0xff] }
 0x3e1   : > { %v4229_v8 = vadd.f32 %v4228_v9, %v4036_v51  ;;  %v4484_v20 = vmul.f32 0.01, %v4227_v18  ;;  %vm4356_vm13 = vcmp.ge.f32.partialorder %v4227_v18, 0.0  ;;  %v4611_v24 = vsel %vm4355_vm5, %v4225_v7, %v4483_v61 }
 0x3e2   : > { %v4230_v2 = vpop.f32.mrf.mxu1  ;;  %v4460_v51 = vmul.f32 0.01, %v11164_v53  ;;  %v4463_v27 = vmul.f32 0.01, %v11166_v17  ;;  %v4599_v52 = vsel %vm4343_vm2, %v4209_v62, %v4471_v32  ;;  %v4672_v31 = vpack.c.bf16 %v4600_v35, %v4596_v22 }
 0x3e3   : > { %vm4359_vm10 = vcmp.ge.f32.partialorder %v4229_v8, 0.0  ;;  %v4487_v42 = vmul.f32 0.01, %v4229_v8  ;;  %v4231_v40 = vadd.f32 %v4230_v2, %v4038_v63  ;;  %v4612_v34 = vsel %vm4356_vm13, %v4227_v18, %v4484_v20 }
 0x3e4   : > { %v4456_v18 = vmul.f32 0.01, %v4191_v13  ;;  %v4592_v7 = vsel %vm4336_vm7, %v11168_v55, %v4464_v46  ;;  %v4185_v9 = vadd.f32 %v11091_v45, %v11119_v49  ;;  %v4459_v38 = vmul.f32 0.01, %v4195_v0 }
 0x3e5   : > { %vm4360_vm1 = vcmp.ge.f32.partialorder %v4231_v40, 0.0  ;;  %v4488_v57 = vmul.f32 0.01, %v4231_v40  ;;  %v4615_v1 = vsel %vm4359_vm10, %v4229_v8, %v4487_v42  ;;  %v4595_v44 = vsel %vm4339_vm0, %v11170_v28, %v4467_v43 }
 0x3e6   : > { %v4679_v15 = vpack.c.bf16 %v4615_v1, %v4611_v24  ;;  %v4452_v8 = vmul.f32 0.01, %v11160_v21  ;;  %vm4331_vm10 = vcmp.ge.f32.partialorder %v4195_v0, 0.0  ;;  %v4671_v5 = vpack.c.bf16 %v4599_v52, %v4595_v44  ;;  %v12798_v24 = vld [vmem:[#allocation53_spill] sm:$0xff] }
 0x3e7   : > { %v4616_v16 = vsel %vm4360_vm1, %v4231_v40, %v4488_v57  ;;  %v4588_v37 = vsel %vm4332_vm4, %v11164_v53, %v4460_v51  ;;  %vm4324_vm6 = vcmp.ge.f32.partialorder %v11160_v21, 0.0  ;;  %v4455_v55 = vmul.f32 0.01, %v11162_v29 }
 0x3e8   : > { %v4680_v63 = vpack.c.bf16 %v4616_v16, %v4612_v34  ;;  %v4591_v62 = vsel %vm4335_vm12, %v11166_v17, %v4463_v27  ;;  %v4668_v45 = vpack.c.bf16 %v4592_v7, %v4588_v37  ;;  %v4448_v49 = vmul.f32 0.01, %v4181_v56  ;;  %v12792_v16 = vld [vmem:[#allocation89_spill] sm:$0xff]  ;;  %v11268_v7 = vpop.permute.xlu1 %4925 }
 0x3e9   : > { %vm4327_vm13 = vcmp.ge.f32.partialorder %v11162_v29, 0.0  ;;  %v4584_v28 = vsel %vm4328_vm14, %v4191_v13, %v4456_v18  ;;  %vm4320_vm5 = vcmp.ge.f32.partialorder %v4181_v56, 0.0  ;;  %v4451_v4 = vmul.f32 0.01, %v4185_v9 }
 0x3ea   : > { %4770 = vmatprep.subr.bf16.mxu1 %v4680_v63  ;;  %v4587_v59 = vsel %vm4331_vm10, %v4195_v0, %v4459_v38  ;;  %v4444_v41 = vmul.f32 0.01, %v11155_v11  ;;  %vm4323_vm1 = vcmp.ge.f32.partialorder %v4185_v9, 0.0  ;;  %v4580_v2 = vsel %vm4324_vm6, %v11160_v21, %v4452_v8  ;;  %v12799_v63 = vld [vmem:[#allocation18_spill] sm:$0xff] }
 0x3eb   : > { %4771 = vmatpush2.bf16.msra.mxu1 %v4679_v15  ;;  %v4667_v53 = vpack.c.bf16 %v4591_v62, %v4587_v59  ;;  %vm4316_vm3 = vcmp.ge.f32.partialorder %v11155_v11, 0.0  ;;  %v4447_v17 = vmul.f32 0.01, %v11158_v33  ;;  %v4583_v20 = vsel %vm4327_vm13, %v11162_v29, %v4455_v55  ;;  %v12807_v15 = vld [vmem:[#allocation136_spill] sm:$0xff] }
 0x3ec   : > { %4772 = vmatprep.subr.bf16.mxu1 %v4676_v58  ;;  %v4664_v42 = vpack.c.bf16 %v4584_v28, %v4580_v2  ;;  %vm4319_vm8 = vcmp.ge.f32.partialorder %v11158_v33, 0.0  ;;  %v4576_v40 = vsel %vm4320_vm5, %v4181_v56, %v4448_v49  ;;  %v4443_v48 = vmul.f32 0.01, %v11051_v10  ;;  %v11270_v8 = vpop.permute.xlu1 %4915 }
 0x3ed   : > { %v4579_v61 = vsel %vm4323_vm1, %v4185_v9, %v4451_v4  ;;  %vm4315_vm11 = vcmp.ge.f32.partialorder %v11051_v10, 0.0  ;;  %v4572_v21 = vsel %vm4316_vm3, %v11155_v11, %v4444_v41  ;;  %v4575_v57 = vsel %vm4319_vm8, %v11158_v33, %v4447_v17  ;;  %v12794_v33 = vld [vmem:[#allocation91_spill] sm:$0xff] }
 0x3ee   : > { %v4663_v14 = vpack.c.bf16 %v4583_v20, %v4579_v61  ;;  %v4660_v12 = vpack.c.bf16 %v4576_v40, %v4572_v21  ;;  %v4571_v29 = vsel %vm4315_vm11, %v11051_v10, %v4443_v48  ;;  %v12790_v1 = vpack.c.bf16 %v11071_v30, %v11069_v60  ;;  %v12797_v10 = vld [vmem:[#allocation16_spill] sm:$0xff] }
 0x3ef   : > { %4773 = vmatpush2.bf16.msra.mxu1 %v4675_v36  ;;  %v4659_v50 = vpack.c.bf16 %v4575_v57, %v4571_v29  ;;  %v12791_v34 = vpack.c.bf16 %v11048_v6, %v11042_v19  ;;  %v12793_v11 = vpack.c.bf16 %v11013_v39, %v12792_v16  ;;  %v12796_v23 = vpack.c.bf16 %v12794_v33, %v12795_v3  ;;  %v12801_v30 = vld [vmem:[#allocation24_spill] sm:$0xff]  ;;  %v12803_v19 = vld [vmem:[#allocation90_spill] sm:$0xff]  ;;  %v11236_v39 = vpop.permute.xlu0 %4920 }
 0x3f0   : > { %4774 = vmatprep.subr.bf16.mxu1 %v4672_v31  ;;  %v12800_v60 = vmov 0   ;;  %vm12802_vm15 = vcmask 130048   ;;  %v12805_v6 = vld [vmem:[#allocation32_spill] sm:$0xff]  ;;  %v11272_v62 = vpop.permute.xlu1 %4905 }
 0x3f1   : > { %vm12804_vm9 = vmmov %vm12802_vm15 }
 0x3f2   : > { %vm12806_vm2 = vmmov %vm12804_vm9 }
 0x3f3   : > { %4775 = vmatpush2.bf16.msra.mxu1 %v4671_v5  ;;  %v11241_v47 = vpop.permute.xlu0 %4910  ;;  %vm12808_vm7 = vmmov %vm12806_vm2 }
 0x3f4   : > { %4776 = vmatprep.subr.bf16.mxu1 %v4668_v45  ;;  %v11274_v4 = vpop.permute.xlu1 %4895 }
 0x3f7   : > { %4777 = vmatpush2.bf16.msra.mxu1 %v4667_v53  ;;  %v11246_v54 = vpop.permute.xlu0 %4900 }
 0x3f8   : > { %4778 = vmatprep.subr.bf16.mxu1 %v4664_v42 }
 0x3fb   : > { %4779 = vmatpush2.bf16.msra.mxu1 %v4663_v14  ;;  %v11248_v32 = vpop.permute.xlu0 %4890 }
 0x3fc   : > { %4780 = vmatprep.subr.bf16.mxu1 %v4660_v12 }
 0x3ff   : > { %4781 = vmatpush2.bf16.msra.mxu1 %v4659_v50  ;;  %v11250_v25 = vpop.permute.xlu0 %5238 }
 0x400   : > { %4782 = vmatprep.subr.bf16.mxu1 %v12790_v1 }
 0x403   : > { %4783 = vmatpush2.bf16.msra.mxu1 %v12791_v34  ;;  %v11252_v58 = vpop.permute.xlu0 %5228 }
 0x404   : > { %4784 = vmatprep.subr.bf16.mxu1 %v12793_v11 }
 0x407   : > { %4785 = vmatpush2.bf16.msra.mxu1 %v12796_v23  ;;  %v11254_v13 = vpop.permute.xlu0 %5431 }
 0x408   : > { %5047 = vmatprep.subr.bf16.mxu1 %v12797_v10 }
 0x40a   : > { %4787 = vmatmul.mubr.bf16.vlgmr.msra.gmra.mxu1 %v12798_v24 }
 0x40b   : > { %5048 = vmatpush1.bf16.msra.mxu1 %v12799_v63  ;;  %5065 = vmatprep.mubr.bf16.mxu1 %v12800_v60  ;;  %v11256_v35 = vpop.permute.xlu0 %4685 }
 0x412   : > { %6074 = vmatmul.mubr.msk.bf16.vlgmr.msra.gmra.mxu1 %vm12802_vm15, %v12801_v30 }
 0x413   : > { %5075 = vmatprep.mubr.bf16.mxu1 %v12800_v60 }
 0x41a   : > { %6075 = vmatmul.mubr.msk.bf16.gmra.mxu1 %vm12804_vm9, %v12803_v19 }
 0x41b   : > { %5085 = vmatprep.mubr.bf16.mxu1 %v12800_v60 }
 0x422   : > { %6076 = vmatmul.mubr.msk.bf16.gmra.mxu1 %vm12806_vm2, %v12805_v6 }
 0x423   : > { %5095 = vmatprep.mubr.bf16.mxu1 %v12800_v60 }
 0x42a   : > { %6077 = vmatmul.mubr.msk.bf16.gmra.mxu1 %vm12808_vm7, %v12807_v15 }
 0x42b   : > { %5348 = vmatprep.mubr.bf16.mxu1 %v12800_v60 }
 0x44a   : > { %v4747_v46 = vpop.f32.mrf.mxu0 }
 0x44b   : > { %v11259_v43 = vadd.f32 %v4747_v46, %v11256_v35 }
 0x44c   : > { %v4749_v0 = vpop.f32.mrf.mxu0 }
 0x44d   : > { %v11262_v26 = vadd.f32 %v4749_v0, %v11256_v35 }
 0x44e   : > { %v4751_v51 = vpop.f32.mrf.mxu0 }
 0x44f   : > { %v5728_v36 = vcombine.low %v11259_v43, %v11262_v26 }
 0x450   : > { %v4752_v22 = vpop.f32.mrf.mxu0 }
 0x452   : > { %v11266_v27 = vpop.f32.mrf.mxu0 }
 0x454   : > { %v4996_v52 = vpop.f32.mrf.mxu0 }
 0x455   : > { %v11279_v53 = vadd.f32 %v4996_v52, %v11248_v32 }
 0x456   : > { %v4998_v31 = vpop.f32.mrf.mxu0 }
 0x457   : > { %v11282_v2 = vadd.f32 %v4998_v31, %v11274_v4  ;;  %vm5107_vm9 = vcmp.ge.f32.partialorder %v11279_v53, 0.0 }
 0x458   : > { %v5000_v56 = vpop.f32.mrf.mxu0 }
 0x459   : > { %v11285_v17 = vadd.f32 %v5000_v56, %v11274_v4  ;;  %vm5110_vm2 = vcmp.ge.f32.partialorder %v11282_v2, 0.0 }
 0x45a   : > { %v5004_v18 = vpop.f32.mrf.mxu0 }
 0x45b   : > { %v11289_v40 = vadd.f32 %v5004_v18, %v11246_v54  ;;  %vm5111_vm11 = vcmp.ge.f32.partialorder %v11285_v17, 0.0 }
 0x45c   : > { %v5006_v9 = vpop.f32.mrf.mxu0 }
 0x45d   : > { %v5007_v48 = vadd.f32 %v5006_v9, %v11246_v54  ;;  %v5143_v9 = vmul.f32 0.01, %v11285_v17  ;;  %vm5114_vm15 = vcmp.ge.f32.partialorder %v11289_v40, 0.0 }
 0x45e   : > { %v5008_v38 = vpop.f32.mrf.mxu0 }
 0x45f   : > { %v5009_v61 = vadd.f32 %v5008_v38, %v11272_v62  ;;  %v5147_v51 = vmul.f32 0.01, %v5007_v48  ;;  %vm5115_vm3 = vcmp.ge.f32.partialorder %v5007_v48, 0.0 }
 0x460   : > { %v5010_v44 = vpop.f32.mrf.mxu0 }
 0x461   : > { %v5011_v21 = vadd.f32 %v5010_v44, %v11272_v62  ;;  %v5150_v31 = vmul.f32 0.01, %v5009_v61  ;;  %vm5118_vm8 = vcmp.ge.f32.partialorder %v5009_v61, 0.0  ;;  %v4995_v44 = vadd.f32 %v11266_v27, %v11248_v32 }
 0x462   : > { %v5014_v5 = vpop.f32.mrf.mxu0  ;;  %v5175_v27 = vsel %vm5111_vm11, %v11285_v17, %v5143_v9  ;;  %v11319_v17 = vld [vmem:[%s11535_s9] sm:$0xff]  }
 0x463   : > { %v5015_v57 = vadd.f32 %v5014_v5, %v11241_v47  ;;  %v5151_v10 = vmul.f32 0.01, %v5011_v21  ;;  %vm5119_vm5 = vcmp.ge.f32.partialorder %v5011_v21, 0.0  ;;  %v5146_v5 = vmul.f32 0.01, %v11289_v40 }
 0x464   : > { %v5016_v37 = vpop.f32.mrf.mxu0  ;;  %vm5106_vm7 = vcmp.ge.f32.partialorder %v4995_v44, 0.0 }
 0x465   : > { %v5017_v14 = vadd.f32 %v5016_v37, %v11241_v47  ;;  %v5154_v15 = vmul.f32 0.01, %v5015_v57  ;;  %vm5122_vm1 = vcmp.ge.f32.partialorder %v5015_v57, 0.0  ;;  %v5183_v38 = vsel %vm5119_vm5, %v5011_v21, %v5151_v10 }
 0x466   : > { %v5018_v55 = vpop.f32.mrf.mxu0 }
 0x467   : > { %v5019_v12 = vadd.f32 %v5018_v55, %v11270_v8  ;;  %v5155_v3 = vmul.f32 0.01, %v5017_v14  ;;  %vm5123_vm6 = vcmp.ge.f32.partialorder %v5017_v14, 0.0  ;;  %v5186_v37 = vsel %vm5122_vm1, %v5015_v57, %v5154_v15 }
 0x468   : > { %v5020_v45 = vpop.f32.mrf.mxu0  ;;  %v5139_v55 = vmul.f32 0.01, %v11279_v53 }
 0x469   : > { %v5021_v59 = vadd.f32 %v5020_v45, %v11270_v8  ;;  %v5158_v24 = vmul.f32 0.01, %v5019_v12  ;;  %vm5126_vm13 = vcmp.ge.f32.partialorder %v5019_v12, 0.0  ;;  %v5187_v52 = vsel %vm5123_vm6, %v5017_v14, %v5155_v3 }
 0x46a   : > { %v5024_v49 = vpop.f32.mrf.mxu0  ;;  %v5171_v21 = vsel %vm5107_vm9, %v11279_v53, %v5139_v55  ;;  %v11327_v53 = vld [vmem:[%s11535_s9 + $0x8] sm:$0xff]  }
 0x46b   : > { %v5025_v20 = vadd.f32 %v5024_v49, %v11236_v39  ;;  %vm5127_vm0 = vcmp.ge.f32.partialorder %v5021_v59, 0.0  ;;  %v5159_v1 = vmul.f32 0.01, %v5021_v59  ;;  %v5190_v56 = vsel %vm5126_vm13, %v5019_v12, %v5158_v24 }
 0x46c   : > { %v5026_v28 = vpop.f32.mrf.mxu0  ;;  %v5210_v45 = vpack.c.bf16 %v5190_v56, %v5186_v37  ;;  %v5179_v49 = vsel %vm5115_vm3, %v5007_v48, %v5147_v51  ;;  %v5203_v57 = vpack.c.bf16 %v5175_v27, %v5171_v21 }
 0x46d   : > { %v5027_v41 = vadd.f32 %v5026_v28, %v11236_v39  ;;  %v5162_v11 = vmul.f32 0.01, %v5025_v20  ;;  %vm5130_vm14 = vcmp.ge.f32.partialorder %v5025_v20, 0.0  ;;  %v5191_v6 = vsel %vm5127_vm0, %v5021_v59, %v5159_v1 }
 0x46e   : > { %v5028_v42 = vpop.f32.mrf.mxu0  ;;  %v5211_v18 = vpack.c.bf16 %v5191_v6, %v5187_v52  ;;  %v5142_v28 = vmul.f32 0.01, %v11282_v2  ;;  %v5182_v59 = vsel %vm5118_vm8, %v5009_v61, %v5150_v31  ;;  %vm5256_vm0 = vcmask 523264  }
 0x46f   : > { %v5029_v29 = vadd.f32 %v5028_v42, %v11268_v7  ;;  %v5163_v34 = vmul.f32 0.01, %v5027_v41  ;;  %vm5131_vm4 = vcmp.ge.f32.partialorder %v5027_v41, 0.0  ;;  %v5194_v46 = vsel %vm5130_vm14, %v5025_v20, %v5162_v11 }
 0x470   : > { %v5030_v50 = vpop.f32.mrf.mxu0  ;;  %v5138_v20 = vmul.f32 0.01, %v4995_v44  ;;  %v5178_v42 = vsel %vm5114_vm15, %v11289_v40, %v5146_v5  ;;  %v5174_v48 = vsel %vm5110_vm2, %v11282_v2, %v5142_v28  ;;  %v6445_v2 = vmov 1983009808  }
 0x471   : > { %v5031_v16 = vadd.f32 %v5030_v50, %v11268_v7  ;;  %vm5134_vm12 = vcmp.ge.f32.partialorder %v5029_v29, 0.0  ;;  %v5166_v33 = vmul.f32 0.01, %v5029_v29  ;;  %v5195_v30 = vsel %vm5131_vm4, %v5027_v41, %v5163_v34  ;;  %v12809_v34 = vld [vmem:[#allocation97_spill] sm:$0xff] }
 0x472   : > { %v5207_v41 = vpack.c.bf16 %v5183_v38, %v5179_v49  ;;  %v5206_v14 = vpack.c.bf16 %v5182_v59, %v5178_v42  ;;  %v5170_v12 = vsel %vm5106_vm7, %v4995_v44, %v5138_v20  ;;  %v5731_v40 = vunpack.c.l.s4 %v6445_v2 }
 0x473   : > { %vm5135_vm10 = vcmp.ge.f32.partialorder %v5031_v16, 0.0  ;;  %v5167_v23 = vmul.f32 0.01, %v5031_v16  ;;  %v5198_v63 = vsel %vm5134_vm12, %v5029_v29, %v5166_v33  ;;  %v5202_v61 = vpack.c.bf16 %v5174_v48, %v5170_v12 }
 0x474   : > { %v5214_v22 = vpack.c.bf16 %v5198_v63, %v5194_v46  ;;  %v5732_v29 = vunpack.c.0.s8 %v5731_v40 }
 0x475   : > { %v5199_v19 = vsel %vm5135_vm10, %v5031_v16, %v5167_v23 }
 0x476   : > { %v5215_v0 = vpack.c.bf16 %v5199_v19, %v5195_v30  ;;  %v5735_v16 = vsub.s32 %v5732_v29, %v12809_v34 }
 0x478   : > { %5271 = vmatprep.subr.bf16.mxu0 %v5215_v0  ;;  %v5736_v24 = vrot.slane %v5728_v36, %v5735_v16 }
 0x479   : > { %5272 = vmatpush1.bf16.msra.mxu0 %v5214_v22 }
 0x47a   : > { %5273 = vmatprep.subr.bf16.mxu0 %v5211_v18 }
 0x47d   : > { %5274 = vmatpush1.bf16.msra.mxu0 %v5210_v45 }
 0x47e   : > { %5275 = vmatprep.subr.bf16.mxu0 %v5207_v41 }
 0x481   : > { %5276 = vmatpush1.bf16.msra.mxu0 %v5206_v14 }
 0x482   : > { %5277 = vmatprep.subr.bf16.mxu0 %v5203_v57 }
 0x485   : > { %5278 = vmatpush1.bf16.msra.mxu0 %v5202_v61 }
 0x488   : > { %6080 = vmatmul.mubr.msk.bf16.vlgmr.msra.gmra.mxu0 %vm5256_vm0, %v11319_v17 }
 0x489   : > { %5305 = vmatprep.mubr.bf16.mxu0 %v12800_v60 }
 0x490   : > { %6081 = vmatmul.mubr.msk.bf16.gmra.mxu0 %vm5256_vm0, %v11327_v53 }
 0x491   : > { %5480 = vmatprep.mubr.bf16.mxu0 %v12800_v60 }
 0x4ca   : > { %v4788_v50 = vpop.f32.mrf.mxu1 }
 0x4cb   : > { %v11337_v11 = vadd.f32 %v4788_v50, %v11256_v35 }
 0x4cc   : > { %v4790_v1 = vpop.f32.mrf.mxu1 }
 0x4cd   : > { %v11340_v33 = vadd.f32 %v4790_v1, %v11256_v35 }
 0x4ce   : > { %v4792_v3 = vpop.f32.mrf.mxu1 }
 0x4cf   : > { %v5729_v23 = vcombine.low %v11337_v11, %v11340_v33 }
 0x4d0   : > { %v4793_v10 = vpop.f32.mrf.mxu1 }
 0x4d1   : > { %v5743_v63 = vrot.slane %v5729_v23, %v5735_v16 }
 0x4d2   : > { %v11348_v30 = vpop.f32.mrf.mxu1 }
 0x4d3   : > { %v5744_v19 = vcombine.low %v5736_v24, %v5743_v63 }
 0x4d4   : > { %v5069_v6 = vpop.f32.mrf.mxu1 }
 0x4d5   : > { %5746 = vst [vmem:[%s11350_s19] sm:$0xff] %v5744_v19  ;;  %v11356_v5 = vadd.f32 %v5069_v6, %v11248_v32 }
 0x4d6   : > { %v5071_v35 = vpop.f32.mrf.mxu1 }
 0x4d7   : > { %v11359_v37 = vadd.f32 %v5071_v35, %v11274_v4  ;;  %v5068_v35 = vadd.f32 %v11348_v30, %v11248_v32  ;;  %vm5109_vm2 = vcmp.ge.f32.partialorder %v11356_v5, 0.0 }
 0x4d8   : > { %v5073_v15 = vpop.f32.mrf.mxu1 }
 0x4d9   : > { %v11362_v55 = vadd.f32 %v5073_v15, %v11274_v4  ;;  %vm5112_vm7 = vcmp.ge.f32.partialorder %v11359_v37, 0.0  ;;  %v5140_v30 = vmul.f32 0.01, %v5068_v35 }
 0x4da   : > { %v5077_v46 = vpop.f32.mrf.mxu1 }
 0x4db   : > { %v11366_v28 = vadd.f32 %v5077_v46, %v11246_v54  ;;  %v5145_v19 = vmul.f32 0.01, %v11362_v55  ;;  %vm5113_vm15 = vcmp.ge.f32.partialorder %v11362_v55, 0.0 }
 0x4dc   : > { %v5079_v0 = vpop.f32.mrf.mxu1 }
 0x4dd   : > { %v5080_v59 = vadd.f32 %v5079_v0, %v11246_v54  ;;  %v5148_v15 = vmul.f32 0.01, %v11366_v28  ;;  %v5141_v0 = vmul.f32 0.01, %v11356_v5  ;;  %vm5116_vm9 = vcmp.ge.f32.partialorder %v11366_v28, 0.0 }
 0x4de   : > { %v5081_v51 = vpop.f32.mrf.mxu1  ;;  %v5177_v32 = vsel %vm5113_vm15, %v11362_v55, %v5145_v19 }
 0x4df   : > { %v5082_v41 = vadd.f32 %v5081_v51, %v11272_v62  ;;  %v5149_v16 = vmul.f32 0.01, %v5080_v59  ;;  %vm5117_vm8 = vcmp.ge.f32.partialorder %v5080_v59, 0.0 }
 0x4e0   : > { %v5083_v22 = vpop.f32.mrf.mxu1 }
 0x4e1   : > { %v5084_v20 = vadd.f32 %v5083_v22, %v11272_v62  ;;  %v5152_v10 = vmul.f32 0.01, %v5082_v41  ;;  %vm5120_vm11 = vcmp.ge.f32.partialorder %v5082_v41, 0.0  ;;  %v5181_v22 = vsel %vm5117_vm8, %v5080_v59, %v5149_v16 }
 0x4e2   : > { %v5087_v52 = vpop.f32.mrf.mxu1 }
 0x4e3   : > { %v5088_v42 = vadd.f32 %v5087_v52, %v11241_v47  ;;  %v5153_v2 = vmul.f32 0.01, %v5084_v20  ;;  %vm5121_vm1 = vcmp.ge.f32.partialorder %v5084_v20, 0.0  ;;  %v5144_v52 = vmul.f32 0.01, %v11359_v37 }
 0x4e4   : > { %v5089_v31 = vpop.f32.mrf.mxu1 }
 0x4e5   : > { %v5090_v27 = vadd.f32 %v5089_v31, %v11241_v47  ;;  %v5156_v1 = vmul.f32 0.01, %v5088_v42  ;;  %vm5124_vm3 = vcmp.ge.f32.partialorder %v5088_v42, 0.0  ;;  %v5185_v6 = vsel %vm5121_vm1, %v5084_v20, %v5153_v2 }
 0x4e6   : > { %v5091_v56 = vpop.f32.mrf.mxu1  ;;  %v5184_v31 = vsel %vm5120_vm11, %v5082_v41, %v5152_v10 }
 0x4e7   : > { %v5092_v14 = vadd.f32 %v5091_v56, %v11270_v8  ;;  %v5157_v61 = vmul.f32 0.01, %v5090_v27  ;;  %vm5125_vm13 = vcmp.ge.f32.partialorder %v5090_v27, 0.0  ;;  %v5188_v46 = vsel %vm5124_vm3, %v5088_v42, %v5156_v1 }
 0x4e8   : > { %v5093_v18 = vpop.f32.mrf.mxu1  ;;  %v5209_v56 = vpack.c.bf16 %v5185_v6, %v5181_v22  ;;  %vm5444_vm3 = vcmask 261120  }
 0x4e9   : > { %v5094_v38 = vadd.f32 %v5093_v18, %v11270_v8  ;;  %v5160_v47 = vmul.f32 0.01, %v5092_v14  ;;  %vm5128_vm5 = vcmp.ge.f32.partialorder %v5092_v14, 0.0  ;;  %v5189_v23 = vsel %vm5125_vm13, %v5090_v27, %v5157_v61 }
 0x4ea   : > { %v5097_v36 = vpop.f32.mrf.mxu1  ;;  %v5180_v18 = vsel %vm5116_vm9, %v11366_v28, %v5148_v15  ;;  %v11399_v28 = vpop.permute.xlu1 %5243 }
 0x4eb   : > { %v5098_v45 = vadd.f32 %v5097_v36, %v11236_v39  ;;  %vm5129_vm4 = vcmp.ge.f32.partialorder %v5094_v38, 0.0  ;;  %v5192_v24 = vsel %vm5128_vm5, %v5092_v14, %v5160_v47  ;;  %v5208_v36 = vpack.c.bf16 %v5184_v31, %v5180_v18 }
 0x4ec   : > { %v5099_v9 = vpop.f32.mrf.mxu1  ;;  %v5212_v51 = vpack.c.bf16 %v5192_v24, %v5188_v46 }
 0x4ed   : > { %v5100_v44 = vadd.f32 %v5099_v9, %v11236_v39  ;;  %v5161_v39 = vmul.f32 0.01, %v5094_v38  ;;  %v5164_v12 = vmul.f32 0.01, %v5098_v45  ;;  %vm5132_vm10 = vcmp.ge.f32.partialorder %v5098_v45, 0.0 }
 0x4ee   : > { %v5101_v49 = vpop.f32.mrf.mxu1  ;;  %v5173_v9 = vsel %vm5109_vm2, %v11356_v5, %v5141_v0  ;;  %v5234_v27 = vpop.permute.xlu1 %5233 }
 0x4ef   : > { %v5102_v4 = vadd.f32 %v5101_v49, %v11268_v7  ;;  %v5165_v48 = vmul.f32 0.01, %v5100_v44  ;;  %vm5133_vm12 = vcmp.ge.f32.partialorder %v5100_v44, 0.0  ;;  %v5193_v50 = vsel %vm5129_vm4, %v5094_v38, %v5161_v39 }
 0x4f0   : > { %v5103_v21 = vpop.f32.mrf.mxu1  ;;  %v5213_v63 = vpack.c.bf16 %v5193_v50, %v5189_v23  ;;  %vm5108_vm4 = vcmp.ge.f32.partialorder %v5068_v35, 0.0  ;;  %v5176_v38 = vsel %vm5112_vm7, %v11359_v37, %v5144_v52 }
 0x4f1   : > { %v5104_v57 = vadd.f32 %v5103_v21, %v11268_v7  ;;  %vm5136_vm14 = vcmp.ge.f32.partialorder %v5102_v4, 0.0  ;;  %v5168_v54 = vmul.f32 0.01, %v5102_v4  ;;  %v5197_v40 = vsel %vm5133_vm12, %v5100_v44, %v5165_v48 }
 0x4f2   : > { %v5196_v7 = vsel %vm5132_vm10, %v5098_v45, %v5164_v12  ;;  %v5205_v44 = vpack.c.bf16 %v5177_v32, %v5173_v9  ;;  %v5172_v45 = vsel %vm5108_vm4, %v5068_v35, %v5140_v30  ;;  %v6299_v35 = vld [vmem:[%s11537_s11] sm:$0xff]  }
 0x4f3   : > { %vm5137_vm6 = vcmp.ge.f32.partialorder %v5104_v57, 0.0  ;;  %v5169_v62 = vmul.f32 0.01, %v5104_v57  ;;  %v5200_v8 = vsel %vm5136_vm14, %v5102_v4, %v5168_v54  ;;  %v5204_v49 = vpack.c.bf16 %v5176_v38, %v5172_v45 }
 0x4f4   : > { %v5216_v3 = vpack.c.bf16 %v5200_v8, %v5196_v7 }
 0x4f5   : > { %v5201_v29 = vsel %vm5137_vm6, %v5104_v57, %v5169_v62 }
 0x4f6   : > { %v5217_v34 = vpack.c.bf16 %v5201_v29, %v5197_v40 }
 0x4f8   : > { %5324 = vmatprep.subr.bf16.mxu1 %v5217_v34 }
 0x4f9   : > { %5325 = vmatpush1.bf16.msra.mxu1 %v5216_v3 }
 0x4fa   : > { %5326 = vmatprep.subr.bf16.mxu1 %v5213_v63 }
 0x4fd   : > { %5327 = vmatpush1.bf16.msra.mxu1 %v5212_v51 }
 0x4fe   : > { %5328 = vmatprep.subr.bf16.mxu1 %v5209_v56 }
 0x501   : > { %5329 = vmatpush1.bf16.msra.mxu1 %v5208_v36 }
 0x502   : > { %5330 = vmatprep.subr.bf16.mxu1 %v5205_v44 }
 0x505   : > { %5331 = vmatpush1.bf16.msra.mxu1 %v5204_v49 }
 0x508   : > { %6082 = vmatmul.mubr.msk.bf16.vlgmr.msra.gmra.mxu1 %vm5256_vm0, %v11319_v17 }
 0x509   : > { %5358 = vmatprep.mubr.bf16.mxu1 %v12800_v60 }
 0x510   : > { %6083 = vmatmul.mubr.msk.bf16.gmra.mxu1 %vm5256_vm0, %v11327_v53 }
 0x511   : > { %5523 = vmatprep.mubr.bf16.mxu1 %v12800_v60 }
 0x548   : > { %v5297_v55 = vpop.f32.mrf.mxu0 }
 0x549   : > { %v5298_v62 = vadd.f32 %v5297_v55, %v11252_v58 }
 0x54a   : > { %v5299_v5 = vpop.f32.mrf.mxu0 }
 0x54b   : > { %v5300_v21 = vadd.f32 %v5299_v5, %v11252_v58  ;;  %v5385_v34 = vmul.f32 0.01, %v5298_v62  ;;  %vm5369_vm1 = vcmp.ge.f32.partialorder %v5298_v62, 0.0 }
 0x54c   : > { %v5301_v37 = vpop.f32.mrf.mxu0 }
 0x54d   : > { %v5302_v39 = vadd.f32 %v5301_v37, %v5234_v27  ;;  %v5386_v47 = vmul.f32 0.01, %v5300_v21  ;;  %vm5370_vm13 = vcmp.ge.f32.partialorder %v5300_v21, 0.0  ;;  %v5401_v19 = vsel %vm5369_vm1, %v5298_v62, %v5385_v34  ;;  %v5437_v62 = vpop.permute.xlu1 %5436 }
 0x54e   : > { %v5303_v59 = vpop.f32.mrf.mxu0 }
 0x54f   : > { %v5304_v20 = vadd.f32 %v5303_v59, %v5234_v27  ;;  %v5389_v40 = vmul.f32 0.01, %v5302_v39  ;;  %vm5373_vm5 = vcmp.ge.f32.partialorder %v5302_v39, 0.0  ;;  %v5402_v10 = vsel %vm5370_vm13, %v5300_v21, %v5386_v47 }
 0x550   : > { %v5307_v41 = vpop.f32.mrf.mxu0  ;;  %vm12810_vm13 = vcmask 130048  }
 0x551   : > { %v5308_v17 = vadd.f32 %v5307_v41, %v11250_v25  ;;  %v5390_v48 = vmul.f32 0.01, %v5304_v20  ;;  %vm5374_vm12 = vcmp.ge.f32.partialorder %v5304_v20, 0.0  ;;  %v5405_v24 = vsel %vm5373_vm5, %v5302_v39, %v5389_v40 }
 0x552   : > { %v5309_v42 = vpop.f32.mrf.mxu0  ;;  %v5417_v6 = vpack.c.bf16 %v5405_v24, %v5401_v19  ;;  %vm4795_vm5 = vcmask 1041408  }
 0x553   : > { %v5310_v14 = vadd.f32 %v5309_v42, %v11250_v25  ;;  %v5393_v2 = vmul.f32 0.01, %v5308_v17  ;;  %vm5377_vm10 = vcmp.ge.f32.partialorder %v5308_v17, 0.0  ;;  %v5406_v7 = vsel %vm5374_vm12, %v5304_v20, %v5390_v48 }
 0x554   : > { %v5311_v4 = vpop.f32.mrf.mxu0  ;;  %v5418_v63 = vpack.c.bf16 %v5406_v7, %v5402_v10  ;;  %v4796_v19 = vsel %vm4795_vm5, %v11259_v43, -inf }
 0x555   : > { %v5312_v53 = vadd.f32 %v5311_v4, %v11399_v28  ;;  %v5394_v12 = vmul.f32 0.01, %v5310_v14  ;;  %vm5378_vm14 = vcmp.ge.f32.partialorder %v5310_v14, 0.0  ;;  %v5409_v16 = vsel %vm5377_vm10, %v5308_v17, %v5393_v2 }
 0x556   : > { %v5313_v57 = vpop.f32.mrf.mxu0 }
 0x557   : > { %vm5381_vm0 = vcmp.ge.f32.partialorder %v5312_v53, 0.0  ;;  %v5397_v54 = vmul.f32 0.01, %v5312_v53  ;;  %v5314_v61 = vadd.f32 %v5313_v57, %v11399_v28  ;;  %v5410_v50 = vsel %vm5378_vm14, %v5310_v14, %v5394_v12 }
 0x559   : > { %vm5382_vm6 = vcmp.ge.f32.partialorder %v5314_v61, 0.0  ;;  %v5398_v8 = vmul.f32 0.01, %v5314_v61  ;;  %v5413_v29 = vsel %vm5381_vm0, %v5312_v53, %v5397_v54 }
 0x55a   : > { %v5421_v23 = vpack.c.bf16 %v5413_v29, %v5409_v16 }
 0x55b   : > { %v5414_v1 = vsel %vm5382_vm6, %v5314_v61, %v5398_v8 }
 0x55c   : > { %v5422_v3 = vpack.c.bf16 %v5414_v1, %v5410_v50 }
 0x55e   : > { %5460 = vmatprep.subr.bf16.mxu0 %v5422_v3 }
 0x55f   : > { %5461 = vmatpush1.bf16.msra.mxu0 %v5421_v23 }
 0x560   : > { %5462 = vmatprep.subr.bf16.mxu0 %v5418_v63  ;;  %v5562_v63 = vld [vmem:[%s11539_s13] sm:$0x1] }
 0x563   : > { %5463 = vmatpush1.bf16.msra.mxu0 %v5417_v6  ;;  %v4803_v6 = vsel %vm4795_vm5, %v11262_v26, -inf }
 0x566   : > { %6085 = vmatmul.mubr.msk.bf16.vlgmr.msra.gmra.mxu0 %vm5444_vm3, %v6299_v35 }
 0x567   : > { %5604 = vmatprep.mubr.bf16.mxu0 %v12800_v60 }
 0x5c8   : > { %v5350_v15 = vpop.f32.mrf.mxu1 }
 0x5c9   : > { %v5351_v5 = vadd.f32 %v5350_v15, %v11252_v58  ;;  %v4804_v15 = vrot.slane %v4803_v6, 4 }
 0x5ca   : > { %v5352_v46 = vpop.f32.mrf.mxu1 }
 0x5cb   : > { %v5353_v18 = vadd.f32 %v5352_v46, %v11252_v58  ;;  %v5387_v17 = vmul.f32 0.01, %v5351_v5  ;;  %vm5371_vm0 = vcmp.ge.f32.partialorder %v5351_v5, 0.0 }
 0x5cc   : > { %v5354_v0 = vpop.f32.mrf.mxu1 }
 0x5cd   : > { %v5355_v9 = vadd.f32 %v5354_v0, %v5234_v27  ;;  %v5388_v59 = vmul.f32 0.01, %v5353_v18  ;;  %vm5372_vm7 = vcmp.ge.f32.partialorder %v5353_v18, 0.0  ;;  %v5403_v48 = vsel %vm5371_vm0, %v5351_v5, %v5387_v17 }
 0x5ce   : > { %v5356_v51 = vpop.f32.mrf.mxu1  ;;  %v4805_v0 = vmax.f32 %v4803_v6, %v4804_v15 }
 0x5cf   : > { %v5357_v52 = vadd.f32 %v5356_v51, %v5234_v27  ;;  %v5391_v41 = vmul.f32 0.01, %v5355_v9  ;;  %vm5375_vm4 = vcmp.ge.f32.partialorder %v5355_v9, 0.0  ;;  %v5404_v58 = vsel %vm5372_vm7, %v5353_v18, %v5388_v59 }
 0x5d0   : > { %v5360_v22 = vpop.f32.mrf.mxu1 }
 0x5d1   : > { %v5361_v32 = vadd.f32 %v5360_v22, %v11250_v25  ;;  %v5392_v38 = vmul.f32 0.01, %v5357_v52  ;;  %vm5376_vm11 = vcmp.ge.f32.partialorder %v5357_v52, 0.0  ;;  %v5407_v53 = vsel %vm5375_vm4, %v5355_v9, %v5391_v41 }
 0x5d2   : > { %v5362_v31 = vpop.f32.mrf.mxu1  ;;  %v5419_v57 = vpack.c.bf16 %v5407_v53, %v5403_v48 }
 0x5d3   : > { %v5363_v56 = vadd.f32 %v5362_v31, %v11250_v25  ;;  %v5395_v37 = vmul.f32 0.01, %v5361_v32  ;;  %vm5379_vm9 = vcmp.ge.f32.partialorder %v5361_v32, 0.0  ;;  %v5408_v14 = vsel %vm5376_vm11, %v5357_v52, %v5392_v38 }
 0x5d4   : > { %v5364_v30 = vpop.f32.mrf.mxu1  ;;  %v5420_v39 = vpack.c.bf16 %v5408_v14, %v5404_v58  ;;  %v4806_v52 = vrot.slane %v4805_v0, 2 }
 0x5d5   : > { %v5365_v36 = vadd.f32 %v5364_v30, %v11399_v28  ;;  %v5396_v45 = vmul.f32 0.01, %v5363_v56  ;;  %vm5380_vm15 = vcmp.ge.f32.partialorder %v5363_v56, 0.0  ;;  %v5411_v4 = vsel %vm5379_vm9, %v5361_v32, %v5395_v37 }
 0x5d6   : > { %v5366_v44 = vpop.f32.mrf.mxu1  ;;  %v4807_v9 = vmax.f32 %v4805_v0, %v4806_v52 }
 0x5d7   : > { %vm5383_vm8 = vcmp.ge.f32.partialorder %v5365_v36, 0.0  ;;  %v5399_v49 = vmul.f32 0.01, %v5365_v36  ;;  %v5367_v55 = vadd.f32 %v5366_v44, %v11399_v28  ;;  %v5412_v27 = vsel %vm5380_vm15, %v5363_v56, %v5396_v45  ;;  %vm12811_vm15 = vmmov %vm12810_vm13 }
 0x5d8   : > { %v4808_v59 = vrot.slane %v4807_v9, 1 }
 0x5d9   : > { %vm5384_vm2 = vcmp.ge.f32.partialorder %v5367_v55, 0.0  ;;  %v5400_v25 = vmul.f32 0.01, %v5367_v55  ;;  %v5415_v20 = vsel %vm5383_vm8, %v5365_v36, %v5399_v49 }
 0x5da   : > { %v5423_v28 = vpack.c.bf16 %v5415_v20, %v5411_v4  ;;  %v4809_v17 = vmax.f32 %v4807_v9, %v4808_v59 }
 0x5db   : > { %v5416_v42 = vsel %vm5384_vm2, %v5367_v55, %v5400_v25 }
 0x5dc   : > { %v5424_v21 = vpack.c.bf16 %v5416_v42, %v5412_v27 }
 0x5de   : > { %5503 = vmatprep.subr.bf16.mxu1 %v5424_v21  ;;  %v4825_v21 = vsub.f32 %v11262_v26, %v4809_v17 }
 0x5df   : > { %5504 = vmatpush1.bf16.msra.mxu1 %v5423_v28 }
 0x5e0   : > { %5505 = vmatprep.subr.bf16.mxu1 %v5420_v39  ;;  %v4830_v58 = vmul.f32 1.442695, %v4825_v21 }
 0x5e3   : > { %5506 = vmatpush1.bf16.msra.mxu1 %v5419_v57 }
 0x5e6   : > { %6086 = vmatmul.mubr.msk.bf16.vlgmr.msra.gmra.mxu1 %vm5444_vm3, %v6299_v35  ;;  %v4797_v35 = vrot.slane %v4796_v19, 4 }
 0x5e7   : > { %5645 = vmatprep.mubr.bf16.mxu1 %v12800_v60 }
 0x5e8   : > { %v4798_v46 = vmax.f32 %v4796_v19, %v4797_v35 }
 0x5ea   : > { %v4799_v51 = vrot.slane %v4798_v46, 2 }
 0x5ec   : > { %v4800_v32 = vmax.f32 %v4798_v46, %v4799_v51 }
 0x5ee   : > { %v4801_v55 = vrot.slane %v4800_v32, 1 }
 0x5f0   : > { %v4802_v27 = vmax.f32 %v4800_v32, %v4801_v55  ;;  %v4810_v55 = vsel %vm4795_vm5, %v11337_v11, -inf }
 0x5f2   : > { %v4824_v4 = vsub.f32 %v11259_v43, %v4802_v27 }
 0x5f4   : > { %v4828_v28 = vmul.f32 1.442695, %v4824_v4 }
 0x5f6   : > { %6300 = vpow2.f32 %v4828_v28 }
 0x5f7   : > { %6302 = vpow2.f32 %v4830_v58 }
 0x603   : > { %v6301_v53 = vpop.eup %6300 }
 0x604   : > { %v6303_v39 = vpop.eup %6302  ;;  %v4836_v48 = vsel %vm4795_vm5, %v6301_v53, 0.0 }
 0x605   : > { %v4843_v57 = vsel %vm4795_vm5, %v6303_v39, 0.0 }
 0x626   : > { %v5482_v12 = vpop.f32.mrf.mxu0 }
 0x627   : > { %v5483_v2 = vadd.f32 %v5482_v12, %v11254_v13  ;;  %v4837_v12 = vrot.slane %v4836_v48, 4 }
 0x628   : > { %v5484_v54 = vpop.f32.mrf.mxu0 }
 0x629   : > { %v5485_v61 = vadd.f32 %v5484_v54, %v11254_v13  ;;  %v5542_v7 = vmul.f32 0.01, %v5483_v2  ;;  %vm5534_vm10 = vcmp.ge.f32.partialorder %v5483_v2, 0.0  ;;  %v4844_v54 = vrot.slane %v4843_v57, 4 }
 0x62a   : > { %v5486_v47 = vpop.f32.mrf.mxu0 }
 0x62b   : > { %v5487_v8 = vadd.f32 %v5486_v47, %v5437_v62  ;;  %v5543_v29 = vmul.f32 0.01, %v5485_v61  ;;  %vm5535_vm14 = vcmp.ge.f32.partialorder %v5485_v61, 0.0  ;;  %v5550_v23 = vsel %vm5534_vm10, %v5483_v2, %v5542_v7 }
 0x62c   : > { %v5488_v40 = vpop.f32.mrf.mxu0 }
 0x62d   : > { %vm5538_vm12 = vcmp.ge.f32.partialorder %v5487_v8, 0.0  ;;  %v5546_v50 = vmul.f32 0.01, %v5487_v8  ;;  %v5489_v1 = vadd.f32 %v5488_v40, %v5437_v62  ;;  %v5551_v16 = vsel %vm5535_vm14, %v5485_v61, %v5543_v29 }
 0x62e   : > { %v4838_v61 = vadd.f32 %v4837_v12, %v4836_v48 }
 0x62f   : > { %vm5539_vm6 = vcmp.ge.f32.partialorder %v5489_v1, 0.0  ;;  %v5547_v34 = vmul.f32 0.01, %v5489_v1  ;;  %v5554_v60 = vsel %vm5538_vm12, %v5487_v8, %v5546_v50 }
 0x630   : > { %v5558_v24 = vpack.c.bf16 %v5554_v60, %v5550_v23  ;;  %v4839_v2 = vrot.slane %v4838_v61, 2 }
 0x631   : > { %v5555_v3 = vsel %vm5539_vm6, %v5489_v1, %v5547_v34  ;;  %v11437_v34 = vpop.permute.xlu1 %5566 }
 0x632   : > { %v5559_v10 = vpack.c.bf16 %v5555_v3, %v5551_v16  ;;  %v4840_v47 = vadd.f32 %v4839_v2, %v4838_v61 }
 0x634   : > { %5586 = vmatprep.subr.bf16.mxu0 %v5559_v10  ;;  %v4841_v8 = vrot.slane %v4840_v47, 1 }
 0x635   : > { %5587 = vmatpush1.bf16.msra.mxu0 %v5558_v24 }
 0x636   : > { %v4842_v29 = vadd.f32 %v4841_v8, %v4840_v47 }
 0x638   : > { %6087 = vmatmul.mubr.msk.bf16.vlgmr.msra.gmra.mxu0 %vm12810_vm13, %v5562_v63  ;;  %6304 = vrcp.f32 %v4842_v29 }
 0x645   : > { %v6305_v1 = vpop.eup %6304 }
 0x646   : > { %v4868_v16 = vmul.f32 %v6305_v1, %v6301_v53 }
 0x6a6   : > { %v5525_v22 = vpop.f32.mrf.mxu1 }
 0x6a7   : > { %v5526_v30 = vadd.f32 %v5525_v22, %v11254_v13 }
 0x6a8   : > { %v5527_v31 = vpop.f32.mrf.mxu1 }
 0x6a9   : > { %v5528_v56 = vadd.f32 %v5527_v31, %v11254_v13  ;;  %v5544_v5 = vmul.f32 0.01, %v5526_v30  ;;  %vm5536_vm8 = vcmp.ge.f32.partialorder %v5526_v30, 0.0 }
 0x6aa   : > { %v5529_v18 = vpop.f32.mrf.mxu1 }
 0x6ab   : > { %v5530_v36 = vadd.f32 %v5529_v18, %v5437_v62  ;;  %v5545_v44 = vmul.f32 0.01, %v5528_v56  ;;  %vm5537_vm3 = vcmp.ge.f32.partialorder %v5528_v56, 0.0  ;;  %v5552_v13 = vsel %vm5536_vm8, %v5526_v30, %v5544_v5 }
 0x6ac   : > { %v5531_v38 = vpop.f32.mrf.mxu1 }
 0x6ad   : > { %vm5540_vm1 = vcmp.ge.f32.partialorder %v5530_v36, 0.0  ;;  %v5548_v45 = vmul.f32 0.01, %v5530_v36  ;;  %v5532_v49 = vadd.f32 %v5531_v38, %v5437_v62  ;;  %v5553_v41 = vsel %vm5537_vm3, %v5528_v56, %v5545_v44 }
 0x6ae   : > { %v4845_v62 = vadd.f32 %v4844_v54, %v4843_v57 }
 0x6af   : > { %vm5541_vm11 = vcmp.ge.f32.partialorder %v5532_v49, 0.0  ;;  %v5549_v37 = vmul.f32 0.01, %v5532_v49  ;;  %v5556_v25 = vsel %vm5540_vm1, %v5530_v36, %v5548_v45 }
 0x6b0   : > { %v5560_v14 = vpack.c.bf16 %v5556_v25, %v5552_v13  ;;  %v4846_v43 = vrot.slane %v4845_v62, 2 }
 0x6b1   : > { %v5557_v20 = vsel %vm5541_vm11, %v5532_v49, %v5549_v37 }
 0x6b2   : > { %v5561_v42 = vpack.c.bf16 %v5557_v20, %v5553_v41  ;;  %v4847_v26 = vadd.f32 %v4846_v43, %v4845_v62 }
 0x6b4   : > { %5627 = vmatprep.subr.bf16.mxu1 %v5561_v42  ;;  %v4848_v40 = vrot.slane %v4847_v26, 1 }
 0x6b5   : > { %5628 = vmatpush1.bf16.msra.mxu1 %v5560_v14 }
 0x6b6   : > { %v4849_v50 = vadd.f32 %v4848_v40, %v4847_v26 }
 0x6b8   : > { %6088 = vmatmul.mubr.msk.bf16.vlgmr.msra.gmra.mxu1 %vm12811_vm15, %v5562_v63  ;;  %6306 = vrcp.f32 %v4849_v50 }
 0x6c5   : > { %v6307_v7 = vpop.eup %6306 }
 0x6c6   : > { %v4869_v24 = vmul.f32 %v6307_v7, %v6303_v39 }
 0x6f8   : > { %v5606_v60 = vpop.f32.mrf.mxu0 }
 0x6f9   : > { %v5607_v3 = vadd.f32 %v5606_v60, %v11437_v34 }
 0x6fa   : > { %v5608_v23 = vpop.f32.mrf.mxu0 }
 0x6fb   : > { %v5654_v10 = vmul.f32 %v5607_v3, %v4868_v16  ;;  %v5609_v63 = vadd.f32 %v5608_v23, %v11437_v34 }
 0x6fc   : > { %v5610_v19 = vpop.f32.mrf.mxu0 }
 0x6fd   : > { %v5658_v6 = vsel %vm4795_vm5, %v5654_v10, 0.0  ;;  %v5655_v35 = vmul.f32 %v5609_v63, %v4869_v24 }
 0x6fe   : > { %v5659_v15 = vrot.slane %v5658_v6, 4  ;;  %v5611_v46 = vpop.f32.mrf.mxu0 }
 0x6ff   : > { %v5665_v0 = vsel %vm4795_vm5, %v5655_v35, 0.0 }
 0x700   : > { %v5660_v51 = vadd.f32 %v5659_v15, %v5658_v6  ;;  %v5666_v22 = vrot.slane %v5665_v0, 4 }
 0x702   : > { %v5661_v52 = vrot.slane %v5660_v51, 2  ;;  %v5667_v31 = vadd.f32 %v5666_v22, %v5665_v0 }
 0x704   : > { %v5662_v56 = vadd.f32 %v5661_v52, %v5660_v51  ;;  %v5668_v32 = vrot.slane %v5667_v31, 2 }
 0x706   : > { %v5663_v30 = vrot.slane %v5662_v56, 1  ;;  %v5669_v18 = vadd.f32 %v5668_v32, %v5667_v31 }
 0x708   : > { %v5664_v36 = vadd.f32 %v5663_v30, %v5662_v56  ;;  %v5670_v9 = vrot.slane %v5669_v18, 1 }
 0x70a   : > { %v5671_v38 = vadd.f32 %v5670_v9, %v5669_v18  ;;  %v11443_v44 = vmul.f32 0.5, %v5664_v36 }
 0x70c   : > { %v11445_v45 = vmul.f32 0.5, %v5671_v38 }
 0x70e   : > { %v5694_v49 = vcombine.low %v11443_v44, %v11445_v45 }
 0x70f   : > { %6348 = shalt.err (!%p6345_p5)
}
 0x710   : > { %s6349_s19 = scalar_lea.hbm %s5783_s25, 128  ;;  %s6353_s23 = scalar_lea.hbm %s11542_s16, 256 }
 0x711   : > { %p6350_p6 = scmp.ne.s32.totalorder %s5783_s25, %s6349_s19  ;;  %p6354_p10 = scmp.lt.s32.totalorder %s5783_s25, %s11542_s16 }
 0x712   : > { %p6355_p11 = scmp.lt.s32.totalorder %s6353_s23, %s6349_s19 }
 0x713   : > { %p6351_p7 = pnand %p6350_p6, %p6573_p4 }
 0x714   : > { %p6356_p12 = por %p6355_p11, %p6354_p10 }
 0x715   : > { %p6352_p9 = pneg %p6351_p7 }
 0x717   : > { %p6357_p13 = pnand %p6356_p12, %p6352_p9 }
 0x719   : > { %6360 = shalt.err (!%p6357_p13)
}
 0x71a   : > { %6101 = dma.vmem_to_hbm [thread:$0]  (%p6573_p4), %s5786_s21, 128, %s5783_s25, %s5753_s29   ;;  %v4817_v5 = vsel %vm4795_vm5, %v11340_v33, -inf  ;;  %v4811_v37 = vrot.slane %v4810_v55, 4 }
 0x71b   : > { %v4818_v59 = vrot.slane %v4817_v5, 4  ;;  %s5901_s1 = sshll.u32 %s11333_s18, 2  ;;  %s6098_s21 = sshll.u32 %s6433_s24, 6 }
 0x71c   : > { %v4812_v25 = vmax.f32 %v4810_v55, %v4811_v37  ;;  %v12812_v37 = vld [vmem:[#allocation26_spill] sm:$0xff]  ;;  %s545_s25 = scalar_lea.vmem [#allocation2], %s5901_s1  ;;  %s12814_s28 = sld [smem:[#allocation171_spill]] }
 0x71d   : > { %v4819_v41 = vmax.f32 %v4817_v5, %v4818_v59  ;;  %v5702_v59 = vrot.slane %v5694_v49, %v12812_v37  ;;  %s5769_s29 = sshll.u32 %s545_s25, 4  ;;  %s5748_s19 = scalar_lea.sflag [#allocation3], %s11333_s18  ;;  %s5770_s29 = int_to_ptr.vmem [resolvable:$true] %s5769_s29 }
 0x71e   : > { %v4813_v20 = vrot.slane %v4812_v25, 2  ;;  %s6361_s17 = scalar_lea.vmem %s5770_s29, 64  ;;  %s6447_s24 = smov [#allocation2]  }
 0x71f   : > { %v4820_v27 = vrot.slane %v4819_v41, 2  ;;  %p6362_p0 = scmp.ne.s32.totalorder %s5770_s29, %s6361_s17  ;;  %s6365_s27 = sshll.u32 %s6447_s24, 4  ;;  %s6366_s27 = int_to_ptr.vmem [resolvable:$false] %s6365_s27 }
 0x720   : > { %v4814_v13 = vmax.f32 %v4812_v25, %v4813_v20  ;;  %v12813_v20 = vlaneseq  ;;  %s6367_s23 = scalar_lea.vmem %s6366_s27, 128  ;;  %p6368_p3 = scmp.lt.s32.totalorder %s5770_s29, %s6366_s27 }
 0x721   : > { %v4821_v42 = vmax.f32 %v4819_v41, %v4820_v27  ;;  %p6363_p1 = pnand %p6362_p0, %p6573_p4  ;;  %p6369_p5 = scmp.lt.s32.totalorder %s6367_s23, %s6361_s17 }
 0x722   : > { %v4815_v14 = vrot.slane %v4814_v13, 1  ;;  %vm5721_vm9 = vcmp.lt.s32.totalorder %v12813_v20, 512  ;;  %s5767_s30 = scalar_lea.hbm %s12814_s28, %s6098_s21 }
 0x723   : > { %v4822_v17 = vrot.slane %v4821_v42, 1  ;;  %p6364_p2 = pneg %p6363_p1  ;;  %p6370_p6 = por %p6369_p5, %p6368_p3 }
 0x724   : > { %v4816_v4 = vmax.f32 %v4814_v13, %v4815_v14 }
 0x725   : > { %v4823_v21 = vmax.f32 %v4821_v42, %v4822_v17  ;;  %p6371_p7 = pnand %p6370_p6, %p6364_p2 }
 0x726   : > { %v4826_v28 = vsub.f32 %v11337_v11, %v4816_v4 }
 0x727   : > { %v4827_v58 = vsub.f32 %v11340_v33, %v4823_v21 }
 0x728   : > { %v4832_v53 = vmul.f32 1.442695, %v4826_v28 }
 0x729   : > { %v4834_v39 = vmul.f32 1.442695, %v4827_v58 }
 0x72a   : > { %6308 = vpow2.f32 %v4832_v53 }
 0x72b   : > { %6310 = vpow2.f32 %v4834_v39 }
 0x737   : > { %v6309_v48 = vpop.eup %6308 }
 0x738   : > { %v6311_v57 = vpop.eup %6310  ;;  %v4850_v12 = vsel %vm4795_vm5, %v6309_v48, 0.0 }
 0x739   : > { %v4857_v54 = vsel %vm4795_vm5, %v6311_v57, 0.0  ;;  %v4851_v61 = vrot.slane %v4850_v12, 4 }
 0x73a   : > { %v4858_v62 = vrot.slane %v4857_v54, 4 }
 0x73b   : > { %v4852_v2 = vadd.f32 %v4851_v61, %v4850_v12 }
 0x73c   : > { %v4859_v43 = vadd.f32 %v4858_v62, %v4857_v54 }
 0x73d   : > { %v4853_v47 = vrot.slane %v4852_v2, 2 }
 0x73e   : > { %v4860_v26 = vrot.slane %v4859_v43, 2 }
 0x73f   : > { %v4854_v8 = vadd.f32 %v4853_v47, %v4852_v2 }
 0x740   : > { %v4861_v11 = vadd.f32 %v4860_v26, %v4859_v43 }
 0x741   : > { %v4855_v40 = vrot.slane %v4854_v8, 1 }
 0x742   : > { %v4862_v33 = vrot.slane %v4861_v11, 1 }
 0x743   : > { %v4856_v29 = vadd.f32 %v4855_v40, %v4854_v8 }
 0x744   : > { %v4863_v50 = vadd.f32 %v4862_v33, %v4861_v11 }
 0x745   : > { %6312 = vrcp.f32 %v4856_v29 }
 0x746   : > { %6314 = vrcp.f32 %v4863_v50 }
 0x752   : > { %v6313_v1 = vpop.eup %6312 }
 0x753   : > { %v6315_v7 = vpop.eup %6314  ;;  %v4870_v16 = vmul.f32 %v6313_v1, %v6309_v48 }
 0x754   : > { %v4871_v24 = vmul.f32 %v6315_v7, %v6311_v57 }
 0x778   : > { %v5647_v60 = vpop.f32.mrf.mxu1 }
 0x779   : > { %v5648_v3 = vadd.f32 %v5647_v60, %v11437_v34 }
 0x77a   : > { %v5649_v23 = vpop.f32.mrf.mxu1 }
 0x77b   : > { %v5656_v10 = vmul.f32 %v5648_v3, %v4870_v16  ;;  %v5650_v63 = vadd.f32 %v5649_v23, %v11437_v34 }
 0x77c   : > { %v5651_v19 = vpop.f32.mrf.mxu1 }
 0x77d   : > { %v5672_v6 = vsel %vm4795_vm5, %v5656_v10, 0.0  ;;  %v5657_v35 = vmul.f32 %v5650_v63, %v4871_v24 }
 0x77e   : > { %v5673_v15 = vrot.slane %v5672_v6, 4  ;;  %v5652_v46 = vpop.f32.mrf.mxu1 }
 0x77f   : > { %v5679_v0 = vsel %vm4795_vm5, %v5657_v35, 0.0 }
 0x780   : > { %v5674_v51 = vadd.f32 %v5673_v15, %v5672_v6  ;;  %v5680_v22 = vrot.slane %v5679_v0, 4 }
 0x782   : > { %v5675_v52 = vrot.slane %v5674_v51, 2  ;;  %v5681_v31 = vadd.f32 %v5680_v22, %v5679_v0 }
 0x784   : > { %v5676_v56 = vadd.f32 %v5675_v52, %v5674_v51  ;;  %v5682_v32 = vrot.slane %v5681_v31, 2 }
 0x786   : > { %v5677_v30 = vrot.slane %v5676_v56, 1  ;;  %v5683_v18 = vadd.f32 %v5682_v32, %v5681_v31 }
 0x788   : > { %v5678_v36 = vadd.f32 %v5677_v30, %v5676_v56  ;;  %v5684_v34 = vrot.slane %v5683_v18, 1 }
 0x78a   : > { %v5685_v9 = vadd.f32 %v5684_v34, %v5683_v18  ;;  %v5688_v38 = vmul.f32 0.5, %v5678_v36 }
 0x78c   : > { %v5689_v55 = vmul.f32 0.5, %v5685_v9 }
 0x78e   : > { %v5695_v5 = vcombine.low %v5688_v38, %v5689_v55 }
 0x790   : > { %v5709_v25 = vrot.slane %v5695_v5, %v12812_v37 }
 0x792   : > { %v5710_v41 = vcombine.low %v5702_v59, %v5709_v25 }
 0x794   : > { %v5717_v27 = vrot.slane %v5710_v41, %v12812_v37 }
 0x796   : > { %5723 = vst.msk [vmem:[%s545_s25] sm:$0xf] %vm5721_vm9, %v5717_v27 }
 0x797   : > { %6374 = shalt.err (!%p6371_p7)
}
 0x798   : > { %s6375_s15 = scalar_lea.hbm %s5767_s30, 64  ;;  %s6379_s21 = scalar_lea.hbm %s12814_s28, 128 }
 0x799   : > { %p6376_p9 = scmp.ne.s32.totalorder %s5767_s30, %s6375_s15  ;;  %p6380_p12 = scmp.lt.s32.totalorder %s5767_s30, %s12814_s28 }
 0x79a   : > { %p6381_p13 = scmp.lt.s32.totalorder %s6379_s21, %s6375_s15 }
 0x79b   : > { %p6377_p10 = pnand %p6376_p9, %p6573_p4 }
 0x79c   : > { %p6382_p0 = por %p6381_p13, %p6380_p12 }
 0x79d   : > { %p6378_p11 = pneg %p6377_p10 }
 0x79f   : > { %p6383_p1 = pnand %p6382_p0, %p6378_p11 }
 0x7a1   : > { %6386 = shalt.err (!%p6383_p1)
}
 0x7a2   : > { %6100 = dma.vmem_to_hbm [thread:$0]  (%p6573_p4), %s5770_s29, 64, %s5767_s30, %s5748_s19  }
 0x7a3 PF: > { %s12815_s20 = sld [smem:[#allocation11_spill]] }
 0x7a4   : > { %s12816_s17 = sld [smem:[#allocation8_spill]] }
 0x7a9   : > { %p6111_p2 = scmp.ge.s32.totalorder %s12815_s20, 2 }
 0x7aa   : > { %s5797_s27 = sand.u32 1, %s12816_s17  }
 0x7ab   : > { %p6105_p3 = pnand %p6111_p2, %p6580_p8  ;;  %s5798_s23 = scalar_lea.sflag [#allocation3], %s5797_s27 }
 0x7ad   : > { %p6106_p5 = pneg %p6105_p3 }
 0x7af   : > { %6412 = dma.done.wait (%p6106_p5), %s5798_s23, 64  }
 0x7b0   : > { %6414 = vsyncadd (%p6106_p5), %s5798_s23, 4294967232  ;;  %s5807_s18 = scalar_lea.sflag [#allocation5], %s5797_s27 }
 0x7b1   : > { %6416 = dma.done.wait (%p6106_p5), %s5807_s18, 128  }
 0x7b2   : > { %6418 = vsyncadd (%p6106_p5), %s5807_s18, 4294967168  ;;  %s33_s26 = sadd.s32 1, %s12815_s20   ;;  %s12818_s0 = sld [smem:[#allocation9_spill]] }
 0x7b3   : > { %p30_p6 = scmp.ge.s32.totalorder %s33_s26, 4   ;;  %s12819_s23 = sld [smem:[#allocation14_spill]] }
 0x7b4   : > { %s12820_s24 = sld [smem:[#allocation10_spill]]  ;;  %s12822_s21 = smov %s6425_s22 }
 0x7b5   : > { %s12821_s25 = sld [smem:[#allocation12_spill]]  ;;  %32 = sbr.rel (!%p30_p6) target bundleno = 10 (0xa), region = 132 }
 0x7b8   : > { %s12823_s22 = smov %s12818_s0 }
 0x7ba   :  { %5812 = vsyncpa [#allocation3], 1 }
 0x7bb   :  { %5814 = vsyncpa [#allocation3 + $0x1], 1 }
 0x7bc   :  { %5815 = vsyncpa [#allocation5], 1 }
 0x7bd   :  { %5817 = vsyncpa [#allocation5 + $0x1], 1 }

</bundles_post_ra>
